<compile_context>
chip_gen: v6e
topology: v6e:2x2x1
jax: 0.10.0
libtpu: 0.0.40
codegen_flags: <defaults>
</compile_context>

<pallas_src>
import functools

import jax
import jax.numpy as jnp
from jax.experimental import pallas as pl
from jax.experimental.pallas import tpu as pltpu

C = 32            # channel count fixed by the module
PACK = 4          # batch images packed onto the 128-lane axis
CP = PACK * C     # 128 lanes


def _resblock_kernel(x_ref, w1_ref, b1_ref, w2_ref, b2_ref, s_ref, out_ref):
    # x_ref  : (1, M, CP)   packed activations (compute dtype)
    # w*_ref : (9, CP, CP)  block-diagonal per-tap weights
    # b*_ref : (1, CP)      packed biases (f32)
    # s_ref  : (9, M, M)    0/1 spatial shift matrices
    # out_ref: (1, M, CP)   f32 output
    m, cp = x_ref.shape[1], x_ref.shape[2]
    cdt = x_ref.dtype
    x = x_ref[0]                                           # (M, CP)

    # ---- conv20 + bias + ReLU: sum_k S_k @ (x @ W1_k) --------------------
    acc1 = jnp.zeros((m, cp), jnp.float32)
    for k in range(9):                                     # static unroll
        t = jnp.dot(x, w1_ref[k],
                    preferred_element_type=jnp.float32).astype(cdt)
        acc1 = acc1 + jnp.dot(s_ref[k], t,
                              preferred_element_type=jnp.float32)
    rs1 = jnp.maximum(acc1 + b1_ref[...], 0.0).astype(cdt)

    # ---- conv21 + bias ----------------------------------------------------
    acc2 = jnp.zeros((m, cp), jnp.float32)
    for k in range(9):
        t = jnp.dot(rs1, w2_ref[k],
                    preferred_element_type=jnp.float32).astype(cdt)
        acc2 = acc2 + jnp.dot(s_ref[k], t,
                              preferred_element_type=jnp.float32)

    # ---- residual add ------------------------------------------------------
    out = x.astype(jnp.float32) + acc2 + b2_ref[...]
    out_ref[0] = out.astype(out_ref.dtype)


@functools.partial(jax.jit, static_argnames=("compute_dtype",))
def resblock_pallas(x_nchw, w1, b1, w2, b2, compute_dtype=jnp.float32):
    """x_nchw: (N, 32, H, W); w*: (32, 32, 3, 3) OIHW; b*: (32,)."""
    N, cin, H, W = x_nchw.shape
    assert cin == C
    M = H * W
    Np = ((N + PACK - 1) // PACK) * PACK        # pad batch to a multiple of 4
    G = Np // PACK

    # ---- pack 4 images onto the 128-lane channel axis ----------------------
    xb = jnp.pad(x_nchw.astype(jnp.float32),
                 ((0, Np - N), (0, 0), (0, 0), (0, 0)))
    x_nhwc = jnp.transpose(xb, (0, 2, 3, 1))                       # (Np,H,W,C)
    xg = x_nhwc.reshape(G, PACK, H, W, C).transpose(0, 2, 3, 1, 4)  # (G,H,W,P,C)
    x_flat = xg.reshape(G, M, CP).astype(compute_dtype)            # lane=p*C+c

    # ---- block-diagonal per-tap weights (9, CP, CP) -------------------------
    eye = jnp.eye(PACK, dtype=jnp.float32)

    def pack_w(w):
        wt = jnp.transpose(w.astype(jnp.float32), (2, 3, 1, 0)).reshape(9, C, C)
        return jnp.einsum("kio,st->ksito", wt, eye).reshape(
            9, CP, CP).astype(compute_dtype)

    w1_p = pack_w(w1)
    w2_p = pack_w(w2)
    b1_p = jnp.tile(b1.astype(jnp.float32), PACK).reshape(1, CP)
    b2_p = jnp.tile(b2.astype(jnp.float32), PACK).reshape(1, CP)

    # ---- 0/1 shift matrices: S[k, m, m'] selects the (dy-1, dx-1) neighbour
    # of flattened pixel m (zero at the borders, matching padding=1) ---------
    yy, xx = jnp.meshgrid(jnp.arange(H), jnp.arange(W), indexing="ij")
    s_list = []
    for dy in range(3):
        for dx in range(3):
            ys = yy + dy - 1
            xs = xx + dx - 1
            valid = ((ys >= 0) & (ys < H) & (xs >= 0) & (xs < W)).reshape(M)
            src = jnp.where(valid, (ys * W + xs).reshape(M), 0)
            s_list.append(jax.nn.one_hot(src, M, dtype=jnp.float32)
                          * valid[:, None].astype(jnp.float32))
    s_mats = jnp.stack(s_list).astype(compute_dtype)               # (9, M, M)

    out_flat = pl.pallas_call(
        _resblock_kernel,
        out_shape=jax.ShapeDtypeStruct((G, M, CP), jnp.float32),
        grid=(G,),
        in_specs=[
            pl.BlockSpec((1, M, CP), lambda g: (g, 0, 0)),
            pl.BlockSpec((9, CP, CP), lambda g: (0, 0, 0)),
            pl.BlockSpec((1, CP), lambda g: (0, 0)),
            pl.BlockSpec((9, CP, CP), lambda g: (0, 0, 0)),
            pl.BlockSpec((1, CP), lambda g: (0, 0)),
            pl.BlockSpec((9, M, M), lambda g: (0, 0, 0)),
        ],
        out_specs=pl.BlockSpec((1, M, CP), lambda g: (g, 0, 0)),
        compiler_params=pltpu.CompilerParams(
            dimension_semantics=("parallel",),
            vmem_limit_bytes=32 * 1024 * 1024),
    )(x_flat, w1_p, b1_p, w2_p, b2_p, s_mats)

    # ---- unpack back to NCHW ------------------------------------------------
    out = out_flat.reshape(G, H, W, PACK, C).transpose(0, 3, 1, 2, 4)
    out = out.reshape(Np, H, W, C)[:N]
    return jnp.transpose(out, (0, 3, 1, 2))


def resblock_ref(x, w1, b1, w2, b2):
    """Pure-JAX reference (NCHW, OIHW) mirroring the PyTorch forward."""
    def conv(inp, w, b):
        y = jax.lax.conv_general_dilated(
            inp, w, window_strides=(1, 1), padding="SAME",
            dimension_numbers=("NCHW", "OIHW", "NCHW"))
        return y + b.reshape(1, C, 1, 1)
    rs1 = jnp.maximum(conv(x, w1, b1), 0.0)
    rs1 = conv(rs1, w2, b2)
    return x + rs1


if __name__ == "__main__":
    key = jax.random.PRNGKey(0)
    kx, kw1, kb1, kw2, kb2 = jax.random.split(key, 5)

    N, H, W = 2, 16, 16
    x = jax.random.normal(kx, (N, C, H, W), jnp.float32)
    w1 = jax.random.normal(kw1, (C, C, 3, 3), jnp.float32) * 0.05
    b1 = jax.random.normal(kb1, (C,), jnp.float32) * 0.05
    w2 = jax.random.normal(kw2, (C, C, 3, 3), jnp.float32) * 0.05
    b2 = jax.random.normal(kb2, (C,), jnp.float32) * 0.05

    ref = resblock_ref(x, w1, b1, w2, b2)

    # f32 path: strict accuracy (tolerance allows only summation-order noise).
    out_f32 = jax.block_until_ready(
        resblock_pallas(x, w1, b1, w2, b2, compute_dtype=jnp.float32))
    assert out_f32.shape == (N, C, H, W)
    assert jnp.allclose(out_f32, ref, rtol=1e-3, atol=1e-3), "f32 mismatch"

    # bf16 matmul-operand path (v6e/v7x recommendation): looser tolerance,
    # consistent with bf16 rounding of activations/weights.
    out_bf16 = jax.block_until_ready(
        resblock_pallas(x, w1, b1, w2, b2, compute_dtype=jnp.bfloat16))
    assert jnp.allclose(out_bf16, ref, rtol=1e-1, atol=1e-1), "bf16 mismatch"

    print("KERNEL_OK")
</pallas_src>

<mosaic_0001>
module attributes {stable_mosaic.version = 11 : i64} {
  func.func @_resblock_kernel(%arg0: i32, %arg1: memref<1x256x128xf32, #tpu.memory_space<vmem>>, %arg2: memref<9x128x128xf32, #tpu.memory_space<vmem>>, %arg3: memref<1x128xf32, #tpu.memory_space<vmem>>, %arg4: memref<9x128x128xf32, #tpu.memory_space<vmem>>, %arg5: memref<1x128xf32, #tpu.memory_space<vmem>>, %arg6: memref<9x256x256xf32, #tpu.memory_space<vmem>>, %arg7: memref<1x256x128xf32, #tpu.memory_space<vmem>>) attributes {dimension_semantics = [#tpu.dimension_semantics<parallel>], iteration_bounds = array<i64: 1>, scalar_prefetch = 0 : i64, scratch_operands = 0 : i64, tpu.core_type = #tpu.core_type<tc>, window_params = [{transform_indices = @transform_0, window_bounds = array<i64: 1, 256, 128>}, {pipeline_mode = #tpu.pipeline_mode<synchronous>, transform_indices = @transform_1, window_bounds = array<i64: 9, 128, 128>}, {pipeline_mode = #tpu.pipeline_mode<synchronous>, transform_indices = @transform_2, window_bounds = array<i64: 1, 128>}, {pipeline_mode = #tpu.pipeline_mode<synchronous>, transform_indices = @transform_3, window_bounds = array<i64: 9, 128, 128>}, {pipeline_mode = #tpu.pipeline_mode<synchronous>, transform_indices = @transform_4, window_bounds = array<i64: 1, 128>}, {pipeline_mode = #tpu.pipeline_mode<synchronous>, transform_indices = @transform_5, window_bounds = array<i64: 9, 256, 256>}, {transform_indices = @transform_6, window_bounds = array<i64: 1, 256, 128>}]} {
    %c0 = arith.constant 0 : index
    %c0_0 = arith.constant 0 : index
    %c0_1 = arith.constant 0 : index
    %0 = vector.load %arg1[%c0, %c0_0, %c0_1] : memref<1x256x128xf32, #tpu.memory_space<vmem>>, vector<1x256x128xf32>
    %1 = vector.shape_cast %0 : vector<1x256x128xf32> to vector<256x128xf32>
    %cst = arith.constant 0.000000e+00 : f32
    %2 = vector.broadcast %cst : f32 to vector<256x128xf32>
    %c0_2 = arith.constant 0 : index
    %c0_3 = arith.constant 0 : index
    %c0_4 = arith.constant 0 : index
    %3 = vector.load %arg2[%c0_2, %c0_3, %c0_4] : memref<9x128x128xf32, #tpu.memory_space<vmem>>, vector<1x128x128xf32>
    %4 = vector.shape_cast %3 : vector<1x128x128xf32> to vector<128x128xf32>
    %cst_5 = arith.constant dense<0.000000e+00> : vector<256x128xf32>
    %5 = tpu.matmul %1, %4, %cst_5 {dimension_numbers = #tpu.dot_dimension_numbers<[1], [0], [0], [1], [0, 0, 1, 1], [], []>} : vector<256x128xf32>, vector<128x128xf32>, vector<256x128xf32> -> vector<256x128xf32>
    %c0_6 = arith.constant 0 : index
    %c0_7 = arith.constant 0 : index
    %c0_8 = arith.constant 0 : index
    %6 = vector.load %arg6[%c0_6, %c0_7, %c0_8] : memref<9x256x256xf32, #tpu.memory_space<vmem>>, vector<1x256x256xf32>
    %7 = vector.shape_cast %6 : vector<1x256x256xf32> to vector<256x256xf32>
    %cst_9 = arith.constant dense<0.000000e+00> : vector<256x128xf32>
    %8 = tpu.matmul %7, %5, %cst_9 {dimension_numbers = #tpu.dot_dimension_numbers<[1], [0], [0], [1], [0, 0, 1, 1], [], []>} : vector<256x256xf32>, vector<256x128xf32>, vector<256x128xf32> -> vector<256x128xf32>
    %9 = arith.addf %2, %8 : vector<256x128xf32>
    %c1 = arith.constant 1 : index
    %c0_10 = arith.constant 0 : index
    %c0_11 = arith.constant 0 : index
    %10 = vector.load %arg2[%c1, %c0_10, %c0_11] : memref<9x128x128xf32, #tpu.memory_space<vmem>>, vector<1x128x128xf32>
    %11 = vector.shape_cast %10 : vector<1x128x128xf32> to vector<128x128xf32>
    %cst_12 = arith.constant dense<0.000000e+00> : vector<256x128xf32>
    %12 = tpu.matmul %1, %11, %cst_12 {dimension_numbers = #tpu.dot_dimension_numbers<[1], [0], [0], [1], [0, 0, 1, 1], [], []>} : vector<256x128xf32>, vector<128x128xf32>, vector<256x128xf32> -> vector<256x128xf32>
    %c1_13 = arith.constant 1 : index
    %c0_14 = arith.constant 0 : index
    %c0_15 = arith.constant 0 : index
    %13 = vector.load %arg6[%c1_13, %c0_14, %c0_15] : memref<9x256x256xf32, #tpu.memory_space<vmem>>, vector<1x256x256xf32>
    %14 = vector.shape_cast %13 : vector<1x256x256xf32> to vector<256x256xf32>
    %cst_16 = arith.constant dense<0.000000e+00> : vector<256x128xf32>
    %15 = tpu.matmul %14, %12, %cst_16 {dimension_numbers = #tpu.dot_dimension_numbers<[1], [0], [0], [1], [0, 0, 1, 1], [], []>} : vector<256x256xf32>, vector<256x128xf32>, vector<256x128xf32> -> vector<256x128xf32>
    %16 = arith.addf %9, %15 : vector<256x128xf32>
    %c2 = arith.constant 2 : index
    %c0_17 = arith.constant 0 : index
    %c0_18 = arith.constant 0 : index
    %17 = vector.load %arg2[%c2, %c0_17, %c0_18] : memref<9x128x128xf32, #tpu.memory_space<vmem>>, vector<1x128x128xf32>
    %18 = vector.shape_cast %17 : vector<1x128x128xf32> to vector<128x128xf32>
    %cst_19 = arith.constant dense<0.000000e+00> : vector<256x128xf32>
    %19 = tpu.matmul %1, %18, %cst_19 {dimension_numbers = #tpu.dot_dimension_numbers<[1], [0], [0], [1], [0, 0, 1, 1], [], []>} : vector<256x128xf32>, vector<128x128xf32>, vector<256x128xf32> -> vector<256x128xf32>
    %c2_20 = arith.constant 2 : index
    %c0_21 = arith.constant 0 : index
    %c0_22 = arith.constant 0 : index
    %20 = vector.load %arg6[%c2_20, %c0_21, %c0_22] : memref<9x256x256xf32, #tpu.memory_space<vmem>>, vector<1x256x256xf32>
    %21 = vector.shape_cast %20 : vector<1x256x256xf32> to vector<256x256xf32>
    %cst_23 = arith.constant dense<0.000000e+00> : vector<256x128xf32>
    %22 = tpu.matmul %21, %19, %cst_23 {dimension_numbers = #tpu.dot_dimension_numbers<[1], [0], [0], [1], [0, 0, 1, 1], [], []>} : vector<256x256xf32>, vector<256x128xf32>, vector<256x128xf32> -> vector<256x128xf32>
    %23 = arith.addf %16, %22 : vector<256x128xf32>
    %c3 = arith.constant 3 : index
    %c0_24 = arith.constant 0 : index
    %c0_25 = arith.constant 0 : index
    %24 = vector.load %arg2[%c3, %c0_24, %c0_25] : memref<9x128x128xf32, #tpu.memory_space<vmem>>, vector<1x128x128xf32>
    %25 = vector.shape_cast %24 : vector<1x128x128xf32> to vector<128x128xf32>
    %cst_26 = arith.constant dense<0.000000e+00> : vector<256x128xf32>
    %26 = tpu.matmul %1, %25, %cst_26 {dimension_numbers = #tpu.dot_dimension_numbers<[1], [0], [0], [1], [0, 0, 1, 1], [], []>} : vector<256x128xf32>, vector<128x128xf32>, vector<256x128xf32> -> vector<256x128xf32>
    %c3_27 = arith.constant 3 : index
    %c0_28 = arith.constant 0 : index
    %c0_29 = arith.constant 0 : index
    %27 = vector.load %arg6[%c3_27, %c0_28, %c0_29] : memref<9x256x256xf32, #tpu.memory_space<vmem>>, vector<1x256x256xf32>
    %28 = vector.shape_cast %27 : vector<1x256x256xf32> to vector<256x256xf32>
    %cst_30 = arith.constant dense<0.000000e+00> : vector<256x128xf32>
    %29 = tpu.matmul %28, %26, %cst_30 {dimension_numbers = #tpu.dot_dimension_numbers<[1], [0], [0], [1], [0, 0, 1, 1], [], []>} : vector<256x256xf32>, vector<256x128xf32>, vector<256x128xf32> -> vector<256x128xf32>
    %30 = arith.addf %23, %29 : vector<256x128xf32>
    %c4 = arith.constant 4 : index
    %c0_31 = arith.constant 0 : index
    %c0_32 = arith.constant 0 : index
    %31 = vector.load %arg2[%c4, %c0_31, %c0_32] : memref<9x128x128xf32, #tpu.memory_space<vmem>>, vector<1x128x128xf32>
    %32 = vector.shape_cast %31 : vector<1x128x128xf32> to vector<128x128xf32>
    %cst_33 = arith.constant dense<0.000000e+00> : vector<256x128xf32>
    %33 = tpu.matmul %1, %32, %cst_33 {dimension_numbers = #tpu.dot_dimension_numbers<[1], [0], [0], [1], [0, 0, 1, 1], [], []>} : vector<256x128xf32>, vector<128x128xf32>, vector<256x128xf32> -> vector<256x128xf32>
    %c4_34 = arith.constant 4 : index
    %c0_35 = arith.constant 0 : index
    %c0_36 = arith.constant 0 : index
    %34 = vector.load %arg6[%c4_34, %c0_35, %c0_36] : memref<9x256x256xf32, #tpu.memory_space<vmem>>, vector<1x256x256xf32>
    %35 = vector.shape_cast %34 : vector<1x256x256xf32> to vector<256x256xf32>
    %cst_37 = arith.constant dense<0.000000e+00> : vector<256x128xf32>
    %36 = tpu.matmul %35, %33, %cst_37 {dimension_numbers = #tpu.dot_dimension_numbers<[1], [0], [0], [1], [0, 0, 1, 1], [], []>} : vector<256x256xf32>, vector<256x128xf32>, vector<256x128xf32> -> vector<256x128xf32>
    %37 = arith.addf %30, %36 : vector<256x128xf32>
    %c5 = arith.constant 5 : index
    %c0_38 = arith.constant 0 : index
    %c0_39 = arith.constant 0 : index
    %38 = vector.load %arg2[%c5, %c0_38, %c0_39] : memref<9x128x128xf32, #tpu.memory_space<vmem>>, vector<1x128x128xf32>
    %39 = vector.shape_cast %38 : vector<1x128x128xf32> to vector<128x128xf32>
    %cst_40 = arith.constant dense<0.000000e+00> : vector<256x128xf32>
    %40 = tpu.matmul %1, %39, %cst_40 {dimension_numbers = #tpu.dot_dimension_numbers<[1], [0], [0], [1], [0, 0, 1, 1], [], []>} : vector<256x128xf32>, vector<128x128xf32>, vector<256x128xf32> -> vector<256x128xf32>
    %c5_41 = arith.constant 5 : index
    %c0_42 = arith.constant 0 : index
    %c0_43 = arith.constant 0 : index
    %41 = vector.load %arg6[%c5_41, %c0_42, %c0_43] : memref<9x256x256xf32, #tpu.memory_space<vmem>>, vector<1x256x256xf32>
    %42 = vector.shape_cast %41 : vector<1x256x256xf32> to vector<256x256xf32>
    %cst_44 = arith.constant dense<0.000000e+00> : vector<256x128xf32>
    %43 = tpu.matmul %42, %40, %cst_44 {dimension_numbers = #tpu.dot_dimension_numbers<[1], [0], [0], [1], [0, 0, 1, 1], [], []>} : vector<256x256xf32>, vector<256x128xf32>, vector<256x128xf32> -> vector<256x128xf32>
    %44 = arith.addf %37, %43 : vector<256x128xf32>
    %c6 = arith.constant 6 : index
    %c0_45 = arith.constant 0 : index
    %c0_46 = arith.constant 0 : index
    %45 = vector.load %arg2[%c6, %c0_45, %c0_46] : memref<9x128x128xf32, #tpu.memory_space<vmem>>, vector<1x128x128xf32>
    %46 = vector.shape_cast %45 : vector<1x128x128xf32> to vector<128x128xf32>
    %cst_47 = arith.constant dense<0.000000e+00> : vector<256x128xf32>
    %47 = tpu.matmul %1, %46, %cst_47 {dimension_numbers = #tpu.dot_dimension_numbers<[1], [0], [0], [1], [0, 0, 1, 1], [], []>} : vector<256x128xf32>, vector<128x128xf32>, vector<256x128xf32> -> vector<256x128xf32>
    %c6_48 = arith.constant 6 : index
    %c0_49 = arith.constant 0 : index
    %c0_50 = arith.constant 0 : index
    %48 = vector.load %arg6[%c6_48, %c0_49, %c0_50] : memref<9x256x256xf32, #tpu.memory_space<vmem>>, vector<1x256x256xf32>
    %49 = vector.shape_cast %48 : vector<1x256x256xf32> to vector<256x256xf32>
    %cst_51 = arith.constant dense<0.000000e+00> : vector<256x128xf32>
    %50 = tpu.matmul %49, %47, %cst_51 {dimension_numbers = #tpu.dot_dimension_numbers<[1], [0], [0], [1], [0, 0, 1, 1], [], []>} : vector<256x256xf32>, vector<256x128xf32>, vector<256x128xf32> -> vector<256x128xf32>
    %51 = arith.addf %44, %50 : vector<256x128xf32>
    %c7 = arith.constant 7 : index
    %c0_52 = arith.constant 0 : index
    %c0_53 = arith.constant 0 : index
    %52 = vector.load %arg2[%c7, %c0_52, %c0_53] : memref<9x128x128xf32, #tpu.memory_space<vmem>>, vector<1x128x128xf32>
    %53 = vector.shape_cast %52 : vector<1x128x128xf32> to vector<128x128xf32>
    %cst_54 = arith.constant dense<0.000000e+00> : vector<256x128xf32>
    %54 = tpu.matmul %1, %53, %cst_54 {dimension_numbers = #tpu.dot_dimension_numbers<[1], [0], [0], [1], [0, 0, 1, 1], [], []>} : vector<256x128xf32>, vector<128x128xf32>, vector<256x128xf32> -> vector<256x128xf32>
    %c7_55 = arith.constant 7 : index
    %c0_56 = arith.constant 0 : index
    %c0_57 = arith.constant 0 : index
    %55 = vector.load %arg6[%c7_55, %c0_56, %c0_57] : memref<9x256x256xf32, #tpu.memory_space<vmem>>, vector<1x256x256xf32>
    %56 = vector.shape_cast %55 : vector<1x256x256xf32> to vector<256x256xf32>
    %cst_58 = arith.constant dense<0.000000e+00> : vector<256x128xf32>
    %57 = tpu.matmul %56, %54, %cst_58 {dimension_numbers = #tpu.dot_dimension_numbers<[1], [0], [0], [1], [0, 0, 1, 1], [], []>} : vector<256x256xf32>, vector<256x128xf32>, vector<256x128xf32> -> vector<256x128xf32>
    %58 = arith.addf %51, %57 : vector<256x128xf32>
    %c8 = arith.constant 8 : index
    %c0_59 = arith.constant 0 : index
    %c0_60 = arith.constant 0 : index
    %59 = vector.load %arg2[%c8, %c0_59, %c0_60] : memref<9x128x128xf32, #tpu.memory_space<vmem>>, vector<1x128x128xf32>
    %60 = vector.shape_cast %59 : vector<1x128x128xf32> to vector<128x128xf32>
    %cst_61 = arith.constant dense<0.000000e+00> : vector<256x128xf32>
    %61 = tpu.matmul %1, %60, %cst_61 {dimension_numbers = #tpu.dot_dimension_numbers<[1], [0], [0], [1], [0, 0, 1, 1], [], []>} : vector<256x128xf32>, vector<128x128xf32>, vector<256x128xf32> -> vector<256x128xf32>
    %c8_62 = arith.constant 8 : index
    %c0_63 = arith.constant 0 : index
    %c0_64 = arith.constant 0 : index
    %62 = vector.load %arg6[%c8_62, %c0_63, %c0_64] : memref<9x256x256xf32, #tpu.memory_space<vmem>>, vector<1x256x256xf32>
    %63 = vector.shape_cast %62 : vector<1x256x256xf32> to vector<256x256xf32>
    %cst_65 = arith.constant dense<0.000000e+00> : vector<256x128xf32>
    %64 = tpu.matmul %63, %61, %cst_65 {dimension_numbers = #tpu.dot_dimension_numbers<[1], [0], [0], [1], [0, 0, 1, 1], [], []>} : vector<256x256xf32>, vector<256x128xf32>, vector<256x128xf32> -> vector<256x128xf32>
    %65 = arith.addf %58, %64 : vector<256x128xf32>
    %c0_66 = arith.constant 0 : index
    %c0_67 = arith.constant 0 : index
    %66 = vector.load %arg3[%c0_66, %c0_67] : memref<1x128xf32, #tpu.memory_space<vmem>>, vector<1x128xf32>
    %67 = vector.broadcast %66 : vector<1x128xf32> to vector<256x128xf32>
    %68 = arith.addf %65, %67 : vector<256x128xf32>
    %cst_68 = arith.constant 0.000000e+00 : f32
    %69 = vector.broadcast %cst_68 : f32 to vector<256x128xf32>
    %70 = arith.maximumf %68, %69 : vector<256x128xf32>
    %cst_69 = arith.constant 0.000000e+00 : f32
    %71 = vector.broadcast %cst_69 : f32 to vector<256x128xf32>
    %c0_70 = arith.constant 0 : index
    %c0_71 = arith.constant 0 : index
    %c0_72 = arith.constant 0 : index
    %72 = vector.load %arg4[%c0_70, %c0_71, %c0_72] : memref<9x128x128xf32, #tpu.memory_space<vmem>>, vector<1x128x128xf32>
    %73 = vector.shape_cast %72 : vector<1x128x128xf32> to vector<128x128xf32>
    %cst_73 = arith.constant dense<0.000000e+00> : vector<256x128xf32>
    %74 = tpu.matmul %70, %73, %cst_73 {dimension_numbers = #tpu.dot_dimension_numbers<[1], [0], [0], [1], [0, 0, 1, 1], [], []>} : vector<256x128xf32>, vector<128x128xf32>, vector<256x128xf32> -> vector<256x128xf32>
    %c0_74 = arith.constant 0 : index
    %c0_75 = arith.constant 0 : index
    %c0_76 = arith.constant 0 : index
    %75 = vector.load %arg6[%c0_74, %c0_75, %c0_76] : memref<9x256x256xf32, #tpu.memory_space<vmem>>, vector<1x256x256xf32>
    %76 = vector.shape_cast %75 : vector<1x256x256xf32> to vector<256x256xf32>
    %cst_77 = arith.constant dense<0.000000e+00> : vector<256x128xf32>
    %77 = tpu.matmul %76, %74, %cst_77 {dimension_numbers = #tpu.dot_dimension_numbers<[1], [0], [0], [1], [0, 0, 1, 1], [], []>} : vector<256x256xf32>, vector<256x128xf32>, vector<256x128xf32> -> vector<256x128xf32>
    %78 = arith.addf %71, %77 : vector<256x128xf32>
    %c1_78 = arith.constant 1 : index
    %c0_79 = arith.constant 0 : index
    %c0_80 = arith.constant 0 : index
    %79 = vector.load %arg4[%c1_78, %c0_79, %c0_80] : memref<9x128x128xf32, #tpu.memory_space<vmem>>, vector<1x128x128xf32>
    %80 = vector.shape_cast %79 : vector<1x128x128xf32> to vector<128x128xf32>
    %cst_81 = arith.constant dense<0.000000e+00> : vector<256x128xf32>
    %81 = tpu.matmul %70, %80, %cst_81 {dimension_numbers = #tpu.dot_dimension_numbers<[1], [0], [0], [1], [0, 0, 1, 1], [], []>} : vector<256x128xf32>, vector<128x128xf32>, vector<256x128xf32> -> vector<256x128xf32>
    %c1_82 = arith.constant 1 : index
    %c0_83 = arith.constant 0 : index
    %c0_84 = arith.constant 0 : index
    %82 = vector.load %arg6[%c1_82, %c0_83, %c0_84] : memref<9x256x256xf32, #tpu.memory_space<vmem>>, vector<1x256x256xf32>
    %83 = vector.shape_cast %82 : vector<1x256x256xf32> to vector<256x256xf32>
    %cst_85 = arith.constant dense<0.000000e+00> : vector<256x128xf32>
    %84 = tpu.matmul %83, %81, %cst_85 {dimension_numbers = #tpu.dot_dimension_numbers<[1], [0], [0], [1], [0, 0, 1, 1], [], []>} : vector<256x256xf32>, vector<256x128xf32>, vector<256x128xf32> -> vector<256x128xf32>
    %85 = arith.addf %78, %84 : vector<256x128xf32>
    %c2_86 = arith.constant 2 : index
    %c0_87 = arith.constant 0 : index
    %c0_88 = arith.constant 0 : index
    %86 = vector.load %arg4[%c2_86, %c0_87, %c0_88] : memref<9x128x128xf32, #tpu.memory_space<vmem>>, vector<1x128x128xf32>
    %87 = vector.shape_cast %86 : vector<1x128x128xf32> to vector<128x128xf32>
    %cst_89 = arith.constant dense<0.000000e+00> : vector<256x128xf32>
    %88 = tpu.matmul %70, %87, %cst_89 {dimension_numbers = #tpu.dot_dimension_numbers<[1], [0], [0], [1], [0, 0, 1, 1], [], []>} : vector<256x128xf32>, vector<128x128xf32>, vector<256x128xf32> -> vector<256x128xf32>
    %c2_90 = arith.constant 2 : index
    %c0_91 = arith.constant 0 : index
    %c0_92 = arith.constant 0 : index
    %89 = vector.load %arg6[%c2_90, %c0_91, %c0_92] : memref<9x256x256xf32, #tpu.memory_space<vmem>>, vector<1x256x256xf32>
    %90 = vector.shape_cast %89 : vector<1x256x256xf32> to vector<256x256xf32>
    %cst_93 = arith.constant dense<0.000000e+00> : vector<256x128xf32>
    %91 = tpu.matmul %90, %88, %cst_93 {dimension_numbers = #tpu.dot_dimension_numbers<[1], [0], [0], [1], [0, 0, 1, 1], [], []>} : vector<256x256xf32>, vector<256x128xf32>, vector<256x128xf32> -> vector<256x128xf32>
    %92 = arith.addf %85, %91 : vector<256x128xf32>
    %c3_94 = arith.constant 3 : index
    %c0_95 = arith.constant 0 : index
    %c0_96 = arith.constant 0 : index
    %93 = vector.load %arg4[%c3_94, %c0_95, %c0_96] : memref<9x128x128xf32, #tpu.memory_space<vmem>>, vector<1x128x128xf32>
    %94 = vector.shape_cast %93 : vector<1x128x128xf32> to vector<128x128xf32>
    %cst_97 = arith.constant dense<0.000000e+00> : vector<256x128xf32>
    %95 = tpu.matmul %70, %94, %cst_97 {dimension_numbers = #tpu.dot_dimension_numbers<[1], [0], [0], [1], [0, 0, 1, 1], [], []>} : vector<256x128xf32>, vector<128x128xf32>, vector<256x128xf32> -> vector<256x128xf32>
    %c3_98 = arith.constant 3 : index
    %c0_99 = arith.constant 0 : index
    %c0_100 = arith.constant 0 : index
    %96 = vector.load %arg6[%c3_98, %c0_99, %c0_100] : memref<9x256x256xf32, #tpu.memory_space<vmem>>, vector<1x256x256xf32>
    %97 = vector.shape_cast %96 : vector<1x256x256xf32> to vector<256x256xf32>
    %cst_101 = arith.constant dense<0.000000e+00> : vector<256x128xf32>
    %98 = tpu.matmul %97, %95, %cst_101 {dimension_numbers = #tpu.dot_dimension_numbers<[1], [0], [0], [1], [0, 0, 1, 1], [], []>} : vector<256x256xf32>, vector<256x128xf32>, vector<256x128xf32> -> vector<256x128xf32>
    %99 = arith.addf %92, %98 : vector<256x128xf32>
    %c4_102 = arith.constant 4 : index
    %c0_103 = arith.constant 0 : index
    %c0_104 = arith.constant 0 : index
    %100 = vector.load %arg4[%c4_102, %c0_103, %c0_104] : memref<9x128x128xf32, #tpu.memory_space<vmem>>, vector<1x128x128xf32>
    %101 = vector.shape_cast %100 : vector<1x128x128xf32> to vector<128x128xf32>
    %cst_105 = arith.constant dense<0.000000e+00> : vector<256x128xf32>
    %102 = tpu.matmul %70, %101, %cst_105 {dimension_numbers = #tpu.dot_dimension_numbers<[1], [0], [0], [1], [0, 0, 1, 1], [], []>} : vector<256x128xf32>, vector<128x128xf32>, vector<256x128xf32> -> vector<256x128xf32>
    %c4_106 = arith.constant 4 : index
    %c0_107 = arith.constant 0 : index
    %c0_108 = arith.constant 0 : index
    %103 = vector.load %arg6[%c4_106, %c0_107, %c0_108] : memref<9x256x256xf32, #tpu.memory_space<vmem>>, vector<1x256x256xf32>
    %104 = vector.shape_cast %103 : vector<1x256x256xf32> to vector<256x256xf32>
    %cst_109 = arith.constant dense<0.000000e+00> : vector<256x128xf32>
    %105 = tpu.matmul %104, %102, %cst_109 {dimension_numbers = #tpu.dot_dimension_numbers<[1], [0], [0], [1], [0, 0, 1, 1], [], []>} : vector<256x256xf32>, vector<256x128xf32>, vector<256x128xf32> -> vector<256x128xf32>
    %106 = arith.addf %99, %105 : vector<256x128xf32>
    %c5_110 = arith.constant 5 : index
    %c0_111 = arith.constant 0 : index
    %c0_112 = arith.constant 0 : index
    %107 = vector.load %arg4[%c5_110, %c0_111, %c0_112] : memref<9x128x128xf32, #tpu.memory_space<vmem>>, vector<1x128x128xf32>
    %108 = vector.shape_cast %107 : vector<1x128x128xf32> to vector<128x128xf32>
    %cst_113 = arith.constant dense<0.000000e+00> : vector<256x128xf32>
    %109 = tpu.matmul %70, %108, %cst_113 {dimension_numbers = #tpu.dot_dimension_numbers<[1], [0], [0], [1], [0, 0, 1, 1], [], []>} : vector<256x128xf32>, vector<128x128xf32>, vector<256x128xf32> -> vector<256x128xf32>
    %c5_114 = arith.constant 5 : index
    %c0_115 = arith.constant 0 : index
    %c0_116 = arith.constant 0 : index
    %110 = vector.load %arg6[%c5_114, %c0_115, %c0_116] : memref<9x256x256xf32, #tpu.memory_space<vmem>>, vector<1x256x256xf32>
    %111 = vector.shape_cast %110 : vector<1x256x256xf32> to vector<256x256xf32>
    %cst_117 = arith.constant dense<0.000000e+00> : vector<256x128xf32>
    %112 = tpu.matmul %111, %109, %cst_117 {dimension_numbers = #tpu.dot_dimension_numbers<[1], [0], [0], [1], [0, 0, 1, 1], [], []>} : vector<256x256xf32>, vector<256x128xf32>, vector<256x128xf32> -> vector<256x128xf32>
    %113 = arith.addf %106, %112 : vector<256x128xf32>
    %c6_118 = arith.constant 6 : index
    %c0_119 = arith.constant 0 : index
    %c0_120 = arith.constant 0 : index
    %114 = vector.load %arg4[%c6_118, %c0_119, %c0_120] : memref<9x128x128xf32, #tpu.memory_space<vmem>>, vector<1x128x128xf32>
    %115 = vector.shape_cast %114 : vector<1x128x128xf32> to vector<128x128xf32>
    %cst_121 = arith.constant dense<0.000000e+00> : vector<256x128xf32>
    %116 = tpu.matmul %70, %115, %cst_121 {dimension_numbers = #tpu.dot_dimension_numbers<[1], [0], [0], [1], [0, 0, 1, 1], [], []>} : vector<256x128xf32>, vector<128x128xf32>, vector<256x128xf32> -> vector<256x128xf32>
    %c6_122 = arith.constant 6 : index
    %c0_123 = arith.constant 0 : index
    %c0_124 = arith.constant 0 : index
    %117 = vector.load %arg6[%c6_122, %c0_123, %c0_124] : memref<9x256x256xf32, #tpu.memory_space<vmem>>, vector<1x256x256xf32>
    %118 = vector.shape_cast %117 : vector<1x256x256xf32> to vector<256x256xf32>
    %cst_125 = arith.constant dense<0.000000e+00> : vector<256x128xf32>
    %119 = tpu.matmul %118, %116, %cst_125 {dimension_numbers = #tpu.dot_dimension_numbers<[1], [0], [0], [1], [0, 0, 1, 1], [], []>} : vector<256x256xf32>, vector<256x128xf32>, vector<256x128xf32> -> vector<256x128xf32>
    %120 = arith.addf %113, %119 : vector<256x128xf32>
    %c7_126 = arith.constant 7 : index
    %c0_127 = arith.constant 0 : index
    %c0_128 = arith.constant 0 : index
    %121 = vector.load %arg4[%c7_126, %c0_127, %c0_128] : memref<9x128x128xf32, #tpu.memory_space<vmem>>, vector<1x128x128xf32>
    %122 = vector.shape_cast %121 : vector<1x128x128xf32> to vector<128x128xf32>
    %cst_129 = arith.constant dense<0.000000e+00> : vector<256x128xf32>
    %123 = tpu.matmul %70, %122, %cst_129 {dimension_numbers = #tpu.dot_dimension_numbers<[1], [0], [0], [1], [0, 0, 1, 1], [], []>} : vector<256x128xf32>, vector<128x128xf32>, vector<256x128xf32> -> vector<256x128xf32>
    %c7_130 = arith.constant 7 : index
    %c0_131 = arith.constant 0 : index
    %c0_132 = arith.constant 0 : index
    %124 = vector.load %arg6[%c7_130, %c0_131, %c0_132] : memref<9x256x256xf32, #tpu.memory_space<vmem>>, vector<1x256x256xf32>
    %125 = vector.shape_cast %124 : vector<1x256x256xf32> to vector<256x256xf32>
    %cst_133 = arith.constant dense<0.000000e+00> : vector<256x128xf32>
    %126 = tpu.matmul %125, %123, %cst_133 {dimension_numbers = #tpu.dot_dimension_numbers<[1], [0], [0], [1], [0, 0, 1, 1], [], []>} : vector<256x256xf32>, vector<256x128xf32>, vector<256x128xf32> -> vector<256x128xf32>
    %127 = arith.addf %120, %126 : vector<256x128xf32>
    %c8_134 = arith.constant 8 : index
    %c0_135 = arith.constant 0 : index
    %c0_136 = arith.constant 0 : index
    %128 = vector.load %arg4[%c8_134, %c0_135, %c0_136] : memref<9x128x128xf32, #tpu.memory_space<vmem>>, vector<1x128x128xf32>
    %129 = vector.shape_cast %128 : vector<1x128x128xf32> to vector<128x128xf32>
    %cst_137 = arith.constant dense<0.000000e+00> : vector<256x128xf32>
    %130 = tpu.matmul %70, %129, %cst_137 {dimension_numbers = #tpu.dot_dimension_numbers<[1], [0], [0], [1], [0, 0, 1, 1], [], []>} : vector<256x128xf32>, vector<128x128xf32>, vector<256x128xf32> -> vector<256x128xf32>
    %c8_138 = arith.constant 8 : index
    %c0_139 = arith.constant 0 : index
    %c0_140 = arith.constant 0 : index
    %131 = vector.load %arg6[%c8_138, %c0_139, %c0_140] : memref<9x256x256xf32, #tpu.memory_space<vmem>>, vector<1x256x256xf32>
    %132 = vector.shape_cast %131 : vector<1x256x256xf32> to vector<256x256xf32>
    %cst_141 = arith.constant dense<0.000000e+00> : vector<256x128xf32>
    %133 = tpu.matmul %132, %130, %cst_141 {dimension_numbers = #tpu.dot_dimension_numbers<[1], [0], [0], [1], [0, 0, 1, 1], [], []>} : vector<256x256xf32>, vector<256x128xf32>, vector<256x128xf32> -> vector<256x128xf32>
    %134 = arith.addf %127, %133 : vector<256x128xf32>
    %135 = arith.addf %1, %134 : vector<256x128xf32>
    %c0_142 = arith.constant 0 : index
    %c0_143 = arith.constant 0 : index
    %136 = vector.load %arg5[%c0_142, %c0_143] : memref<1x128xf32, #tpu.memory_space<vmem>>, vector<1x128xf32>
    %137 = vector.broadcast %136 : vector<1x128xf32> to vector<256x128xf32>
    %138 = arith.addf %135, %137 : vector<256x128xf32>
    %c0_144 = arith.constant 0 : index
    %c0_145 = arith.constant 0 : index
    %c0_146 = arith.constant 0 : index
    %139 = vector.load %arg7[%c0_144, %c0_145, %c0_146] : memref<1x256x128xf32, #tpu.memory_space<vmem>>, vector<1x256x128xf32>
    %140 = vector.shape_cast %139 : vector<1x256x128xf32> to vector<256x128xf32>
    %141 = vector.shape_cast %138 : vector<256x128xf32> to vector<1x256x128xf32>
    tpu.vector_store %arg7[%c0_144, %c0_145, %c0_146], %141 {strides = array<i32>} : memref<1x256x128xf32, #tpu.memory_space<vmem>>, vector<1x256x128xf32>,
    return
  }
  func.func @transform_0(%arg0: i32) -> (i32, i32, i32) {
    %c0_i32 = arith.constant 0 : i32
    %c0_i32_0 = arith.constant 0 : i32
    %c0_i32_1 = arith.constant 0 : i32
    return %arg0, %c0_i32, %c0_i32_0 : i32, i32, i32
  }
  func.func @transform_1(%arg0: i32) -> (i32, i32, i32) {
    %c0_i32 = arith.constant 0 : i32
    %c0_i32_0 = arith.constant 0 : i32
    %c0_i32_1 = arith.constant 0 : i32
    %c0_i32_2 = arith.constant 0 : i32
    return %c0_i32, %c0_i32_0, %c0_i32_1 : i32, i32, i32
  }
  func.func @transform_2(%arg0: i32) -> (i32, i32) {
    %c0_i32 = arith.constant 0 : i32
    %c0_i32_0 = arith.constant 0 : i32
    %c0_i32_1 = arith.constant 0 : i32
    return %c0_i32, %c0_i32_0 : i32, i32
  }
  func.func @transform_3(%arg0: i32) -> (i32, i32, i32) {
    %c0_i32 = arith.constant 0 : i32
    %c0_i32_0 = arith.constant 0 : i32
    %c0_i32_1 = arith.constant 0 : i32
    %c0_i32_2 = arith.constant 0 : i32
    return %c0_i32, %c0_i32_0, %c0_i32_1 : i32, i32, i32
  }
  func.func @transform_4(%arg0: i32) -> (i32, i32) {
    %c0_i32 = arith.constant 0 : i32
    %c0_i32_0 = arith.constant 0 : i32
    %c0_i32_1 = arith.constant 0 : i32
    return %c0_i32, %c0_i32_0 : i32, i32
  }
  func.func @transform_5(%arg0: i32) -> (i32, i32, i32) {
    %c0_i32 = arith.constant 0 : i32
    %c0_i32_0 = arith.constant 0 : i32
    %c0_i32_1 = arith.constant 0 : i32
    %c0_i32_2 = arith.constant 0 : i32
    return %c0_i32, %c0_i32_0, %c0_i32_1 : i32, i32, i32
  }
  func.func @transform_6(%arg0: i32) -> (i32, i32, i32) {
    %c0_i32 = arith.constant 0 : i32
    %c0_i32_0 = arith.constant 0 : i32
    %c0_i32_1 = arith.constant 0 : i32
    return %arg0, %c0_i32, %c0_i32_0 : i32, i32, i32
  }
}

</mosaic_0001>

<bundles_post_ra>
// kernel: tile.13
= control target key start
LH: loop header
LB: loop body
LE: loop exit
PB: predicated region body
PF: predicated region fallthrough
CT: control target
= control target key end

     0   :  { %s22_s0 = inlined_call_operand.vmem [shape: f32[32], index: 0, kind: input, shape index: {}]   ;;  %s23_s1 = inlined_call_operand.vmem [shape: f32[4,32], index: 1, kind: output, shape index: {}]  }
   0x1   :  { %v4_v0 = vld [vmem:[%s22_s0] ss:$0 sm:$0xff] }
   0x2   :  { %5 = vst [vmem:[%s23_s1] sm:$0xf] %v4_v0 }

// kernel: tile.14
= control target key start
LH: loop header
LB: loop body
LE: loop exit
PB: predicated region body
PF: predicated region fallthrough
CT: control target
= control target key end

     0   :  { %vm8_vm0 = vcmask 261120   ;;  %s40_s8 = smov 32   ;;  %s41_s9 = smov 64   ;;  %vm14_vm1 = vcmask 1048320   ;;  %vm20_vm2 = vcmask 785920   ;;  %vm26_vm3 = vcmask 523520   ;;  %s58_s0 = inlined_call_operand.vmem [shape: f32[4,32], index: 0, kind: input, shape index: {}]   ;;  %s59_s1 = inlined_call_operand.vmem [shape: f32[1,128], index: 1, kind: output, shape index: {}]  }
   0x1   :  { %v5_v0 = vld [vmem:[%s58_s0] sm:$0xf]  ;;  %s39_s0 = smov 96  }
   0x2   :  { %6 = vst [vmem:[#allocation1] sm:$0xf] %v5_v0 }
   0x9   :  { %v11_v1 = vld [vmem:[#allocation1 + $0x3] sm:$0x1]   ;;  %v23_v2 = vld [vmem:[#allocation1 + $0x1] sm:$0x1]   ;;  %v7_v3 = vld [vmem:[#allocation1] sm:$0x1]  }
   0xa   :  { %12 = vrot.lane.b32.xlu0 %v11_v1, %s39_s0  ;;  %24 = vrot.lane.b32.xlu1 %v23_v2, %s40_s8  ;;  %v17_v4 = vld [vmem:[#allocation1 + $0x2] sm:$0x1]   ;;  %9 = vst.msk [vmem:[#allocation0] sm:$0x1] %vm8_vm0, %v7_v3  }
   0xe   :  { %18 = vrot.lane.b32.xlu0 %v17_v4, %s41_s9 }
  0x7c   :  { %v13_v5 = vpop.permute.xlu0 %12   ;;  %v25_v6 = vpop.permute.xlu1 %24  }
  0x7d   :  { %15 = vst.msk [vmem:[#allocation0] sm:$0x1] %vm14_vm1, %v13_v5  }
  0x80   :  { %v19_v7 = vpop.permute.xlu0 %18  }
  0x81   :  { %21 = vst.msk [vmem:[#allocation0] sm:$0x1] %vm20_vm2, %v19_v7  }
  0x82   :  { %27 = vst.msk [vmem:[#allocation0] sm:$0x1] %vm26_vm3, %v25_v6  }
  0x89   :  { %v32_v8 = vld [vmem:[#allocation0] sm:$0x1] }
  0x8a   :  { %35 = vst [vmem:[%s59_s1] sm:$0x1] %v32_v8 }

// kernel: resblock_pallas.1
= control target key start
LH: loop header
LB: loop body
LE: loop exit
PB: predicated region body
PF: predicated region fallthrough
CT: control target
= control target key end

     0   :  { %s22325_s1 = inlined_call_operand.vmem [shape: f32[9,128,128], index: 1, kind: input, shape index: {}]   ;;  %s22326_s0 = inlined_call_operand.vmem [shape: f32[1,256,128], index: 0, kind: input, shape index: {}]   ;;  %s22327_s5 = inlined_call_operand.vmem [shape: f32[9,256,256], index: 5, kind: input, shape index: {}]   ;;  %s22328_s3 = inlined_call_operand.vmem [shape: f32[9,128,128], index: 3, kind: input, shape index: {}]   ;;  %s22329_s2 = inlined_call_operand.vmem [shape: f32[1,128], index: 2, kind: input, shape index: {}]   ;;  %s22330_s4 = inlined_call_operand.vmem [shape: f32[1,128], index: 4, kind: input, shape index: {}]   ;;  %s22331_s6 = inlined_call_operand.vmem [shape: f32[1,256,128], index: 6, kind: output, shape index: {}]  }
   0x1   :  { %v9684_v0 = vld [vmem:[%s22325_s1 + $0xf8] sm:$0xff]  ;;  %v9683_v1 = vld [vmem:[%s22325_s1 + $0xf0] sm:$0xff]  ;;  %v9682_v2 = vld [vmem:[%s22325_s1 + $0xe8] sm:$0xff] }
   0x2   :  { %11383 = vmatprep.subr.mxu1 %v9684_v0  ;;  %v9681_v3 = vld [vmem:[%s22325_s1 + $0xe0] sm:$0xff]  ;;  %v9680_v5 = vld [vmem:[%s22325_s1 + $0xd8] sm:$0xff]  ;;  %v9679_v6 = vld [vmem:[%s22325_s1 + $0xd0] sm:$0xff] }
   0x3   :  { %11384 = vmatpush3.msra.mxu1 %v9684_v0  ;;  %v23_v4 = vld [vmem:[%s22326_s0] sm:$0xff]  ;;  %v9678_v7 = vld [vmem:[%s22325_s1 + $0xc8] sm:$0xff]  ;;  %v70_v8 = vld [vmem:[%s22325_s1 + $0x78] sm:$0xff]  ;;  %v22332_v0 = vmov 0.0  }
   0x4   :  { %11385 = vmatprep.subr.mxu1 %v9683_v1  ;;  %11415 = vmatprep.mubr.f32.mxu1 %v23_v4  ;;  %v69_v9 = vld [vmem:[%s22325_s1 + $0x70] sm:$0xff]  ;;  %v9677_v10 = vld [vmem:[%s22325_s1 + $0xc0] sm:$0xff]  ;;  %v68_v11 = vld [vmem:[%s22325_s1 + $0x68] sm:$0xff] }
   0x5   :  { %11386 = vmatpush3.msra.mxu1 %v9683_v1  ;;  %11335 = vmatprep.mubr.f32.mxu0 %v23_v4  ;;  %v9676_v12 = vld [vmem:[%s22325_s1 + $0xb8] sm:$0xff]  ;;  %v67_v13 = vld [vmem:[%s22325_s1 + $0x60] sm:$0xff]  ;;  %v9675_v14 = vld [vmem:[%s22325_s1 + $0xb0] sm:$0xff] }
   0x6   :  { %11387 = vmatprep.subr.mxu1 %v9682_v2  ;;  %11303 = vmatprep.subr.mxu0 %v70_v8  ;;  %v66_v15 = vld [vmem:[%s22325_s1 + $0x58] sm:$0xff]  ;;  %v9674_v16 = vld [vmem:[%s22325_s1 + $0xa8] sm:$0xff]  ;;  %v65_v17 = vld [vmem:[%s22325_s1 + $0x50] sm:$0xff] }
   0x7   :  { %11388 = vmatpush3.msra.mxu1 %v9682_v2  ;;  %11304 = vmatpush3.msra.mxu0 %v70_v8  ;;  %v9673_v18 = vld [vmem:[%s22325_s1 + $0xa0] sm:$0xff]  ;;  %v64_v19 = vld [vmem:[%s22325_s1 + $0x48] sm:$0xff]  ;;  %v9672_v20 = vld [vmem:[%s22325_s1 + $0x98] sm:$0xff] }
   0x8   :  { %11389 = vmatprep.subr.mxu1 %v9681_v3  ;;  %11305 = vmatprep.subr.mxu0 %v69_v9  ;;  %v63_v21 = vld [vmem:[%s22325_s1 + $0x40] sm:$0xff]  ;;  %v9671_v22 = vld [vmem:[%s22325_s1 + $0x90] sm:$0xff]  ;;  %v62_v23 = vld [vmem:[%s22325_s1 + $0x38] sm:$0xff] }
   0x9   :  { %11390 = vmatpush3.msra.mxu1 %v9681_v3  ;;  %11306 = vmatpush3.msra.mxu0 %v69_v9  ;;  %v9670_v24 = vld [vmem:[%s22325_s1 + $0x88] sm:$0xff]  ;;  %v61_v25 = vld [vmem:[%s22325_s1 + $0x30] sm:$0xff]  ;;  %v9669_v26 = vld [vmem:[%s22325_s1 + $0x80] sm:$0xff] }
   0xa   :  { %11391 = vmatprep.subr.mxu1 %v9680_v5  ;;  %11307 = vmatprep.subr.mxu0 %v68_v11  ;;  %v60_v27 = vld [vmem:[%s22325_s1 + $0x28] sm:$0xff]  ;;  %v25_v29 = vld [vmem:[%s22326_s0 + $0x10] sm:$0xff]  ;;  %v59_v30 = vld [vmem:[%s22325_s1 + $0x20] sm:$0xff] }
   0xb   :  { %11392 = vmatpush3.msra.mxu1 %v9680_v5  ;;  %11308 = vmatpush3.msra.mxu0 %v68_v11  ;;  %v24_v28 = vld [vmem:[%s22326_s0 + $0x8] sm:$0xff]  ;;  %v58_v31 = vld [vmem:[%s22325_s1 + $0x18] sm:$0xff]  ;;  %v27_v33 = vld [vmem:[%s22326_s0 + $0x20] sm:$0xff] }
   0xc   :  { %11393 = vmatprep.subr.mxu1 %v9679_v6  ;;  %11309 = vmatprep.subr.mxu0 %v67_v13  ;;  %v26_v32 = vld [vmem:[%s22326_s0 + $0x18] sm:$0xff]  ;;  %v57_v34 = vld [vmem:[%s22325_s1 + $0x10] sm:$0xff]  ;;  %v56_v35 = vld [vmem:[%s22325_s1 + $0x8] sm:$0xff] }
   0xd   :  { %11394 = vmatpush3.msra.mxu1 %v9679_v6  ;;  %11310 = vmatpush3.msra.mxu0 %v67_v13  ;;  %v28_v36 = vld [vmem:[%s22326_s0 + $0x28] sm:$0xff]  ;;  %v29_v37 = vld [vmem:[%s22326_s0 + $0x30] sm:$0xff]  ;;  %v55_v38 = vld [vmem:[%s22325_s1] sm:$0xff] }
   0xe   :  { %11395 = vmatprep.subr.mxu1 %v9678_v7  ;;  %11311 = vmatprep.subr.mxu0 %v66_v15  ;;  %v30_v39 = vld [vmem:[%s22326_s0 + $0x38] sm:$0xff]  ;;  %v31_v40 = vld [vmem:[%s22326_s0 + $0x40] sm:$0xff]  ;;  %v32_v41 = vld [vmem:[%s22326_s0 + $0x48] sm:$0xff] }
   0xf   :  { %11396 = vmatpush3.msra.mxu1 %v9678_v7  ;;  %11312 = vmatpush3.msra.mxu0 %v66_v15  ;;  %v33_v42 = vld [vmem:[%s22326_s0 + $0x50] sm:$0xff]  ;;  %v34_v43 = vld [vmem:[%s22326_s0 + $0x58] sm:$0xff]  ;;  %v35_v44 = vld [vmem:[%s22326_s0 + $0x60] sm:$0xff] }
  0x10   :  { %11397 = vmatprep.subr.mxu1 %v9677_v10  ;;  %11313 = vmatprep.subr.mxu0 %v65_v17  ;;  %v36_v45 = vld [vmem:[%s22326_s0 + $0x68] sm:$0xff]  ;;  %v37_v46 = vld [vmem:[%s22326_s0 + $0x70] sm:$0xff]  ;;  %v38_v47 = vld [vmem:[%s22326_s0 + $0x78] sm:$0xff] }
  0x11   :  { %11398 = vmatpush3.msra.mxu1 %v9677_v10  ;;  %11314 = vmatpush3.msra.mxu0 %v65_v17  ;;  %v39_v48 = vld [vmem:[%s22326_s0 + $0x80] sm:$0xff]  ;;  %v40_v49 = vld [vmem:[%s22326_s0 + $0x88] sm:$0xff]  ;;  %v41_v50 = vld [vmem:[%s22326_s0 + $0x90] sm:$0xff] }
  0x12   :  { %11399 = vmatprep.subr.mxu1 %v9676_v12  ;;  %11315 = vmatprep.subr.mxu0 %v64_v19  ;;  %v42_v51 = vld [vmem:[%s22326_s0 + $0x98] sm:$0xff]  ;;  %v43_v52 = vld [vmem:[%s22326_s0 + $0xa0] sm:$0xff]  ;;  %v44_v53 = vld [vmem:[%s22326_s0 + $0xa8] sm:$0xff] }
  0x13   :  { %11400 = vmatpush3.msra.mxu1 %v9676_v12  ;;  %11316 = vmatpush3.msra.mxu0 %v64_v19  ;;  %v45_v54 = vld [vmem:[%s22326_s0 + $0xb0] sm:$0xff]  ;;  %v46_v55 = vld [vmem:[%s22326_s0 + $0xb8] sm:$0xff]  ;;  %v47_v56 = vld [vmem:[%s22326_s0 + $0xc0] sm:$0xff] }
  0x14   :  { %11401 = vmatprep.subr.mxu1 %v9675_v14  ;;  %11317 = vmatprep.subr.mxu0 %v63_v21  ;;  %v48_v57 = vld [vmem:[%s22326_s0 + $0xc8] sm:$0xff]  ;;  %v49_v58 = vld [vmem:[%s22326_s0 + $0xd0] sm:$0xff]  ;;  %v50_v59 = vld [vmem:[%s22326_s0 + $0xd8] sm:$0xff] }
  0x15   :  { %11402 = vmatpush3.msra.mxu1 %v9675_v14  ;;  %11318 = vmatpush3.msra.mxu0 %v63_v21  ;;  %v51_v60 = vld [vmem:[%s22326_s0 + $0xe0] sm:$0xff]  ;;  %v52_v61 = vld [vmem:[%s22326_s0 + $0xe8] sm:$0xff]  ;;  %v53_v62 = vld [vmem:[%s22326_s0 + $0xf0] sm:$0xff] }
  0x16   :  { %11403 = vmatprep.subr.mxu1 %v9674_v16  ;;  %11319 = vmatprep.subr.mxu0 %v62_v23  ;;  %v54_v63 = vld [vmem:[%s22326_s0 + $0xf8] sm:$0xff]  ;;  %v9686_v1 = vld [vmem:[%s22327_s5 + $0x208] sm:$0xff] }
  0x17   :  { %11404 = vmatpush3.msra.mxu1 %v9674_v16  ;;  %11320 = vmatpush3.msra.mxu0 %v62_v23  ;;  %v9718_v2 = vld [vmem:[%s22327_s5 + $0x308] sm:$0xff] }
  0x18   :  { %11405 = vmatprep.subr.mxu1 %v9673_v18  ;;  %11321 = vmatprep.subr.mxu0 %v61_v25 }
  0x19   :  { %11406 = vmatpush3.msra.mxu1 %v9673_v18  ;;  %11322 = vmatpush3.msra.mxu0 %v61_v25 }
  0x1a   :  { %11407 = vmatprep.subr.mxu1 %v9672_v20  ;;  %11323 = vmatprep.subr.mxu0 %v60_v27 }
  0x1b   :  { %11408 = vmatpush3.msra.mxu1 %v9672_v20  ;;  %11324 = vmatpush3.msra.mxu0 %v60_v27 }
  0x1c   :  { %11409 = vmatprep.subr.mxu1 %v9671_v22  ;;  %11325 = vmatprep.subr.mxu0 %v59_v30 }
  0x1d   :  { %11410 = vmatpush3.msra.mxu1 %v9671_v22  ;;  %11326 = vmatpush3.msra.mxu0 %v59_v30 }
  0x1e   :  { %11411 = vmatprep.subr.mxu1 %v9670_v24  ;;  %11327 = vmatprep.subr.mxu0 %v58_v31 }
  0x1f   :  { %11412 = vmatpush3.msra.mxu1 %v9670_v24  ;;  %11328 = vmatpush3.msra.mxu0 %v58_v31 }
  0x20   :  { %11413 = vmatprep.subr.mxu1 %v9669_v26  ;;  %11329 = vmatprep.subr.mxu0 %v57_v34 }
  0x21   :  { %11414 = vmatpush3.msra.mxu1 %v9669_v26  ;;  %11330 = vmatpush3.msra.mxu0 %v57_v34 }
  0x22   :  { %11416 = vmatmul.mubr.f32.vlgmr.msra.gmra.mxu1 %v24_v28  ;;  %11331 = vmatprep.subr.mxu0 %v56_v35 }
  0x23   :  { %11418 = vmatprep.mubr.f32.mxu1 %v25_v29  ;;  %11332 = vmatpush3.msra.mxu0 %v56_v35 }
  0x24   :  { %11333 = vmatprep.subr.mxu0 %v55_v38  ;;  %12743 = vmatprep.subr.mxu1 %v22332_v0 }
  0x25   :  { %11334 = vmatpush3.msra.mxu0 %v55_v38 }
  0x26   :  { %11419 = vmatmul.mubr.f32.gmra.mxu1 %v26_v32  ;;  %11336 = vmatmul.mubr.f32.vlgmr.msra.gmra.mxu0 %v24_v28 }
  0x27   :  { %11421 = vmatprep.mubr.f32.mxu1 %v27_v33  ;;  %11338 = vmatprep.mubr.f32.mxu0 %v25_v29 }
  0x28   :  { %667 = vmatprep.subr.mxu0 %v22332_v0 }
  0x2a   :  { %11422 = vmatmul.mubr.f32.gmra.mxu1 %v28_v36  ;;  %11339 = vmatmul.mubr.f32.gmra.mxu0 %v26_v32 }
  0x2b   :  { %11424 = vmatprep.mubr.f32.mxu1 %v29_v37  ;;  %11341 = vmatprep.mubr.f32.mxu0 %v27_v33 }
  0x2e   :  { %11425 = vmatmul.mubr.f32.gmra.mxu1 %v30_v39  ;;  %11342 = vmatmul.mubr.f32.gmra.mxu0 %v28_v36 }
  0x2f   :  { %11427 = vmatprep.mubr.f32.mxu1 %v31_v40  ;;  %11344 = vmatprep.mubr.f32.mxu0 %v29_v37 }
  0x32   :  { %11428 = vmatmul.mubr.f32.gmra.mxu1 %v32_v41  ;;  %11345 = vmatmul.mubr.f32.gmra.mxu0 %v30_v39 }
  0x33   :  { %11430 = vmatprep.mubr.f32.mxu1 %v33_v42  ;;  %11347 = vmatprep.mubr.f32.mxu0 %v31_v40 }
  0x36   :  { %11431 = vmatmul.mubr.f32.gmra.mxu1 %v34_v43  ;;  %11348 = vmatmul.mubr.f32.gmra.mxu0 %v32_v41 }
  0x37   :  { %11433 = vmatprep.mubr.f32.mxu1 %v35_v44  ;;  %11350 = vmatprep.mubr.f32.mxu0 %v33_v42 }
  0x3a   :  { %11434 = vmatmul.mubr.f32.gmra.mxu1 %v36_v45  ;;  %11351 = vmatmul.mubr.f32.gmra.mxu0 %v34_v43 }
  0x3b   :  { %11436 = vmatprep.mubr.f32.mxu1 %v37_v46  ;;  %11353 = vmatprep.mubr.f32.mxu0 %v35_v44 }
  0x3e   :  { %11437 = vmatmul.mubr.f32.gmra.mxu1 %v38_v47  ;;  %11354 = vmatmul.mubr.f32.gmra.mxu0 %v36_v45 }
  0x3f   :  { %11439 = vmatprep.mubr.f32.mxu1 %v39_v48  ;;  %11356 = vmatprep.mubr.f32.mxu0 %v37_v46 }
  0x42   :  { %11440 = vmatmul.mubr.f32.gmra.mxu1 %v40_v49  ;;  %11357 = vmatmul.mubr.f32.gmra.mxu0 %v38_v47 }
  0x43   :  { %11442 = vmatprep.mubr.f32.mxu1 %v41_v50  ;;  %11359 = vmatprep.mubr.f32.mxu0 %v39_v48 }
  0x46   :  { %11443 = vmatmul.mubr.f32.gmra.mxu1 %v42_v51  ;;  %11360 = vmatmul.mubr.f32.gmra.mxu0 %v40_v49 }
  0x47   :  { %11445 = vmatprep.mubr.f32.mxu1 %v43_v52  ;;  %11362 = vmatprep.mubr.f32.mxu0 %v41_v50 }
  0x4a   :  { %11446 = vmatmul.mubr.f32.gmra.mxu1 %v44_v53  ;;  %11363 = vmatmul.mubr.f32.gmra.mxu0 %v42_v51 }
  0x4b   :  { %11448 = vmatprep.mubr.f32.mxu1 %v45_v54  ;;  %11365 = vmatprep.mubr.f32.mxu0 %v43_v52 }
  0x4e   :  { %11449 = vmatmul.mubr.f32.gmra.mxu1 %v46_v55  ;;  %11366 = vmatmul.mubr.f32.gmra.mxu0 %v44_v53 }
  0x4f   :  { %11451 = vmatprep.mubr.f32.mxu1 %v47_v56  ;;  %11368 = vmatprep.mubr.f32.mxu0 %v45_v54 }
  0x52   :  { %11452 = vmatmul.mubr.f32.gmra.mxu1 %v48_v57  ;;  %11369 = vmatmul.mubr.f32.gmra.mxu0 %v46_v55 }
  0x53   :  { %11454 = vmatprep.mubr.f32.mxu1 %v49_v58  ;;  %11371 = vmatprep.mubr.f32.mxu0 %v47_v56 }
  0x56   :  { %11455 = vmatmul.mubr.f32.gmra.mxu1 %v50_v59  ;;  %11372 = vmatmul.mubr.f32.gmra.mxu0 %v48_v57  ;;  %v9685_v57 = vld [vmem:[%s22327_s5 + $0x200] sm:$0xff] }
  0x57   :  { %11457 = vmatprep.mubr.f32.mxu1 %v51_v60  ;;  %11374 = vmatprep.mubr.f32.mxu0 %v49_v58  ;;  %v9717_v58 = vld [vmem:[%s22327_s5 + $0x300] sm:$0xff] }
  0x5a   :  { %11458 = vmatmul.mubr.f32.gmra.mxu1 %v52_v61  ;;  %11375 = vmatmul.mubr.f32.gmra.mxu0 %v50_v59  ;;  %v9688_v59 = vld [vmem:[%s22327_s5 + $0x218] sm:$0xff] }
  0x5b   :  { %11460 = vmatprep.mubr.f32.mxu1 %v53_v62  ;;  %11377 = vmatprep.mubr.f32.mxu0 %v51_v60 }
  0x5e   :  { %11461 = vmatmul.mubr.f32.gmra.mxu1 %v54_v63  ;;  %11378 = vmatmul.mubr.f32.gmra.mxu0 %v52_v61  ;;  %v9720_v61 = vld [vmem:[%s22327_s5 + $0x318] sm:$0xff] }
  0x5f   :  { %11380 = vmatprep.mubr.f32.mxu0 %v53_v62  ;;  %811 = vmatprep.mubr.f32.mxu1 %v9718_v2  ;;  %v13971_v62 = vld [vmem:[%s22325_s1 + $0x178] sm:$0xff] }
  0x62   :  { %11381 = vmatmul.mubr.f32.gmra.mxu0 %v54_v63  ;;  %v9687_v63 = vld [vmem:[%s22327_s5 + $0x210] sm:$0xff] }
  0x63   :  { %731 = vmatprep.mubr.f32.mxu0 %v9686_v1  ;;  %v9719_v1 = vld [vmem:[%s22327_s5 + $0x310] sm:$0xff] }
  0xe2   :  { %v13780_v3 = vpop.f32.mrf.mxu1 }
  0xe4   :  { %v13782_v4 = vpop.f32.mrf.mxu1 }
  0xe6   :  { %v13784_v5 = vpop.f32.mrf.mxu1  ;;  %v13792_v9 = vpop.f32.mrf.mxu0 }
  0xe8   :  { %v13786_v6 = vpop.f32.mrf.mxu1  ;;  %v13794_v11 = vpop.f32.mrf.mxu0 }
  0xea   :  { %v13788_v7 = vpop.f32.mrf.mxu1  ;;  %v13798_v13 = vpop.f32.mrf.mxu0 }
  0xec   :  { %v13790_v8 = vpop.f32.mrf.mxu1  ;;  %v13800_v15 = vpop.f32.mrf.mxu0 }
  0xee   :  { %v11426_v10 = vpop.f32.mrf.mxu1  ;;  %v13802_v17 = vpop.f32.mrf.mxu0 }
  0xf0   :  { %v13796_v12 = vpop.f32.mrf.mxu1  ;;  %v13804_v20 = vpop.f32.mrf.mxu0 }
  0xf2   :  { %v11429_v14 = vpop.f32.mrf.mxu1  ;;  %v13806_v23 = vpop.f32.mrf.mxu0 }
  0xf4   :  { %v483_v16 = vpop.f32.mrf.mxu1  ;;  %v13810_v26 = vpop.f32.mrf.mxu0 }
  0xf6   :  { %v11432_v18 = vpop.f32.mrf.mxu1  ;;  %v13820_v29 = vpop.f32.mrf.mxu0 }
  0xf8   :  { %v493_v19 = vpop.f32.mrf.mxu1  ;;  %v13830_v32 = vpop.f32.mrf.mxu0 }
  0xfa   :  { %v11435_v21 = vpop.f32.mrf.mxu1  ;;  %v13840_v35 = vpop.f32.mrf.mxu0 }
  0xfc   :  { %v503_v22 = vpop.f32.mrf.mxu1  ;;  %v13850_v38 = vpop.f32.mrf.mxu0 }
  0xfe   :  { %v11438_v24 = vpop.f32.mrf.mxu1  ;;  %v13864_v41 = vpop.f32.mrf.mxu0 }
  0xff   :  { %668 = vmatpush1.msra.mxu0 %v11438_v24  ;;  %12775 = vmatpush1.msra.mxu1 %v11438_v24 }
 0x100   :  { %v513_v25 = vpop.f32.mrf.mxu1  ;;  %669 = vmatprep.subr.mxu0 %v22332_v0  ;;  %12744 = vmatprep.subr.mxu1 %v22332_v0  ;;  %v13874_v44 = vpop.f32.mrf.mxu0 }
 0x101   :  { %670 = vmatpush1.msra.mxu0 %v513_v25  ;;  %12776 = vmatpush1.msra.mxu1 %v513_v25  ;;  %v9696_v25 = vld [vmem:[%s22327_s5 + $0x258] sm:$0xff] }
 0x102   :  { %v13812_v27 = vpop.f32.mrf.mxu1  ;;  %671 = vmatprep.subr.mxu0 %v22332_v0  ;;  %12745 = vmatprep.subr.mxu1 %v22332_v0  ;;  %v13884_v47 = vpop.f32.mrf.mxu0 }
 0x103   :  { %672 = vmatpush1.msra.mxu0 %v11435_v21  ;;  %12777 = vmatpush1.msra.mxu1 %v11435_v21  ;;  %v9693_v21 = vld [vmem:[%s22327_s5 + $0x240] sm:$0xff] }
 0x104   :  { %v13816_v28 = vpop.f32.mrf.mxu1  ;;  %673 = vmatprep.subr.mxu0 %v22332_v0  ;;  %12746 = vmatprep.subr.mxu1 %v22332_v0  ;;  %v13892_v50 = vpop.f32.mrf.mxu0 }
 0x105   :  { %674 = vmatpush1.msra.mxu0 %v503_v22  ;;  %12778 = vmatpush1.msra.mxu1 %v503_v22  ;;  %v9725_v22 = vld [vmem:[%s22327_s5 + $0x340] sm:$0xff] }
 0x106   :  { %v13822_v30 = vpop.f32.mrf.mxu1  ;;  %675 = vmatprep.subr.mxu0 %v22332_v0  ;;  %12747 = vmatprep.subr.mxu1 %v22332_v0  ;;  %v13898_v51 = vpop.f32.mrf.mxu0 }
 0x107   :  { %676 = vmatpush1.msra.mxu0 %v11432_v18  ;;  %12779 = vmatpush1.msra.mxu1 %v11432_v18  ;;  %v9694_v18 = vld [vmem:[%s22327_s5 + $0x248] sm:$0xff] }
 0x108   :  { %v13826_v31 = vpop.f32.mrf.mxu1  ;;  %677 = vmatprep.subr.mxu0 %v22332_v0  ;;  %12748 = vmatprep.subr.mxu1 %v22332_v0  ;;  %v13904_v52 = vpop.f32.mrf.mxu0 }
 0x109   :  { %678 = vmatpush1.msra.mxu0 %v493_v19  ;;  %12780 = vmatpush1.msra.mxu1 %v493_v19  ;;  %v9726_v19 = vld [vmem:[%s22327_s5 + $0x348] sm:$0xff] }
 0x10a   :  { %v13832_v33 = vpop.f32.mrf.mxu1  ;;  %679 = vmatprep.subr.mxu0 %v22332_v0  ;;  %12749 = vmatprep.subr.mxu1 %v22332_v0  ;;  %v13912_v53 = vpop.f32.mrf.mxu0 }
 0x10b   :  { %680 = vmatpush1.msra.mxu0 %v11429_v14  ;;  %12781 = vmatpush1.msra.mxu1 %v11429_v14  ;;  %v9723_v14 = vld [vmem:[%s22327_s5 + $0x330] sm:$0xff] }
 0x10c   :  { %v13836_v34 = vpop.f32.mrf.mxu1  ;;  %681 = vmatprep.subr.mxu0 %v22332_v0  ;;  %12750 = vmatprep.subr.mxu1 %v22332_v0  ;;  %v13922_v54 = vpop.f32.mrf.mxu0 }
 0x10d   :  { %682 = vmatpush1.msra.mxu0 %v483_v16  ;;  %12782 = vmatpush1.msra.mxu1 %v483_v16 }
 0x10e   :  { %v13842_v36 = vpop.f32.mrf.mxu1  ;;  %683 = vmatprep.subr.mxu0 %v22332_v0  ;;  %12751 = vmatprep.subr.mxu1 %v22332_v0  ;;  %v13932_v55 = vpop.f32.mrf.mxu0 }
 0x10f   :  { %684 = vmatpush1.msra.mxu0 %v11426_v10  ;;  %12783 = vmatpush1.msra.mxu1 %v11426_v10  ;;  %v9724_v10 = vld [vmem:[%s22327_s5 + $0x338] sm:$0xff] }
 0x110   :  { %v13846_v37 = vpop.f32.mrf.mxu1  ;;  %685 = vmatprep.subr.mxu0 %v22332_v0  ;;  %12752 = vmatprep.subr.mxu1 %v22332_v0  ;;  %v13942_v56 = vpop.f32.mrf.mxu0 }
 0x111   :  { %686 = vmatpush1.msra.mxu0 %v13796_v12  ;;  %12784 = vmatpush1.msra.mxu1 %v13796_v12  ;;  %v9691_v12 = vld [vmem:[%s22327_s5 + $0x230] sm:$0xff] }
 0x112   :  { %v13854_v39 = vpop.f32.mrf.mxu1  ;;  %687 = vmatprep.subr.mxu0 %v22332_v0  ;;  %12753 = vmatprep.subr.mxu1 %v22332_v0  ;;  %v13961_v60 = vpop.f32.mrf.mxu0 }
 0x113   :  { %688 = vmatpush1.msra.mxu0 %v13788_v7  ;;  %12785 = vmatpush1.msra.mxu1 %v13788_v7 }
 0x114   :  { %v13860_v40 = vpop.f32.mrf.mxu1  ;;  %689 = vmatprep.subr.mxu0 %v22332_v0  ;;  %12754 = vmatprep.subr.mxu1 %v22332_v0  ;;  %v13981_v2 = vpop.f32.mrf.mxu0 }
 0x115   :  { %690 = vmatpush1.msra.mxu0 %v13790_v8  ;;  %12786 = vmatpush1.msra.mxu1 %v13790_v8  ;;  %v9692_v8 = vld [vmem:[%s22327_s5 + $0x238] sm:$0xff] }
 0x116   :  { %v11456_v42 = vpop.f32.mrf.mxu1  ;;  %691 = vmatprep.subr.mxu0 %v22332_v0  ;;  %12755 = vmatprep.subr.mxu1 %v22332_v0  ;;  %v14000_v7 = vpop.f32.mrf.mxu0 }
 0x117   :  { %692 = vmatpush1.msra.mxu0 %v13784_v5  ;;  %12787 = vmatpush1.msra.mxu1 %v13784_v5  ;;  %v9689_v5 = vld [vmem:[%s22327_s5 + $0x220] sm:$0xff] }
 0x118   :  { %v573_v43 = vpop.f32.mrf.mxu1  ;;  %693 = vmatprep.subr.mxu0 %v22332_v0  ;;  %12756 = vmatprep.subr.mxu1 %v22332_v0  ;;  %v14018_v16 = vpop.f32.mrf.mxu0 }
 0x119   :  { %694 = vmatpush1.msra.mxu0 %v13786_v6  ;;  %12788 = vmatpush1.msra.mxu1 %v13786_v6  ;;  %v9721_v6 = vld [vmem:[%s22327_s5 + $0x320] sm:$0xff] }
 0x11a   :  { %v11459_v45 = vpop.f32.mrf.mxu1  ;;  %695 = vmatprep.subr.mxu0 %v22332_v0  ;;  %12757 = vmatprep.subr.mxu1 %v22332_v0  ;;  %v14036_v24 = vpop.f32.mrf.mxu0 }
 0x11b   :  { %696 = vmatpush1.msra.mxu0 %v13780_v3  ;;  %12789 = vmatpush1.msra.mxu1 %v13780_v3  ;;  %v9690_v3 = vld [vmem:[%s22327_s5 + $0x228] sm:$0xff] }
 0x11c   :  { %v583_v46 = vpop.f32.mrf.mxu1  ;;  %697 = vmatprep.subr.mxu0 %v22332_v0  ;;  %12758 = vmatprep.subr.mxu1 %v22332_v0 }
 0x11d   :  { %698 = vmatpush1.msra.mxu0 %v13782_v4  ;;  %12790 = vmatpush1.msra.mxu1 %v13782_v4  ;;  %v9722_v4 = vld [vmem:[%s22327_s5 + $0x328] sm:$0xff] }
 0x11e   :  { %v11462_v48 = vpop.f32.mrf.mxu1  ;;  %699 = vmatprep.subr.mxu0 %v22332_v0  ;;  %12759 = vmatprep.subr.mxu1 %v22332_v0 }
 0x11f   :  { %700 = vmatpush2.msra.mxu0 %v11462_v48  ;;  %12791 = vmatpush2.msra.mxu1 %v11462_v48  ;;  %v9705_v48 = vld [vmem:[%s22327_s5 + $0x2a0] sm:$0xff] }
 0x120   :  { %v593_v49 = vpop.f32.mrf.mxu1  ;;  %701 = vmatprep.subr.mxu0 %v22332_v0  ;;  %12760 = vmatprep.subr.mxu1 %v22332_v0 }
 0x121   :  { %702 = vmatpush2.msra.mxu0 %v593_v49  ;;  %12792 = vmatpush2.msra.mxu1 %v593_v49  ;;  %v9737_v49 = vld [vmem:[%s22327_s5 + $0x3a0] sm:$0xff] }
 0x122   :  { %703 = vmatprep.subr.mxu0 %v22332_v0  ;;  %12761 = vmatprep.subr.mxu1 %v22332_v0 }
 0x123   :  { %704 = vmatpush2.msra.mxu0 %v11459_v45  ;;  %12793 = vmatpush2.msra.mxu1 %v11459_v45  ;;  %v9761_v45 = vld [vmem:[%s22325_s1 + $0x160] sm:$0xff] }
 0x124   :  { %705 = vmatprep.subr.mxu0 %v22332_v0  ;;  %12762 = vmatprep.subr.mxu1 %v22332_v0 }
 0x125   :  { %706 = vmatpush2.msra.mxu0 %v583_v46  ;;  %12794 = vmatpush2.msra.mxu1 %v583_v46  ;;  %v9706_v46 = vld [vmem:[%s22327_s5 + $0x2a8] sm:$0xff] }
 0x126   :  { %707 = vmatprep.subr.mxu0 %v22332_v0  ;;  %12763 = vmatprep.subr.mxu1 %v22332_v0 }
 0x127   :  { %708 = vmatpush2.msra.mxu0 %v11456_v42  ;;  %12795 = vmatpush2.msra.mxu1 %v11456_v42  ;;  %v9703_v42 = vld [vmem:[%s22327_s5 + $0x290] sm:$0xff] }
 0x128   :  { %709 = vmatprep.subr.mxu0 %v22332_v0  ;;  %12764 = vmatprep.subr.mxu1 %v22332_v0 }
 0x129   :  { %710 = vmatpush2.msra.mxu0 %v573_v43  ;;  %12796 = vmatpush2.msra.mxu1 %v573_v43  ;;  %v9735_v43 = vld [vmem:[%s22327_s5 + $0x390] sm:$0xff] }
 0x12a   :  { %711 = vmatprep.subr.mxu0 %v22332_v0  ;;  %12765 = vmatprep.subr.mxu1 %v22332_v0 }
 0x12b   :  { %712 = vmatpush2.msra.mxu0 %v13854_v39  ;;  %12797 = vmatpush2.msra.mxu1 %v13854_v39 }
 0x12c   :  { %713 = vmatprep.subr.mxu0 %v22332_v0  ;;  %12766 = vmatprep.subr.mxu1 %v22332_v0 }
 0x12d   :  { %714 = vmatpush2.msra.mxu0 %v13860_v40  ;;  %12798 = vmatpush2.msra.mxu1 %v13860_v40  ;;  %v9763_v40 = vld [vmem:[%s22325_s1 + $0x170] sm:$0xff] }
 0x12e   :  { %715 = vmatprep.subr.mxu0 %v22332_v0  ;;  %12767 = vmatprep.subr.mxu1 %v22332_v0 }
 0x12f   :  { %716 = vmatpush2.msra.mxu0 %v13842_v36  ;;  %12799 = vmatpush2.msra.mxu1 %v13842_v36  ;;  %v9731_v36 = vld [vmem:[%s22327_s5 + $0x370] sm:$0xff] }
 0x130   :  { %717 = vmatprep.subr.mxu0 %v22332_v0  ;;  %12768 = vmatprep.subr.mxu1 %v22332_v0 }
 0x131   :  { %718 = vmatpush2.msra.mxu0 %v13846_v37  ;;  %12800 = vmatpush2.msra.mxu1 %v13846_v37  ;;  %v9702_v37 = vld [vmem:[%s22327_s5 + $0x288] sm:$0xff] }
 0x132   :  { %719 = vmatprep.subr.mxu0 %v22332_v0  ;;  %12769 = vmatprep.subr.mxu1 %v22332_v0 }
 0x133   :  { %720 = vmatpush2.msra.mxu0 %v13832_v33  ;;  %12801 = vmatpush2.msra.mxu1 %v13832_v33  ;;  %v9729_v33 = vld [vmem:[%s22327_s5 + $0x360] sm:$0xff] }
 0x134   :  { %721 = vmatprep.subr.mxu0 %v22332_v0  ;;  %12770 = vmatprep.subr.mxu1 %v22332_v0 }
 0x135   :  { %722 = vmatpush2.msra.mxu0 %v13836_v34  ;;  %12802 = vmatpush2.msra.mxu1 %v13836_v34  ;;  %v9700_v34 = vld [vmem:[%s22327_s5 + $0x278] sm:$0xff] }
 0x136   :  { %723 = vmatprep.subr.mxu0 %v22332_v0  ;;  %12771 = vmatprep.subr.mxu1 %v22332_v0 }
 0x137   :  { %724 = vmatpush2.msra.mxu0 %v13822_v30  ;;  %12803 = vmatpush2.msra.mxu1 %v13822_v30  ;;  %v14054_v30 = vpop.f32.mrf.mxu0 }
 0x138   :  { %725 = vmatprep.subr.mxu0 %v22332_v0  ;;  %12772 = vmatprep.subr.mxu1 %v22332_v0 }
 0x139   :  { %726 = vmatpush2.msra.mxu0 %v13826_v31  ;;  %12804 = vmatpush2.msra.mxu1 %v13826_v31  ;;  %v9698_v31 = vld [vmem:[%s22327_s5 + $0x268] sm:$0xff] }
 0x13a   :  { %727 = vmatprep.subr.mxu0 %v22332_v0  ;;  %12773 = vmatprep.subr.mxu1 %v22332_v0 }
 0x13b   :  { %728 = vmatpush2.msra.mxu0 %v13812_v27  ;;  %12805 = vmatpush2.msra.mxu1 %v13812_v27  ;;  %v9728_v27 = vld [vmem:[%s22327_s5 + $0x358] sm:$0xff] }
 0x13c   :  { %729 = vmatprep.subr.mxu0 %v22332_v0  ;;  %12774 = vmatprep.subr.mxu1 %v22332_v0 }
 0x13d   :  { %730 = vmatpush2.msra.mxu0 %v13816_v28  ;;  %12806 = vmatpush2.msra.mxu1 %v13816_v28  ;;  %v9695_v28 = vld [vmem:[%s22327_s5 + $0x250] sm:$0xff] }
 0x13e   :  { %732 = vmatmul.mubr.f32.vlgmr.msra.gmra.mxu0 %v9685_v57  ;;  %812 = vmatmul.mubr.f32.vlgmr.msra.gmra.mxu1 %v9717_v58  ;;  %v9759_v57 = vld [vmem:[%s22325_s1 + $0x150] sm:$0xff]  ;;  %v9708_v58 = vld [vmem:[%s22327_s5 + $0x2b8] sm:$0xff] }
 0x13f   :  { %892 = vmatprep.subr.mxu1 %v22332_v0  ;;  %736 = vmatprep.mubr.f32.mxu0 %v9688_v59  ;;  %v9740_v59 = vld [vmem:[%s22327_s5 + $0x3b8] sm:$0xff] }
 0x140   :  { %893 = vmatpush1.msra.mxu1 %v13884_v47  ;;  %816 = vmatprep.mubr.f32.mxu1 %v9720_v61  ;;  %v9738_v47 = vld [vmem:[%s22327_s5 + $0x3a8] sm:$0xff]  ;;  %v9707_v61 = vld [vmem:[%s22327_s5 + $0x2b0] sm:$0xff] }
 0x141   :  { %894 = vmatprep.subr.mxu1 %v22332_v0  ;;  %11463 = vmatprep.subr.mxu0 %v13971_v62 }
 0x142   :  { %895 = vmatpush1.msra.mxu1 %v13892_v50  ;;  %737 = vmatmul.mubr.f32.gmra.mxu0 %v9687_v63  ;;  %v9760_v50 = vld [vmem:[%s22325_s1 + $0x158] sm:$0xff]  ;;  %v9758_v63 = vld [vmem:[%s22325_s1 + $0x148] sm:$0xff] }
 0x143   :  { %817 = vmatmul.mubr.f32.gmra.mxu1 %v9719_v1  ;;  %896 = vmatprep.subr.mxu1 %v22332_v0  ;;  %v9757_v1 = vld [vmem:[%s22325_s1 + $0x140] sm:$0xff] }
 0x144   :  { %897 = vmatpush1.msra.mxu1 %v13864_v41  ;;  %741 = vmatprep.mubr.f32.mxu0 %v9690_v3  ;;  %v9736_v41 = vld [vmem:[%s22327_s5 + $0x398] sm:$0xff]  ;;  %v9710_v3 = vld [vmem:[%s22327_s5 + $0x2c8] sm:$0xff] }
 0x145   :  { %898 = vmatprep.subr.mxu1 %v22332_v0  ;;  %821 = vmatprep.mubr.f32.mxu1 %v9722_v4  ;;  %v9742_v4 = vld [vmem:[%s22327_s5 + $0x3c8] sm:$0xff] }
 0x146   :  { %899 = vmatpush1.msra.mxu1 %v13874_v44  ;;  %742 = vmatmul.mubr.f32.gmra.mxu0 %v9689_v5  ;;  %v9762_v44 = vld [vmem:[%s22325_s1 + $0x168] sm:$0xff]  ;;  %v9709_v5 = vld [vmem:[%s22327_s5 + $0x2c0] sm:$0xff] }
 0x147   :  { %822 = vmatmul.mubr.f32.gmra.mxu1 %v9721_v6  ;;  %900 = vmatprep.subr.mxu1 %v22332_v0  ;;  %v9741_v6 = vld [vmem:[%s22327_s5 + $0x3c0] sm:$0xff] }
 0x148   :  { %901 = vmatpush1.msra.mxu1 %v13840_v35  ;;  %746 = vmatprep.mubr.f32.mxu0 %v9692_v8  ;;  %v9699_v35 = vld [vmem:[%s22327_s5 + $0x270] sm:$0xff]  ;;  %v9756_v8 = vld [vmem:[%s22325_s1 + $0x138] sm:$0xff] }
 0x149   :  { %902 = vmatprep.subr.mxu1 %v22332_v0  ;;  %826 = vmatprep.mubr.f32.mxu1 %v9724_v10  ;;  %v9712_v10 = vld [vmem:[%s22327_s5 + $0x2d8] sm:$0xff] }
 0x14a   :  { %903 = vmatpush1.msra.mxu1 %v13850_v38  ;;  %747 = vmatmul.mubr.f32.gmra.mxu0 %v9691_v12  ;;  %v9701_v38 = vld [vmem:[%s22327_s5 + $0x280] sm:$0xff]  ;;  %v9744_v12 = vld [vmem:[%s22327_s5 + $0x3d8] sm:$0xff] }
 0x14b   :  { %827 = vmatmul.mubr.f32.gmra.mxu1 %v9723_v14  ;;  %904 = vmatprep.subr.mxu1 %v22332_v0  ;;  %v9711_v14 = vld [vmem:[%s22327_s5 + $0x2d0] sm:$0xff] }
 0x14c   :  { %905 = vmatpush1.msra.mxu1 %v13820_v29  ;;  %751 = vmatprep.mubr.f32.mxu0 %v9694_v18  ;;  %v9727_v29 = vld [vmem:[%s22327_s5 + $0x350] sm:$0xff]  ;;  %v9754_v18 = vld [vmem:[%s22325_s1 + $0x128] sm:$0xff] }
 0x14d   :  { %906 = vmatprep.subr.mxu1 %v22332_v0  ;;  %831 = vmatprep.mubr.f32.mxu1 %v9726_v19  ;;  %v9714_v19 = vld [vmem:[%s22327_s5 + $0x2e8] sm:$0xff] }
 0x14e   :  { %907 = vmatpush1.msra.mxu1 %v13830_v32  ;;  %752 = vmatmul.mubr.f32.gmra.mxu0 %v9693_v21  ;;  %v9697_v32 = vld [vmem:[%s22327_s5 + $0x260] sm:$0xff]  ;;  %v9746_v21 = vld [vmem:[%s22327_s5 + $0x3e8] sm:$0xff] }
 0x14f   :  { %832 = vmatmul.mubr.f32.gmra.mxu1 %v9725_v22  ;;  %908 = vmatprep.subr.mxu1 %v22332_v0  ;;  %v9745_v22 = vld [vmem:[%s22327_s5 + $0x3e0] sm:$0xff] }
 0x150   :  { %909 = vmatpush1.msra.mxu1 %v13806_v23  ;;  %756 = vmatprep.mubr.f32.mxu0 %v9696_v25  ;;  %v9730_v23 = vld [vmem:[%s22327_s5 + $0x368] sm:$0xff]  ;;  %v9716_v25 = vld [vmem:[%s22327_s5 + $0x2f8] sm:$0xff] }
 0x151   :  { %910 = vmatprep.subr.mxu1 %v22332_v0  ;;  %836 = vmatprep.mubr.f32.mxu1 %v9728_v27  ;;  %v9748_v27 = vld [vmem:[%s22327_s5 + $0x3f8] sm:$0xff] }
 0x152   :  { %911 = vmatpush1.msra.mxu1 %v13810_v26  ;;  %757 = vmatmul.mubr.f32.gmra.mxu0 %v9695_v28  ;;  %v11379_v26 = vpop.f32.mrf.mxu0  ;;  %v9747_v28 = vld [vmem:[%s22327_s5 + $0x3f0] sm:$0xff] }
 0x153   :  { %837 = vmatmul.mubr.f32.gmra.mxu1 %v9727_v29  ;;  %912 = vmatprep.subr.mxu1 %v22332_v0  ;;  %v9750_v29 = vld [vmem:[%s22325_s1 + $0x108] sm:$0xff] }
 0x154   :  { %913 = vmatpush1.msra.mxu1 %v13802_v17  ;;  %761 = vmatprep.mubr.f32.mxu0 %v9698_v31  ;;  %v9732_v17 = vld [vmem:[%s22327_s5 + $0x378] sm:$0xff] }
 0x155   :  { %914 = vmatprep.subr.mxu1 %v22332_v0  ;;  %841 = vmatprep.mubr.f32.mxu1 %v9730_v23  ;;  %v299_v31 = vld [vmem:[%s22327_s5 + $0x18] sm:$0xff] }
 0x156   :  { %915 = vmatpush1.msra.mxu1 %v13804_v20  ;;  %762 = vmatmul.mubr.f32.gmra.mxu0 %v9697_v32  ;;  %v277_v20 = vpop.f32.mrf.mxu0  ;;  %v9844_v23 = vld [vmem:[%s22325_s1 + $0x1f8] sm:$0xff]  ;;  %v14291_v32 = vld [vmem:[%s22326_s0 + $0x10] sm:$0xff] }
 0x157   :  { %842 = vmatmul.mubr.f32.gmra.mxu1 %v9729_v33  ;;  %916 = vmatprep.subr.mxu1 %v22332_v0  ;;  %v298_v33 = vld [vmem:[%s22327_s5 + $0x10] sm:$0xff] }
 0x158   :  { %917 = vmatpush1.msra.mxu1 %v13798_v13  ;;  %766 = vmatprep.mubr.f32.mxu0 %v9700_v34  ;;  %v9734_v13 = vld [vmem:[%s22327_s5 + $0x388] sm:$0xff]  ;;  %v11382_v39 = vpop.f32.mrf.mxu0  ;;  %v9843_v34 = vld [vmem:[%s22325_s1 + $0x1f0] sm:$0xff] }
 0x159   :  { %918 = vmatprep.subr.mxu1 %v22332_v0  ;;  %846 = vmatprep.mubr.f32.mxu1 %v9732_v17  ;;  %v14307_v17 = vld [vmem:[%s22326_s0 + $0x18] sm:$0xff] }
 0x15a   :  { %919 = vmatpush1.msra.mxu1 %v13800_v15  ;;  %767 = vmatmul.mubr.f32.gmra.mxu0 %v9699_v35  ;;  %v9733_v15 = vld [vmem:[%s22327_s5 + $0x380] sm:$0xff] }
 0x15b   :  { %847 = vmatmul.mubr.f32.gmra.mxu1 %v9731_v36  ;;  %920 = vmatprep.subr.mxu1 %v22332_v0  ;;  %v14313_v35 = vld [vmem:[%s22326_s0 + $0x20] sm:$0xff] }
 0x15c   :  { %921 = vmatpush1.msra.mxu1 %v13792_v9  ;;  %771 = vmatprep.mubr.f32.mxu0 %v9702_v37  ;;  %v9704_v9 = vld [vmem:[%s22327_s5 + $0x298] sm:$0xff]  ;;  %v300_v36 = vld [vmem:[%s22327_s5 + $0x20] sm:$0xff]  ;;  %v9842_v37 = vld [vmem:[%s22325_s1 + $0x1e8] sm:$0xff] }
 0x15d   :  { %922 = vmatprep.subr.mxu1 %v22332_v0  ;;  %851 = vmatprep.mubr.f32.mxu1 %v9734_v13  ;;  %v14328_v13 = vld [vmem:[%s22326_s0 + $0x28] sm:$0xff] }
 0x15e   :  { %923 = vmatpush1.msra.mxu1 %v13794_v11  ;;  %772 = vmatmul.mubr.f32.gmra.mxu0 %v9701_v38  ;;  %v287_v11 = vpop.f32.mrf.mxu0  ;;  %v14334_v38 = vld [vmem:[%s22326_s0 + $0x30] sm:$0xff] }
 0x15f   :  { %852 = vmatmul.mubr.f32.gmra.mxu1 %v9733_v15  ;;  %924 = vmatprep.subr.mxu1 %v22332_v0  ;;  %v305_v15 = vld [vmem:[%s22327_s5 + $0x48] sm:$0xff] }
 0x160   :  { %925 = vmatpush2.msra.mxu1 %v11382_v39  ;;  %11464 = vmatpush3.msra.mxu0 %v13971_v62  ;;  %v9739_v62 = vld [vmem:[%s22327_s5 + $0x3b0] sm:$0xff] }
 0x161   :  { %926 = vmatprep.subr.mxu1 %v22332_v0  ;;  %11465 = vmatprep.subr.mxu0 %v9763_v40  ;;  %v302_v39 = vld [vmem:[%s22327_s5 + $0x30] sm:$0xff] }
 0x162   :  { %776 = vmatprep.mubr.f32.mxu0 %v9704_v9  ;;  %856 = vmatprep.mubr.f32.mxu1 %v9736_v41  ;;  %v14349_v9 = vld [vmem:[%s22326_s0 + $0x38] sm:$0xff]  ;;  %v14355_v41 = vld [vmem:[%s22326_s0 + $0x40] sm:$0xff] }
 0x163   :  { %927 = vmatpush2.msra.mxu1 %v287_v11  ;;  %11466 = vmatpush3.msra.mxu0 %v9763_v40  ;;  %v9841_v40 = vld [vmem:[%s22325_s1 + $0x1e0] sm:$0xff] }
 0x164   :  { %777 = vmatmul.mubr.f32.gmra.mxu0 %v9703_v42  ;;  %857 = vmatmul.mubr.f32.gmra.mxu1 %v9735_v43  ;;  %v304_v11 = vld [vmem:[%s22327_s5 + $0x40] sm:$0xff]  ;;  %v307_v42 = vld [vmem:[%s22327_s5 + $0x58] sm:$0xff] }
 0x165   :  { %928 = vmatprep.subr.mxu1 %v22332_v0  ;;  %11467 = vmatprep.subr.mxu0 %v9762_v44  ;;  %v9840_v43 = vld [vmem:[%s22325_s1 + $0x1d8] sm:$0xff] }
 0x166   :  { %929 = vmatpush2.msra.mxu1 %v11379_v26  ;;  %11468 = vmatpush3.msra.mxu0 %v9762_v44  ;;  %v301_v26 = vld [vmem:[%s22327_s5 + $0x28] sm:$0xff] }
 0x167   :  { %930 = vmatprep.subr.mxu1 %v22332_v0  ;;  %11469 = vmatprep.subr.mxu0 %v9761_v45  ;;  %v14370_v44 = vld [vmem:[%s22326_s0 + $0x48] sm:$0xff] }
 0x168   :  { %781 = vmatprep.mubr.f32.mxu0 %v9706_v46  ;;  %861 = vmatprep.mubr.f32.mxu1 %v9738_v47  ;;  %v306_v46 = vld [vmem:[%s22327_s5 + $0x50] sm:$0xff]  ;;  %v309_v47 = vld [vmem:[%s22327_s5 + $0x68] sm:$0xff] }
 0x169   :  { %931 = vmatpush2.msra.mxu1 %v277_v20  ;;  %11470 = vmatpush3.msra.mxu0 %v9761_v45  ;;  %v303_v20 = vld [vmem:[%s22327_s5 + $0x38] sm:$0xff]  ;;  %v14376_v45 = vld [vmem:[%s22326_s0 + $0x50] sm:$0xff] }
 0x16a   :  { %782 = vmatmul.mubr.f32.gmra.mxu0 %v9705_v48  ;;  %862 = vmatmul.mubr.f32.gmra.mxu1 %v9737_v49  ;;  %v9839_v48 = vld [vmem:[%s22325_s1 + $0x1d0] sm:$0xff]  ;;  %v14391_v49 = vld [vmem:[%s22326_s0 + $0x58] sm:$0xff] }
 0x16b   :  { %932 = vmatprep.subr.mxu1 %v22332_v0  ;;  %11471 = vmatprep.subr.mxu0 %v9760_v50 }
 0x16c   :  { %933 = vmatpush2.msra.mxu1 %v14036_v24  ;;  %11472 = vmatpush3.msra.mxu0 %v9760_v50  ;;  %v9752_v24 = vld [vmem:[%s22325_s1 + $0x118] sm:$0xff]  ;;  %v14397_v50 = vld [vmem:[%s22326_s0 + $0x60] sm:$0xff] }
 0x16d   :  { %934 = vmatprep.subr.mxu1 %v22332_v0  ;;  %11473 = vmatprep.subr.mxu0 %v9759_v57 }
 0x16e   :  { %786 = vmatprep.mubr.f32.mxu0 %v9708_v58  ;;  %866 = vmatprep.mubr.f32.mxu1 %v9740_v59  ;;  %v311_v58 = vld [vmem:[%s22327_s5 + $0x78] sm:$0xff]  ;;  %v9838_v59 = vld [vmem:[%s22325_s1 + $0x1c8] sm:$0xff] }
 0x16f   :  { %935 = vmatpush2.msra.mxu1 %v14054_v30  ;;  %11474 = vmatpush3.msra.mxu0 %v9759_v57  ;;  %v297_v30 = vld [vmem:[%s22327_s5 + $0x8] sm:$0xff]  ;;  %v308_v57 = vld [vmem:[%s22327_s5 + $0x60] sm:$0xff] }
 0x170   :  { %787 = vmatmul.mubr.f32.gmra.mxu0 %v9707_v61  ;;  %867 = vmatmul.mubr.f32.gmra.mxu1 %v9739_v62  ;;  %v14412_v61 = vld [vmem:[%s22326_s0 + $0x68] sm:$0xff]  ;;  %v14418_v62 = vld [vmem:[%s22326_s0 + $0x70] sm:$0xff] }
 0x171   :  { %936 = vmatprep.subr.mxu1 %v22332_v0  ;;  %11475 = vmatprep.subr.mxu0 %v9758_v63 }
 0x172   :  { %937 = vmatpush2.msra.mxu1 %v14000_v7  ;;  %11476 = vmatpush3.msra.mxu0 %v9758_v63  ;;  %v9755_v7 = vld [vmem:[%s22325_s1 + $0x130] sm:$0xff] }
 0x173   :  { %938 = vmatprep.subr.mxu1 %v22332_v0  ;;  %11477 = vmatprep.subr.mxu0 %v9757_v1  ;;  %v310_v63 = vld [vmem:[%s22327_s5 + $0x70] sm:$0xff] }
 0x174   :  { %791 = vmatprep.mubr.f32.mxu0 %v9710_v3  ;;  %871 = vmatprep.mubr.f32.mxu1 %v9742_v4  ;;  %v9837_v3 = vld [vmem:[%s22325_s1 + $0x1c0] sm:$0xff]  ;;  %v14433_v4 = vld [vmem:[%s22326_s0 + $0x78] sm:$0xff] }
 0x175   :  { %939 = vmatpush2.msra.mxu1 %v14018_v16  ;;  %11478 = vmatpush3.msra.mxu0 %v9757_v1  ;;  %v9743_v16 = vld [vmem:[%s22327_s5 + $0x3d0] sm:$0xff]  ;;  %v313_v1 = vld [vmem:[%s22327_s5 + $0x88] sm:$0xff] }
 0x176   :  { %792 = vmatmul.mubr.f32.gmra.mxu0 %v9709_v5  ;;  %872 = vmatmul.mubr.f32.gmra.mxu1 %v9741_v6  ;;  %v14439_v5 = vld [vmem:[%s22326_s0 + $0x80] sm:$0xff] }
 0x177   :  { %940 = vmatprep.subr.mxu1 %v22332_v0  ;;  %11479 = vmatprep.subr.mxu0 %v9756_v8  ;;  %v312_v6 = vld [vmem:[%s22327_s5 + $0x80] sm:$0xff] }
 0x178   :  { %941 = vmatpush2.msra.mxu1 %v13961_v60  ;;  %11480 = vmatpush3.msra.mxu0 %v9756_v8  ;;  %v9753_v60 = vld [vmem:[%s22325_s1 + $0x120] sm:$0xff]  ;;  %v315_v8 = vld [vmem:[%s22327_s5 + $0x98] sm:$0xff] }
 0x179   :  { %942 = vmatprep.subr.mxu1 %v22332_v0  ;;  %11481 = vmatprep.subr.mxu0 %v9755_v7 }
 0x17a   :  { %796 = vmatprep.mubr.f32.mxu0 %v9712_v10  ;;  %876 = vmatprep.mubr.f32.mxu1 %v9744_v12  ;;  %v14454_v10 = vld [vmem:[%s22326_s0 + $0x88] sm:$0xff]  ;;  %v14460_v12 = vld [vmem:[%s22326_s0 + $0x90] sm:$0xff] }
 0x17b   :  { %943 = vmatpush2.msra.mxu1 %v13981_v2  ;;  %11482 = vmatpush3.msra.mxu0 %v9755_v7  ;;  %v9713_v2 = vld [vmem:[%s22327_s5 + $0x2e0] sm:$0xff]  ;;  %v9836_v7 = vld [vmem:[%s22325_s1 + $0x1b8] sm:$0xff] }
 0x17c   :  { %797 = vmatmul.mubr.f32.gmra.mxu0 %v9711_v14  ;;  %877 = vmatmul.mubr.f32.gmra.mxu1 %v9743_v16  ;;  %v314_v14 = vld [vmem:[%s22327_s5 + $0x90] sm:$0xff]  ;;  %v317_v16 = vld [vmem:[%s22327_s5 + $0xa8] sm:$0xff] }
 0x17d   :  { %944 = vmatprep.subr.mxu1 %v22332_v0  ;;  %11483 = vmatprep.subr.mxu0 %v9754_v18 }
 0x17e   :  { %945 = vmatpush2.msra.mxu1 %v13932_v55  ;;  %11484 = vmatpush3.msra.mxu0 %v9754_v18  ;;  %v9751_v55 = vld [vmem:[%s22325_s1 + $0x110] sm:$0xff] }
 0x17f   :  { %946 = vmatprep.subr.mxu1 %v22332_v0  ;;  %11485 = vmatprep.subr.mxu0 %v9753_v60  ;;  %v9835_v18 = vld [vmem:[%s22325_s1 + $0x1b0] sm:$0xff] }
 0x180   :  { %801 = vmatprep.mubr.f32.mxu0 %v9714_v19  ;;  %881 = vmatprep.mubr.f32.mxu1 %v9746_v21  ;;  %v14481_v19 = vld [vmem:[%s22326_s0 + $0xa0] sm:$0xff] }
 0x181   :  { %947 = vmatpush2.msra.mxu1 %v13942_v56  ;;  %11486 = vmatpush3.msra.mxu0 %v9753_v60  ;;  %v9715_v56 = vld [vmem:[%s22327_s5 + $0x2f0] sm:$0xff]  ;;  %v14475_v60 = vld [vmem:[%s22326_s0 + $0x98] sm:$0xff]  ;;  %v316_v21 = vld [vmem:[%s22327_s5 + $0xa0] sm:$0xff] }
 0x182   :  { %802 = vmatmul.mubr.f32.gmra.mxu0 %v9713_v2  ;;  %882 = vmatmul.mubr.f32.gmra.mxu1 %v9745_v22  ;;  %v319_v2 = vld [vmem:[%s22327_s5 + $0xb8] sm:$0xff]  ;;  %v9834_v22 = vld [vmem:[%s22325_s1 + $0x1a8] sm:$0xff] }
 0x183   :  { %948 = vmatprep.subr.mxu1 %v22332_v0  ;;  %11487 = vmatprep.subr.mxu0 %v9752_v24 }
 0x184   :  { %949 = vmatpush2.msra.mxu1 %v13912_v53  ;;  %11488 = vmatpush3.msra.mxu0 %v9752_v24  ;;  %v9749_v53 = vld [vmem:[%s22325_s1 + $0x100] sm:$0xff]  ;;  %v14496_v24 = vld [vmem:[%s22326_s0 + $0xa8] sm:$0xff] }
 0x185   :  { %950 = vmatprep.subr.mxu1 %v22332_v0  ;;  %11489 = vmatprep.subr.mxu0 %v9751_v55 }
 0x186   :  { %806 = vmatprep.mubr.f32.mxu0 %v9716_v25  ;;  %886 = vmatprep.mubr.f32.mxu1 %v9748_v27  ;;  %v318_v25 = vld [vmem:[%s22327_s5 + $0xb0] sm:$0xff]  ;;  %v321_v27 = vld [vmem:[%s22327_s5 + $0xc8] sm:$0xff] }
 0x187   :  { %951 = vmatpush2.msra.mxu1 %v13922_v54  ;;  %11490 = vmatpush3.msra.mxu0 %v9751_v55  ;;  %v296_v54 = vld [vmem:[%s22327_s5] sm:$0xff]  ;;  %v14502_v55 = vld [vmem:[%s22326_s0 + $0xb0] sm:$0xff] }
 0x188   :  { %807 = vmatmul.mubr.f32.gmra.mxu0 %v9715_v56  ;;  %887 = vmatmul.mubr.f32.gmra.mxu1 %v9747_v28  ;;  %v9833_v56 = vld [vmem:[%s22325_s1 + $0x1a0] sm:$0xff]  ;;  %v14517_v28 = vld [vmem:[%s22326_s0 + $0xb8] sm:$0xff] }
 0x189   :  { %952 = vmatprep.subr.mxu1 %v22332_v0  ;;  %11491 = vmatprep.subr.mxu0 %v9750_v29 }
 0x18a   :  { %953 = vmatpush2.msra.mxu1 %v13898_v51  ;;  %11492 = vmatpush3.msra.mxu0 %v9750_v29  ;;  %v14276_v51 = vld [vmem:[%s22326_s0] sm:$0xff] }
 0x18b   :  { %954 = vmatprep.subr.mxu1 %v22332_v0  ;;  %11493 = vmatprep.subr.mxu0 %v9749_v53  ;;  %v14523_v29 = vld [vmem:[%s22326_s0 + $0xc0] sm:$0xff] }
 0x18c   :  { %955 = vmatpush2.msra.mxu1 %v13904_v52  ;;  %956 = vmatprep.mubr.f32.mxu1 %v297_v30  ;;  %v14285_v52 = vld [vmem:[%s22326_s0 + $0x8] sm:$0xff]  ;;  %v323_v30 = vld [vmem:[%s22327_s5 + $0xd8] sm:$0xff] }
 0x18d   :  { %11494 = vmatpush3.msra.mxu0 %v9749_v53  ;;  %11495 = vmatprep.mubr.f32.mxu0 %v14276_v51  ;;  %v320_v53 = vld [vmem:[%s22327_s5 + $0xc0] sm:$0xff] }
 0x18e   :  { %957 = vmatmul.mubr.f32.vlgmr.msra.gmra.mxu1 %v296_v54  ;;  %11496 = vmatmul.mubr.f32.vlgmr.msra.gmra.mxu0 %v14285_v52  ;;  %v9832_v54 = vld [vmem:[%s22325_s1 + $0x198] sm:$0xff] }
 0x18f   :  { %961 = vmatprep.mubr.f32.mxu1 %v299_v31  ;;  %11498 = vmatprep.mubr.f32.mxu0 %v14291_v32  ;;  %v14538_v31 = vld [vmem:[%s22326_s0 + $0xc8] sm:$0xff] }
 0x190   :  { %11543 = vmatprep.subr.mxu0 %v9844_v23  ;;  %1424 = vmatprep.subr.mxu1 %v22332_v0 }
 0x191   :  { %11544 = vmatpush3.msra.mxu0 %v9844_v23  ;;  %v14544_v23 = vld [vmem:[%s22326_s0 + $0xd0] sm:$0xff] }
 0x192   :  { %962 = vmatmul.mubr.f32.gmra.mxu1 %v298_v33  ;;  %11499 = vmatmul.mubr.f32.gmra.mxu0 %v14307_v17  ;;  %v322_v33 = vld [vmem:[%s22327_s5 + $0xd0] sm:$0xff] }
 0x193   :  { %966 = vmatprep.mubr.f32.mxu1 %v301_v26  ;;  %11501 = vmatprep.mubr.f32.mxu0 %v14313_v35  ;;  %v325_v26 = vld [vmem:[%s22327_s5 + $0xe8] sm:$0xff] }
 0x194   :  { %11545 = vmatprep.subr.mxu0 %v9843_v34 }
 0x195   :  { %11546 = vmatpush3.msra.mxu0 %v9843_v34  ;;  %v9831_v34 = vld [vmem:[%s22325_s1 + $0x190] sm:$0xff] }
 0x196   :  { %967 = vmatmul.mubr.f32.gmra.mxu1 %v300_v36  ;;  %11502 = vmatmul.mubr.f32.gmra.mxu0 %v14328_v13  ;;  %v14559_v36 = vld [vmem:[%s22326_s0 + $0xd8] sm:$0xff] }
 0x197   :  { %971 = vmatprep.mubr.f32.mxu1 %v303_v20  ;;  %11504 = vmatprep.mubr.f32.mxu0 %v14334_v38  ;;  %v14565_v20 = vld [vmem:[%s22326_s0 + $0xe0] sm:$0xff] }
 0x198   :  { %11547 = vmatprep.subr.mxu0 %v9842_v37 }
 0x199   :  { %11548 = vmatpush3.msra.mxu0 %v9842_v37  ;;  %v324_v37 = vld [vmem:[%s22327_s5 + $0xe0] sm:$0xff] }
 0x19a   :  { %972 = vmatmul.mubr.f32.gmra.mxu1 %v302_v39  ;;  %11505 = vmatmul.mubr.f32.gmra.mxu0 %v14349_v9  ;;  %v327_v39 = vld [vmem:[%s22327_s5 + $0xf8] sm:$0xff] }
 0x19b   :  { %976 = vmatprep.mubr.f32.mxu1 %v305_v15  ;;  %11507 = vmatprep.mubr.f32.mxu0 %v14355_v41  ;;  %v9830_v15 = vld [vmem:[%s22325_s1 + $0x188] sm:$0xff] }
 0x19c   :  { %11549 = vmatprep.subr.mxu0 %v9841_v40 }
 0x19d   :  { %11550 = vmatpush3.msra.mxu0 %v9841_v40  ;;  %v14580_v40 = vld [vmem:[%s22326_s0 + $0xe8] sm:$0xff] }
 0x19e   :  { %977 = vmatmul.mubr.f32.gmra.mxu1 %v304_v11  ;;  %11508 = vmatmul.mubr.f32.gmra.mxu0 %v14370_v44  ;;  %v14586_v11 = vld [vmem:[%s22326_s0 + $0xf0] sm:$0xff] }
 0x19f   :  { %981 = vmatprep.mubr.f32.mxu1 %v307_v42  ;;  %11510 = vmatprep.mubr.f32.mxu0 %v14376_v45  ;;  %v326_v42 = vld [vmem:[%s22327_s5 + $0xf0] sm:$0xff] }
 0x1a0   :  { %11551 = vmatprep.subr.mxu0 %v9840_v43 }
 0x1a1   :  { %11552 = vmatpush3.msra.mxu0 %v9840_v43  ;;  %v9829_v43 = vld [vmem:[%s22325_s1 + $0x180] sm:$0xff] }
 0x1a2   :  { %982 = vmatmul.mubr.f32.gmra.mxu1 %v306_v46  ;;  %11511 = vmatmul.mubr.f32.gmra.mxu0 %v14391_v49  ;;  %v329_v46 = vld [vmem:[%s22327_s5 + $0x108] sm:$0xff] }
 0x1a3   :  { %986 = vmatprep.mubr.f32.mxu1 %v309_v47  ;;  %11513 = vmatprep.mubr.f32.mxu0 %v14397_v50  ;;  %v14601_v47 = vld [vmem:[%s22326_s0 + $0xf8] sm:$0xff] }
 0x1a4   :  { %11553 = vmatprep.subr.mxu0 %v9839_v48 }
 0x1a5   :  { %11554 = vmatpush3.msra.mxu0 %v9839_v48  ;;  %v328_v48 = vld [vmem:[%s22327_s5 + $0x100] sm:$0xff] }
 0x1a6   :  { %987 = vmatmul.mubr.f32.gmra.mxu1 %v308_v57  ;;  %11514 = vmatmul.mubr.f32.gmra.mxu0 %v14412_v61  ;;  %v331_v57 = vld [vmem:[%s22327_s5 + $0x118] sm:$0xff] }
 0x1a7   :  { %991 = vmatprep.mubr.f32.mxu1 %v311_v58  ;;  %11516 = vmatprep.mubr.f32.mxu0 %v14418_v62  ;;  %v333_v58 = vld [vmem:[%s22327_s5 + $0x128] sm:$0xff] }
 0x1a8   :  { %11555 = vmatprep.subr.mxu0 %v9838_v59 }
 0x1a9   :  { %11556 = vmatpush3.msra.mxu0 %v9838_v59  ;;  %v344_v59 = vld [vmem:[%s22327_s5 + $0x180] sm:$0xff] }
 0x1aa   :  { %992 = vmatmul.mubr.f32.gmra.mxu1 %v310_v63  ;;  %11517 = vmatmul.mubr.f32.gmra.mxu0 %v14433_v4  ;;  %v349_v63 = vld [vmem:[%s22327_s5 + $0x1a8] sm:$0xff] }
 0x1ab   :  { %996 = vmatprep.mubr.f32.mxu1 %v313_v1  ;;  %11519 = vmatprep.mubr.f32.mxu0 %v14439_v5  ;;  %v348_v1 = vld [vmem:[%s22327_s5 + $0x1a0] sm:$0xff] }
 0x1ac   :  { %11557 = vmatprep.subr.mxu0 %v9837_v3 }
 0x1ad   :  { %11558 = vmatpush3.msra.mxu0 %v9837_v3  ;;  %v351_v3 = vld [vmem:[%s22327_s5 + $0x1b8] sm:$0xff] }
 0x1ae   :  { %997 = vmatmul.mubr.f32.gmra.mxu1 %v312_v6  ;;  %11520 = vmatmul.mubr.f32.gmra.mxu0 %v14454_v10  ;;  %v352_v6 = vld [vmem:[%s22327_s5 + $0x1c0] sm:$0xff] }
 0x1af   :  { %1001 = vmatprep.mubr.f32.mxu1 %v315_v8  ;;  %11522 = vmatprep.mubr.f32.mxu0 %v14460_v12  ;;  %v355_v8 = vld [vmem:[%s22327_s5 + $0x1d8] sm:$0xff] }
 0x1b0   :  { %11559 = vmatprep.subr.mxu0 %v9836_v7 }
 0x1b1   :  { %11560 = vmatpush3.msra.mxu0 %v9836_v7 }
 0x1b2   :  { %1002 = vmatmul.mubr.f32.gmra.mxu1 %v314_v14  ;;  %11523 = vmatmul.mubr.f32.gmra.mxu0 %v14475_v60 }
 0x1b3   :  { %1006 = vmatprep.mubr.f32.mxu1 %v317_v16  ;;  %11525 = vmatprep.mubr.f32.mxu0 %v14481_v19 }
 0x1b4   :  { %11561 = vmatprep.subr.mxu0 %v9835_v18 }
 0x1b5   :  { %11562 = vmatpush3.msra.mxu0 %v9835_v18  ;;  %v357_v18 = vld [vmem:[%s22327_s5 + $0x1e8] sm:$0xff] }
 0x1b6   :  { %1007 = vmatmul.mubr.f32.gmra.mxu1 %v316_v21  ;;  %11526 = vmatmul.mubr.f32.gmra.mxu0 %v14496_v24  ;;  %v356_v21 = vld [vmem:[%s22327_s5 + $0x1e0] sm:$0xff] }
 0x1b7   :  { %1011 = vmatprep.mubr.f32.mxu1 %v319_v2  ;;  %11528 = vmatprep.mubr.f32.mxu0 %v14502_v55 }
 0x1b8   :  { %11563 = vmatprep.subr.mxu0 %v9834_v22 }
 0x1b9   :  { %11564 = vmatpush3.msra.mxu0 %v9834_v22  ;;  %v359_v22 = vld [vmem:[%s22327_s5 + $0x1f8] sm:$0xff] }
 0x1ba   :  { %1012 = vmatmul.mubr.f32.gmra.mxu1 %v318_v25  ;;  %11529 = vmatmul.mubr.f32.gmra.mxu0 %v14517_v28 }
 0x1bb   :  { %1016 = vmatprep.mubr.f32.mxu1 %v321_v27  ;;  %11531 = vmatprep.mubr.f32.mxu0 %v14523_v29  ;;  %v358_v27 = vld [vmem:[%s22327_s5 + $0x1f0] sm:$0xff] }
 0x1bc   :  { %11565 = vmatprep.subr.mxu0 %v9833_v56 }
 0x1bd   :  { %11566 = vmatpush3.msra.mxu0 %v9833_v56 }
 0x1be   :  { %1017 = vmatmul.mubr.f32.gmra.mxu1 %v320_v53  ;;  %11532 = vmatmul.mubr.f32.gmra.mxu0 %v14538_v31 }
 0x1bf   :  { %1021 = vmatprep.mubr.f32.mxu1 %v323_v30  ;;  %11534 = vmatprep.mubr.f32.mxu0 %v14544_v23 }
 0x1c0   :  { %11567 = vmatprep.subr.mxu0 %v9832_v54 }
 0x1c1   :  { %11568 = vmatpush3.msra.mxu0 %v9832_v54 }
 0x1c2   :  { %1022 = vmatmul.mubr.f32.gmra.mxu1 %v322_v33  ;;  %11535 = vmatmul.mubr.f32.gmra.mxu0 %v14559_v36 }
 0x1c3   :  { %1026 = vmatprep.mubr.f32.mxu1 %v325_v26  ;;  %11537 = vmatprep.mubr.f32.mxu0 %v14565_v20 }
 0x1c4   :  { %11569 = vmatprep.subr.mxu0 %v9831_v34 }
 0x1c5   :  { %11570 = vmatpush3.msra.mxu0 %v9831_v34 }
 0x1c6   :  { %1027 = vmatmul.mubr.f32.gmra.mxu1 %v324_v37  ;;  %11538 = vmatmul.mubr.f32.gmra.mxu0 %v14580_v40 }
 0x1c7   :  { %1031 = vmatprep.mubr.f32.mxu1 %v327_v39  ;;  %11540 = vmatprep.mubr.f32.mxu0 %v14586_v11 }
 0x1c8   :  { %11571 = vmatprep.subr.mxu0 %v9830_v15 }
 0x1c9   :  { %11572 = vmatpush3.msra.mxu0 %v9830_v15 }
 0x1ca   :  { %1032 = vmatmul.mubr.f32.gmra.mxu1 %v326_v42  ;;  %11541 = vmatmul.mubr.f32.gmra.mxu0 %v14601_v47 }
 0x1cb   :  { %11573 = vmatprep.subr.mxu0 %v9829_v43  ;;  %11575 = vmatprep.mubr.f32.mxu0 %v14276_v51  ;;  %v330_v51 = vld [vmem:[%s22327_s5 + $0x110] sm:$0xff] }
 0x1cc   :  { %11574 = vmatpush3.msra.mxu0 %v9829_v43  ;;  %1036 = vmatprep.mubr.f32.mxu1 %v329_v46 }
 0x1cd   :  { %1988 = vmatprep.subr.mxu0 %v22332_v0 }
 0x1ce   :  { %11576 = vmatmul.mubr.f32.vlgmr.msra.gmra.mxu0 %v14285_v52  ;;  %1037 = vmatmul.mubr.f32.gmra.mxu1 %v328_v48  ;;  %v332_v52 = vld [vmem:[%s22327_s5 + $0x120] sm:$0xff] }
 0x1cf   :  { %11578 = vmatprep.mubr.f32.mxu0 %v14291_v32  ;;  %1041 = vmatprep.mubr.f32.mxu1 %v331_v57  ;;  %v335_v32 = vld [vmem:[%s22327_s5 + $0x138] sm:$0xff] }
 0x1d2   :  { %11579 = vmatmul.mubr.f32.gmra.mxu0 %v14307_v17  ;;  %1042 = vmatmul.mubr.f32.gmra.mxu1 %v330_v51  ;;  %v334_v17 = vld [vmem:[%s22327_s5 + $0x130] sm:$0xff] }
 0x1d3   :  { %11581 = vmatprep.mubr.f32.mxu0 %v14313_v35  ;;  %1046 = vmatprep.mubr.f32.mxu1 %v333_v58  ;;  %v337_v35 = vld [vmem:[%s22327_s5 + $0x148] sm:$0xff] }
 0x1d6   :  { %11582 = vmatmul.mubr.f32.gmra.mxu0 %v14328_v13  ;;  %1047 = vmatmul.mubr.f32.gmra.mxu1 %v332_v52  ;;  %v336_v13 = vld [vmem:[%s22327_s5 + $0x140] sm:$0xff] }
 0x1d7   :  { %11584 = vmatprep.mubr.f32.mxu0 %v14334_v38  ;;  %1051 = vmatprep.mubr.f32.mxu1 %v335_v32  ;;  %v339_v38 = vld [vmem:[%s22327_s5 + $0x158] sm:$0xff] }
 0x1da   :  { %11585 = vmatmul.mubr.f32.gmra.mxu0 %v14349_v9  ;;  %1052 = vmatmul.mubr.f32.gmra.mxu1 %v334_v17  ;;  %v338_v9 = vld [vmem:[%s22327_s5 + $0x150] sm:$0xff] }
 0x1db   :  { %11587 = vmatprep.mubr.f32.mxu0 %v14355_v41  ;;  %1056 = vmatprep.mubr.f32.mxu1 %v337_v35  ;;  %v341_v41 = vld [vmem:[%s22327_s5 + $0x168] sm:$0xff] }
 0x1de   :  { %11588 = vmatmul.mubr.f32.gmra.mxu0 %v14370_v44  ;;  %1057 = vmatmul.mubr.f32.gmra.mxu1 %v336_v13  ;;  %v340_v44 = vld [vmem:[%s22327_s5 + $0x160] sm:$0xff]  ;;  %v9766_v13 = vld [vmem:[%s22327_s5 + $0x408] sm:$0xff] }
 0x1df   :  { %11590 = vmatprep.mubr.f32.mxu0 %v14376_v45  ;;  %1061 = vmatprep.mubr.f32.mxu1 %v339_v38  ;;  %v343_v45 = vld [vmem:[%s22327_s5 + $0x178] sm:$0xff] }
 0x1e2   :  { %11591 = vmatmul.mubr.f32.gmra.mxu0 %v14391_v49  ;;  %1062 = vmatmul.mubr.f32.gmra.mxu1 %v338_v9  ;;  %v342_v49 = vld [vmem:[%s22327_s5 + $0x170] sm:$0xff] }
 0x1e3   :  { %11593 = vmatprep.mubr.f32.mxu0 %v14397_v50  ;;  %1066 = vmatprep.mubr.f32.mxu1 %v341_v41  ;;  %v345_v50 = vld [vmem:[%s22327_s5 + $0x188] sm:$0xff] }
 0x1e6   :  { %11594 = vmatmul.mubr.f32.gmra.mxu0 %v14412_v61  ;;  %1067 = vmatmul.mubr.f32.gmra.mxu1 %v340_v44  ;;  %v347_v61 = vld [vmem:[%s22327_s5 + $0x198] sm:$0xff] }
 0x1e7   :  { %11596 = vmatprep.mubr.f32.mxu0 %v14418_v62  ;;  %1071 = vmatprep.mubr.f32.mxu1 %v343_v45  ;;  %v346_v62 = vld [vmem:[%s22327_s5 + $0x190] sm:$0xff] }
 0x1ea   :  { %11597 = vmatmul.mubr.f32.gmra.mxu0 %v14433_v4  ;;  %1072 = vmatmul.mubr.f32.gmra.mxu1 %v342_v49  ;;  %v350_v4 = vld [vmem:[%s22327_s5 + $0x1b0] sm:$0xff] }
 0x1eb   :  { %11599 = vmatprep.mubr.f32.mxu0 %v14439_v5  ;;  %1076 = vmatprep.mubr.f32.mxu1 %v345_v50  ;;  %v353_v5 = vld [vmem:[%s22327_s5 + $0x1c8] sm:$0xff] }
 0x1ee   :  { %11600 = vmatmul.mubr.f32.gmra.mxu0 %v14454_v10  ;;  %1077 = vmatmul.mubr.f32.gmra.mxu1 %v344_v59 }
 0x1ef   :  { %11602 = vmatprep.mubr.f32.mxu0 %v14460_v12  ;;  %1081 = vmatprep.mubr.f32.mxu1 %v347_v61  ;;  %v354_v12 = vld [vmem:[%s22327_s5 + $0x1d0] sm:$0xff] }
 0x1f2   :  { %11603 = vmatmul.mubr.f32.gmra.mxu0 %v14475_v60  ;;  %1082 = vmatmul.mubr.f32.gmra.mxu1 %v346_v62 }
 0x1f3   :  { %11605 = vmatprep.mubr.f32.mxu0 %v14481_v19  ;;  %1086 = vmatprep.mubr.f32.mxu1 %v349_v63 }
 0x1f6   :  { %11606 = vmatmul.mubr.f32.gmra.mxu0 %v14496_v24  ;;  %1087 = vmatmul.mubr.f32.gmra.mxu1 %v348_v1 }
 0x1f7   :  { %11608 = vmatprep.mubr.f32.mxu0 %v14502_v55  ;;  %1091 = vmatprep.mubr.f32.mxu1 %v351_v3 }
 0x1fa   :  { %11609 = vmatmul.mubr.f32.gmra.mxu0 %v14517_v28  ;;  %1092 = vmatmul.mubr.f32.gmra.mxu1 %v350_v4 }
 0x1fb   :  { %11611 = vmatprep.mubr.f32.mxu0 %v14523_v29  ;;  %1096 = vmatprep.mubr.f32.mxu1 %v353_v5 }
 0x1fe   :  { %11612 = vmatmul.mubr.f32.gmra.mxu0 %v14538_v31  ;;  %v14709_v7 = vpop.f32.mrf.mxu0  ;;  %v14711_v10 = vpop.f32.mrf.mxu1  ;;  %1097 = vmatmul.mubr.f32.gmra.mxu1 %v352_v6 }
 0x1ff   :  { %22367 = vst [vmem:[#allocation2_spill] sm:$0xff] %v14711_v10  ;;  %11614 = vmatprep.mubr.f32.mxu0 %v14544_v23  ;;  %1101 = vmatprep.mubr.f32.mxu1 %v355_v8  ;;  %v9905_v10 = vld [vmem:[%s22327_s5 + $0x7e0] sm:$0xff] }
 0x200   :  { %v735_v14 = vpop.f32.mrf.mxu0  ;;  %v815_v16 = vpop.f32.mrf.mxu1 }
 0x202   :  { %11615 = vmatmul.mubr.f32.gmra.mxu0 %v14559_v36  ;;  %v14721_v60 = vpop.f32.mrf.mxu0  ;;  %1102 = vmatmul.mubr.f32.gmra.mxu1 %v354_v12 }
 0x203   :  { %11617 = vmatprep.mubr.f32.mxu0 %v14565_v20  ;;  %v14724_v19 = vpop.f32.mrf.mxu1  ;;  %1106 = vmatprep.mubr.f32.mxu1 %v357_v18 }
 0x204   :  { %22368 = vst [vmem:[#allocation3_spill] sm:$0xff] %v14724_v19  ;;  %v740_v2 = vpop.f32.mrf.mxu0  ;;  %v9903_v19 = vld [vmem:[%s22327_s5 + $0x7d0] sm:$0xff] }
 0x205   :  { %v820_v24 = vpop.f32.mrf.mxu1 }
 0x206   :  { %11618 = vmatmul.mubr.f32.gmra.mxu0 %v14580_v40  ;;  %v14733_v55 = vpop.f32.mrf.mxu0  ;;  %1107 = vmatmul.mubr.f32.gmra.mxu1 %v356_v21 }
 0x207   :  { %11620 = vmatprep.mubr.f32.mxu0 %v14586_v11  ;;  %v14736_v25 = vpop.f32.mrf.mxu1  ;;  %1111 = vmatprep.mubr.f32.mxu1 %v359_v22 }
 0x208   :  { %22369 = vst [vmem:[#allocation4_spill] sm:$0xff] %v14736_v25  ;;  %v745_v56 = vpop.f32.mrf.mxu0  ;;  %v9901_v25 = vld [vmem:[%s22327_s5 + $0x7c0] sm:$0xff] }
 0x209   :  { %v825_v28 = vpop.f32.mrf.mxu1 }
 0x20a   :  { %11621 = vmatmul.mubr.f32.gmra.mxu0 %v14601_v47  ;;  %v14742_v29 = vpop.f32.mrf.mxu0  ;;  %1112 = vmatmul.mubr.f32.gmra.mxu1 %v358_v27 }
 0x20b   :  { %v14744_v53 = vpop.f32.mrf.mxu1  ;;  %1488 = vmatprep.mubr.f32.mxu1 %v9766_v13 }
 0x20c   :  { %22370 = vst [vmem:[#allocation5_spill] sm:$0xff] %v14744_v53  ;;  %v750_v30 = vpop.f32.mrf.mxu0  ;;  %v9899_v53 = vld [vmem:[%s22327_s5 + $0x7b0] sm:$0xff] }
 0x20d   :  { %v830_v54 = vpop.f32.mrf.mxu1 }
 0x20e   :  { %v14746_v31 = vpop.f32.mrf.mxu0 }
 0x20f   :  { %v14748_v23 = vpop.f32.mrf.mxu1 }
 0x210   :  { %22371 = vst [vmem:[#allocation6_spill] sm:$0xff] %v14748_v23  ;;  %v755_v33 = vpop.f32.mrf.mxu0 }
 0x211   :  { %v835_v26 = vpop.f32.mrf.mxu1 }
 0x212   :  { %v14750_v34 = vpop.f32.mrf.mxu0 }
 0x213   :  { %v14752_v36 = vpop.f32.mrf.mxu1 }
 0x214   :  { %22372 = vst [vmem:[#allocation7_spill] sm:$0xff] %v14752_v36  ;;  %v760_v20 = vpop.f32.mrf.mxu0 }
 0x215   :  { %v840_v37 = vpop.f32.mrf.mxu1 }
 0x216   :  { %v14754_v39 = vpop.f32.mrf.mxu0 }
 0x217   :  { %v14756_v15 = vpop.f32.mrf.mxu1 }
 0x218   :  { %22373 = vst [vmem:[#allocation8_spill] sm:$0xff] %v14756_v15  ;;  %v765_v40 = vpop.f32.mrf.mxu0 }
 0x219   :  { %v845_v11 = vpop.f32.mrf.mxu1 }
 0x21a   :  { %v14758_v42 = vpop.f32.mrf.mxu0 }
 0x21b   :  { %v14760_v43 = vpop.f32.mrf.mxu1 }
 0x21c   :  { %22374 = vst [vmem:[#allocation9_spill] sm:$0xff] %v14760_v43  ;;  %v770_v46 = vpop.f32.mrf.mxu0 }
 0x21d   :  { %v850_v47 = vpop.f32.mrf.mxu1 }
 0x21e   :  { %v14762_v48 = vpop.f32.mrf.mxu0 }
 0x21f   :  { %v14764_v57 = vpop.f32.mrf.mxu1 }
 0x220   :  { %22375 = vst [vmem:[#allocation10_spill] sm:$0xff] %v14764_v57  ;;  %v775_v51 = vpop.f32.mrf.mxu0 }
 0x221   :  { %v855_v58 = vpop.f32.mrf.mxu1 }
 0x224   :  { %v14766_v52 = vpop.f32.mrf.mxu0  ;;  %v14768_v32 = vpop.f32.mrf.mxu1 }
 0x225   :  { %22376 = vst [vmem:[#allocation11_spill] sm:$0xff] %v14768_v32 }
 0x226   :  { %v780_v17 = vpop.f32.mrf.mxu0  ;;  %v860_v35 = vpop.f32.mrf.mxu1 }
 0x22a   :  { %v14773_v38 = vpop.f32.mrf.mxu0  ;;  %v14775_v9 = vpop.f32.mrf.mxu1 }
 0x22b   :  { %22377 = vst [vmem:[#allocation12_spill] sm:$0xff] %v14775_v9 }
 0x22c   :  { %v785_v41 = vpop.f32.mrf.mxu0  ;;  %v865_v44 = vpop.f32.mrf.mxu1 }
 0x230   :  { %v14777_v45 = vpop.f32.mrf.mxu0  ;;  %v14779_v49 = vpop.f32.mrf.mxu1 }
 0x231   :  { %22378 = vst [vmem:[#allocation13_spill] sm:$0xff] %v14779_v49 }
 0x232   :  { %v790_v50 = vpop.f32.mrf.mxu0  ;;  %v870_v59 = vpop.f32.mrf.mxu1 }
 0x236   :  { %v14781_v61 = vpop.f32.mrf.mxu0  ;;  %v14783_v62 = vpop.f32.mrf.mxu1 }
 0x237   :  { %22379 = vst [vmem:[#allocation14_spill] sm:$0xff] %v14783_v62 }
 0x238   :  { %v795_v63 = vpop.f32.mrf.mxu0  ;;  %v875_v1 = vpop.f32.mrf.mxu1 }
 0x23c   :  { %v14785_v3 = vpop.f32.mrf.mxu0  ;;  %v14787_v4 = vpop.f32.mrf.mxu1 }
 0x23d   :  { %22380 = vst [vmem:[#allocation15_spill] sm:$0xff] %v14787_v4 }
 0x23e   :  { %v800_v5 = vpop.f32.mrf.mxu0  ;;  %v880_v6 = vpop.f32.mrf.mxu1 }
 0x242   :  { %v14789_v8 = vpop.f32.mrf.mxu0  ;;  %v14791_v12 = vpop.f32.mrf.mxu1 }
 0x243   :  { %22381 = vst [vmem:[#allocation16_spill] sm:$0xff] %v14789_v8  ;;  %22382 = vst [vmem:[#allocation17_spill] sm:$0xff] %v14791_v12 }
 0x244   :  { %v805_v14 = vpop.f32.mrf.mxu0  ;;  %v885_v16 = vpop.f32.mrf.mxu1 }
 0x245   :  { %v9846_v16 = vld [vmem:[%s22327_s5 + $0x608] sm:$0xff] }
 0x246   :  { %2052 = vmatprep.mubr.f32.mxu0 %v9846_v16 }
 0x248   :  { %v14793_v18 = vpop.f32.mrf.mxu0  ;;  %v14795_v21 = vpop.f32.mrf.mxu1 }
 0x249   :  { %22383 = vst [vmem:[#allocation18_spill] sm:$0xff] %v14793_v18  ;;  %22384 = vst [vmem:[#allocation19_spill] sm:$0xff] %v14795_v21  ;;  %v9907_v18 = vld [vmem:[%s22327_s5 + $0x7f0] sm:$0xff] }
 0x24a   :  { %v810_v2 = vpop.f32.mrf.mxu0  ;;  %v890_v22 = vpop.f32.mrf.mxu1 }
 0x24e   :  { %v14797_v24 = vpop.f32.mrf.mxu1  ;;  %v14799_v27 = vpop.f32.mrf.mxu0 }
 0x250   :  { %v960_v56 = vpop.f32.mrf.mxu1  ;;  %v14801_v28 = vpop.f32.mrf.mxu0 }
 0x252   :  { %v14803_v30 = vpop.f32.mrf.mxu1  ;;  %v14805_v54 = vpop.f32.mrf.mxu0 }
 0x254   :  { %v965_v33 = vpop.f32.mrf.mxu1  ;;  %v14807_v26 = vpop.f32.mrf.mxu0 }
 0x256   :  { %v14809_v20 = vpop.f32.mrf.mxu1  ;;  %v11503_v37 = vpop.f32.mrf.mxu0 }
 0x258   :  { %v970_v40 = vpop.f32.mrf.mxu1  ;;  %v14811_v11 = vpop.f32.mrf.mxu0 }
 0x25a   :  { %v14813_v46 = vpop.f32.mrf.mxu1  ;;  %v11506_v47 = vpop.f32.mrf.mxu0 }
 0x25c   :  { %v975_v51 = vpop.f32.mrf.mxu1  ;;  %v1230_v58 = vpop.f32.mrf.mxu0 }
 0x25e   :  { %v14815_v17 = vpop.f32.mrf.mxu1  ;;  %v11509_v35 = vpop.f32.mrf.mxu0 }
 0x260   :  { %v980_v13 = vpop.f32.mrf.mxu1  ;;  %v1240_v41 = vpop.f32.mrf.mxu0 }
 0x262   :  { %v14817_v44 = vpop.f32.mrf.mxu1  ;;  %v11512_v50 = vpop.f32.mrf.mxu0 }
 0x264   :  { %v985_v59 = vpop.f32.mrf.mxu1  ;;  %v1250_v63 = vpop.f32.mrf.mxu0 }
 0x266   :  { %v14819_v1 = vpop.f32.mrf.mxu1  ;;  %v11515_v5 = vpop.f32.mrf.mxu0 }
 0x268   :  { %v990_v6 = vpop.f32.mrf.mxu1  ;;  %v1260_v14 = vpop.f32.mrf.mxu0 }
 0x26a   :  { %v14824_v2 = vpop.f32.mrf.mxu1  ;;  %v11518_v22 = vpop.f32.mrf.mxu0 }
 0x26b   :  { %1425 = vmatpush1.msra.mxu1 %v11518_v22 }
 0x26c   :  { %v995_v56 = vpop.f32.mrf.mxu1  ;;  %v1270_v33 = vpop.f32.mrf.mxu0  ;;  %1426 = vmatprep.subr.mxu1 %v22332_v0 }
 0x26d   :  { %1427 = vmatpush1.msra.mxu1 %v1270_v33 }
 0x26e   :  { %v14827_v40 = vpop.f32.mrf.mxu1  ;;  %v14829_v51 = vpop.f32.mrf.mxu0  ;;  %1428 = vmatprep.subr.mxu1 %v22332_v0 }
 0x26f   :  { %1429 = vmatpush1.msra.mxu1 %v11515_v5 }
 0x270   :  { %v1000_v13 = vpop.f32.mrf.mxu1  ;;  %v14832_v59 = vpop.f32.mrf.mxu0  ;;  %1430 = vmatprep.subr.mxu1 %v22332_v0 }
 0x271   :  { %1431 = vmatpush1.msra.mxu1 %v1260_v14 }
 0x272   :  { %v14835_v6 = vpop.f32.mrf.mxu1  ;;  %v14837_v16 = vpop.f32.mrf.mxu0  ;;  %1432 = vmatprep.subr.mxu1 %v22332_v0 }
 0x273   :  { %1433 = vmatpush1.msra.mxu1 %v11512_v50 }
 0x274   :  { %v1005_v22 = vpop.f32.mrf.mxu1  ;;  %v14840_v56 = vpop.f32.mrf.mxu0  ;;  %1434 = vmatprep.subr.mxu1 %v22332_v0 }
 0x275   :  { %1435 = vmatpush1.msra.mxu1 %v1250_v63 }
 0x276   :  { %v14843_v5 = vpop.f32.mrf.mxu1  ;;  %v14845_v33 = vpop.f32.mrf.mxu0  ;;  %1436 = vmatprep.subr.mxu1 %v22332_v0 }
 0x277   :  { %1437 = vmatpush1.msra.mxu1 %v11509_v35 }
 0x278   :  { %v1010_v14 = vpop.f32.mrf.mxu1  ;;  %v14848_v13 = vpop.f32.mrf.mxu0  ;;  %1438 = vmatprep.subr.mxu1 %v22332_v0 }
 0x279   :  { %1439 = vmatpush1.msra.mxu1 %v1240_v41 }
 0x27a   :  { %v14851_v50 = vpop.f32.mrf.mxu1  ;;  %v14853_v22 = vpop.f32.mrf.mxu0  ;;  %1440 = vmatprep.subr.mxu1 %v22332_v0 }
 0x27b   :  { %1441 = vmatpush1.msra.mxu1 %v11506_v47 }
 0x27c   :  { %v1015_v63 = vpop.f32.mrf.mxu1  ;;  %v14856_v21 = vpop.f32.mrf.mxu0  ;;  %1442 = vmatprep.subr.mxu1 %v22332_v0 }
 0x27d   :  { %1443 = vmatpush1.msra.mxu1 %v1230_v58 }
 0x27e   :  { %v14859_v35 = vpop.f32.mrf.mxu1  ;;  %v11533_v14 = vpop.f32.mrf.mxu0  ;;  %1444 = vmatprep.subr.mxu1 %v22332_v0 }
 0x27f   :  { %1445 = vmatpush1.msra.mxu1 %v11503_v37 }
 0x280   :  { %v1020_v41 = vpop.f32.mrf.mxu1  ;;  %v1320_v12 = vpop.f32.mrf.mxu0  ;;  %1446 = vmatprep.subr.mxu1 %v22332_v0 }
 0x281   :  { %1447 = vmatpush1.msra.mxu1 %v14811_v11 }
 0x282   :  { %v14864_v4 = vpop.f32.mrf.mxu1  ;;  %v11536_v47 = vpop.f32.mrf.mxu0  ;;  %1448 = vmatprep.subr.mxu1 %v22332_v0 }
 0x283   :  { %1449 = vmatpush1.msra.mxu1 %v14805_v54 }
 0x284   :  { %v1025_v58 = vpop.f32.mrf.mxu1  ;;  %v1330_v63 = vpop.f32.mrf.mxu0  ;;  %1450 = vmatprep.subr.mxu1 %v22332_v0 }
 0x285   :  { %1451 = vmatpush1.msra.mxu1 %v14807_v26 }
 0x286   :  { %v14870_v37 = vpop.f32.mrf.mxu1  ;;  %v11539_v41 = vpop.f32.mrf.mxu0  ;;  %1452 = vmatprep.subr.mxu1 %v22332_v0 }
 0x287   :  { %22385 = vst [vmem:[#allocation20_spill] sm:$0xff] %v14870_v37  ;;  %1453 = vmatpush1.msra.mxu1 %v14799_v27  ;;  %v964_v37 = vadd.f32 %v14803_v30, %v14721_v60  ;;  %v974_v60 = vadd.f32 %v14813_v46, %v14742_v29  ;;  %v984_v29 = vadd.f32 %v14817_v44, %v14750_v34 }
 0x288   :  { %v1030_v11 = vpop.f32.mrf.mxu1  ;;  %v1340_v62 = vpop.f32.mrf.mxu0  ;;  %1454 = vmatprep.subr.mxu1 %v22332_v0  ;;  %v994_v34 = vadd.f32 %v14824_v2, %v14758_v42  ;;  %v1004_v42 = vadd.f32 %v14835_v6, %v14766_v52  ;;  %v1014_v52 = vadd.f32 %v14851_v50, %v14777_v45  ;;  %v1024_v45 = vadd.f32 %v14864_v4, %v14785_v3  ;;  %v22411_v3 = vld [vmem:[#allocation18_spill] sm:$0xff] }
 0x289   :  { %1455 = vmatpush1.msra.mxu1 %v14801_v28 }
 0x28a   :  { %v14876_v54 = vpop.f32.mrf.mxu1  ;;  %v11542_v58 = vpop.f32.mrf.mxu0  ;;  %1456 = vmatprep.subr.mxu1 %v22332_v0 }
 0x28b   :  { %22386 = vst [vmem:[#allocation21_spill] sm:$0xff] %v14876_v54  ;;  %1457 = vmatpush2.msra.mxu1 %v11542_v58  ;;  %v15681_v54 = vld [vmem:[%s22326_s0 + $0xf0] sm:$0xff] }
 0x28c   :  { %v1350_v26 = vpop.f32.mrf.mxu0  ;;  %1458 = vmatprep.subr.mxu1 %v22332_v0  ;;  %v1035_v49 = vpop.f32.mrf.mxu1  ;;  %22405 = vst [vmem:[#allocation39_spill] sm:$0xff] %v15681_v54 }
 0x28d   :  { %1459 = vmatpush2.msra.mxu1 %v1350_v26 }
 0x28e   :  { %1460 = vmatprep.subr.mxu1 %v22332_v0  ;;  %v14881_v27 = vpop.f32.mrf.mxu0  ;;  %v14883_v11 = vpop.f32.mrf.mxu1 }
 0x28f   :  { %22387 = vst [vmem:[#allocation22_spill] sm:$0xff] %v14883_v11  ;;  %1461 = vmatpush2.msra.mxu1 %v11539_v41  ;;  %v15663_v11 = vld [vmem:[%s22326_s0 + $0xe0] sm:$0xff] }
 0x290   :  { %1462 = vmatprep.subr.mxu1 %v22332_v0  ;;  %v14886_v28 = vpop.f32.mrf.mxu0  ;;  %v1040_v9 = vpop.f32.mrf.mxu1 }
 0x291   :  { %1463 = vmatpush2.msra.mxu1 %v1340_v62 }
 0x292   :  { %1464 = vmatprep.subr.mxu1 %v22332_v0  ;;  %v14889_v58 = vpop.f32.mrf.mxu0  ;;  %v14891_v32 = vpop.f32.mrf.mxu1  ;;  %v22412_v4 = vld [vmem:[#allocation21_spill] sm:$0xff] }
 0x293   :  { %22388 = vst [vmem:[#allocation23_spill] sm:$0xff] %v14891_v32  ;;  %1465 = vmatpush2.msra.mxu1 %v11536_v47  ;;  %v15645_v32 = vld [vmem:[%s22326_s0 + $0xd0] sm:$0xff] }
 0x294   :  { %1466 = vmatprep.subr.mxu1 %v22332_v0  ;;  %v14894_v49 = vpop.f32.mrf.mxu0  ;;  %v1045_v26 = vpop.f32.mrf.mxu1 }
 0x295   :  { %1467 = vmatpush2.msra.mxu1 %v1330_v63 }
 0x296   :  { %1468 = vmatprep.subr.mxu1 %v22332_v0  ;;  %v14897_v41 = vpop.f32.mrf.mxu0  ;;  %v14899_v57 = vpop.f32.mrf.mxu1 }
 0x297   :  { %22389 = vst [vmem:[#allocation24_spill] sm:$0xff] %v14899_v57  ;;  %1469 = vmatpush2.msra.mxu1 %v11533_v14  ;;  %v15627_v57 = vld [vmem:[%s22326_s0 + $0xc0] sm:$0xff] }
 0x298   :  { %1470 = vmatprep.subr.mxu1 %v22332_v0  ;;  %v14902_v9 = vpop.f32.mrf.mxu0  ;;  %v1050_v62 = vpop.f32.mrf.mxu1 }
 0x299   :  { %1471 = vmatpush2.msra.mxu1 %v1320_v12 }
 0x29a   :  { %1472 = vmatprep.subr.mxu1 %v22332_v0  ;;  %v14905_v47 = vpop.f32.mrf.mxu0  ;;  %v14907_v43 = vpop.f32.mrf.mxu1 }
 0x29b   :  { %22390 = vst [vmem:[#allocation25_spill] sm:$0xff] %v14907_v43  ;;  %1473 = vmatpush2.msra.mxu1 %v14853_v22  ;;  %v22395_v43 = vmov 0.0  }
 0x29c   :  { %1474 = vmatprep.subr.mxu1 %v22332_v0  ;;  %v14911_v63 = vpop.f32.mrf.mxu0  ;;  %v1055_v26 = vpop.f32.mrf.mxu1 }
 0x29d   :  { %1475 = vmatpush2.msra.mxu1 %v14856_v21 }
 0x29e   :  { %1476 = vmatprep.subr.mxu1 %v22332_v0  ;;  %v14915_v14 = vpop.f32.mrf.mxu0  ;;  %v14917_v12 = vpop.f32.mrf.mxu1 }
 0x29f   :  { %22391 = vst [vmem:[#allocation26_spill] sm:$0xff] %v14917_v12  ;;  %1477 = vmatpush2.msra.mxu1 %v14845_v33 }
 0x2a0   :  { %1478 = vmatprep.subr.mxu1 %v22332_v0  ;;  %v14921_v62 = vpop.f32.mrf.mxu0  ;;  %v1060_v22 = vpop.f32.mrf.mxu1 }
 0x2a1   :  { %1479 = vmatpush2.msra.mxu1 %v14848_v13  ;;  %v9765_v13 = vld [vmem:[%s22327_s5 + $0x400] sm:$0xff] }
 0x2a2   :  { %1480 = vmatprep.subr.mxu1 %v22332_v0  ;;  %v11592_v26 = vpop.f32.mrf.mxu0  ;;  %v14925_v15 = vpop.f32.mrf.mxu1 }
 0x2a3   :  { %22392 = vst [vmem:[#allocation27_spill] sm:$0xff] %v14925_v15  ;;  %1481 = vmatpush2.msra.mxu1 %v14837_v16  ;;  %v9924_v16 = vld [vmem:[%s22325_s1 + $0x278] sm:$0xff]  ;;  %v9923_v15 = vld [vmem:[%s22325_s1 + $0x270] sm:$0xff] }
 0x2a4   :  { %1482 = vmatprep.subr.mxu1 %v22332_v0  ;;  %v1814_v21 = vpop.f32.mrf.mxu0  ;;  %v1065_v36 = vpop.f32.mrf.mxu1 }
 0x2a5   :  { %1483 = vmatpush2.msra.mxu1 %v14840_v56  ;;  %v9768_v56 = vld [vmem:[%s22327_s5 + $0x418] sm:$0xff] }
 0x2a6   :  { %1484 = vmatprep.subr.mxu1 %v22332_v0  ;;  %v11595_v33 = vpop.f32.mrf.mxu0  ;;  %v14931_v12 = vpop.f32.mrf.mxu1 }
 0x2a7   :  { %22393 = vst [vmem:[#allocation28_spill] sm:$0xff] %v14931_v12  ;;  %1485 = vmatpush2.msra.mxu1 %v14829_v51 }
 0x2a8   :  { %1486 = vmatprep.subr.mxu1 %v22332_v0  ;;  %v1824_v36 = vpop.f32.mrf.mxu0  ;;  %v1070_v22 = vpop.f32.mrf.mxu1  ;;  %v9767_v0 = vld [vmem:[%s22327_s5 + $0x410] sm:$0xff] }
 0x2a9   :  { %1487 = vmatpush2.msra.mxu1 %v14832_v59  ;;  %v9770_v59 = vld [vmem:[%s22327_s5 + $0x428] sm:$0xff] }
 0x2aa   :  { %1489 = vmatmul.mubr.f32.vlgmr.msra.gmra.mxu1 %v9765_v13  ;;  %v11598_v51 = vpop.f32.mrf.mxu0  ;;  %v14945_v12 = vpop.f32.mrf.mxu1  ;;  %11623 = vmatprep.subr.mxu1 %v9924_v16 }
 0x2ab   :  { %22394 = vst [vmem:[#allocation29_spill] sm:$0xff] %v14945_v12  ;;  %1989 = vmatpush1.msra.mxu0 %v11598_v51  ;;  %1493 = vmatprep.mubr.f32.mxu1 %v9768_v56  ;;  %v9922_v51 = vld [vmem:[%s22325_s1 + $0x268] sm:$0xff]  ;;  %v15609_v12 = vld [vmem:[%s22326_s0 + $0xb0] sm:$0xff] }
 0x2ac   :  { %v1834_v23 = vpop.f32.mrf.mxu0  ;;  %1990 = vmatprep.subr.mxu0 %v22395_v43  ;;  %v1075_v13 = vpop.f32.mrf.mxu1  ;;  %11624 = vmatpush3.msra.mxu1 %v9924_v16 }
 0x2ad   :  { %1991 = vmatpush1.msra.mxu0 %v1834_v23  ;;  %11625 = vmatprep.subr.mxu1 %v9923_v15  ;;  %v9769_v13 = vld [vmem:[%s22327_s5 + $0x420] sm:$0xff] }
 0x2ae   :  { %1494 = vmatmul.mubr.f32.gmra.mxu1 %v9767_v0  ;;  %v14957_v22 = vpop.f32.mrf.mxu0  ;;  %1992 = vmatprep.subr.mxu0 %v22395_v43  ;;  %v14960_v56 = vpop.f32.mrf.mxu1  ;;  %v9772_v0 = vld [vmem:[%s22327_s5 + $0x438] sm:$0xff] }
 0x2af   :  { %22396 = vst [vmem:[#allocation30_spill] sm:$0xff] %v14960_v56  ;;  %1993 = vmatpush1.msra.mxu0 %v11595_v33  ;;  %1498 = vmatprep.mubr.f32.mxu1 %v9770_v59  ;;  %v9921_v59 = vld [vmem:[%s22325_s1 + $0x260] sm:$0xff] }
 0x2b0   :  { %v14968_v16 = vpop.f32.mrf.mxu0  ;;  %1994 = vmatprep.subr.mxu0 %v22395_v43  ;;  %v1080_v23 = vpop.f32.mrf.mxu1  ;;  %11626 = vmatpush3.msra.mxu1 %v9923_v15 }
 0x2b1   :  { %1995 = vmatpush1.msra.mxu0 %v1824_v36  ;;  %11627 = vmatprep.subr.mxu1 %v9922_v51  ;;  %v9771_v23 = vld [vmem:[%s22327_s5 + $0x430] sm:$0xff]  ;;  %v9774_v36 = vld [vmem:[%s22327_s5 + $0x448] sm:$0xff] }
 0x2b2   :  { %1499 = vmatmul.mubr.f32.gmra.mxu1 %v9769_v13  ;;  %v14974_v56 = vpop.f32.mrf.mxu0  ;;  %1996 = vmatprep.subr.mxu0 %v22395_v43  ;;  %v14977_v33 = vpop.f32.mrf.mxu1 }
 0x2b3   :  { %22397 = vst [vmem:[#allocation31_spill] sm:$0xff] %v14977_v33  ;;  %1997 = vmatpush1.msra.mxu0 %v11592_v26  ;;  %1503 = vmatprep.mubr.f32.mxu1 %v9772_v0  ;;  %v9920_v0 = vld [vmem:[%s22325_s1 + $0x258] sm:$0xff] }
 0x2b4   :  { %v14985_v15 = vpop.f32.mrf.mxu0  ;;  %1998 = vmatprep.subr.mxu0 %v22395_v43  ;;  %v1085_v13 = vpop.f32.mrf.mxu1  ;;  %11628 = vmatpush3.msra.mxu1 %v9922_v51  ;;  %v9773_v51 = vld [vmem:[%s22327_s5 + $0x440] sm:$0xff] }
 0x2b5   :  { %1999 = vmatpush1.msra.mxu0 %v1814_v21  ;;  %11629 = vmatprep.subr.mxu1 %v9921_v59 }
 0x2b6   :  { %1504 = vmatmul.mubr.f32.gmra.mxu1 %v9771_v23  ;;  %v14991_v33 = vpop.f32.mrf.mxu0  ;;  %2000 = vmatprep.subr.mxu0 %v22395_v43  ;;  %v14994_v26 = vpop.f32.mrf.mxu1  ;;  %v9776_v23 = vld [vmem:[%s22327_s5 + $0x458] sm:$0xff] }
 0x2b7   :  { %22398 = vst [vmem:[#allocation32_spill] sm:$0xff] %v14994_v26  ;;  %2001 = vmatpush1.msra.mxu0 %v14915_v14  ;;  %1508 = vmatprep.mubr.f32.mxu1 %v9774_v36  ;;  %v9919_v26 = vld [vmem:[%s22325_s1 + $0x250] sm:$0xff] }
 0x2b8   :  { %v15003_v21 = vpop.f32.mrf.mxu0  ;;  %2002 = vmatprep.subr.mxu0 %v22395_v43  ;;  %v1090_v13 = vpop.f32.mrf.mxu1  ;;  %11630 = vmatpush3.msra.mxu1 %v9921_v59  ;;  %v9775_v59 = vld [vmem:[%s22327_s5 + $0x450] sm:$0xff] }
 0x2b9   :  { %2003 = vmatpush1.msra.mxu0 %v14921_v62  ;;  %11631 = vmatprep.subr.mxu1 %v9920_v0 }
 0x2ba   :  { %1509 = vmatmul.mubr.f32.gmra.mxu1 %v9773_v51  ;;  %v15010_v14 = vpop.f32.mrf.mxu0  ;;  %2004 = vmatprep.subr.mxu0 %v22395_v43  ;;  %v15013_v36 = vpop.f32.mrf.mxu1  ;;  %v9778_v51 = vld [vmem:[%s22327_s5 + $0x468] sm:$0xff] }
 0x2bb   :  { %22399 = vst [vmem:[#allocation33_spill] sm:$0xff] %v15013_v36  ;;  %2005 = vmatpush1.msra.mxu0 %v14905_v47  ;;  %1513 = vmatprep.mubr.f32.mxu1 %v9776_v23  ;;  %v9918_v36 = vld [vmem:[%s22325_s1 + $0x248] sm:$0xff] }
 0x2bc   :  { %v15022_v62 = vpop.f32.mrf.mxu0  ;;  %2006 = vmatprep.subr.mxu0 %v22395_v43  ;;  %v1095_v13 = vpop.f32.mrf.mxu1  ;;  %11632 = vmatpush3.msra.mxu1 %v9920_v0  ;;  %v9777_v0 = vld [vmem:[%s22327_s5 + $0x460] sm:$0xff] }
 0x2bd   :  { %2007 = vmatpush1.msra.mxu0 %v14911_v63  ;;  %11633 = vmatprep.subr.mxu1 %v9919_v26 }
 0x2be   :  { %1514 = vmatmul.mubr.f32.gmra.mxu1 %v9775_v59  ;;  %v15029_v47 = vpop.f32.mrf.mxu0  ;;  %2008 = vmatprep.subr.mxu0 %v22395_v43  ;;  %v15032_v23 = vpop.f32.mrf.mxu1  ;;  %v9780_v59 = vld [vmem:[%s22327_s5 + $0x478] sm:$0xff] }
 0x2bf   :  { %22400 = vst [vmem:[#allocation34_spill] sm:$0xff] %v15032_v23  ;;  %2009 = vmatpush1.msra.mxu0 %v14897_v41  ;;  %1518 = vmatprep.mubr.f32.mxu1 %v9778_v51  ;;  %v9917_v23 = vld [vmem:[%s22325_s1 + $0x240] sm:$0xff] }
 0x2c0   :  { %v15041_v63 = vpop.f32.mrf.mxu0  ;;  %2010 = vmatprep.subr.mxu0 %v22395_v43  ;;  %v1100_v13 = vpop.f32.mrf.mxu1  ;;  %11634 = vmatpush3.msra.mxu1 %v9919_v26  ;;  %v9779_v26 = vld [vmem:[%s22327_s5 + $0x470] sm:$0xff] }
 0x2c1   :  { %2011 = vmatpush1.msra.mxu0 %v14902_v9  ;;  %11635 = vmatprep.subr.mxu1 %v9918_v36  ;;  %v9782_v9 = vld [vmem:[%s22327_s5 + $0x488] sm:$0xff] }
 0x2c2   :  { %1519 = vmatmul.mubr.f32.gmra.mxu1 %v9777_v0  ;;  %v11616_v41 = vpop.f32.mrf.mxu0  ;;  %2012 = vmatprep.subr.mxu0 %v22395_v43  ;;  %v15049_v51 = vpop.f32.mrf.mxu1 }
 0x2c3   :  { %22401 = vst [vmem:[#allocation35_spill] sm:$0xff] %v15049_v51  ;;  %2013 = vmatpush1.msra.mxu0 %v14889_v58  ;;  %1523 = vmatprep.mubr.f32.mxu1 %v9780_v59  ;;  %v9916_v59 = vld [vmem:[%s22325_s1 + $0x238] sm:$0xff] }
 0x2c4   :  { %v1894_v13 = vpop.f32.mrf.mxu0  ;;  %2014 = vmatprep.subr.mxu0 %v22395_v43  ;;  %v1105_v0 = vpop.f32.mrf.mxu1  ;;  %11636 = vmatpush3.msra.mxu1 %v9918_v36  ;;  %v9781_v36 = vld [vmem:[%s22327_s5 + $0x480] sm:$0xff] }
 0x2c5   :  { %2015 = vmatpush1.msra.mxu0 %v14894_v49  ;;  %11637 = vmatprep.subr.mxu1 %v9917_v23  ;;  %v9784_v49 = vld [vmem:[%s22327_s5 + $0x498] sm:$0xff] }
 0x2c6   :  { %1524 = vmatmul.mubr.f32.gmra.mxu1 %v9779_v26  ;;  %v11619_v51 = vpop.f32.mrf.mxu0  ;;  %2016 = vmatprep.subr.mxu0 %v22395_v43  ;;  %v15064_v58 = vpop.f32.mrf.mxu1 }
 0x2c7   :  { %22402 = vst [vmem:[#allocation36_spill] sm:$0xff] %v15064_v58  ;;  %2017 = vmatpush1.msra.mxu0 %v14881_v27  ;;  %1528 = vmatprep.mubr.f32.mxu1 %v9782_v9  ;;  %v9915_v9 = vld [vmem:[%s22325_s1 + $0x230] sm:$0xff] }
 0x2c8   :  { %v1904_v0 = vpop.f32.mrf.mxu0  ;;  %2018 = vmatprep.subr.mxu0 %v22395_v43  ;;  %v1110_v26 = vpop.f32.mrf.mxu1  ;;  %11638 = vmatpush3.msra.mxu1 %v9917_v23 }
 0x2c9   :  { %2019 = vmatpush1.msra.mxu0 %v14886_v28  ;;  %11639 = vmatprep.subr.mxu1 %v9916_v59  ;;  %v9783_v26 = vld [vmem:[%s22327_s5 + $0x490] sm:$0xff]  ;;  %v9786_v28 = vld [vmem:[%s22327_s5 + $0x4a8] sm:$0xff] }
 0x2ca   :  { %1529 = vmatmul.mubr.f32.gmra.mxu1 %v9781_v36  ;;  %v11622_v58 = vpop.f32.mrf.mxu0  ;;  %2020 = vmatprep.subr.mxu0 %v22395_v43  ;;  %v15079_v27 = vpop.f32.mrf.mxu1 }
 0x2cb   :  { %22403 = vst [vmem:[#allocation37_spill] sm:$0xff] %v15079_v27  ;;  %2021 = vmatpush2.msra.mxu0 %v11622_v58  ;;  %1533 = vmatprep.mubr.f32.mxu1 %v9784_v49  ;;  %v9914_v58 = vld [vmem:[%s22325_s1 + $0x228] sm:$0xff]  ;;  %v9785_v49 = vld [vmem:[%s22327_s5 + $0x4a0] sm:$0xff] }
 0x2cc   :  { %v1914_v23 = vpop.f32.mrf.mxu0  ;;  %2022 = vmatprep.subr.mxu0 %v22395_v43  ;;  %11640 = vmatpush3.msra.mxu1 %v9916_v59  ;;  %v1115_v36 = vpop.f32.mrf.mxu1  ;;  %v9788_v59 = vld [vmem:[%s22327_s5 + $0x4b8] sm:$0xff]  ;;  %v9897_v27 = vld [vmem:[%s22327_s5 + $0x7a0] sm:$0xff] }
 0x2cd   :  { %2023 = vmatpush2.msra.mxu0 %v1914_v23  ;;  %11641 = vmatprep.subr.mxu1 %v9915_v9  ;;  %v9791_v23 = vld [vmem:[%s22327_s5 + $0x4d0] sm:$0xff] }
 0x2ce   :  { %1534 = vmatmul.mubr.f32.gmra.mxu1 %v9783_v26  ;;  %2024 = vmatprep.subr.mxu0 %v22395_v43  ;;  %v9787_v26 = vld [vmem:[%s22327_s5 + $0x4b0] sm:$0xff] }
 0x2cf   :  { %2025 = vmatpush2.msra.mxu0 %v11619_v51  ;;  %1538 = vmatprep.mubr.f32.mxu1 %v9786_v28  ;;  %v9913_v51 = vld [vmem:[%s22325_s1 + $0x220] sm:$0xff]  ;;  %v9795_v36 = vld [vmem:[%s22327_s5 + $0x4f0] sm:$0xff] }
 0x2d0   :  { %2026 = vmatprep.subr.mxu0 %v22395_v43  ;;  %11642 = vmatpush3.msra.mxu1 %v9915_v9  ;;  %v9789_v9 = vld [vmem:[%s22327_s5 + $0x4c0] sm:$0xff] }
 0x2d1   :  { %2027 = vmatpush2.msra.mxu0 %v1904_v0  ;;  %11643 = vmatprep.subr.mxu1 %v9914_v58  ;;  %v9790_v0 = vld [vmem:[%s22327_s5 + $0x4c8] sm:$0xff]  ;;  %v9793_v28 = vld [vmem:[%s22327_s5 + $0x4e0] sm:$0xff] }
 0x2d2   :  { %1539 = vmatmul.mubr.f32.gmra.mxu1 %v9785_v49  ;;  %2028 = vmatprep.subr.mxu0 %v22395_v43  ;;  %v9848_v49 = vld [vmem:[%s22327_s5 + $0x618] sm:$0xff] }
 0x2d3   :  { %2029 = vmatpush2.msra.mxu0 %v11616_v41  ;;  %1543 = vmatprep.mubr.f32.mxu1 %v9788_v59  ;;  %v9912_v41 = vld [vmem:[%s22325_s1 + $0x218] sm:$0xff]  ;;  %v9799_v59 = vld [vmem:[%s22327_s5 + $0x510] sm:$0xff] }
 0x2d4   :  { %2030 = vmatprep.subr.mxu0 %v22395_v43  ;;  %11644 = vmatpush3.msra.mxu1 %v9914_v58  ;;  %v9845_v58 = vld [vmem:[%s22327_s5 + $0x600] sm:$0xff] }
 0x2d5   :  { %2031 = vmatpush2.msra.mxu0 %v1894_v13  ;;  %11645 = vmatprep.subr.mxu1 %v9913_v51  ;;  %v9792_v13 = vld [vmem:[%s22327_s5 + $0x4d8] sm:$0xff] }
 0x2d6   :  { %1544 = vmatmul.mubr.f32.gmra.mxu1 %v9787_v26  ;;  %2032 = vmatprep.subr.mxu0 %v22395_v43  ;;  %v9850_v26 = vld [vmem:[%s22327_s5 + $0x628] sm:$0xff] }
 0x2d7   :  { %2033 = vmatpush2.msra.mxu0 %v15029_v47  ;;  %1548 = vmatprep.mubr.f32.mxu1 %v9790_v0  ;;  %v9911_v47 = vld [vmem:[%s22325_s1 + $0x210] sm:$0xff] }
 0x2d8   :  { %2034 = vmatprep.subr.mxu0 %v22395_v43  ;;  %11646 = vmatpush3.msra.mxu1 %v9913_v51  ;;  %v9847_v51 = vld [vmem:[%s22327_s5 + $0x610] sm:$0xff] }
 0x2d9   :  { %2035 = vmatpush2.msra.mxu0 %v15041_v63  ;;  %11647 = vmatprep.subr.mxu1 %v9912_v41  ;;  %v9794_v63 = vld [vmem:[%s22327_s5 + $0x4e8] sm:$0xff]  ;;  %v10003_v0 = vld [vmem:[%s22325_s1 + $0x2f0] sm:$0xff] }
 0x2da   :  { %1549 = vmatmul.mubr.f32.gmra.mxu1 %v9789_v9  ;;  %2036 = vmatprep.subr.mxu0 %v22395_v43  ;;  %v9849_v9 = vld [vmem:[%s22327_s5 + $0x620] sm:$0xff] }
 0x2db   :  { %2037 = vmatpush2.msra.mxu0 %v15010_v14  ;;  %1553 = vmatprep.mubr.f32.mxu1 %v9792_v13  ;;  %v9910_v14 = vld [vmem:[%s22325_s1 + $0x208] sm:$0xff]  ;;  %v9804_v13 = vld [vmem:[%s22327_s5 + $0x538] sm:$0xff] }
 0x2dc   :  { %2038 = vmatprep.subr.mxu0 %v22395_v43  ;;  %11648 = vmatpush3.msra.mxu1 %v9912_v41  ;;  %v9801_v41 = vld [vmem:[%s22327_s5 + $0x520] sm:$0xff] }
 0x2dd   :  { %2039 = vmatpush2.msra.mxu0 %v15022_v62  ;;  %11649 = vmatprep.subr.mxu1 %v9911_v47  ;;  %v9796_v62 = vld [vmem:[%s22327_s5 + $0x4f8] sm:$0xff] }
 0x2de   :  { %1554 = vmatmul.mubr.f32.gmra.mxu1 %v9791_v23  ;;  %2040 = vmatprep.subr.mxu0 %v22395_v43  ;;  %v10002_v23 = vld [vmem:[%s22325_s1 + $0x2e8] sm:$0xff] }
 0x2df   :  { %2041 = vmatpush2.msra.mxu0 %v14991_v33  ;;  %1558 = vmatprep.mubr.f32.mxu1 %v9794_v63  ;;  %v9909_v33 = vld [vmem:[%s22325_s1 + $0x200] sm:$0xff]  ;;  %v9803_v63 = vld [vmem:[%s22327_s5 + $0x530] sm:$0xff] }
 0x2e0   :  { %2042 = vmatprep.subr.mxu0 %v22395_v43  ;;  %11650 = vmatpush3.msra.mxu1 %v9911_v47  ;;  %v9852_v47 = vld [vmem:[%s22327_s5 + $0x638] sm:$0xff] }
 0x2e1   :  { %2043 = vmatpush2.msra.mxu0 %v15003_v21  ;;  %11651 = vmatprep.subr.mxu1 %v9910_v14  ;;  %v9798_v21 = vld [vmem:[%s22327_s5 + $0x508] sm:$0xff] }
 0x2e2   :  { %1559 = vmatmul.mubr.f32.gmra.mxu1 %v9793_v28  ;;  %2044 = vmatprep.subr.mxu0 %v22395_v43  ;;  %v9806_v28 = vld [vmem:[%s22327_s5 + $0x548] sm:$0xff] }
 0x2e3   :  { %2045 = vmatpush2.msra.mxu0 %v14974_v56  ;;  %1563 = vmatprep.mubr.f32.mxu1 %v9796_v62  ;;  %v9797_v56 = vld [vmem:[%s22327_s5 + $0x500] sm:$0xff]  ;;  %v9854_v62 = vld [vmem:[%s22327_s5 + $0x648] sm:$0xff] }
 0x2e4   :  { %2046 = vmatprep.subr.mxu0 %v22395_v43  ;;  %11652 = vmatpush3.msra.mxu1 %v9910_v14  ;;  %v9851_v14 = vld [vmem:[%s22327_s5 + $0x630] sm:$0xff] }
 0x2e5   :  { %2047 = vmatpush2.msra.mxu0 %v14985_v15  ;;  %11653 = vmatprep.subr.mxu1 %v9909_v33  ;;  %v9800_v15 = vld [vmem:[%s22327_s5 + $0x518] sm:$0xff] }
 0x2e6   :  { %1564 = vmatmul.mubr.f32.gmra.mxu1 %v9795_v36  ;;  %2048 = vmatprep.subr.mxu0 %v22395_v43  ;;  %v9805_v36 = vld [vmem:[%s22327_s5 + $0x540] sm:$0xff] }
 0x2e7   :  { %2049 = vmatpush2.msra.mxu0 %v14957_v22  ;;  %1568 = vmatprep.mubr.f32.mxu1 %v9798_v21  ;;  %v10004_v22 = vld [vmem:[%s22325_s1 + $0x2f8] sm:$0xff]  ;;  %v9853_v21 = vld [vmem:[%s22327_s5 + $0x640] sm:$0xff] }
 0x2e8   :  { %2050 = vmatprep.subr.mxu0 %v22395_v43  ;;  %11654 = vmatpush3.msra.mxu1 %v9909_v33  ;;  %v10001_v33 = vld [vmem:[%s22325_s1 + $0x2e0] sm:$0xff] }
 0x2e9   :  { %2051 = vmatpush2.msra.mxu0 %v14968_v16  ;;  %2552 = vmatprep.subr.mxu1 %v22395_v43  ;;  %v9802_v16 = vld [vmem:[%s22327_s5 + $0x528] sm:$0xff] }
 0x2ea   :  { %1569 = vmatmul.mubr.f32.gmra.mxu1 %v9797_v56  ;;  %2053 = vmatmul.mubr.f32.vlgmr.msra.gmra.mxu0 %v9845_v58  ;;  %v9808_v56 = vld [vmem:[%s22327_s5 + $0x558] sm:$0xff] }
 0x2eb   :  { %1573 = vmatprep.mubr.f32.mxu1 %v9800_v15  ;;  %2057 = vmatprep.mubr.f32.mxu0 %v9848_v49  ;;  %v9856_v58 = vld [vmem:[%s22327_s5 + $0x658] sm:$0xff]  ;;  %v9807_v49 = vld [vmem:[%s22327_s5 + $0x550] sm:$0xff] }
 0x2ec   :  { %11703 = vmatprep.subr.mxu0 %v10004_v22  ;;  %v10000_v15 = vld [vmem:[%s22325_s1 + $0x2d8] sm:$0xff] }
 0x2ed   :  { %11704 = vmatpush3.msra.mxu0 %v10004_v22  ;;  %v9855_v22 = vld [vmem:[%s22327_s5 + $0x650] sm:$0xff] }
 0x2ee   :  { %1574 = vmatmul.mubr.f32.gmra.mxu1 %v9799_v59  ;;  %2058 = vmatmul.mubr.f32.gmra.mxu0 %v9847_v51  ;;  %v9810_v59 = vld [vmem:[%s22327_s5 + $0x568] sm:$0xff] }
 0x2ef   :  { %1578 = vmatprep.mubr.f32.mxu1 %v9802_v16  ;;  %2062 = vmatprep.mubr.f32.mxu0 %v9850_v26  ;;  %v9858_v51 = vld [vmem:[%s22327_s5 + $0x668] sm:$0xff]  ;;  %v9999_v16 = vld [vmem:[%s22325_s1 + $0x2d0] sm:$0xff]  ;;  %v9809_v26 = vld [vmem:[%s22327_s5 + $0x560] sm:$0xff] }
 0x2f0   :  { %11705 = vmatprep.subr.mxu0 %v10003_v0 }
 0x2f1   :  { %11706 = vmatpush3.msra.mxu0 %v10003_v0  ;;  %v9857_v0 = vld [vmem:[%s22327_s5 + $0x660] sm:$0xff] }
 0x2f2   :  { %1579 = vmatmul.mubr.f32.gmra.mxu1 %v9801_v41  ;;  %2063 = vmatmul.mubr.f32.gmra.mxu0 %v9849_v9  ;;  %v9812_v41 = vld [vmem:[%s22327_s5 + $0x578] sm:$0xff] }
 0x2f3   :  { %1583 = vmatprep.mubr.f32.mxu1 %v9804_v13  ;;  %2067 = vmatprep.mubr.f32.mxu0 %v9852_v47  ;;  %v9860_v9 = vld [vmem:[%s22327_s5 + $0x678] sm:$0xff]  ;;  %v9998_v13 = vld [vmem:[%s22325_s1 + $0x2c8] sm:$0xff]  ;;  %v9811_v47 = vld [vmem:[%s22327_s5 + $0x570] sm:$0xff] }
 0x2f4   :  { %11707 = vmatprep.subr.mxu0 %v10002_v23 }
 0x2f5   :  { %11708 = vmatpush3.msra.mxu0 %v10002_v23  ;;  %v9859_v23 = vld [vmem:[%s22327_s5 + $0x670] sm:$0xff] }
 0x2f6   :  { %1584 = vmatmul.mubr.f32.gmra.mxu1 %v9803_v63  ;;  %2068 = vmatmul.mubr.f32.gmra.mxu0 %v9851_v14  ;;  %v9814_v63 = vld [vmem:[%s22327_s5 + $0x588] sm:$0xff] }
 0x2f7   :  { %1588 = vmatprep.mubr.f32.mxu1 %v9806_v28  ;;  %2072 = vmatprep.mubr.f32.mxu0 %v9854_v62  ;;  %v9862_v14 = vld [vmem:[%s22327_s5 + $0x688] sm:$0xff]  ;;  %v9997_v28 = vld [vmem:[%s22325_s1 + $0x2c0] sm:$0xff] }
 0x2f8   :  { %11709 = vmatprep.subr.mxu0 %v10001_v33  ;;  %v9813_v62 = vld [vmem:[%s22327_s5 + $0x580] sm:$0xff] }
 0x2f9   :  { %11710 = vmatpush3.msra.mxu0 %v10001_v33  ;;  %v9861_v33 = vld [vmem:[%s22327_s5 + $0x680] sm:$0xff] }
 0x2fa   :  { %1589 = vmatmul.mubr.f32.gmra.mxu1 %v9805_v36  ;;  %2073 = vmatmul.mubr.f32.gmra.mxu0 %v9853_v21  ;;  %v9816_v36 = vld [vmem:[%s22327_s5 + $0x598] sm:$0xff] }
 0x2fb   :  { %1593 = vmatprep.mubr.f32.mxu1 %v9808_v56  ;;  %2077 = vmatprep.mubr.f32.mxu0 %v9856_v58  ;;  %v9864_v21 = vld [vmem:[%s22327_s5 + $0x698] sm:$0xff]  ;;  %v9815_v58 = vld [vmem:[%s22327_s5 + $0x590] sm:$0xff] }
 0x2fc   :  { %11711 = vmatprep.subr.mxu0 %v10000_v15  ;;  %v9996_v56 = vld [vmem:[%s22325_s1 + $0x2b8] sm:$0xff] }
 0x2fd   :  { %11712 = vmatpush3.msra.mxu0 %v10000_v15  ;;  %v9863_v15 = vld [vmem:[%s22327_s5 + $0x690] sm:$0xff] }
 0x2fe   :  { %1594 = vmatmul.mubr.f32.gmra.mxu1 %v9807_v49  ;;  %2078 = vmatmul.mubr.f32.gmra.mxu0 %v9855_v22  ;;  %v9818_v49 = vld [vmem:[%s22327_s5 + $0x5a8] sm:$0xff] }
 0x2ff   :  { %1598 = vmatprep.mubr.f32.mxu1 %v9810_v59  ;;  %2082 = vmatprep.mubr.f32.mxu0 %v9858_v51  ;;  %v9866_v22 = vld [vmem:[%s22327_s5 + $0x6a8] sm:$0xff]  ;;  %v9995_v59 = vld [vmem:[%s22325_s1 + $0x2b0] sm:$0xff]  ;;  %v9817_v51 = vld [vmem:[%s22327_s5 + $0x5a0] sm:$0xff] }
 0x300   :  { %11713 = vmatprep.subr.mxu0 %v9999_v16 }
 0x301   :  { %11714 = vmatpush3.msra.mxu0 %v9999_v16  ;;  %v9865_v16 = vld [vmem:[%s22327_s5 + $0x6a0] sm:$0xff] }
 0x302   :  { %1599 = vmatmul.mubr.f32.gmra.mxu1 %v9809_v26  ;;  %2083 = vmatmul.mubr.f32.gmra.mxu0 %v9857_v0  ;;  %v9820_v26 = vld [vmem:[%s22327_s5 + $0x5b8] sm:$0xff] }
 0x303   :  { %1603 = vmatprep.mubr.f32.mxu1 %v9812_v41  ;;  %2087 = vmatprep.mubr.f32.mxu0 %v9860_v9  ;;  %v9868_v0 = vld [vmem:[%s22327_s5 + $0x6b8] sm:$0xff]  ;;  %v9994_v41 = vld [vmem:[%s22325_s1 + $0x2a8] sm:$0xff]  ;;  %v9819_v9 = vld [vmem:[%s22327_s5 + $0x5b0] sm:$0xff] }
 0x304   :  { %11715 = vmatprep.subr.mxu0 %v9998_v13 }
 0x305   :  { %11716 = vmatpush3.msra.mxu0 %v9998_v13  ;;  %v9867_v13 = vld [vmem:[%s22327_s5 + $0x6b0] sm:$0xff] }
 0x306   :  { %1604 = vmatmul.mubr.f32.gmra.mxu1 %v9811_v47  ;;  %2088 = vmatmul.mubr.f32.gmra.mxu0 %v9859_v23  ;;  %v9822_v47 = vld [vmem:[%s22327_s5 + $0x5c8] sm:$0xff] }
 0x307   :  { %1608 = vmatprep.mubr.f32.mxu1 %v9814_v63  ;;  %2092 = vmatprep.mubr.f32.mxu0 %v9862_v14  ;;  %v9870_v23 = vld [vmem:[%s22327_s5 + $0x6c8] sm:$0xff]  ;;  %v9993_v63 = vld [vmem:[%s22325_s1 + $0x2a0] sm:$0xff] }
 0x308   :  { %11717 = vmatprep.subr.mxu0 %v9997_v28  ;;  %v9821_v14 = vld [vmem:[%s22327_s5 + $0x5c0] sm:$0xff] }
 0x309   :  { %11718 = vmatpush3.msra.mxu0 %v9997_v28  ;;  %v9869_v28 = vld [vmem:[%s22327_s5 + $0x6c0] sm:$0xff] }
 0x30a   :  { %1609 = vmatmul.mubr.f32.gmra.mxu1 %v9813_v62  ;;  %2093 = vmatmul.mubr.f32.gmra.mxu0 %v9861_v33  ;;  %v9824_v62 = vld [vmem:[%s22327_s5 + $0x5d8] sm:$0xff] }
 0x30b   :  { %1613 = vmatprep.mubr.f32.mxu1 %v9816_v36  ;;  %2097 = vmatprep.mubr.f32.mxu0 %v9864_v21  ;;  %v9872_v33 = vld [vmem:[%s22327_s5 + $0x6d8] sm:$0xff]  ;;  %v9823_v21 = vld [vmem:[%s22327_s5 + $0x5d0] sm:$0xff] }
 0x30c   :  { %11719 = vmatprep.subr.mxu0 %v9996_v56  ;;  %v9992_v36 = vld [vmem:[%s22325_s1 + $0x298] sm:$0xff] }
 0x30d   :  { %11720 = vmatpush3.msra.mxu0 %v9996_v56  ;;  %v9871_v56 = vld [vmem:[%s22327_s5 + $0x6d0] sm:$0xff] }
 0x30e   :  { %1614 = vmatmul.mubr.f32.gmra.mxu1 %v9815_v58  ;;  %2098 = vmatmul.mubr.f32.gmra.mxu0 %v9863_v15  ;;  %v9826_v58 = vld [vmem:[%s22327_s5 + $0x5e8] sm:$0xff] }
 0x30f   :  { %1618 = vmatprep.mubr.f32.mxu1 %v9818_v49  ;;  %2102 = vmatprep.mubr.f32.mxu0 %v9866_v22  ;;  %v9874_v15 = vld [vmem:[%s22327_s5 + $0x6e8] sm:$0xff]  ;;  %v9991_v49 = vld [vmem:[%s22325_s1 + $0x290] sm:$0xff]  ;;  %v9825_v22 = vld [vmem:[%s22327_s5 + $0x5e0] sm:$0xff] }
 0x310   :  { %11721 = vmatprep.subr.mxu0 %v9995_v59 }
 0x311   :  { %11722 = vmatpush3.msra.mxu0 %v9995_v59  ;;  %v9873_v59 = vld [vmem:[%s22327_s5 + $0x6e0] sm:$0xff] }
 0x312   :  { %1619 = vmatmul.mubr.f32.gmra.mxu1 %v9817_v51  ;;  %2103 = vmatmul.mubr.f32.gmra.mxu0 %v9865_v16  ;;  %v9828_v51 = vld [vmem:[%s22327_s5 + $0x5f8] sm:$0xff] }
 0x313   :  { %1623 = vmatprep.mubr.f32.mxu1 %v9820_v26  ;;  %2107 = vmatprep.mubr.f32.mxu0 %v9868_v0  ;;  %v9876_v16 = vld [vmem:[%s22327_s5 + $0x6f8] sm:$0xff]  ;;  %v9990_v26 = vld [vmem:[%s22325_s1 + $0x288] sm:$0xff]  ;;  %v9827_v0 = vld [vmem:[%s22327_s5 + $0x5f0] sm:$0xff] }
 0x314   :  { %11723 = vmatprep.subr.mxu0 %v9994_v41 }
 0x315   :  { %11724 = vmatpush3.msra.mxu0 %v9994_v41  ;;  %v9875_v41 = vld [vmem:[%s22327_s5 + $0x6f0] sm:$0xff] }
 0x316   :  { %1624 = vmatmul.mubr.f32.gmra.mxu1 %v9819_v9  ;;  %2108 = vmatmul.mubr.f32.gmra.mxu0 %v9867_v13  ;;  %v9878_v9 = vld [vmem:[%s22327_s5 + $0x708] sm:$0xff]  ;;  %v9989_v13 = vld [vmem:[%s22325_s1 + $0x280] sm:$0xff] }
 0x317   :  { %1628 = vmatprep.mubr.f32.mxu1 %v9822_v47  ;;  %2112 = vmatprep.mubr.f32.mxu0 %v9870_v23  ;;  %v15410_v47 = vld [vmem:[%s22326_s0] sm:$0xff] }
 0x318   :  { %11725 = vmatprep.subr.mxu0 %v9993_v63  ;;  %v9877_v23 = vld [vmem:[%s22327_s5 + $0x700] sm:$0xff] }
 0x319   :  { %11726 = vmatpush3.msra.mxu0 %v9993_v63  ;;  %v9880_v63 = vld [vmem:[%s22327_s5 + $0x718] sm:$0xff] }
 0x31a   :  { %1629 = vmatmul.mubr.f32.gmra.mxu1 %v9821_v14  ;;  %2113 = vmatmul.mubr.f32.gmra.mxu0 %v9869_v28  ;;  %v15422_v14 = vld [vmem:[%s22326_s0 + $0x8] sm:$0xff]  ;;  %v15428_v28 = vld [vmem:[%s22326_s0 + $0x10] sm:$0xff] }
 0x31b   :  { %1633 = vmatprep.mubr.f32.mxu1 %v9824_v62  ;;  %2117 = vmatprep.mubr.f32.mxu0 %v9872_v33  ;;  %v9879_v62 = vld [vmem:[%s22327_s5 + $0x710] sm:$0xff]  ;;  %v9882_v33 = vld [vmem:[%s22327_s5 + $0x728] sm:$0xff] }
 0x31c   :  { %11727 = vmatprep.subr.mxu0 %v9992_v36 }
 0x31d   :  { %11728 = vmatpush3.msra.mxu0 %v9992_v36  ;;  %v15441_v36 = vld [vmem:[%s22326_s0 + $0x18] sm:$0xff] }
 0x31e   :  { %1634 = vmatmul.mubr.f32.gmra.mxu1 %v9823_v21  ;;  %2118 = vmatmul.mubr.f32.gmra.mxu0 %v9871_v56  ;;  %v15447_v21 = vld [vmem:[%s22326_s0 + $0x20] sm:$0xff] }
 0x31f   :  { %1638 = vmatprep.mubr.f32.mxu1 %v9826_v58  ;;  %2122 = vmatprep.mubr.f32.mxu0 %v9874_v15  ;;  %v9881_v56 = vld [vmem:[%s22327_s5 + $0x720] sm:$0xff]  ;;  %v9884_v58 = vld [vmem:[%s22327_s5 + $0x738] sm:$0xff]  ;;  %v15459_v15 = vld [vmem:[%s22326_s0 + $0x28] sm:$0xff] }
 0x320   :  { %11729 = vmatprep.subr.mxu0 %v9991_v49 }
 0x321   :  { %11730 = vmatpush3.msra.mxu0 %v9991_v49  ;;  %v15465_v49 = vld [vmem:[%s22326_s0 + $0x30] sm:$0xff] }
 0x322   :  { %1639 = vmatmul.mubr.f32.gmra.mxu1 %v9825_v22  ;;  %2123 = vmatmul.mubr.f32.gmra.mxu0 %v9873_v59  ;;  %v9883_v22 = vld [vmem:[%s22327_s5 + $0x730] sm:$0xff]  ;;  %v9886_v59 = vld [vmem:[%s22327_s5 + $0x748] sm:$0xff] }
 0x323   :  { %1643 = vmatprep.mubr.f32.mxu1 %v9828_v51  ;;  %2127 = vmatprep.mubr.f32.mxu0 %v9876_v16  ;;  %v15477_v51 = vld [vmem:[%s22326_s0 + $0x38] sm:$0xff]  ;;  %v15483_v16 = vld [vmem:[%s22326_s0 + $0x40] sm:$0xff] }
 0x324   :  { %11731 = vmatprep.subr.mxu0 %v9990_v26 }
 0x325   :  { %11732 = vmatpush3.msra.mxu0 %v9990_v26  ;;  %v9885_v26 = vld [vmem:[%s22327_s5 + $0x740] sm:$0xff] }
 0x326   :  { %1644 = vmatmul.mubr.f32.gmra.mxu1 %v9827_v0  ;;  %2128 = vmatmul.mubr.f32.gmra.mxu0 %v9875_v41  ;;  %v9888_v0 = vld [vmem:[%s22327_s5 + $0x758] sm:$0xff]  ;;  %v15495_v41 = vld [vmem:[%s22326_s0 + $0x48] sm:$0xff] }
 0x327   :  { %2132 = vmatprep.mubr.f32.mxu0 %v9878_v9  ;;  %11655 = vmatprep.mubr.f32.mxu1 %v15410_v47  ;;  %v15501_v9 = vld [vmem:[%s22326_s0 + $0x50] sm:$0xff] }
 0x328   :  { %11733 = vmatprep.subr.mxu0 %v9989_v13 }
 0x329   :  { %11734 = vmatpush3.msra.mxu0 %v9989_v13  ;;  %v9887_v13 = vld [vmem:[%s22327_s5 + $0x750] sm:$0xff] }
 0x32a   :  { %2133 = vmatmul.mubr.f32.gmra.mxu0 %v9877_v23  ;;  %11656 = vmatmul.mubr.f32.vlgmr.msra.gmra.mxu1 %v15422_v14  ;;  %v9890_v23 = vld [vmem:[%s22327_s5 + $0x768] sm:$0xff] }
 0x32b   :  { %2137 = vmatprep.mubr.f32.mxu0 %v9880_v63  ;;  %11658 = vmatprep.mubr.f32.mxu1 %v15428_v28  ;;  %v15513_v63 = vld [vmem:[%s22326_s0 + $0x58] sm:$0xff] }
 0x32c   :  { %3116 = vmatprep.subr.mxu0 %v22395_v43  ;;  %v15591_v43 = vld [vmem:[%s22326_s0 + $0xa0] sm:$0xff] }
 0x32e   :  { %2138 = vmatmul.mubr.f32.gmra.mxu0 %v9879_v62  ;;  %11659 = vmatmul.mubr.f32.gmra.mxu1 %v15441_v36  ;;  %v15519_v62 = vld [vmem:[%s22326_s0 + $0x60] sm:$0xff] }
 0x32f   :  { %2142 = vmatprep.mubr.f32.mxu0 %v9882_v33  ;;  %11661 = vmatprep.mubr.f32.mxu1 %v15447_v21  ;;  %v9889_v33 = vld [vmem:[%s22327_s5 + $0x760] sm:$0xff] }
 0x332   :  { %2143 = vmatmul.mubr.f32.gmra.mxu0 %v9881_v56  ;;  %11662 = vmatmul.mubr.f32.gmra.mxu1 %v15459_v15  ;;  %v9892_v56 = vld [vmem:[%s22327_s5 + $0x778] sm:$0xff] }
 0x333   :  { %2147 = vmatprep.mubr.f32.mxu0 %v9884_v58  ;;  %11664 = vmatprep.mubr.f32.mxu1 %v15465_v49  ;;  %v15531_v58 = vld [vmem:[%s22326_s0 + $0x68] sm:$0xff] }
 0x336   :  { %2148 = vmatmul.mubr.f32.gmra.mxu0 %v9883_v22  ;;  %11665 = vmatmul.mubr.f32.gmra.mxu1 %v15477_v51  ;;  %v15537_v22 = vld [vmem:[%s22326_s0 + $0x70] sm:$0xff] }
 0x337   :  { %2152 = vmatprep.mubr.f32.mxu0 %v9886_v59  ;;  %11667 = vmatprep.mubr.f32.mxu1 %v15483_v16  ;;  %v9891_v59 = vld [vmem:[%s22327_s5 + $0x770] sm:$0xff] }
 0x33a   :  { %2153 = vmatmul.mubr.f32.gmra.mxu0 %v9885_v26  ;;  %11668 = vmatmul.mubr.f32.gmra.mxu1 %v15495_v41  ;;  %v9894_v26 = vld [vmem:[%s22327_s5 + $0x788] sm:$0xff] }
 0x33b   :  { %2157 = vmatprep.mubr.f32.mxu0 %v9888_v0  ;;  %11670 = vmatprep.mubr.f32.mxu1 %v15501_v9  ;;  %v15549_v0 = vld [vmem:[%s22326_s0 + $0x78] sm:$0xff] }
 0x33e   :  { %2158 = vmatmul.mubr.f32.gmra.mxu0 %v9887_v13  ;;  %11671 = vmatmul.mubr.f32.gmra.mxu1 %v15513_v63  ;;  %v15555_v13 = vld [vmem:[%s22326_s0 + $0x80] sm:$0xff] }
 0x33f   :  { %2162 = vmatprep.mubr.f32.mxu0 %v9890_v23  ;;  %11673 = vmatprep.mubr.f32.mxu1 %v15519_v62  ;;  %v9893_v23 = vld [vmem:[%s22327_s5 + $0x780] sm:$0xff] }
 0x342   :  { %2163 = vmatmul.mubr.f32.gmra.mxu0 %v9889_v33  ;;  %11674 = vmatmul.mubr.f32.gmra.mxu1 %v15531_v58  ;;  %v9896_v33 = vld [vmem:[%s22327_s5 + $0x798] sm:$0xff] }
 0x343   :  { %2167 = vmatprep.mubr.f32.mxu0 %v9892_v56  ;;  %11676 = vmatprep.mubr.f32.mxu1 %v15537_v22  ;;  %v15567_v56 = vld [vmem:[%s22326_s0 + $0x88] sm:$0xff] }
 0x346   :  { %2168 = vmatmul.mubr.f32.gmra.mxu0 %v9891_v59  ;;  %11677 = vmatmul.mubr.f32.gmra.mxu1 %v15549_v0  ;;  %v15573_v59 = vld [vmem:[%s22326_s0 + $0x90] sm:$0xff] }
 0x347   :  { %2172 = vmatprep.mubr.f32.mxu0 %v9894_v26  ;;  %11679 = vmatprep.mubr.f32.mxu1 %v15555_v13  ;;  %v9895_v26 = vld [vmem:[%s22327_s5 + $0x790] sm:$0xff] }
 0x34a   :  { %2173 = vmatmul.mubr.f32.gmra.mxu0 %v9893_v23  ;;  %11680 = vmatmul.mubr.f32.gmra.mxu1 %v15567_v56  ;;  %v9898_v23 = vld [vmem:[%s22327_s5 + $0x7a8] sm:$0xff] }
 0x34b   :  { %2177 = vmatprep.mubr.f32.mxu0 %v9896_v33  ;;  %11682 = vmatprep.mubr.f32.mxu1 %v15573_v59  ;;  %v15585_v33 = vld [vmem:[%s22326_s0 + $0x98] sm:$0xff] }
 0x34e   :  { %2178 = vmatmul.mubr.f32.gmra.mxu0 %v9895_v26  ;;  %11683 = vmatmul.mubr.f32.gmra.mxu1 %v15585_v33  ;;  %v9900_v26 = vld [vmem:[%s22327_s5 + $0x7b8] sm:$0xff] }
 0x34f   :  { %2182 = vmatprep.mubr.f32.mxu0 %v9898_v23  ;;  %11685 = vmatprep.mubr.f32.mxu1 %v15591_v43  ;;  %v15603_v23 = vld [vmem:[%s22326_s0 + $0xa8] sm:$0xff] }
 0x352   :  { %2183 = vmatmul.mubr.f32.gmra.mxu0 %v9897_v27  ;;  %11686 = vmatmul.mubr.f32.gmra.mxu1 %v15603_v23  ;;  %v9902_v27 = vld [vmem:[%s22327_s5 + $0x7c8] sm:$0xff] }
 0x353   :  { %2187 = vmatprep.mubr.f32.mxu0 %v9900_v26  ;;  %11688 = vmatprep.mubr.f32.mxu1 %v15609_v12  ;;  %v15621_v26 = vld [vmem:[%s22326_s0 + $0xb8] sm:$0xff] }
 0x356   :  { %2188 = vmatmul.mubr.f32.gmra.mxu0 %v9899_v53  ;;  %11689 = vmatmul.mubr.f32.gmra.mxu1 %v15621_v26  ;;  %v9904_v53 = vld [vmem:[%s22327_s5 + $0x7d8] sm:$0xff] }
 0x357   :  { %2192 = vmatprep.mubr.f32.mxu0 %v9902_v27  ;;  %11691 = vmatprep.mubr.f32.mxu1 %v15627_v57  ;;  %v15639_v27 = vld [vmem:[%s22326_s0 + $0xc8] sm:$0xff] }
 0x35a   :  { %2193 = vmatmul.mubr.f32.gmra.mxu0 %v9901_v25  ;;  %11692 = vmatmul.mubr.f32.gmra.mxu1 %v15639_v27  ;;  %v9906_v25 = vld [vmem:[%s22327_s5 + $0x7e8] sm:$0xff] }
 0x35b   :  { %2197 = vmatprep.mubr.f32.mxu0 %v9904_v53  ;;  %11694 = vmatprep.mubr.f32.mxu1 %v15645_v32  ;;  %v15657_v53 = vld [vmem:[%s22326_s0 + $0xd8] sm:$0xff] }
 0x35e   :  { %2198 = vmatmul.mubr.f32.gmra.mxu0 %v9903_v19  ;;  %11695 = vmatmul.mubr.f32.gmra.mxu1 %v15657_v53  ;;  %v9908_v19 = vld [vmem:[%s22327_s5 + $0x7f8] sm:$0xff] }
 0x35f   :  { %2202 = vmatprep.mubr.f32.mxu0 %v9906_v25  ;;  %11697 = vmatprep.mubr.f32.mxu1 %v15663_v11  ;;  %v15675_v25 = vld [vmem:[%s22326_s0 + $0xe8] sm:$0xff] }
 0x360   :  { %22404 = vst [vmem:[#allocation38_spill] sm:$0xff] %v15675_v25 }
 0x362   :  { %2203 = vmatmul.mubr.f32.gmra.mxu0 %v9905_v10  ;;  %11698 = vmatmul.mubr.f32.gmra.mxu1 %v15675_v25  ;;  %v15690_v10 = vld [vmem:[%s22326_s0 + $0xf8] sm:$0xff] }
 0x363   :  { %2207 = vmatprep.mubr.f32.mxu0 %v9908_v19  ;;  %11700 = vmatprep.mubr.f32.mxu1 %v15681_v54  ;;  %22406 = vst [vmem:[#allocation40_spill] sm:$0xff] %v15690_v10  ;;  %v959_v19 = vadd.f32 %v14797_v24, %v14709_v7  ;;  %v969_v7 = vadd.f32 %v14809_v20, %v14733_v55 }
 0x364   :  { %v979_v55 = vadd.f32 %v14815_v17, %v14746_v31  ;;  %v989_v31 = vadd.f32 %v14819_v1, %v14754_v39  ;;  %v999_v39 = vadd.f32 %v14827_v40, %v14762_v48  ;;  %v1009_v48 = vadd.f32 %v14843_v5, %v14773_v38 }
 0x365   :  { %v1019_v38 = vadd.f32 %v14859_v35, %v14781_v61  ;;  %v22407_v61 = vld [vmem:[#allocation16_spill] sm:$0xff] }
 0x366   :  { %2208 = vmatmul.mubr.f32.gmra.mxu0 %v9907_v18  ;;  %11701 = vmatmul.mubr.f32.gmra.mxu1 %v15690_v10  ;;  %v22408_v35 = vld [vmem:[#allocation20_spill] sm:$0xff] }
 0x367   :  { %11735 = vmatprep.mubr.f32.mxu0 %v15410_v47 }
 0x36a   :  { %v1490_v25 = vpop.f32.mrf.mxu1  ;;  %11736 = vmatmul.mubr.f32.vlgmr.msra.gmra.mxu0 %v15422_v14 }
 0x36b   :  { %v15697_v54 = vadd.f32 %v1490_v25, %v959_v19  ;;  %11738 = vmatprep.mubr.f32.mxu0 %v15428_v28 }
 0x36c   :  { %v1492_v18 = vpop.f32.mrf.mxu1 }
 0x36d   :  { %v1034_v18 = vadd.f32 %v22412_v4, %v22411_v3  ;;  %v22424_v3 = vld [vmem:[#allocation7_spill] sm:$0xff] }
 0x36e   :  { %v1495_v8 = vpop.f32.mrf.mxu1  ;;  %11739 = vmatmul.mubr.f32.gmra.mxu0 %v15441_v36  ;;  %v22425_v4 = vld [vmem:[#allocation27_spill] sm:$0xff] }
 0x36f   :  { %v15703_v10 = vadd.f32 %v1495_v8, %v964_v37  ;;  %11741 = vmatprep.mubr.f32.mxu0 %v15447_v21 }
 0x370   :  { %v1497_v47 = vpop.f32.mrf.mxu1 }
 0x371   :  { %v22413_v47 = vld [vmem:[#allocation40_spill] sm:$0xff] }
 0x372   :  { %v1500_v24 = vpop.f32.mrf.mxu1  ;;  %11742 = vmatmul.mubr.f32.gmra.mxu0 %v15459_v15 }
 0x373   :  { %v15709_v14 = vadd.f32 %v1500_v24, %v969_v7  ;;  %11744 = vmatprep.mubr.f32.mxu0 %v15465_v49  ;;  %v22414_v24 = vld [vmem:[#allocation2_spill] sm:$0xff] }
 0x374   :  { %v1502_v28 = vpop.f32.mrf.mxu1 }
 0x375   :  { %v22415_v28 = vld [vmem:[#allocation22_spill] sm:$0xff] }
 0x376   :  { %v1505_v30 = vpop.f32.mrf.mxu1  ;;  %11745 = vmatmul.mubr.f32.gmra.mxu0 %v15477_v51 }
 0x377   :  { %v15715_v8 = vadd.f32 %v1505_v30, %v974_v60  ;;  %11747 = vmatprep.mubr.f32.mxu0 %v15483_v16  ;;  %v1039_v60 = vadd.f32 %v22415_v28, %v22414_v24 }
 0x378   :  { %v1507_v37 = vpop.f32.mrf.mxu1 }
 0x37a   :  { %v1510_v20 = vpop.f32.mrf.mxu1  ;;  %11748 = vmatmul.mubr.f32.gmra.mxu0 %v15495_v41 }
 0x37b   :  { %v15721_v36 = vadd.f32 %v1510_v20, %v979_v55  ;;  %11750 = vmatprep.mubr.f32.mxu0 %v15501_v9 }
 0x37c   :  { %v1512_v21 = vpop.f32.mrf.mxu1 }
 0x37e   :  { %v1515_v46 = vpop.f32.mrf.mxu1  ;;  %11751 = vmatmul.mubr.f32.gmra.mxu0 %v15513_v63 }
 0x37f   :  { %v15727_v15 = vadd.f32 %v1515_v46, %v984_v29  ;;  %11753 = vmatprep.mubr.f32.mxu0 %v15519_v62  ;;  %v22416_v46 = vld [vmem:[#allocation3_spill] sm:$0xff] }
 0x380   :  { %v1517_v49 = vpop.f32.mrf.mxu1 }
 0x381   :  { %v22417_v49 = vld [vmem:[#allocation23_spill] sm:$0xff] }
 0x382   :  { %v1520_v17 = vpop.f32.mrf.mxu1  ;;  %11754 = vmatmul.mubr.f32.gmra.mxu0 %v15531_v58 }
 0x383   :  { %v15733_v51 = vadd.f32 %v1520_v17, %v989_v31  ;;  %11756 = vmatprep.mubr.f32.mxu0 %v15537_v22  ;;  %v1044_v31 = vadd.f32 %v22417_v49, %v22416_v46 }
 0x384   :  { %v1522_v16 = vpop.f32.mrf.mxu1 }
 0x386   :  { %v1525_v44 = vpop.f32.mrf.mxu1  ;;  %11757 = vmatmul.mubr.f32.gmra.mxu0 %v15549_v0 }
 0x387   :  { %v15739_v41 = vadd.f32 %v1525_v44, %v994_v34  ;;  %11759 = vmatprep.mubr.f32.mxu0 %v15555_v13 }
 0x388   :  { %v1527_v9 = vpop.f32.mrf.mxu1 }
 0x38a   :  { %v1530_v1 = vpop.f32.mrf.mxu1  ;;  %11760 = vmatmul.mubr.f32.gmra.mxu0 %v15567_v56 }
 0x38b   :  { %v15745_v63 = vadd.f32 %v1530_v1, %v999_v39  ;;  %11762 = vmatprep.mubr.f32.mxu0 %v15573_v59  ;;  %v22418_v1 = vld [vmem:[#allocation4_spill] sm:$0xff] }
 0x38c   :  { %v1532_v62 = vpop.f32.mrf.mxu1 }
 0x38d   :  { %v22419_v62 = vld [vmem:[#allocation24_spill] sm:$0xff] }
 0x38e   :  { %v1535_v2 = vpop.f32.mrf.mxu1  ;;  %11763 = vmatmul.mubr.f32.gmra.mxu0 %v15585_v33 }
 0x38f   :  { %v15751_v58 = vadd.f32 %v1535_v2, %v1004_v42  ;;  %11765 = vmatprep.mubr.f32.mxu0 %v15591_v43  ;;  %v1049_v42 = vadd.f32 %v22419_v62, %v22418_v1 }
 0x390   :  { %v1537_v22 = vpop.f32.mrf.mxu1 }
 0x392   :  { %v1540_v40 = vpop.f32.mrf.mxu1  ;;  %11766 = vmatmul.mubr.f32.gmra.mxu0 %v15603_v23  ;;  %v1029_v23 = vadd.f32 %v22408_v35, %v22407_v61  ;;  %v22423_v61 = vld [vmem:[#allocation26_spill] sm:$0xff] }
 0x393   :  { %v15757_v0 = vadd.f32 %v1540_v40, %v1009_v48  ;;  %11768 = vmatprep.mubr.f32.mxu0 %v15609_v12 }
 0x394   :  { %v1542_v13 = vpop.f32.mrf.mxu1 }
 0x396   :  { %v1545_v6 = vpop.f32.mrf.mxu1  ;;  %11769 = vmatmul.mubr.f32.gmra.mxu0 %v15621_v26 }
 0x397   :  { %v15763_v56 = vadd.f32 %v1545_v6, %v1014_v52  ;;  %11771 = vmatprep.mubr.f32.mxu0 %v15627_v57  ;;  %v22420_v52 = vld [vmem:[#allocation5_spill] sm:$0xff] }
 0x398   :  { %v1547_v43 = vpop.f32.mrf.mxu1  ;;  %v22421_v6 = vld [vmem:[#allocation25_spill] sm:$0xff] }
 0x399   :  { %v1054_v43 = vadd.f32 %v22421_v6, %v22420_v52 }
 0x39a   :  { %v1550_v5 = vpop.f32.mrf.mxu1  ;;  %11772 = vmatmul.mubr.f32.gmra.mxu0 %v15639_v27  ;;  %v22409_v27 = vld [vmem:[#allocation38_spill] sm:$0xff] }
 0x39b   :  { %v15769_v59 = vadd.f32 %v1550_v5, %v1019_v38  ;;  %11774 = vmatprep.mubr.f32.mxu0 %v15645_v32  ;;  %v22410_v32 = vld [vmem:[#allocation39_spill] sm:$0xff] }
 0x39c   :  { %v1552_v12 = vpop.f32.mrf.mxu1 }
 0x39e   :  { %v1555_v50 = vpop.f32.mrf.mxu1  ;;  %11775 = vmatmul.mubr.f32.gmra.mxu0 %v15657_v53 }
 0x39f   :  { %v15775_v33 = vadd.f32 %v1555_v50, %v1024_v45  ;;  %11777 = vmatprep.mubr.f32.mxu0 %v15663_v11 }
 0x3a0   :  { %v1557_v57 = vpop.f32.mrf.mxu1 }
 0x3a1   :  { %v22422_v57 = vld [vmem:[#allocation6_spill] sm:$0xff] }
 0x3a2   :  { %v1560_v26 = vpop.f32.mrf.mxu1  ;;  %11778 = vmatmul.mubr.f32.gmra.mxu0 %v22409_v27  ;;  %v1059_v35 = vadd.f32 %v22423_v61, %v22422_v57  ;;  %v22433_v57 = vld [vmem:[#allocation31_spill] sm:$0xff] }
 0x3a3   :  { %v15781_v25 = vadd.f32 %v1560_v26, %v1029_v23  ;;  %11780 = vmatprep.mubr.f32.mxu0 %v22410_v32 }
 0x3a4   :  { %v1562_v19 = vpop.f32.mrf.mxu1 }
 0x3a6   :  { %v1565_v53 = vpop.f32.mrf.mxu1  ;;  %11781 = vmatmul.mubr.f32.gmra.mxu0 %v22413_v47 }
 0x3a7   :  { %v15787_v7 = vadd.f32 %v1565_v53, %v1034_v18  ;;  %v1064_v18 = vadd.f32 %v22425_v4, %v22424_v3  ;;  %v22434_v3 = vld [vmem:[#allocation12_spill] sm:$0xff] }
 0x3a8   :  { %v1567_v11 = vpop.f32.mrf.mxu1  ;;  %v22435_v4 = vld [vmem:[#allocation32_spill] sm:$0xff] }
 0x3aa   :  { %v1570_v30 = vpop.f32.mrf.mxu1  ;;  %v2054_v37 = vpop.f32.mrf.mxu0 }
 0x3ab   :  { %v15791_v55 = vadd.f32 %v1570_v30, %v1039_v60  ;;  %v15794_v20 = vadd.f32 %v2054_v37, %v15697_v54  ;;  %v22426_v60 = vld [vmem:[#allocation8_spill] sm:$0xff] }
 0x3ac   :  { %v1572_v21 = vpop.f32.mrf.mxu1  ;;  %v2056_v29 = vpop.f32.mrf.mxu0  ;;  %v22427_v30 = vld [vmem:[#allocation28_spill] sm:$0xff] }
 0x3ad   :  { %v1069_v37 = vadd.f32 %v22427_v30, %v22426_v60  ;;  %v22436_v30 = vld [vmem:[#allocation13_spill] sm:$0xff] }
 0x3ae   :  { %v1575_v17 = vpop.f32.mrf.mxu1  ;;  %v2059_v16 = vpop.f32.mrf.mxu0 }
 0x3af   :  { %v15798_v34 = vadd.f32 %v1575_v17, %v1044_v31  ;;  %v15801_v44 = vadd.f32 %v2059_v16, %v15703_v10  ;;  %v9926_v17 = vld [vmem:[%s22327_s5 + $0x808] sm:$0xff]  ;;  %v22429_v16 = vld [vmem:[#allocation29_spill] sm:$0xff] }
 0x3b0   :  { %v1577_v9 = vpop.f32.mrf.mxu1  ;;  %v2061_v39 = vpop.f32.mrf.mxu0  ;;  %2616 = vmatprep.mubr.f32.mxu1 %v9926_v17 }
 0x3b2   :  { %v1580_v2 = vpop.f32.mrf.mxu1  ;;  %v2064_v54 = vpop.f32.mrf.mxu0 }
 0x3b3   :  { %v15805_v22 = vadd.f32 %v1580_v2, %v1049_v42  ;;  %v15808_v48 = vadd.f32 %v2064_v54, %v15709_v14  ;;  %v22430_v54 = vld [vmem:[#allocation10_spill] sm:$0xff] }
 0x3b4   :  { %v1582_v40 = vpop.f32.mrf.mxu1  ;;  %v2066_v13 = vpop.f32.mrf.mxu0 }
 0x3b5   :  { %v22431_v40 = vld [vmem:[#allocation30_spill] sm:$0xff] }
 0x3b6   :  { %v1585_v38 = vpop.f32.mrf.mxu1  ;;  %v2069_v10 = vpop.f32.mrf.mxu0  ;;  %v1079_v13 = vadd.f32 %v22431_v40, %v22430_v54 }
 0x3b7   :  { %v15812_v5 = vadd.f32 %v1585_v38, %v1054_v43  ;;  %v15815_v12 = vadd.f32 %v2069_v10, %v15715_v8 }
 0x3b8   :  { %v1587_v45 = vpop.f32.mrf.mxu1  ;;  %v2071_v50 = vpop.f32.mrf.mxu0 }
 0x3b9   :  { %v22432_v50 = vld [vmem:[#allocation11_spill] sm:$0xff] }
 0x3ba   :  { %v1590_v23 = vpop.f32.mrf.mxu1  ;;  %v2074_v14 = vpop.f32.mrf.mxu0  ;;  %v1084_v61 = vadd.f32 %v22433_v57, %v22432_v50 }
 0x3bb   :  { %v15819_v26 = vadd.f32 %v1590_v23, %v1059_v35  ;;  %v15822_v27 = vadd.f32 %v2074_v14, %v15721_v36 }
 0x3bc   :  { %v1592_v32 = vpop.f32.mrf.mxu1  ;;  %v2076_v19 = vpop.f32.mrf.mxu0 }
 0x3be   :  { %v1595_v53 = vpop.f32.mrf.mxu1  ;;  %v2079_v8 = vpop.f32.mrf.mxu0 }
 0x3bf   :  { %v15826_v47 = vadd.f32 %v1595_v53, %v1064_v18  ;;  %v15829_v11 = vadd.f32 %v2079_v8, %v15727_v15  ;;  %v22428_v15 = vld [vmem:[#allocation9_spill] sm:$0xff]  ;;  %v1089_v18 = vadd.f32 %v22435_v4, %v22434_v3 }
 0x3c0   :  { %v1597_v24 = vpop.f32.mrf.mxu1  ;;  %v2081_v28 = vpop.f32.mrf.mxu0  ;;  %v1074_v9 = vadd.f32 %v22429_v16, %v22428_v15  ;;  %v22438_v16 = vld [vmem:[#allocation14_spill] sm:$0xff] }
 0x3c2   :  { %v1600_v21 = vpop.f32.mrf.mxu1  ;;  %v2084_v36 = vpop.f32.mrf.mxu0 }
 0x3c3   :  { %v15833_v29 = vadd.f32 %v1600_v21, %v1069_v37  ;;  %v15836_v46 = vadd.f32 %v2084_v36, %v15733_v51  ;;  %v22437_v37 = vld [vmem:[#allocation33_spill] sm:$0xff] }
 0x3c4   :  { %v1602_v49 = vpop.f32.mrf.mxu1  ;;  %v2086_v31 = vpop.f32.mrf.mxu0  ;;  %v1094_v21 = vadd.f32 %v22437_v37, %v22436_v30 }
 0x3c6   :  { %v1605_v39 = vpop.f32.mrf.mxu1  ;;  %v2089_v1 = vpop.f32.mrf.mxu0 }
 0x3c7   :  { %v15843_v62 = vadd.f32 %v1605_v39, %v1074_v9  ;;  %v15846_v42 = vadd.f32 %v2089_v1, %v15739_v41  ;;  %v22439_v9 = vld [vmem:[#allocation34_spill] sm:$0xff] }
 0x3c8   :  { %v1607_v2 = vpop.f32.mrf.mxu1  ;;  %v2091_v51 = vpop.f32.mrf.mxu0  ;;  %v1099_v39 = vadd.f32 %v22439_v9, %v22438_v16 }
 0x3ca   :  { %v1610_v52 = vpop.f32.mrf.mxu1  ;;  %v2094_v6 = vpop.f32.mrf.mxu0 }
 0x3cb   :  { %v15850_v43 = vadd.f32 %v1610_v52, %v1079_v13  ;;  %v15853_v38 = vadd.f32 %v2094_v6, %v15745_v63  ;;  %v22440_v13 = vld [vmem:[#allocation15_spill] sm:$0xff] }
 0x3cc   :  { %v1612_v10 = vpop.f32.mrf.mxu1  ;;  %v2096_v45 = vpop.f32.mrf.mxu0  ;;  %v22441_v52 = vld [vmem:[#allocation35_spill] sm:$0xff] }
 0x3cd   :  { %v1104_v6 = vadd.f32 %v22441_v52, %v22440_v13 }
 0x3ce   :  { %v1615_v35 = vpop.f32.mrf.mxu1  ;;  %v2099_v41 = vpop.f32.mrf.mxu0 }
 0x3cf   :  { %v15857_v23 = vadd.f32 %v1615_v35, %v1084_v61  ;;  %v15860_v14 = vadd.f32 %v2099_v41, %v15751_v58  ;;  %v22442_v35 = vld [vmem:[#allocation17_spill] sm:$0xff]  ;;  %v22443_v41 = vld [vmem:[#allocation36_spill] sm:$0xff] }
 0x3d0   :  { %v1617_v32 = vpop.f32.mrf.mxu1  ;;  %v2101_v19 = vpop.f32.mrf.mxu0 }
 0x3d1   :  { %v1109_v32 = vadd.f32 %v22443_v41, %v22442_v35 }
 0x3d2   :  { %v1620_v53 = vpop.f32.mrf.mxu1  ;;  %v2104_v63 = vpop.f32.mrf.mxu0 }
 0x3d3   :  { %v15864_v8 = vadd.f32 %v1620_v53, %v1089_v18  ;;  %v15867_v24 = vadd.f32 %v2104_v63, %v15757_v0  ;;  %v22444_v63 = vld [vmem:[#allocation19_spill] sm:$0xff] }
 0x3d4   :  { %v1622_v28 = vpop.f32.mrf.mxu1  ;;  %v2106_v60 = vpop.f32.mrf.mxu0 }
 0x3d5   :  { %v22445_v28 = vld [vmem:[#allocation37_spill] sm:$0xff] }
 0x3d6   :  { %v1625_v36 = vpop.f32.mrf.mxu1  ;;  %v2109_v58 = vpop.f32.mrf.mxu0  ;;  %v1114_v60 = vadd.f32 %v22445_v28, %v22444_v63 }
 0x3d7   :  { %v15871_v49 = vadd.f32 %v1625_v36, %v1094_v21  ;;  %v15874_v31 = vadd.f32 %v2109_v58, %v15763_v56 }
 0x3d8   :  { %v1627_v17 = vpop.f32.mrf.mxu1  ;;  %v2111_v15 = vpop.f32.mrf.mxu0 }
 0x3da   :  { %v1630_v1 = vpop.f32.mrf.mxu1  ;;  %v2114_v0 = vpop.f32.mrf.mxu0 }
 0x3db   :  { %v15878_v2 = vadd.f32 %v1630_v1, %v1099_v39  ;;  %v15881_v51 = vadd.f32 %v2114_v0, %v15769_v59 }
 0x3dc   :  { %v1632_v54 = vpop.f32.mrf.mxu1  ;;  %v2116_v40 = vpop.f32.mrf.mxu0 }
 0x3de   :  { %v1635_v10 = vpop.f32.mrf.mxu1  ;;  %v2119_v56 = vpop.f32.mrf.mxu0 }
 0x3df   :  { %v15885_v45 = vadd.f32 %v1635_v10, %v1104_v6  ;;  %v15888_v50 = vadd.f32 %v2119_v56, %v15775_v33 }
 0x3e0   :  { %v1637_v57 = vpop.f32.mrf.mxu1  ;;  %v2121_v61 = vpop.f32.mrf.mxu0 }
 0x3e2   :  { %v1640_v19 = vpop.f32.mrf.mxu1  ;;  %v2124_v59 = vpop.f32.mrf.mxu0 }
 0x3e3   :  { %v15892_v3 = vadd.f32 %v1640_v19, %v1109_v32  ;;  %v15895_v4 = vadd.f32 %v2124_v59, %v15781_v25 }
 0x3e4   :  { %v1642_v18 = vpop.f32.mrf.mxu1  ;;  %v2126_v53 = vpop.f32.mrf.mxu0 }
 0x3e6   :  { %v1645_v30 = vpop.f32.mrf.mxu1  ;;  %v2129_v33 = vpop.f32.mrf.mxu0 }
 0x3e7   :  { %v15899_v37 = vadd.f32 %v1645_v30, %v1114_v60  ;;  %v15902_v21 = vadd.f32 %v2129_v33, %v15787_v7 }
 0x3e8   :  { %v1647_v36 = vpop.f32.mrf.mxu1  ;;  %v2131_v58 = vpop.f32.mrf.mxu0 }
 0x3ea   :  { %v2134_v17 = vpop.f32.mrf.mxu0  ;;  %v15904_v15 = vpop.f32.mrf.mxu1 }
 0x3eb   :  { %v15907_v25 = vadd.f32 %v2134_v17, %v15791_v55 }
 0x3ec   :  { %v2136_v16 = vpop.f32.mrf.mxu0  ;;  %v15909_v9 = vpop.f32.mrf.mxu1 }
 0x3ee   :  { %v2139_v39 = vpop.f32.mrf.mxu0  ;;  %v15911_v1 = vpop.f32.mrf.mxu1 }
 0x3ef   :  { %v15914_v0 = vadd.f32 %v2139_v39, %v15798_v34 }
 0x3f0   :  { %v2141_v54 = vpop.f32.mrf.mxu0  ;;  %v15916_v7 = vpop.f32.mrf.mxu1 }
 0x3f1   :  { %v22446_v54 = vmov 0.0  }
 0x3f2   :  { %v2144_v40 = vpop.f32.mrf.mxu0  ;;  %v15918_v13 = vpop.f32.mrf.mxu1 }
 0x3f3   :  { %v15921_v52 = vadd.f32 %v2144_v40, %v15805_v22 }
 0x3f4   :  { %v2146_v55 = vpop.f32.mrf.mxu0  ;;  %v15923_v6 = vpop.f32.mrf.mxu1 }
 0x3f6   :  { %v2149_v10 = vpop.f32.mrf.mxu0  ;;  %v11666_v56 = vpop.f32.mrf.mxu1 }
 0x3f7   :  { %v15926_v57 = vadd.f32 %v2149_v10, %v15812_v5 }
 0x3f8   :  { %v2151_v61 = vpop.f32.mrf.mxu0  ;;  %v2358_v34 = vpop.f32.mrf.mxu1 }
 0x3fa   :  { %v2154_v35 = vpop.f32.mrf.mxu0  ;;  %v11669_v41 = vpop.f32.mrf.mxu1 }
 0x3fb   :  { %v15929_v32 = vadd.f32 %v2154_v35, %v15819_v26  ;;  %v10006_v26 = vld [vmem:[%s22327_s5 + $0xa08] sm:$0xff] }
 0x3fc   :  { %v2156_v19 = vpop.f32.mrf.mxu0  ;;  %v2368_v59 = vpop.f32.mrf.mxu1  ;;  %3180 = vmatprep.mubr.f32.mxu0 %v10006_v26 }
 0x3fe   :  { %v2159_v18 = vpop.f32.mrf.mxu0  ;;  %v11672_v22 = vpop.f32.mrf.mxu1 }
 0x3ff   :  { %v15932_v53 = vadd.f32 %v2159_v18, %v15826_v47 }
 0x400   :  { %v2161_v63 = vpop.f32.mrf.mxu0  ;;  %v2378_v28 = vpop.f32.mrf.mxu1 }
 0x402   :  { %v2164_v60 = vpop.f32.mrf.mxu0  ;;  %v11675_v30 = vpop.f32.mrf.mxu1 }
 0x403   :  { %v15935_v5 = vadd.f32 %v2164_v60, %v15833_v29 }
 0x404   :  { %v2166_v33 = vpop.f32.mrf.mxu0  ;;  %v2388_v36 = vpop.f32.mrf.mxu1 }
 0x406   :  { %v2169_v58 = vpop.f32.mrf.mxu0  ;;  %v11678_v17 = vpop.f32.mrf.mxu1 }
 0x407   :  { %v15941_v16 = vadd.f32 %v2169_v58, %v15843_v62  ;;  %2553 = vmatpush1.msra.mxu1 %v11678_v17 }
 0x408   :  { %v2171_v47 = vpop.f32.mrf.mxu0  ;;  %v2398_v39 = vpop.f32.mrf.mxu1  ;;  %2554 = vmatprep.subr.mxu1 %v22446_v54 }
 0x409   :  { %2555 = vmatpush1.msra.mxu1 %v2398_v39 }
 0x40a   :  { %v2174_v29 = vpop.f32.mrf.mxu0  ;;  %v15944_v40 = vpop.f32.mrf.mxu1  ;;  %2556 = vmatprep.subr.mxu1 %v22446_v54 }
 0x40b   :  { %v15948_v55 = vadd.f32 %v2174_v29, %v15850_v43  ;;  %2557 = vmatpush1.msra.mxu1 %v11675_v30 }
 0x40c   :  { %v2176_v10 = vpop.f32.mrf.mxu0  ;;  %v15950_v61 = vpop.f32.mrf.mxu1  ;;  %2558 = vmatprep.subr.mxu1 %v22446_v54 }
 0x40d   :  { %2559 = vmatpush1.msra.mxu1 %v2388_v36 }
 0x40e   :  { %v2179_v62 = vpop.f32.mrf.mxu0  ;;  %v15953_v35 = vpop.f32.mrf.mxu1  ;;  %2560 = vmatprep.subr.mxu1 %v22446_v54 }
 0x40f   :  { %v15957_v19 = vadd.f32 %v2179_v62, %v15857_v23  ;;  %2561 = vmatpush1.msra.mxu1 %v11672_v22 }
 0x410   :  { %v2181_v18 = vpop.f32.mrf.mxu0  ;;  %v15959_v63 = vpop.f32.mrf.mxu1  ;;  %2562 = vmatprep.subr.mxu1 %v22446_v54 }
 0x411   :  { %22447 = vst [vmem:[#allocation16_spill] sm:$0xff] %v15957_v19  ;;  %2563 = vmatpush1.msra.mxu1 %v2378_v28 }
 0x412   :  { %v2184_v43 = vpop.f32.mrf.mxu0  ;;  %v15962_v60 = vpop.f32.mrf.mxu1  ;;  %2564 = vmatprep.subr.mxu1 %v22446_v54 }
 0x413   :  { %v15966_v30 = vadd.f32 %v2184_v43, %v15864_v8  ;;  %2565 = vmatpush1.msra.mxu1 %v11669_v41 }
 0x414   :  { %v2186_v33 = vpop.f32.mrf.mxu0  ;;  %v15968_v36 = vpop.f32.mrf.mxu1  ;;  %2566 = vmatprep.subr.mxu1 %v22446_v54 }
 0x415   :  { %22448 = vst [vmem:[#allocation20_spill] sm:$0xff] %v15966_v30  ;;  %2567 = vmatpush1.msra.mxu1 %v2368_v59 }
 0x416   :  { %v2189_v23 = vpop.f32.mrf.mxu0  ;;  %v15971_v22 = vpop.f32.mrf.mxu1  ;;  %2568 = vmatprep.subr.mxu1 %v22446_v54 }
 0x417   :  { %v15975_v28 = vadd.f32 %v2189_v23, %v15871_v49  ;;  %2569 = vmatpush1.msra.mxu1 %v11666_v56 }
 0x418   :  { %v2191_v26 = vpop.f32.mrf.mxu0  ;;  %v2438_v58 = vpop.f32.mrf.mxu1  ;;  %2570 = vmatprep.subr.mxu1 %v22446_v54 }
 0x419   :  { %22449 = vst [vmem:[#allocation38_spill] sm:$0xff] %v15975_v28  ;;  %2571 = vmatpush1.msra.mxu1 %v2358_v34 }
 0x41a   :  { %v2194_v8 = vpop.f32.mrf.mxu0  ;;  %v11693_v41 = vpop.f32.mrf.mxu1  ;;  %2572 = vmatprep.subr.mxu1 %v22446_v54 }
 0x41b   :  { %v15980_v59 = vadd.f32 %v2194_v8, %v15878_v2  ;;  %2573 = vmatpush1.msra.mxu1 %v15918_v13 }
 0x41c   :  { %v2196_v17 = vpop.f32.mrf.mxu0  ;;  %v2448_v47 = vpop.f32.mrf.mxu1  ;;  %2574 = vmatprep.subr.mxu1 %v22446_v54 }
 0x41d   :  { %22450 = vst [vmem:[#allocation39_spill] sm:$0xff] %v15980_v59  ;;  %2575 = vmatpush1.msra.mxu1 %v15923_v6 }
 0x41e   :  { %v2199_v49 = vpop.f32.mrf.mxu0  ;;  %v11696_v56 = vpop.f32.mrf.mxu1  ;;  %2576 = vmatprep.subr.mxu1 %v22446_v54 }
 0x41f   :  { %v15987_v34 = vadd.f32 %v2199_v49, %v15885_v45  ;;  %2577 = vmatpush1.msra.mxu1 %v15911_v1 }
 0x420   :  { %v2201_v39 = vpop.f32.mrf.mxu0  ;;  %v2458_v2 = vpop.f32.mrf.mxu1  ;;  %2578 = vmatprep.subr.mxu1 %v22446_v54 }
 0x421   :  { %22451 = vst [vmem:[#allocation18_spill] sm:$0xff] %v15987_v34  ;;  %2579 = vmatpush1.msra.mxu1 %v15916_v7 }
 0x422   :  { %v2204_v13 = vpop.f32.mrf.mxu0  ;;  %v11699_v29 = vpop.f32.mrf.mxu1  ;;  %2580 = vmatprep.subr.mxu1 %v22446_v54 }
 0x423   :  { %v15994_v6 = vadd.f32 %v2204_v13, %v15892_v3  ;;  %2581 = vmatpush1.msra.mxu1 %v15904_v15  ;;  %v10082_v13 = vld [vmem:[%s22325_s1 + $0x368] sm:$0xff] }
 0x424   :  { %v2206_v10 = vpop.f32.mrf.mxu0  ;;  %v2468_v45 = vpop.f32.mrf.mxu1  ;;  %2582 = vmatprep.subr.mxu1 %v22446_v54 }
 0x425   :  { %22452 = vst [vmem:[#allocation21_spill] sm:$0xff] %v15994_v6  ;;  %2583 = vmatpush1.msra.mxu1 %v15909_v9  ;;  %v10067_v6 = vld [vmem:[%s22327_s5 + $0xbf0] sm:$0xff] }
 0x426   :  { %v2209_v1 = vpop.f32.mrf.mxu0  ;;  %v11702_v62 = vpop.f32.mrf.mxu1  ;;  %2584 = vmatprep.subr.mxu1 %v22446_v54 }
 0x427   :  { %v16001_v7 = vadd.f32 %v2209_v1, %v15899_v37  ;;  %2585 = vmatpush2.msra.mxu1 %v11702_v62  ;;  %v10081_v62 = vld [vmem:[%s22325_s1 + $0x360] sm:$0xff] }
 0x428   :  { %v2211_v18 = vpop.f32.mrf.mxu0  ;;  %v2478_v43 = vpop.f32.mrf.mxu1  ;;  %2586 = vmatprep.subr.mxu1 %v22446_v54 }
 0x429   :  { %22453 = vst [vmem:[#allocation40_spill] sm:$0xff] %v16001_v7  ;;  %2587 = vmatpush2.msra.mxu1 %v2478_v43  ;;  %v9931_v18 = vld [vmem:[%s22327_s5 + $0x830] sm:$0xff] }
 0x42a   :  { %2588 = vmatprep.subr.mxu1 %v22446_v54  ;;  %v16005_v3 = vpop.f32.mrf.mxu0  ;;  %v16769_v7 = vld [vmem:[%s22326_s0 + $0xf0] sm:$0xff] }
 0x42b   :  { %2589 = vmatpush2.msra.mxu1 %v11699_v29  ;;  %v9929_v29 = vld [vmem:[%s22327_s5 + $0x820] sm:$0xff] }
 0x42c   :  { %2590 = vmatprep.subr.mxu1 %v22446_v54  ;;  %v16008_v15 = vpop.f32.mrf.mxu0 }
 0x42d   :  { %2591 = vmatpush2.msra.mxu1 %v2468_v45  ;;  %v9932_v45 = vld [vmem:[%s22327_s5 + $0x838] sm:$0xff] }
 0x42e   :  { %2592 = vmatprep.subr.mxu1 %v22446_v54  ;;  %v16011_v37 = vpop.f32.mrf.mxu0 }
 0x42f   :  { %2593 = vmatpush2.msra.mxu1 %v11696_v56  ;;  %v9927_v56 = vld [vmem:[%s22327_s5 + $0x810] sm:$0xff] }
 0x430   :  { %2594 = vmatprep.subr.mxu1 %v22446_v54  ;;  %v16014_v9 = vpop.f32.mrf.mxu0 }
 0x431   :  { %2595 = vmatpush2.msra.mxu1 %v2458_v2 }
 0x432   :  { %2596 = vmatprep.subr.mxu1 %v22446_v54  ;;  %v16017_v33 = vpop.f32.mrf.mxu0 }
 0x433   :  { %2597 = vmatpush2.msra.mxu1 %v11693_v41 }
 0x434   :  { %2598 = vmatprep.subr.mxu1 %v22446_v54  ;;  %v16020_v23 = vpop.f32.mrf.mxu0 }
 0x435   :  { %2599 = vmatpush2.msra.mxu1 %v2448_v47 }
 0x436   :  { %2600 = vmatprep.subr.mxu1 %v22446_v54  ;;  %v16023_v26 = vpop.f32.mrf.mxu0 }
 0x437   :  { %2601 = vmatpush2.msra.mxu1 %v15971_v22 }
 0x438   :  { %2602 = vmatprep.subr.mxu1 %v22446_v54  ;;  %v16027_v8 = vpop.f32.mrf.mxu0 }
 0x439   :  { %2603 = vmatpush2.msra.mxu1 %v2438_v58 }
 0x43a   :  { %2604 = vmatprep.subr.mxu1 %v22446_v54  ;;  %v11749_v17 = vpop.f32.mrf.mxu0 }
 0x43b   :  { %2605 = vmatpush2.msra.mxu1 %v15962_v60  ;;  %v9925_v60 = vld [vmem:[%s22327_s5 + $0x800] sm:$0xff] }
 0x43c   :  { %2606 = vmatprep.subr.mxu1 %v22446_v54  ;;  %v16032_v41 = vpop.f32.mrf.mxu0 }
 0x43d   :  { %2607 = vmatpush2.msra.mxu1 %v15968_v36  ;;  %v10084_v36 = vld [vmem:[%s22325_s1 + $0x378] sm:$0xff] }
 0x43e   :  { %2608 = vmatprep.subr.mxu1 %v22446_v54  ;;  %v11752_v47 = vpop.f32.mrf.mxu0 }
 0x43f   :  { %2609 = vmatpush2.msra.mxu1 %v15953_v35 }
 0x440   :  { %2610 = vmatprep.subr.mxu1 %v22446_v54  ;;  %v2942_v22 = vpop.f32.mrf.mxu0 }
 0x441   :  { %2611 = vmatpush2.msra.mxu1 %v15959_v63  ;;  %v9928_v63 = vld [vmem:[%s22327_s5 + $0x818] sm:$0xff] }
 0x442   :  { %2612 = vmatprep.subr.mxu1 %v22446_v54  ;;  %v11755_v58 = vpop.f32.mrf.mxu0 }
 0x443   :  { %2613 = vmatpush2.msra.mxu1 %v15944_v40  ;;  %v10083_v40 = vld [vmem:[%s22325_s1 + $0x370] sm:$0xff] }
 0x444   :  { %2614 = vmatprep.subr.mxu1 %v22446_v54  ;;  %v2952_v35 = vpop.f32.mrf.mxu0 }
 0x445   :  { %2615 = vmatpush2.msra.mxu1 %v15950_v61  ;;  %v9930_v61 = vld [vmem:[%s22327_s5 + $0x828] sm:$0xff] }
 0x446   :  { %2617 = vmatmul.mubr.f32.vlgmr.msra.gmra.mxu1 %v9925_v60  ;;  %v11758_v49 = vpop.f32.mrf.mxu0  ;;  %11783 = vmatprep.subr.mxu1 %v10084_v36 }
 0x447   :  { %3117 = vmatpush1.msra.mxu0 %v11758_v49  ;;  %2621 = vmatprep.mubr.f32.mxu1 %v9928_v63  ;;  %v9935_v49 = vld [vmem:[%s22327_s5 + $0x850] sm:$0xff] }
 0x448   :  { %v2962_v39 = vpop.f32.mrf.mxu0  ;;  %3118 = vmatprep.subr.mxu0 %v22446_v54  ;;  %11784 = vmatpush3.msra.mxu1 %v10084_v36  ;;  %v9933_v36 = vld [vmem:[%s22327_s5 + $0x840] sm:$0xff] }
 0x449   :  { %3119 = vmatpush1.msra.mxu0 %v2962_v39  ;;  %11785 = vmatprep.subr.mxu1 %v10083_v40  ;;  %v9937_v39 = vld [vmem:[%s22327_s5 + $0x860] sm:$0xff] }
 0x44a   :  { %2622 = vmatmul.mubr.f32.gmra.mxu1 %v9927_v56  ;;  %v16062_v2 = vpop.f32.mrf.mxu0  ;;  %3120 = vmatprep.subr.mxu0 %v22446_v54 }
 0x44b   :  { %3121 = vmatpush1.msra.mxu0 %v11755_v58  ;;  %2626 = vmatprep.mubr.f32.mxu1 %v9930_v61  ;;  %v9934_v58 = vld [vmem:[%s22327_s5 + $0x848] sm:$0xff] }
 0x44c   :  { %v16071_v10 = vpop.f32.mrf.mxu0  ;;  %3122 = vmatprep.subr.mxu0 %v22446_v54  ;;  %11786 = vmatpush3.msra.mxu1 %v10083_v40 }
 0x44d   :  { %3123 = vmatpush1.msra.mxu0 %v2952_v35  ;;  %11787 = vmatprep.subr.mxu1 %v10082_v13 }
 0x44e   :  { %2627 = vmatmul.mubr.f32.gmra.mxu1 %v9929_v29  ;;  %v16077_v1 = vpop.f32.mrf.mxu0  ;;  %3124 = vmatprep.subr.mxu0 %v22446_v54  ;;  %v9939_v29 = vld [vmem:[%s22327_s5 + $0x870] sm:$0xff] }
 0x44f   :  { %3125 = vmatpush1.msra.mxu0 %v11752_v47  ;;  %2631 = vmatprep.mubr.f32.mxu1 %v9932_v45  ;;  %v10080_v47 = vld [vmem:[%s22325_s1 + $0x358] sm:$0xff] }
 0x450   :  { %v16086_v43 = vpop.f32.mrf.mxu0  ;;  %3126 = vmatprep.subr.mxu0 %v22446_v54  ;;  %11788 = vmatpush3.msra.mxu1 %v10082_v13 }
 0x451   :  { %3127 = vmatpush1.msra.mxu0 %v2942_v22  ;;  %11789 = vmatprep.subr.mxu1 %v10081_v62  ;;  %v9936_v22 = vld [vmem:[%s22327_s5 + $0x858] sm:$0xff] }
 0x452   :  { %2632 = vmatmul.mubr.f32.gmra.mxu1 %v9931_v18  ;;  %v16092_v60 = vpop.f32.mrf.mxu0  ;;  %3128 = vmatprep.subr.mxu0 %v22446_v54  ;;  %v9941_v18 = vld [vmem:[%s22327_s5 + $0x880] sm:$0xff] }
 0x453   :  { %3129 = vmatpush1.msra.mxu0 %v11749_v17  ;;  %2636 = vmatprep.mubr.f32.mxu1 %v9934_v58  ;;  %v10079_v17 = vld [vmem:[%s22325_s1 + $0x350] sm:$0xff] }
 0x454   :  { %v16101_v35 = vpop.f32.mrf.mxu0  ;;  %3130 = vmatprep.subr.mxu0 %v22446_v54  ;;  %11790 = vmatpush3.msra.mxu1 %v10081_v62 }
 0x455   :  { %3131 = vmatpush1.msra.mxu0 %v16032_v41  ;;  %11791 = vmatprep.subr.mxu1 %v10080_v47  ;;  %v9938_v41 = vld [vmem:[%s22327_s5 + $0x868] sm:$0xff] }
 0x456   :  { %2637 = vmatmul.mubr.f32.gmra.mxu1 %v9933_v36  ;;  %v16108_v63 = vpop.f32.mrf.mxu0  ;;  %3132 = vmatprep.subr.mxu0 %v22446_v54  ;;  %v9943_v36 = vld [vmem:[%s22327_s5 + $0x890] sm:$0xff] }
 0x457   :  { %3133 = vmatpush1.msra.mxu0 %v16023_v26  ;;  %2641 = vmatprep.mubr.f32.mxu1 %v9936_v22  ;;  %v10078_v26 = vld [vmem:[%s22325_s1 + $0x348] sm:$0xff] }
 0x458   :  { %v16118_v40 = vpop.f32.mrf.mxu0  ;;  %3134 = vmatprep.subr.mxu0 %v22446_v54  ;;  %11792 = vmatpush3.msra.mxu1 %v10080_v47 }
 0x459   :  { %3135 = vmatpush1.msra.mxu0 %v16027_v8  ;;  %11793 = vmatprep.subr.mxu1 %v10079_v17  ;;  %v9940_v8 = vld [vmem:[%s22327_s5 + $0x878] sm:$0xff] }
 0x45a   :  { %2642 = vmatmul.mubr.f32.gmra.mxu1 %v9935_v49  ;;  %v16125_v56 = vpop.f32.mrf.mxu0  ;;  %3136 = vmatprep.subr.mxu0 %v22446_v54  ;;  %v9945_v49 = vld [vmem:[%s22327_s5 + $0x8a0] sm:$0xff] }
 0x45b   :  { %3137 = vmatpush1.msra.mxu0 %v16017_v33  ;;  %2646 = vmatprep.mubr.f32.mxu1 %v9938_v41  ;;  %v10077_v33 = vld [vmem:[%s22325_s1 + $0x340] sm:$0xff]  ;;  %v9948_v41 = vld [vmem:[%s22327_s5 + $0x8b8] sm:$0xff] }
 0x45c   :  { %v16135_v61 = vpop.f32.mrf.mxu0  ;;  %3138 = vmatprep.subr.mxu0 %v22446_v54  ;;  %11794 = vmatpush3.msra.mxu1 %v10079_v17  ;;  %v10074_v17 = vld [vmem:[%s22325_s1 + $0x328] sm:$0xff] }
 0x45d   :  { %3139 = vmatpush1.msra.mxu0 %v16020_v23  ;;  %11795 = vmatprep.subr.mxu1 %v10078_v26  ;;  %v9942_v23 = vld [vmem:[%s22327_s5 + $0x888] sm:$0xff] }
 0x45e   :  { %2647 = vmatmul.mubr.f32.gmra.mxu1 %v9937_v39  ;;  %v11776_v13 = vpop.f32.mrf.mxu0  ;;  %3140 = vmatprep.subr.mxu0 %v22446_v54  ;;  %v9947_v39 = vld [vmem:[%s22327_s5 + $0x8b0] sm:$0xff] }
 0x45f   :  { %3141 = vmatpush1.msra.mxu0 %v16011_v37  ;;  %2651 = vmatprep.mubr.f32.mxu1 %v9940_v8  ;;  %v10076_v37 = vld [vmem:[%s22325_s1 + $0x338] sm:$0xff]  ;;  %v9950_v8 = vld [vmem:[%s22327_s5 + $0x8c8] sm:$0xff] }
 0x460   :  { %v3022_v45 = vpop.f32.mrf.mxu0  ;;  %3142 = vmatprep.subr.mxu0 %v22446_v54  ;;  %11796 = vmatpush3.msra.mxu1 %v10078_v26  ;;  %v10073_v26 = vld [vmem:[%s22325_s1 + $0x320] sm:$0xff] }
 0x461   :  { %3143 = vmatpush1.msra.mxu0 %v16014_v9  ;;  %11797 = vmatprep.subr.mxu1 %v10077_v33  ;;  %v9944_v9 = vld [vmem:[%s22327_s5 + $0x898] sm:$0xff] }
 0x462   :  { %2652 = vmatmul.mubr.f32.gmra.mxu1 %v9939_v29  ;;  %v11779_v62 = vpop.f32.mrf.mxu0  ;;  %3144 = vmatprep.subr.mxu0 %v22446_v54  ;;  %v9952_v29 = vld [vmem:[%s22327_s5 + $0x8d8] sm:$0xff] }
 0x463   :  { %3145 = vmatpush1.msra.mxu0 %v16005_v3  ;;  %2656 = vmatprep.mubr.f32.mxu1 %v9942_v23  ;;  %v10075_v3 = vld [vmem:[%s22325_s1 + $0x330] sm:$0xff]  ;;  %v9953_v23 = vld [vmem:[%s22327_s5 + $0x8e0] sm:$0xff] }
 0x464   :  { %v3032_v58 = vpop.f32.mrf.mxu0  ;;  %3146 = vmatprep.subr.mxu0 %v22446_v54  ;;  %11798 = vmatpush3.msra.mxu1 %v10077_v33  ;;  %v9949_v33 = vld [vmem:[%s22327_s5 + $0x8c0] sm:$0xff] }
 0x465   :  { %3147 = vmatpush1.msra.mxu0 %v16008_v15  ;;  %11799 = vmatprep.subr.mxu1 %v10076_v37  ;;  %v9946_v15 = vld [vmem:[%s22327_s5 + $0x8a8] sm:$0xff] }
 0x466   :  { %2657 = vmatmul.mubr.f32.gmra.mxu1 %v9941_v18  ;;  %v11782_v47 = vpop.f32.mrf.mxu0  ;;  %3148 = vmatprep.subr.mxu0 %v22446_v54  ;;  %v10008_v18 = vld [vmem:[%s22327_s5 + $0xa18] sm:$0xff] }
 0x467   :  { %3149 = vmatpush2.msra.mxu0 %v11782_v47  ;;  %2661 = vmatprep.mubr.f32.mxu1 %v9944_v9  ;;  %v10007_v9 = vld [vmem:[%s22327_s5 + $0xa10] sm:$0xff]  ;;  %v10010_v47 = vld [vmem:[%s22327_s5 + $0xa28] sm:$0xff] }
 0x468   :  { %v3042_v22 = vpop.f32.mrf.mxu0  ;;  %3150 = vmatprep.subr.mxu0 %v22446_v54  ;;  %11800 = vmatpush3.msra.mxu1 %v10076_v37  ;;  %v10005_v37 = vld [vmem:[%s22327_s5 + $0xa00] sm:$0xff] }
 0x469   :  { %3151 = vmatpush2.msra.mxu0 %v3042_v22  ;;  %11801 = vmatprep.subr.mxu1 %v10075_v3  ;;  %v10009_v22 = vld [vmem:[%s22327_s5 + $0xa20] sm:$0xff] }
 0x46a   :  { %2662 = vmatmul.mubr.f32.gmra.mxu1 %v9943_v36  ;;  %3152 = vmatprep.subr.mxu0 %v22446_v54  ;;  %v9961_v36 = vld [vmem:[%s22327_s5 + $0x920] sm:$0xff] }
 0x46b   :  { %3153 = vmatpush2.msra.mxu0 %v11779_v62  ;;  %2666 = vmatprep.mubr.f32.mxu1 %v9946_v15  ;;  %v9955_v62 = vld [vmem:[%s22327_s5 + $0x8f0] sm:$0xff]  ;;  %v9964_v15 = vld [vmem:[%s22327_s5 + $0x938] sm:$0xff] }
 0x46c   :  { %3154 = vmatprep.subr.mxu0 %v22446_v54  ;;  %11802 = vmatpush3.msra.mxu1 %v10075_v3  ;;  %v10163_v3 = vld [vmem:[%s22325_s1 + $0x3f0] sm:$0xff] }
 0x46d   :  { %3155 = vmatpush2.msra.mxu0 %v3032_v58  ;;  %11803 = vmatprep.subr.mxu1 %v10074_v17  ;;  %v9959_v58 = vld [vmem:[%s22327_s5 + $0x910] sm:$0xff] }
 0x46e   :  { %2667 = vmatmul.mubr.f32.gmra.mxu1 %v9945_v49  ;;  %3156 = vmatprep.subr.mxu0 %v22446_v54  ;;  %v10162_v49 = vld [vmem:[%s22325_s1 + $0x3e8] sm:$0xff] }
 0x46f   :  { %3157 = vmatpush2.msra.mxu0 %v11776_v13  ;;  %2671 = vmatprep.mubr.f32.mxu1 %v9948_v41  ;;  %v10072_v13 = vld [vmem:[%s22325_s1 + $0x318] sm:$0xff]  ;;  %v9963_v41 = vld [vmem:[%s22327_s5 + $0x930] sm:$0xff] }
 0x470   :  { %3158 = vmatprep.subr.mxu0 %v22446_v54  ;;  %11804 = vmatpush3.msra.mxu1 %v10074_v17  ;;  %v10012_v17 = vld [vmem:[%s22327_s5 + $0xa38] sm:$0xff] }
 0x471   :  { %3159 = vmatpush2.msra.mxu0 %v3022_v45  ;;  %11805 = vmatprep.subr.mxu1 %v10073_v26  ;;  %v9951_v45 = vld [vmem:[%s22327_s5 + $0x8d0] sm:$0xff] }
 0x472   :  { %2672 = vmatmul.mubr.f32.gmra.mxu1 %v9947_v39  ;;  %3160 = vmatprep.subr.mxu0 %v22446_v54  ;;  %v9966_v39 = vld [vmem:[%s22327_s5 + $0x948] sm:$0xff] }
 0x473   :  { %3161 = vmatpush2.msra.mxu0 %v16125_v56  ;;  %2676 = vmatprep.mubr.f32.mxu1 %v9950_v8  ;;  %v10071_v56 = vld [vmem:[%s22325_s1 + $0x310] sm:$0xff]  ;;  %v10014_v8 = vld [vmem:[%s22327_s5 + $0xa48] sm:$0xff] }
 0x474   :  { %3162 = vmatprep.subr.mxu0 %v22446_v54  ;;  %11806 = vmatpush3.msra.mxu1 %v10073_v26  ;;  %v10011_v26 = vld [vmem:[%s22327_s5 + $0xa30] sm:$0xff] }
 0x475   :  { %3163 = vmatpush2.msra.mxu0 %v16135_v61  ;;  %11807 = vmatprep.subr.mxu1 %v10072_v13  ;;  %v9954_v61 = vld [vmem:[%s22327_s5 + $0x8e8] sm:$0xff] }
 0x476   :  { %2677 = vmatmul.mubr.f32.gmra.mxu1 %v9949_v33  ;;  %3164 = vmatprep.subr.mxu0 %v22446_v54  ;;  %v9965_v33 = vld [vmem:[%s22327_s5 + $0x940] sm:$0xff] }
 0x477   :  { %3165 = vmatpush2.msra.mxu0 %v16108_v63  ;;  %2681 = vmatprep.mubr.f32.mxu1 %v9952_v29  ;;  %v10070_v63 = vld [vmem:[%s22325_s1 + $0x308] sm:$0xff]  ;;  %v10013_v29 = vld [vmem:[%s22327_s5 + $0xa40] sm:$0xff] }
 0x478   :  { %3166 = vmatprep.subr.mxu0 %v22446_v54  ;;  %11808 = vmatpush3.msra.mxu1 %v10072_v13  ;;  %v10161_v13 = vld [vmem:[%s22325_s1 + $0x3e0] sm:$0xff] }
 0x479   :  { %3167 = vmatpush2.msra.mxu0 %v16118_v40  ;;  %11809 = vmatprep.subr.mxu1 %v10071_v56  ;;  %v9956_v40 = vld [vmem:[%s22327_s5 + $0x8f8] sm:$0xff] }
 0x47a   :  { %2682 = vmatmul.mubr.f32.gmra.mxu1 %v9951_v45  ;;  %3168 = vmatprep.subr.mxu0 %v22446_v54  ;;  %v10016_v45 = vld [vmem:[%s22327_s5 + $0xa58] sm:$0xff] }
 0x47b   :  { %3169 = vmatpush2.msra.mxu0 %v16092_v60  ;;  %2686 = vmatprep.mubr.f32.mxu1 %v9954_v61  ;;  %v10069_v60 = vld [vmem:[%s22325_s1 + $0x300] sm:$0xff]  ;;  %v10160_v61 = vld [vmem:[%s22325_s1 + $0x3d8] sm:$0xff] }
 0x47c   :  { %3170 = vmatprep.subr.mxu0 %v22446_v54  ;;  %11810 = vmatpush3.msra.mxu1 %v10071_v56  ;;  %v9968_v56 = vld [vmem:[%s22327_s5 + $0x958] sm:$0xff] }
 0x47d   :  { %3171 = vmatpush2.msra.mxu0 %v16101_v35  ;;  %11811 = vmatprep.subr.mxu1 %v10070_v63  ;;  %v9958_v35 = vld [vmem:[%s22327_s5 + $0x908] sm:$0xff] }
 0x47e   :  { %2687 = vmatmul.mubr.f32.gmra.mxu1 %v9953_v23  ;;  %3172 = vmatprep.subr.mxu0 %v22446_v54  ;;  %v10015_v23 = vld [vmem:[%s22327_s5 + $0xa50] sm:$0xff] }
 0x47f   :  { %3173 = vmatpush2.msra.mxu0 %v16077_v1  ;;  %2691 = vmatprep.mubr.f32.mxu1 %v9956_v40  ;;  %v9957_v1 = vld [vmem:[%s22327_s5 + $0x900] sm:$0xff]  ;;  %v9970_v40 = vld [vmem:[%s22327_s5 + $0x968] sm:$0xff] }
 0x480   :  { %3174 = vmatprep.subr.mxu0 %v22446_v54  ;;  %11812 = vmatpush3.msra.mxu1 %v10070_v63  ;;  %v9967_v63 = vld [vmem:[%s22327_s5 + $0x950] sm:$0xff] }
 0x481   :  { %3175 = vmatpush2.msra.mxu0 %v16086_v43  ;;  %11813 = vmatprep.subr.mxu1 %v10069_v60  ;;  %v9960_v43 = vld [vmem:[%s22327_s5 + $0x918] sm:$0xff] }
 0x482   :  { %2692 = vmatmul.mubr.f32.gmra.mxu1 %v9955_v62  ;;  %3176 = vmatprep.subr.mxu0 %v22446_v54  ;;  %v10159_v62 = vld [vmem:[%s22325_s1 + $0x3d0] sm:$0xff] }
 0x483   :  { %3177 = vmatpush2.msra.mxu0 %v16062_v2  ;;  %2696 = vmatprep.mubr.f32.mxu1 %v9958_v35  ;;  %v10164_v2 = vld [vmem:[%s22325_s1 + $0x3f8] sm:$0xff]  ;;  %v9969_v35 = vld [vmem:[%s22327_s5 + $0x960] sm:$0xff] }
 0x484   :  { %3178 = vmatprep.subr.mxu0 %v22446_v54  ;;  %11814 = vmatpush3.msra.mxu1 %v10069_v60  ;;  %v10018_v60 = vld [vmem:[%s22327_s5 + $0xa68] sm:$0xff] }
 0x485   :  { %3179 = vmatpush2.msra.mxu0 %v16071_v10  ;;  %3680 = vmatprep.subr.mxu1 %v22446_v54  ;;  %v9962_v10 = vld [vmem:[%s22327_s5 + $0x928] sm:$0xff] }
 0x486   :  { %2697 = vmatmul.mubr.f32.gmra.mxu1 %v9957_v1  ;;  %3181 = vmatmul.mubr.f32.vlgmr.msra.gmra.mxu0 %v10005_v37  ;;  %v10017_v1 = vld [vmem:[%s22327_s5 + $0xa60] sm:$0xff]  ;;  %v9972_v37 = vld [vmem:[%s22327_s5 + $0x978] sm:$0xff] }
 0x487   :  { %2701 = vmatprep.mubr.f32.mxu1 %v9960_v43  ;;  %3185 = vmatprep.mubr.f32.mxu0 %v10008_v18  ;;  %v10020_v43 = vld [vmem:[%s22327_s5 + $0xa78] sm:$0xff]  ;;  %v10158_v18 = vld [vmem:[%s22325_s1 + $0x3c8] sm:$0xff] }
 0x488   :  { %11863 = vmatprep.subr.mxu0 %v10164_v2 }
 0x489   :  { %11864 = vmatpush3.msra.mxu0 %v10164_v2  ;;  %v9971_v2 = vld [vmem:[%s22327_s5 + $0x970] sm:$0xff] }
 0x48a   :  { %2702 = vmatmul.mubr.f32.gmra.mxu1 %v9959_v58  ;;  %3186 = vmatmul.mubr.f32.gmra.mxu0 %v10007_v9  ;;  %v10019_v58 = vld [vmem:[%s22327_s5 + $0xa70] sm:$0xff]  ;;  %v9974_v9 = vld [vmem:[%s22327_s5 + $0x988] sm:$0xff] }
 0x48b   :  { %2706 = vmatprep.mubr.f32.mxu1 %v9962_v10  ;;  %3190 = vmatprep.mubr.f32.mxu0 %v10010_v47  ;;  %v10022_v10 = vld [vmem:[%s22327_s5 + $0xa88] sm:$0xff]  ;;  %v10157_v47 = vld [vmem:[%s22325_s1 + $0x3c0] sm:$0xff] }
 0x48c   :  { %11865 = vmatprep.subr.mxu0 %v10163_v3 }
 0x48d   :  { %11866 = vmatpush3.msra.mxu0 %v10163_v3  ;;  %v9973_v3 = vld [vmem:[%s22327_s5 + $0x980] sm:$0xff] }
 0x48e   :  { %2707 = vmatmul.mubr.f32.gmra.mxu1 %v9961_v36  ;;  %3191 = vmatmul.mubr.f32.gmra.mxu0 %v10009_v22  ;;  %v10021_v36 = vld [vmem:[%s22327_s5 + $0xa80] sm:$0xff]  ;;  %v9976_v22 = vld [vmem:[%s22327_s5 + $0x998] sm:$0xff] }
 0x48f   :  { %2711 = vmatprep.mubr.f32.mxu1 %v9964_v15  ;;  %3195 = vmatprep.mubr.f32.mxu0 %v10012_v17  ;;  %v10024_v15 = vld [vmem:[%s22327_s5 + $0xa98] sm:$0xff] }
 0x490   :  { %11867 = vmatprep.subr.mxu0 %v10162_v49  ;;  %v10156_v17 = vld [vmem:[%s22325_s1 + $0x3b8] sm:$0xff] }
 0x491   :  { %11868 = vmatpush3.msra.mxu0 %v10162_v49  ;;  %v9975_v49 = vld [vmem:[%s22327_s5 + $0x990] sm:$0xff] }
 0x492   :  { %2712 = vmatmul.mubr.f32.gmra.mxu1 %v9963_v41  ;;  %3196 = vmatmul.mubr.f32.gmra.mxu0 %v10011_v26  ;;  %v10023_v41 = vld [vmem:[%s22327_s5 + $0xa90] sm:$0xff]  ;;  %v9978_v26 = vld [vmem:[%s22327_s5 + $0x9a8] sm:$0xff] }
 0x493   :  { %2716 = vmatprep.mubr.f32.mxu1 %v9966_v39  ;;  %3200 = vmatprep.mubr.f32.mxu0 %v10014_v8  ;;  %v10026_v39 = vld [vmem:[%s22327_s5 + $0xaa8] sm:$0xff]  ;;  %v10155_v8 = vld [vmem:[%s22325_s1 + $0x3b0] sm:$0xff] }
 0x494   :  { %11869 = vmatprep.subr.mxu0 %v10161_v13 }
 0x495   :  { %11870 = vmatpush3.msra.mxu0 %v10161_v13  ;;  %v9977_v13 = vld [vmem:[%s22327_s5 + $0x9a0] sm:$0xff] }
 0x496   :  { %2717 = vmatmul.mubr.f32.gmra.mxu1 %v9965_v33  ;;  %3201 = vmatmul.mubr.f32.gmra.mxu0 %v10013_v29  ;;  %v10025_v33 = vld [vmem:[%s22327_s5 + $0xaa0] sm:$0xff]  ;;  %v9980_v29 = vld [vmem:[%s22327_s5 + $0x9b8] sm:$0xff] }
 0x497   :  { %2721 = vmatprep.mubr.f32.mxu1 %v9968_v56  ;;  %3205 = vmatprep.mubr.f32.mxu0 %v10016_v45  ;;  %v10028_v56 = vld [vmem:[%s22327_s5 + $0xab8] sm:$0xff]  ;;  %v10154_v45 = vld [vmem:[%s22325_s1 + $0x3a8] sm:$0xff] }
 0x498   :  { %11871 = vmatprep.subr.mxu0 %v10160_v61 }
 0x499   :  { %11872 = vmatpush3.msra.mxu0 %v10160_v61  ;;  %v9979_v61 = vld [vmem:[%s22327_s5 + $0x9b0] sm:$0xff] }
 0x49a   :  { %2722 = vmatmul.mubr.f32.gmra.mxu1 %v9967_v63  ;;  %3206 = vmatmul.mubr.f32.gmra.mxu0 %v10015_v23  ;;  %v10027_v63 = vld [vmem:[%s22327_s5 + $0xab0] sm:$0xff]  ;;  %v9982_v23 = vld [vmem:[%s22327_s5 + $0x9c8] sm:$0xff] }
 0x49b   :  { %2726 = vmatprep.mubr.f32.mxu1 %v9970_v40  ;;  %3210 = vmatprep.mubr.f32.mxu0 %v10018_v60  ;;  %v10030_v40 = vld [vmem:[%s22327_s5 + $0xac8] sm:$0xff]  ;;  %v10153_v60 = vld [vmem:[%s22325_s1 + $0x3a0] sm:$0xff] }
 0x49c   :  { %11873 = vmatprep.subr.mxu0 %v10159_v62 }
 0x49d   :  { %11874 = vmatpush3.msra.mxu0 %v10159_v62  ;;  %v9981_v62 = vld [vmem:[%s22327_s5 + $0x9c0] sm:$0xff] }
 0x49e   :  { %2727 = vmatmul.mubr.f32.gmra.mxu1 %v9969_v35  ;;  %3211 = vmatmul.mubr.f32.gmra.mxu0 %v10017_v1  ;;  %v10029_v35 = vld [vmem:[%s22327_s5 + $0xac0] sm:$0xff]  ;;  %v9984_v1 = vld [vmem:[%s22327_s5 + $0x9d8] sm:$0xff] }
 0x49f   :  { %2731 = vmatprep.mubr.f32.mxu1 %v9972_v37  ;;  %3215 = vmatprep.mubr.f32.mxu0 %v10020_v43  ;;  %v10032_v37 = vld [vmem:[%s22327_s5 + $0xad8] sm:$0xff] }
 0x4a0   :  { %11875 = vmatprep.subr.mxu0 %v10158_v18  ;;  %v10152_v43 = vld [vmem:[%s22325_s1 + $0x398] sm:$0xff] }
 0x4a1   :  { %11876 = vmatpush3.msra.mxu0 %v10158_v18  ;;  %v9983_v18 = vld [vmem:[%s22327_s5 + $0x9d0] sm:$0xff] }
 0x4a2   :  { %2732 = vmatmul.mubr.f32.gmra.mxu1 %v9971_v2  ;;  %3216 = vmatmul.mubr.f32.gmra.mxu0 %v10019_v58  ;;  %v10031_v2 = vld [vmem:[%s22327_s5 + $0xad0] sm:$0xff]  ;;  %v9986_v58 = vld [vmem:[%s22327_s5 + $0x9e8] sm:$0xff] }
 0x4a3   :  { %2736 = vmatprep.mubr.f32.mxu1 %v9974_v9  ;;  %3220 = vmatprep.mubr.f32.mxu0 %v10022_v10  ;;  %v10034_v9 = vld [vmem:[%s22327_s5 + $0xae8] sm:$0xff]  ;;  %v10151_v10 = vld [vmem:[%s22325_s1 + $0x390] sm:$0xff] }
 0x4a4   :  { %11877 = vmatprep.subr.mxu0 %v10157_v47 }
 0x4a5   :  { %11878 = vmatpush3.msra.mxu0 %v10157_v47  ;;  %v9985_v47 = vld [vmem:[%s22327_s5 + $0x9e0] sm:$0xff] }
 0x4a6   :  { %2737 = vmatmul.mubr.f32.gmra.mxu1 %v9973_v3  ;;  %3221 = vmatmul.mubr.f32.gmra.mxu0 %v10021_v36  ;;  %v10033_v3 = vld [vmem:[%s22327_s5 + $0xae0] sm:$0xff]  ;;  %v9988_v36 = vld [vmem:[%s22327_s5 + $0x9f8] sm:$0xff] }
 0x4a7   :  { %2741 = vmatprep.mubr.f32.mxu1 %v9976_v22  ;;  %3225 = vmatprep.mubr.f32.mxu0 %v10024_v15  ;;  %v10036_v22 = vld [vmem:[%s22327_s5 + $0xaf8] sm:$0xff]  ;;  %v10150_v15 = vld [vmem:[%s22325_s1 + $0x388] sm:$0xff] }
 0x4a8   :  { %11879 = vmatprep.subr.mxu0 %v10156_v17 }
 0x4a9   :  { %11880 = vmatpush3.msra.mxu0 %v10156_v17  ;;  %v9987_v17 = vld [vmem:[%s22327_s5 + $0x9f0] sm:$0xff] }
 0x4aa   :  { %2742 = vmatmul.mubr.f32.gmra.mxu1 %v9975_v49  ;;  %3226 = vmatmul.mubr.f32.gmra.mxu0 %v10023_v41  ;;  %v10035_v49 = vld [vmem:[%s22327_s5 + $0xaf0] sm:$0xff]  ;;  %v10038_v41 = vld [vmem:[%s22327_s5 + $0xb08] sm:$0xff] }
 0x4ab   :  { %2746 = vmatprep.mubr.f32.mxu1 %v9978_v26  ;;  %3230 = vmatprep.mubr.f32.mxu0 %v10026_v39  ;;  %v10149_v26 = vld [vmem:[%s22325_s1 + $0x380] sm:$0xff] }
 0x4ac   :  { %11881 = vmatprep.subr.mxu0 %v10155_v8  ;;  %v16498_v39 = vld [vmem:[%s22326_s0] sm:$0xff] }
 0x4ad   :  { %11882 = vmatpush3.msra.mxu0 %v10155_v8  ;;  %v10037_v8 = vld [vmem:[%s22327_s5 + $0xb00] sm:$0xff] }
 0x4ae   :  { %2747 = vmatmul.mubr.f32.gmra.mxu1 %v9977_v13  ;;  %3231 = vmatmul.mubr.f32.gmra.mxu0 %v10025_v33  ;;  %v10040_v13 = vld [vmem:[%s22327_s5 + $0xb18] sm:$0xff]  ;;  %v16510_v33 = vld [vmem:[%s22326_s0 + $0x8] sm:$0xff] }
 0x4af   :  { %2751 = vmatprep.mubr.f32.mxu1 %v9980_v29  ;;  %3235 = vmatprep.mubr.f32.mxu0 %v10028_v56  ;;  %v16516_v29 = vld [vmem:[%s22326_s0 + $0x10] sm:$0xff] }
 0x4b0   :  { %11883 = vmatprep.subr.mxu0 %v10154_v45  ;;  %v10039_v56 = vld [vmem:[%s22327_s5 + $0xb10] sm:$0xff] }
 0x4b1   :  { %11884 = vmatpush3.msra.mxu0 %v10154_v45  ;;  %v10042_v45 = vld [vmem:[%s22327_s5 + $0xb28] sm:$0xff] }
 0x4b2   :  { %2752 = vmatmul.mubr.f32.gmra.mxu1 %v9979_v61  ;;  %3236 = vmatmul.mubr.f32.gmra.mxu0 %v10027_v63  ;;  %v16529_v61 = vld [vmem:[%s22326_s0 + $0x18] sm:$0xff]  ;;  %v16535_v63 = vld [vmem:[%s22326_s0 + $0x20] sm:$0xff] }
 0x4b3   :  { %2756 = vmatprep.mubr.f32.mxu1 %v9982_v23  ;;  %3240 = vmatprep.mubr.f32.mxu0 %v10030_v40  ;;  %v10041_v23 = vld [vmem:[%s22327_s5 + $0xb20] sm:$0xff]  ;;  %v10044_v40 = vld [vmem:[%s22327_s5 + $0xb38] sm:$0xff] }
 0x4b4   :  { %11885 = vmatprep.subr.mxu0 %v10153_v60 }
 0x4b5   :  { %11886 = vmatpush3.msra.mxu0 %v10153_v60  ;;  %v16547_v60 = vld [vmem:[%s22326_s0 + $0x28] sm:$0xff] }
 0x4b6   :  { %2757 = vmatmul.mubr.f32.gmra.mxu1 %v9981_v62  ;;  %3241 = vmatmul.mubr.f32.gmra.mxu0 %v10029_v35  ;;  %v16553_v62 = vld [vmem:[%s22326_s0 + $0x30] sm:$0xff] }
 0x4b7   :  { %2761 = vmatprep.mubr.f32.mxu1 %v9984_v1  ;;  %3245 = vmatprep.mubr.f32.mxu0 %v10032_v37  ;;  %v10043_v35 = vld [vmem:[%s22327_s5 + $0xb30] sm:$0xff]  ;;  %v10046_v1 = vld [vmem:[%s22327_s5 + $0xb48] sm:$0xff]  ;;  %v16565_v37 = vld [vmem:[%s22326_s0 + $0x38] sm:$0xff] }
 0x4b8   :  { %11887 = vmatprep.subr.mxu0 %v10152_v43 }
 0x4b9   :  { %11888 = vmatpush3.msra.mxu0 %v10152_v43  ;;  %v16571_v43 = vld [vmem:[%s22326_s0 + $0x40] sm:$0xff] }
 0x4ba   :  { %2762 = vmatmul.mubr.f32.gmra.mxu1 %v9983_v18  ;;  %3246 = vmatmul.mubr.f32.gmra.mxu0 %v10031_v2  ;;  %v10045_v18 = vld [vmem:[%s22327_s5 + $0xb40] sm:$0xff]  ;;  %v10048_v2 = vld [vmem:[%s22327_s5 + $0xb58] sm:$0xff] }
 0x4bb   :  { %2766 = vmatprep.mubr.f32.mxu1 %v9986_v58  ;;  %3250 = vmatprep.mubr.f32.mxu0 %v10034_v9  ;;  %v16583_v58 = vld [vmem:[%s22326_s0 + $0x48] sm:$0xff]  ;;  %v16589_v9 = vld [vmem:[%s22326_s0 + $0x50] sm:$0xff] }
 0x4bc   :  { %11889 = vmatprep.subr.mxu0 %v10151_v10 }
 0x4bd   :  { %11890 = vmatpush3.msra.mxu0 %v10151_v10  ;;  %v10047_v10 = vld [vmem:[%s22327_s5 + $0xb50] sm:$0xff] }
 0x4be   :  { %2767 = vmatmul.mubr.f32.gmra.mxu1 %v9985_v47  ;;  %3251 = vmatmul.mubr.f32.gmra.mxu0 %v10033_v3  ;;  %v10050_v47 = vld [vmem:[%s22327_s5 + $0xb68] sm:$0xff]  ;;  %v16601_v3 = vld [vmem:[%s22326_s0 + $0x58] sm:$0xff] }
 0x4bf   :  { %2771 = vmatprep.mubr.f32.mxu1 %v9988_v36  ;;  %3255 = vmatprep.mubr.f32.mxu0 %v10036_v22  ;;  %v16607_v36 = vld [vmem:[%s22326_s0 + $0x60] sm:$0xff] }
 0x4c0   :  { %11891 = vmatprep.subr.mxu0 %v10150_v15  ;;  %v10049_v22 = vld [vmem:[%s22327_s5 + $0xb60] sm:$0xff] }
 0x4c1   :  { %11892 = vmatpush3.msra.mxu0 %v10150_v15  ;;  %v10052_v15 = vld [vmem:[%s22327_s5 + $0xb78] sm:$0xff] }
 0x4c2   :  { %2772 = vmatmul.mubr.f32.gmra.mxu1 %v9987_v17  ;;  %3256 = vmatmul.mubr.f32.gmra.mxu0 %v10035_v49  ;;  %v16619_v17 = vld [vmem:[%s22326_s0 + $0x68] sm:$0xff]  ;;  %v16625_v49 = vld [vmem:[%s22326_s0 + $0x70] sm:$0xff] }
 0x4c3   :  { %3260 = vmatprep.mubr.f32.mxu0 %v10038_v41  ;;  %11815 = vmatprep.mubr.f32.mxu1 %v16498_v39  ;;  %v10051_v41 = vld [vmem:[%s22327_s5 + $0xb70] sm:$0xff] }
 0x4c4   :  { %11893 = vmatprep.subr.mxu0 %v10149_v26 }
 0x4c5   :  { %11894 = vmatpush3.msra.mxu0 %v10149_v26  ;;  %v10054_v26 = vld [vmem:[%s22327_s5 + $0xb88] sm:$0xff] }
 0x4c6   :  { %3261 = vmatmul.mubr.f32.gmra.mxu0 %v10037_v8  ;;  %11816 = vmatmul.mubr.f32.vlgmr.msra.gmra.mxu1 %v16510_v33  ;;  %v16637_v8 = vld [vmem:[%s22326_s0 + $0x78] sm:$0xff] }
 0x4c7   :  { %3265 = vmatprep.mubr.f32.mxu0 %v10040_v13  ;;  %11818 = vmatprep.mubr.f32.mxu1 %v16516_v29  ;;  %v16643_v13 = vld [vmem:[%s22326_s0 + $0x80] sm:$0xff] }
 0x4c8   :  { %4244 = vmatprep.subr.mxu0 %v22446_v54  ;;  %v10065_v54 = vld [vmem:[%s22327_s5 + $0xbe0] sm:$0xff] }
 0x4ca   :  { %3266 = vmatmul.mubr.f32.gmra.mxu0 %v10039_v56  ;;  %11819 = vmatmul.mubr.f32.gmra.mxu1 %v16529_v61  ;;  %v10053_v56 = vld [vmem:[%s22327_s5 + $0xb80] sm:$0xff] }
 0x4cb   :  { %3270 = vmatprep.mubr.f32.mxu0 %v10042_v45  ;;  %11821 = vmatprep.mubr.f32.mxu1 %v16535_v63  ;;  %v10056_v45 = vld [vmem:[%s22327_s5 + $0xb98] sm:$0xff] }
 0x4ce   :  { %3271 = vmatmul.mubr.f32.gmra.mxu0 %v10041_v23  ;;  %11822 = vmatmul.mubr.f32.gmra.mxu1 %v16547_v60  ;;  %v16655_v23 = vld [vmem:[%s22326_s0 + $0x88] sm:$0xff] }
 0x4cf   :  { %3275 = vmatprep.mubr.f32.mxu0 %v10044_v40  ;;  %11824 = vmatprep.mubr.f32.mxu1 %v16553_v62  ;;  %v16661_v40 = vld [vmem:[%s22326_s0 + $0x90] sm:$0xff] }
 0x4d2   :  { %3276 = vmatmul.mubr.f32.gmra.mxu0 %v10043_v35  ;;  %11825 = vmatmul.mubr.f32.gmra.mxu1 %v16565_v37  ;;  %v10055_v35 = vld [vmem:[%s22327_s5 + $0xb90] sm:$0xff] }
 0x4d3   :  { %3280 = vmatprep.mubr.f32.mxu0 %v10046_v1  ;;  %11827 = vmatprep.mubr.f32.mxu1 %v16571_v43  ;;  %v10058_v1 = vld [vmem:[%s22327_s5 + $0xba8] sm:$0xff] }
 0x4d6   :  { %3281 = vmatmul.mubr.f32.gmra.mxu0 %v10045_v18  ;;  %11828 = vmatmul.mubr.f32.gmra.mxu1 %v16583_v58  ;;  %v16673_v18 = vld [vmem:[%s22326_s0 + $0x98] sm:$0xff] }
 0x4d7   :  { %3285 = vmatprep.mubr.f32.mxu0 %v10048_v2  ;;  %11830 = vmatprep.mubr.f32.mxu1 %v16589_v9  ;;  %v16679_v2 = vld [vmem:[%s22326_s0 + $0xa0] sm:$0xff] }
 0x4da   :  { %3286 = vmatmul.mubr.f32.gmra.mxu0 %v10047_v10  ;;  %11831 = vmatmul.mubr.f32.gmra.mxu1 %v16601_v3  ;;  %v10057_v10 = vld [vmem:[%s22327_s5 + $0xba0] sm:$0xff] }
 0x4db   :  { %3290 = vmatprep.mubr.f32.mxu0 %v10050_v47  ;;  %11833 = vmatprep.mubr.f32.mxu1 %v16607_v36  ;;  %v10060_v47 = vld [vmem:[%s22327_s5 + $0xbb8] sm:$0xff] }
 0x4de   :  { %3291 = vmatmul.mubr.f32.gmra.mxu0 %v10049_v22  ;;  %11834 = vmatmul.mubr.f32.gmra.mxu1 %v16619_v17  ;;  %v16691_v22 = vld [vmem:[%s22326_s0 + $0xa8] sm:$0xff] }
 0x4df   :  { %3295 = vmatprep.mubr.f32.mxu0 %v10052_v15  ;;  %11836 = vmatprep.mubr.f32.mxu1 %v16625_v49  ;;  %v16697_v15 = vld [vmem:[%s22326_s0 + $0xb0] sm:$0xff] }
 0x4e2   :  { %3296 = vmatmul.mubr.f32.gmra.mxu0 %v10051_v41  ;;  %11837 = vmatmul.mubr.f32.gmra.mxu1 %v16637_v8  ;;  %v10059_v41 = vld [vmem:[%s22327_s5 + $0xbb0] sm:$0xff] }
 0x4e3   :  { %3300 = vmatprep.mubr.f32.mxu0 %v10054_v26  ;;  %11839 = vmatprep.mubr.f32.mxu1 %v16643_v13  ;;  %v10062_v26 = vld [vmem:[%s22327_s5 + $0xbc8] sm:$0xff] }
 0x4e6   :  { %3301 = vmatmul.mubr.f32.gmra.mxu0 %v10053_v56  ;;  %11840 = vmatmul.mubr.f32.gmra.mxu1 %v16655_v23  ;;  %v16709_v56 = vld [vmem:[%s22326_s0 + $0xb8] sm:$0xff] }
 0x4e7   :  { %3305 = vmatprep.mubr.f32.mxu0 %v10056_v45  ;;  %11842 = vmatprep.mubr.f32.mxu1 %v16661_v40  ;;  %v16715_v45 = vld [vmem:[%s22326_s0 + $0xc0] sm:$0xff] }
 0x4ea   :  { %3306 = vmatmul.mubr.f32.gmra.mxu0 %v10055_v35  ;;  %11843 = vmatmul.mubr.f32.gmra.mxu1 %v16673_v18  ;;  %v10061_v35 = vld [vmem:[%s22327_s5 + $0xbc0] sm:$0xff] }
 0x4eb   :  { %3310 = vmatprep.mubr.f32.mxu0 %v10058_v1  ;;  %11845 = vmatprep.mubr.f32.mxu1 %v16679_v2  ;;  %v10064_v1 = vld [vmem:[%s22327_s5 + $0xbd8] sm:$0xff] }
 0x4ee   :  { %3311 = vmatmul.mubr.f32.gmra.mxu0 %v10057_v10  ;;  %11846 = vmatmul.mubr.f32.gmra.mxu1 %v16691_v22  ;;  %v16727_v10 = vld [vmem:[%s22326_s0 + $0xc8] sm:$0xff] }
 0x4ef   :  { %3315 = vmatprep.mubr.f32.mxu0 %v10060_v47  ;;  %11848 = vmatprep.mubr.f32.mxu1 %v16697_v15  ;;  %v16733_v47 = vld [vmem:[%s22326_s0 + $0xd0] sm:$0xff] }
 0x4f2   :  { %3316 = vmatmul.mubr.f32.gmra.mxu0 %v10059_v41  ;;  %11849 = vmatmul.mubr.f32.gmra.mxu1 %v16709_v56  ;;  %v10063_v41 = vld [vmem:[%s22327_s5 + $0xbd0] sm:$0xff] }
 0x4f3   :  { %3320 = vmatprep.mubr.f32.mxu0 %v10062_v26  ;;  %11851 = vmatprep.mubr.f32.mxu1 %v16715_v45  ;;  %v10066_v26 = vld [vmem:[%s22327_s5 + $0xbe8] sm:$0xff] }
 0x4f6   :  { %3321 = vmatmul.mubr.f32.gmra.mxu0 %v10061_v35  ;;  %11852 = vmatmul.mubr.f32.gmra.mxu1 %v16727_v10  ;;  %v16745_v35 = vld [vmem:[%s22326_s0 + $0xd8] sm:$0xff] }
 0x4f7   :  { %3325 = vmatprep.mubr.f32.mxu0 %v10064_v1  ;;  %11854 = vmatprep.mubr.f32.mxu1 %v16733_v47  ;;  %v16751_v1 = vld [vmem:[%s22326_s0 + $0xe0] sm:$0xff] }
 0x4fa   :  { %3326 = vmatmul.mubr.f32.gmra.mxu0 %v10063_v41  ;;  %11855 = vmatmul.mubr.f32.gmra.mxu1 %v16745_v35  ;;  %v10068_v41 = vld [vmem:[%s22327_s5 + $0xbf8] sm:$0xff] }
 0x4fb   :  { %3330 = vmatprep.mubr.f32.mxu0 %v10066_v26  ;;  %11857 = vmatprep.mubr.f32.mxu1 %v16751_v1  ;;  %v16763_v26 = vld [vmem:[%s22326_s0 + $0xe8] sm:$0xff] }
 0x4fe   :  { %3331 = vmatmul.mubr.f32.gmra.mxu0 %v10065_v54  ;;  %11858 = vmatmul.mubr.f32.gmra.mxu1 %v16763_v26  ;;  %v16778_v54 = vld [vmem:[%s22326_s0 + $0xf8] sm:$0xff] }
 0x4ff   :  { %3335 = vmatprep.mubr.f32.mxu0 %v10068_v41  ;;  %11860 = vmatprep.mubr.f32.mxu1 %v16769_v7 }
 0x502   :  { %3336 = vmatmul.mubr.f32.gmra.mxu0 %v10067_v6  ;;  %11861 = vmatmul.mubr.f32.gmra.mxu1 %v16778_v54 }
 0x503   :  { %11895 = vmatprep.mubr.f32.mxu0 %v16498_v39 }
 0x506   :  { %v2618_v41 = vpop.f32.mrf.mxu1  ;;  %11896 = vmatmul.mubr.f32.vlgmr.msra.gmra.mxu0 %v16510_v33 }
 0x507   :  { %v16784_v34 = vadd.f32 %v2618_v41, %v15794_v20  ;;  %11898 = vmatprep.mubr.f32.mxu0 %v16516_v29 }
 0x508   :  { %v2620_v59 = vpop.f32.mrf.mxu1 }
 0x50a   :  { %v2623_v28 = vpop.f32.mrf.mxu1  ;;  %11899 = vmatmul.mubr.f32.gmra.mxu0 %v16529_v61 }
 0x50b   :  { %v16789_v6 = vadd.f32 %v2623_v28, %v15801_v44  ;;  %11901 = vmatprep.mubr.f32.mxu0 %v16535_v63 }
 0x50c   :  { %v2625_v30 = vpop.f32.mrf.mxu1 }
 0x50e   :  { %v2628_v19 = vpop.f32.mrf.mxu1  ;;  %11902 = vmatmul.mubr.f32.gmra.mxu0 %v16547_v60 }
 0x50f   :  { %v16794_v39 = vadd.f32 %v2628_v19, %v15808_v48  ;;  %11904 = vmatprep.mubr.f32.mxu0 %v16553_v62 }
 0x510   :  { %v2630_v20 = vpop.f32.mrf.mxu1 }
 0x512   :  { %v2633_v33 = vpop.f32.mrf.mxu1  ;;  %11905 = vmatmul.mubr.f32.gmra.mxu0 %v16565_v37 }
 0x513   :  { %v16799_v59 = vadd.f32 %v2633_v33, %v15815_v12  ;;  %11907 = vmatprep.mubr.f32.mxu0 %v16571_v43 }
 0x514   :  { %v2635_v44 = vpop.f32.mrf.mxu1 }
 0x516   :  { %v2638_v28 = vpop.f32.mrf.mxu1  ;;  %11908 = vmatmul.mubr.f32.gmra.mxu0 %v16583_v58 }
 0x517   :  { %v16804_v30 = vadd.f32 %v2638_v28, %v15822_v27  ;;  %11910 = vmatprep.mubr.f32.mxu0 %v16589_v9 }
 0x518   :  { %v2640_v48 = vpop.f32.mrf.mxu1 }
 0x51a   :  { %v2643_v19 = vpop.f32.mrf.mxu1  ;;  %11911 = vmatmul.mubr.f32.gmra.mxu0 %v16601_v3 }
 0x51b   :  { %v16809_v29 = vadd.f32 %v2643_v19, %v15829_v11  ;;  %11913 = vmatprep.mubr.f32.mxu0 %v16607_v36 }
 0x51c   :  { %v2645_v12 = vpop.f32.mrf.mxu1 }
 0x51e   :  { %v2648_v61 = vpop.f32.mrf.mxu1  ;;  %11914 = vmatmul.mubr.f32.gmra.mxu0 %v16619_v17 }
 0x51f   :  { %v16814_v63 = vadd.f32 %v2648_v61, %v15836_v46  ;;  %11916 = vmatprep.mubr.f32.mxu0 %v16625_v49 }
 0x520   :  { %v2650_v27 = vpop.f32.mrf.mxu1 }
 0x522   :  { %v2653_v60 = vpop.f32.mrf.mxu1  ;;  %11917 = vmatmul.mubr.f32.gmra.mxu0 %v16637_v8 }
 0x523   :  { %v16819_v62 = vadd.f32 %v2653_v60, %v15846_v42  ;;  %11919 = vmatprep.mubr.f32.mxu0 %v16643_v13 }
 0x524   :  { %v2655_v11 = vpop.f32.mrf.mxu1 }
 0x526   :  { %v2658_v37 = vpop.f32.mrf.mxu1  ;;  %11920 = vmatmul.mubr.f32.gmra.mxu0 %v16655_v23 }
 0x527   :  { %v16824_v43 = vadd.f32 %v2658_v37, %v15853_v38  ;;  %11922 = vmatprep.mubr.f32.mxu0 %v16661_v40 }
 0x528   :  { %v2660_v46 = vpop.f32.mrf.mxu1 }
 0x52a   :  { %v2663_v58 = vpop.f32.mrf.mxu1  ;;  %11923 = vmatmul.mubr.f32.gmra.mxu0 %v16673_v18 }
 0x52b   :  { %v16829_v9 = vadd.f32 %v2663_v58, %v15860_v14  ;;  %11925 = vmatprep.mubr.f32.mxu0 %v16679_v2 }
 0x52c   :  { %v2665_v42 = vpop.f32.mrf.mxu1 }
 0x52e   :  { %v2668_v3 = vpop.f32.mrf.mxu1  ;;  %11926 = vmatmul.mubr.f32.gmra.mxu0 %v16691_v22 }
 0x52f   :  { %v16834_v36 = vadd.f32 %v2668_v3, %v15867_v24  ;;  %11928 = vmatprep.mubr.f32.mxu0 %v16697_v15 }
 0x530   :  { %v2670_v38 = vpop.f32.mrf.mxu1 }
 0x532   :  { %v2673_v17 = vpop.f32.mrf.mxu1  ;;  %11929 = vmatmul.mubr.f32.gmra.mxu0 %v16709_v56 }
 0x533   :  { %v16839_v49 = vadd.f32 %v2673_v17, %v15874_v31  ;;  %11931 = vmatprep.mubr.f32.mxu0 %v16715_v45 }
 0x534   :  { %v2675_v14 = vpop.f32.mrf.mxu1 }
 0x536   :  { %v2678_v8 = vpop.f32.mrf.mxu1  ;;  %11932 = vmatmul.mubr.f32.gmra.mxu0 %v16727_v10 }
 0x537   :  { %v16844_v13 = vadd.f32 %v2678_v8, %v15881_v51  ;;  %11934 = vmatprep.mubr.f32.mxu0 %v16733_v47 }
 0x538   :  { %v2680_v24 = vpop.f32.mrf.mxu1 }
 0x53a   :  { %v2683_v23 = vpop.f32.mrf.mxu1  ;;  %11935 = vmatmul.mubr.f32.gmra.mxu0 %v16745_v35 }
 0x53b   :  { %v16849_v40 = vadd.f32 %v2683_v23, %v15888_v50  ;;  %11937 = vmatprep.mubr.f32.mxu0 %v16751_v1 }
 0x53c   :  { %v2685_v31 = vpop.f32.mrf.mxu1 }
 0x53e   :  { %v2688_v18 = vpop.f32.mrf.mxu1  ;;  %11938 = vmatmul.mubr.f32.gmra.mxu0 %v16763_v26 }
 0x53f   :  { %v16854_v2 = vadd.f32 %v2688_v18, %v15895_v4  ;;  %11940 = vmatprep.mubr.f32.mxu0 %v16769_v7 }
 0x540   :  { %v2690_v51 = vpop.f32.mrf.mxu1 }
 0x542   :  { %v2693_v22 = vpop.f32.mrf.mxu1  ;;  %11941 = vmatmul.mubr.f32.gmra.mxu0 %v16778_v54 }
 0x543   :  { %v16859_v15 = vadd.f32 %v2693_v22, %v15902_v21 }
 0x544   :  { %v2695_v50 = vpop.f32.mrf.mxu1 }
 0x546   :  { %v2698_v56 = vpop.f32.mrf.mxu1  ;;  %v3182_v45 = vpop.f32.mrf.mxu0 }
 0x547   :  { %v16862_v10 = vadd.f32 %v2698_v56, %v15907_v25  ;;  %v16865_v47 = vadd.f32 %v3182_v45, %v16784_v34 }
 0x548   :  { %v2700_v4 = vpop.f32.mrf.mxu1  ;;  %v3184_v35 = vpop.f32.mrf.mxu0 }
 0x54a   :  { %v2703_v1 = vpop.f32.mrf.mxu1  ;;  %v3187_v7 = vpop.f32.mrf.mxu0 }
 0x54b   :  { %v16868_v26 = vadd.f32 %v2703_v1, %v15914_v0  ;;  %v16871_v54 = vadd.f32 %v3187_v7, %v16789_v6  ;;  %v22454_v1 = vld [vmem:[#allocation16_spill] sm:$0xff] }
 0x54c   :  { %v2705_v21 = vpop.f32.mrf.mxu1  ;;  %v3189_v41 = vpop.f32.mrf.mxu0 }
 0x54e   :  { %v2708_v20 = vpop.f32.mrf.mxu1  ;;  %v3192_v33 = vpop.f32.mrf.mxu0 }
 0x54f   :  { %v16874_v25 = vadd.f32 %v2708_v20, %v15921_v52  ;;  %v16877_v34 = vadd.f32 %v3192_v33, %v16794_v39  ;;  %v22455_v33 = vld [vmem:[#allocation20_spill] sm:$0xff] }
 0x550   :  { %v2710_v44 = vpop.f32.mrf.mxu1  ;;  %v3194_v28 = vpop.f32.mrf.mxu0 }
 0x552   :  { %v2713_v48 = vpop.f32.mrf.mxu1  ;;  %v3197_v19 = vpop.f32.mrf.mxu0 }
 0x553   :  { %v16880_v0 = vadd.f32 %v2713_v48, %v15926_v57  ;;  %v16883_v6 = vadd.f32 %v3197_v19, %v16799_v59 }
 0x554   :  { %v2715_v12 = vpop.f32.mrf.mxu1  ;;  %v3199_v61 = vpop.f32.mrf.mxu0 }
 0x555   :  { %v22456_v12 = vld [vmem:[#allocation38_spill] sm:$0xff] }
 0x556   :  { %v2718_v27 = vpop.f32.mrf.mxu1  ;;  %v3202_v60 = vpop.f32.mrf.mxu0 }
 0x557   :  { %v16886_v52 = vadd.f32 %v2718_v27, %v15929_v32  ;;  %v16889_v39 = vadd.f32 %v3202_v60, %v16804_v30 }
 0x558   :  { %v2720_v11 = vpop.f32.mrf.mxu1  ;;  %v3204_v37 = vpop.f32.mrf.mxu0 }
 0x55a   :  { %v2723_v46 = vpop.f32.mrf.mxu1  ;;  %v3207_v58 = vpop.f32.mrf.mxu0 }
 0x55b   :  { %v16892_v57 = vadd.f32 %v2723_v46, %v15932_v53  ;;  %v16895_v59 = vadd.f32 %v3207_v58, %v16809_v29  ;;  %v10086_v53 = vld [vmem:[%s22327_s5 + $0xc08] sm:$0xff] }
 0x55c   :  { %v2725_v42 = vpop.f32.mrf.mxu1  ;;  %v3209_v3 = vpop.f32.mrf.mxu0  ;;  %3744 = vmatprep.mubr.f32.mxu1 %v10086_v53  ;;  %v22457_v46 = vld [vmem:[#allocation39_spill] sm:$0xff] }
 0x55e   :  { %v2728_v38 = vpop.f32.mrf.mxu1  ;;  %v3212_v17 = vpop.f32.mrf.mxu0 }
 0x55f   :  { %v16898_v32 = vadd.f32 %v2728_v38, %v15935_v5  ;;  %v16901_v30 = vadd.f32 %v3212_v17, %v16814_v63 }
 0x560   :  { %v2730_v14 = vpop.f32.mrf.mxu1  ;;  %v3214_v8 = vpop.f32.mrf.mxu0 }
 0x561   :  { %v22458_v14 = vld [vmem:[#allocation18_spill] sm:$0xff] }
 0x562   :  { %v2733_v24 = vpop.f32.mrf.mxu1  ;;  %v3217_v29 = vpop.f32.mrf.mxu0 }
 0x563   :  { %v16907_v23 = vadd.f32 %v2733_v24, %v15941_v16  ;;  %v16910_v31 = vadd.f32 %v3217_v29, %v16819_v62 }
 0x564   :  { %v2735_v5 = vpop.f32.mrf.mxu1  ;;  %v3219_v18 = vpop.f32.mrf.mxu0 }
 0x565   :  { %v22459_v18 = vld [vmem:[#allocation21_spill] sm:$0xff] }
 0x566   :  { %v2738_v51 = vpop.f32.mrf.mxu1  ;;  %v3222_v63 = vpop.f32.mrf.mxu0 }
 0x567   :  { %v16913_v22 = vadd.f32 %v2738_v51, %v15948_v55  ;;  %v16916_v50 = vadd.f32 %v3222_v63, %v16824_v43 }
 0x568   :  { %v2740_v56 = vpop.f32.mrf.mxu1  ;;  %v3224_v45 = vpop.f32.mrf.mxu0 }
 0x56a   :  { %v2743_v4 = vpop.f32.mrf.mxu1  ;;  %v3227_v35 = vpop.f32.mrf.mxu0 }
 0x56b   :  { %v16919_v16 = vadd.f32 %v2743_v4, %v22454_v1  ;;  %v16922_v62 = vadd.f32 %v3227_v35, %v16829_v9  ;;  %v22460_v35 = vld [vmem:[#allocation40_spill] sm:$0xff] }
 0x56c   :  { %v2745_v7 = vpop.f32.mrf.mxu1  ;;  %v3229_v21 = vpop.f32.mrf.mxu0 }
 0x56e   :  { %v2748_v41 = vpop.f32.mrf.mxu1  ;;  %v3232_v20 = vpop.f32.mrf.mxu0 }
 0x56f   :  { %v16925_v55 = vadd.f32 %v2748_v41, %v22455_v33  ;;  %v16928_v43 = vadd.f32 %v3232_v20, %v16834_v36 }
 0x570   :  { %v2750_v44 = vpop.f32.mrf.mxu1  ;;  %v3234_v28 = vpop.f32.mrf.mxu0 }
 0x572   :  { %v2753_v48 = vpop.f32.mrf.mxu1  ;;  %v3237_v19 = vpop.f32.mrf.mxu0 }
 0x573   :  { %v16931_v61 = vadd.f32 %v2753_v48, %v22456_v12  ;;  %v16934_v9 = vadd.f32 %v3237_v19, %v16839_v49 }
 0x574   :  { %v2755_v27 = vpop.f32.mrf.mxu1  ;;  %v3239_v60 = vpop.f32.mrf.mxu0 }
 0x576   :  { %v2758_v11 = vpop.f32.mrf.mxu1  ;;  %v3242_v37 = vpop.f32.mrf.mxu0 }
 0x577   :  { %v16937_v58 = vadd.f32 %v2758_v11, %v22457_v46  ;;  %v16940_v36 = vadd.f32 %v3242_v37, %v16844_v13 }
 0x578   :  { %v2760_v42 = vpop.f32.mrf.mxu1  ;;  %v3244_v3 = vpop.f32.mrf.mxu0 }
 0x57a   :  { %v2763_v38 = vpop.f32.mrf.mxu1  ;;  %v3247_v17 = vpop.f32.mrf.mxu0 }
 0x57b   :  { %v16943_v8 = vadd.f32 %v2763_v38, %v22458_v14  ;;  %v16946_v49 = vadd.f32 %v3247_v17, %v16849_v40 }
 0x57c   :  { %v2765_v53 = vpop.f32.mrf.mxu1  ;;  %v3249_v24 = vpop.f32.mrf.mxu0 }
 0x57e   :  { %v2768_v29 = vpop.f32.mrf.mxu1  ;;  %v3252_v5 = vpop.f32.mrf.mxu0 }
 0x57f   :  { %v16949_v51 = vadd.f32 %v2768_v29, %v22459_v18  ;;  %v16952_v13 = vadd.f32 %v3252_v5, %v16854_v2 }
 0x580   :  { %v2770_v63 = vpop.f32.mrf.mxu1  ;;  %v3254_v56 = vpop.f32.mrf.mxu0 }
 0x582   :  { %v2773_v45 = vpop.f32.mrf.mxu1  ;;  %v3257_v4 = vpop.f32.mrf.mxu0 }
 0x583   :  { %v16955_v1 = vadd.f32 %v2773_v45, %v22460_v35  ;;  %v16958_v40 = vadd.f32 %v3257_v4, %v16859_v15 }
 0x584   :  { %v2775_v7 = vpop.f32.mrf.mxu1  ;;  %v3259_v21 = vpop.f32.mrf.mxu0 }
 0x586   :  { %v3262_v41 = vpop.f32.mrf.mxu0  ;;  %v16960_v20 = vpop.f32.mrf.mxu1 }
 0x587   :  { %v16963_v33 = vadd.f32 %v3262_v41, %v16862_v10 }
 0x588   :  { %v3264_v2 = vpop.f32.mrf.mxu0  ;;  %v16965_v44 = vpop.f32.mrf.mxu1 }
 0x58a   :  { %v3267_v28 = vpop.f32.mrf.mxu0  ;;  %v16967_v48 = vpop.f32.mrf.mxu1 }
 0x58b   :  { %v16970_v19 = vadd.f32 %v3267_v28, %v16868_v26 }
 0x58c   :  { %v3269_v12 = vpop.f32.mrf.mxu0  ;;  %v16972_v15 = vpop.f32.mrf.mxu1 }
 0x58d   :  { %v22461_v12 = vmov 0.0  }
 0x58e   :  { %v3272_v27 = vpop.f32.mrf.mxu0  ;;  %v16974_v60 = vpop.f32.mrf.mxu1 }
 0x58f   :  { %v16977_v11 = vadd.f32 %v3272_v27, %v16874_v25 }
 0x590   :  { %v3274_v10 = vpop.f32.mrf.mxu0  ;;  %v16979_v37 = vpop.f32.mrf.mxu1 }
 0x592   :  { %v3277_v46 = vpop.f32.mrf.mxu0  ;;  %v11826_v42 = vpop.f32.mrf.mxu1 }
 0x593   :  { %v16982_v3 = vadd.f32 %v3277_v46, %v16880_v0 }
 0x594   :  { %v3279_v38 = vpop.f32.mrf.mxu0  ;;  %v3486_v26 = vpop.f32.mrf.mxu1 }
 0x596   :  { %v3282_v17 = vpop.f32.mrf.mxu0  ;;  %v11829_v14 = vpop.f32.mrf.mxu1 }
 0x597   :  { %v16985_v53 = vadd.f32 %v3282_v17, %v16886_v52  ;;  %v10166_v52 = vld [vmem:[%s22327_s5 + $0xe08] sm:$0xff] }
 0x598   :  { %v3284_v24 = vpop.f32.mrf.mxu0  ;;  %v3496_v29 = vpop.f32.mrf.mxu1  ;;  %4308 = vmatprep.mubr.f32.mxu0 %v10166_v52 }
 0x59a   :  { %v3287_v5 = vpop.f32.mrf.mxu0  ;;  %v11832_v25 = vpop.f32.mrf.mxu1 }
 0x59b   :  { %v16988_v18 = vadd.f32 %v3287_v5, %v16892_v57 }
 0x59c   :  { %v3289_v63 = vpop.f32.mrf.mxu0  ;;  %v3506_v56 = vpop.f32.mrf.mxu1 }
 0x59e   :  { %v3292_v45 = vpop.f32.mrf.mxu0  ;;  %v11835_v4 = vpop.f32.mrf.mxu1 }
 0x59f   :  { %v16991_v0 = vadd.f32 %v3292_v45, %v16898_v32 }
 0x5a0   :  { %v3294_v35 = vpop.f32.mrf.mxu0  ;;  %v3516_v7 = vpop.f32.mrf.mxu1 }
 0x5a2   :  { %v3297_v21 = vpop.f32.mrf.mxu0  ;;  %v11838_v41 = vpop.f32.mrf.mxu1 }
 0x5a3   :  { %v16997_v2 = vadd.f32 %v3297_v21, %v16907_v23  ;;  %3681 = vmatpush1.msra.mxu1 %v11838_v41 }
 0x5a4   :  { %v3299_v57 = vpop.f32.mrf.mxu0  ;;  %v3526_v28 = vpop.f32.mrf.mxu1  ;;  %3682 = vmatprep.subr.mxu1 %v22461_v12 }
 0x5a5   :  { %3683 = vmatpush1.msra.mxu1 %v3526_v28 }
 0x5a6   :  { %v3302_v32 = vpop.f32.mrf.mxu0  ;;  %v17000_v27 = vpop.f32.mrf.mxu1  ;;  %3684 = vmatprep.subr.mxu1 %v22461_v12 }
 0x5a7   :  { %v17004_v10 = vadd.f32 %v3302_v32, %v16913_v22  ;;  %3685 = vmatpush1.msra.mxu1 %v11835_v4 }
 0x5a8   :  { %v3304_v46 = vpop.f32.mrf.mxu0  ;;  %v17006_v38 = vpop.f32.mrf.mxu1  ;;  %3686 = vmatprep.subr.mxu1 %v22461_v12 }
 0x5a9   :  { %3687 = vmatpush1.msra.mxu1 %v3516_v7 }
 0x5aa   :  { %v3307_v23 = vpop.f32.mrf.mxu0  ;;  %v17009_v17 = vpop.f32.mrf.mxu1  ;;  %3688 = vmatprep.subr.mxu1 %v22461_v12 }
 0x5ab   :  { %v17013_v24 = vadd.f32 %v3307_v23, %v16919_v16  ;;  %3689 = vmatpush1.msra.mxu1 %v11832_v25 }
 0x5ac   :  { %v3309_v5 = vpop.f32.mrf.mxu0  ;;  %v17015_v63 = vpop.f32.mrf.mxu1  ;;  %3690 = vmatprep.subr.mxu1 %v22461_v12 }
 0x5ad   :  { %3691 = vmatpush1.msra.mxu1 %v3506_v56 }
 0x5ae   :  { %v3312_v22 = vpop.f32.mrf.mxu0  ;;  %v17018_v45 = vpop.f32.mrf.mxu1  ;;  %3692 = vmatprep.subr.mxu1 %v22461_v12 }
 0x5af   :  { %v17022_v4 = vadd.f32 %v3312_v22, %v16925_v55  ;;  %3693 = vmatpush1.msra.mxu1 %v11829_v14 }
 0x5b0   :  { %v3314_v35 = vpop.f32.mrf.mxu0  ;;  %v17024_v7 = vpop.f32.mrf.mxu1  ;;  %3694 = vmatprep.subr.mxu1 %v22461_v12 }
 0x5b1   :  { %3695 = vmatpush1.msra.mxu1 %v3496_v29 }
 0x5b2   :  { %v3317_v16 = vpop.f32.mrf.mxu0  ;;  %v17027_v25 = vpop.f32.mrf.mxu1  ;;  %3696 = vmatprep.subr.mxu1 %v22461_v12 }
 0x5b3   :  { %v17031_v56 = vadd.f32 %v3317_v16, %v16931_v61  ;;  %3697 = vmatpush1.msra.mxu1 %v11826_v42 }
 0x5b4   :  { %v3319_v52 = vpop.f32.mrf.mxu0  ;;  %v3566_v21 = vpop.f32.mrf.mxu1  ;;  %3698 = vmatprep.subr.mxu1 %v22461_v12 }
 0x5b5   :  { %3699 = vmatpush1.msra.mxu1 %v3486_v26 }
 0x5b6   :  { %v3322_v55 = vpop.f32.mrf.mxu0  ;;  %v11853_v14 = vpop.f32.mrf.mxu1  ;;  %3700 = vmatprep.subr.mxu1 %v22461_v12 }
 0x5b7   :  { %v17036_v29 = vadd.f32 %v3322_v55, %v16937_v58  ;;  %3701 = vmatpush1.msra.mxu1 %v16974_v60 }
 0x5b8   :  { %v3324_v41 = vpop.f32.mrf.mxu0  ;;  %v3576_v57 = vpop.f32.mrf.mxu1  ;;  %3702 = vmatprep.subr.mxu1 %v22461_v12 }
 0x5b9   :  { %3703 = vmatpush1.msra.mxu1 %v16979_v37 }
 0x5ba   :  { %v3327_v61 = vpop.f32.mrf.mxu0  ;;  %v11856_v42 = vpop.f32.mrf.mxu1  ;;  %3704 = vmatprep.subr.mxu1 %v22461_v12 }
 0x5bb   :  { %v17043_v26 = vadd.f32 %v3327_v61, %v16943_v8  ;;  %3705 = vmatpush1.msra.mxu1 %v16967_v48 }
 0x5bc   :  { %v3329_v28 = vpop.f32.mrf.mxu0  ;;  %v3586_v58 = vpop.f32.mrf.mxu1  ;;  %3706 = vmatprep.subr.mxu1 %v22461_v12 }
 0x5bd   :  { %3707 = vmatpush1.msra.mxu1 %v16972_v15 }
 0x5be   :  { %v3332_v60 = vpop.f32.mrf.mxu0  ;;  %v11859_v32 = vpop.f32.mrf.mxu1  ;;  %3708 = vmatprep.subr.mxu1 %v22461_v12 }
 0x5bf   :  { %v17050_v37 = vadd.f32 %v3332_v60, %v16949_v51  ;;  %3709 = vmatpush1.msra.mxu1 %v16960_v20  ;;  %v10242_v60 = vld [vmem:[%s22325_s1 + $0x468] sm:$0xff] }
 0x5c0   :  { %v3334_v46 = vpop.f32.mrf.mxu0  ;;  %v3596_v8 = vpop.f32.mrf.mxu1  ;;  %3710 = vmatprep.subr.mxu1 %v22461_v12 }
 0x5c1   :  { %3711 = vmatpush1.msra.mxu1 %v16965_v44 }
 0x5c2   :  { %v3337_v48 = vpop.f32.mrf.mxu0  ;;  %v11862_v23 = vpop.f32.mrf.mxu1  ;;  %3712 = vmatprep.subr.mxu1 %v22461_v12 }
 0x5c3   :  { %v17057_v15 = vadd.f32 %v3337_v48, %v16955_v1  ;;  %3713 = vmatpush2.msra.mxu1 %v11862_v23  ;;  %v10241_v23 = vld [vmem:[%s22325_s1 + $0x460] sm:$0xff] }
 0x5c4   :  { %v3339_v5 = vpop.f32.mrf.mxu0  ;;  %v3606_v22 = vpop.f32.mrf.mxu1  ;;  %3714 = vmatprep.subr.mxu1 %v22461_v12 }
 0x5c5   :  { %3715 = vmatpush2.msra.mxu1 %v3606_v22  ;;  %v10091_v5 = vld [vmem:[%s22327_s5 + $0xc30] sm:$0xff] }
 0x5c6   :  { %3716 = vmatprep.subr.mxu1 %v22461_v12  ;;  %v17061_v51 = vpop.f32.mrf.mxu0 }
 0x5c7   :  { %3717 = vmatpush2.msra.mxu1 %v11859_v32  ;;  %v10089_v32 = vld [vmem:[%s22327_s5 + $0xc20] sm:$0xff] }
 0x5c8   :  { %3718 = vmatprep.subr.mxu1 %v22461_v12  ;;  %v17064_v20 = vpop.f32.mrf.mxu0 }
 0x5c9   :  { %3719 = vmatpush2.msra.mxu1 %v3596_v8  ;;  %v10092_v8 = vld [vmem:[%s22327_s5 + $0xc38] sm:$0xff] }
 0x5ca   :  { %3720 = vmatprep.subr.mxu1 %v22461_v12  ;;  %v17067_v1 = vpop.f32.mrf.mxu0 }
 0x5cb   :  { %3721 = vmatpush2.msra.mxu1 %v11856_v42  ;;  %v10087_v42 = vld [vmem:[%s22327_s5 + $0xc10] sm:$0xff] }
 0x5cc   :  { %3722 = vmatprep.subr.mxu1 %v22461_v12  ;;  %v17070_v44 = vpop.f32.mrf.mxu0 }
 0x5cd   :  { %3723 = vmatpush2.msra.mxu1 %v3586_v58 }
 0x5ce   :  { %3724 = vmatprep.subr.mxu1 %v22461_v12  ;;  %v17073_v35 = vpop.f32.mrf.mxu0 }
 0x5cf   :  { %3725 = vmatpush2.msra.mxu1 %v11853_v14 }
 0x5d0   :  { %3726 = vmatprep.subr.mxu1 %v22461_v12  ;;  %v17076_v16 = vpop.f32.mrf.mxu0 }
 0x5d1   :  { %3727 = vmatpush2.msra.mxu1 %v3576_v57 }
 0x5d2   :  { %3728 = vmatprep.subr.mxu1 %v22461_v12  ;;  %v17079_v52 = vpop.f32.mrf.mxu0 }
 0x5d3   :  { %3729 = vmatpush2.msra.mxu1 %v17027_v25 }
 0x5d4   :  { %3730 = vmatprep.subr.mxu1 %v22461_v12  ;;  %v17083_v55 = vpop.f32.mrf.mxu0 }
 0x5d5   :  { %3731 = vmatpush2.msra.mxu1 %v3566_v21 }
 0x5d6   :  { %3732 = vmatprep.subr.mxu1 %v22461_v12  ;;  %v11909_v41 = vpop.f32.mrf.mxu0 }
 0x5d7   :  { %3733 = vmatpush2.msra.mxu1 %v17018_v45  ;;  %v10085_v45 = vld [vmem:[%s22327_s5 + $0xc00] sm:$0xff] }
 0x5d8   :  { %3734 = vmatprep.subr.mxu1 %v22461_v12  ;;  %v17088_v14 = vpop.f32.mrf.mxu0 }
 0x5d9   :  { %3735 = vmatpush2.msra.mxu1 %v17024_v7  ;;  %v10244_v7 = vld [vmem:[%s22325_s1 + $0x478] sm:$0xff] }
 0x5da   :  { %3736 = vmatprep.subr.mxu1 %v22461_v12  ;;  %v11912_v57 = vpop.f32.mrf.mxu0 }
 0x5db   :  { %3737 = vmatpush2.msra.mxu1 %v17009_v17 }
 0x5dc   :  { %3738 = vmatprep.subr.mxu1 %v22461_v12  ;;  %v4070_v25 = vpop.f32.mrf.mxu0 }
 0x5dd   :  { %3739 = vmatpush2.msra.mxu1 %v17015_v63  ;;  %v10088_v63 = vld [vmem:[%s22327_s5 + $0xc18] sm:$0xff] }
 0x5de   :  { %3740 = vmatprep.subr.mxu1 %v22461_v12  ;;  %v11915_v21 = vpop.f32.mrf.mxu0 }
 0x5df   :  { %3741 = vmatpush2.msra.mxu1 %v17000_v27  ;;  %v10243_v27 = vld [vmem:[%s22325_s1 + $0x470] sm:$0xff] }
 0x5e0   :  { %3742 = vmatprep.subr.mxu1 %v22461_v12  ;;  %v4080_v17 = vpop.f32.mrf.mxu0 }
 0x5e1   :  { %3743 = vmatpush2.msra.mxu1 %v17006_v38  ;;  %v10090_v38 = vld [vmem:[%s22327_s5 + $0xc28] sm:$0xff] }
 0x5e2   :  { %3745 = vmatmul.mubr.f32.vlgmr.msra.gmra.mxu1 %v10085_v45  ;;  %v11918_v61 = vpop.f32.mrf.mxu0  ;;  %11943 = vmatprep.subr.mxu1 %v10244_v7 }
 0x5e3   :  { %4245 = vmatpush1.msra.mxu0 %v11918_v61  ;;  %3749 = vmatprep.mubr.f32.mxu1 %v10088_v63  ;;  %v10095_v61 = vld [vmem:[%s22327_s5 + $0xc50] sm:$0xff] }
 0x5e4   :  { %v4090_v28 = vpop.f32.mrf.mxu0  ;;  %4246 = vmatprep.subr.mxu0 %v22461_v12  ;;  %11944 = vmatpush3.msra.mxu1 %v10244_v7  ;;  %v10093_v7 = vld [vmem:[%s22327_s5 + $0xc40] sm:$0xff] }
 0x5e5   :  { %4247 = vmatpush1.msra.mxu0 %v4090_v28  ;;  %11945 = vmatprep.subr.mxu1 %v10243_v27  ;;  %v10097_v28 = vld [vmem:[%s22327_s5 + $0xc60] sm:$0xff] }
 0x5e6   :  { %3750 = vmatmul.mubr.f32.gmra.mxu1 %v10087_v42  ;;  %v17118_v58 = vpop.f32.mrf.mxu0  ;;  %4248 = vmatprep.subr.mxu0 %v22461_v12 }
 0x5e7   :  { %4249 = vmatpush1.msra.mxu0 %v11915_v21  ;;  %3754 = vmatprep.mubr.f32.mxu1 %v10090_v38  ;;  %v10094_v21 = vld [vmem:[%s22327_s5 + $0xc48] sm:$0xff] }
 0x5e8   :  { %v17127_v46 = vpop.f32.mrf.mxu0  ;;  %4250 = vmatprep.subr.mxu0 %v22461_v12  ;;  %11946 = vmatpush3.msra.mxu1 %v10243_v27 }
 0x5e9   :  { %4251 = vmatpush1.msra.mxu0 %v4080_v17  ;;  %11947 = vmatprep.subr.mxu1 %v10242_v60 }
 0x5ea   :  { %3755 = vmatmul.mubr.f32.gmra.mxu1 %v10089_v32  ;;  %v17133_v48 = vpop.f32.mrf.mxu0  ;;  %4252 = vmatprep.subr.mxu0 %v22461_v12  ;;  %v10099_v32 = vld [vmem:[%s22327_s5 + $0xc70] sm:$0xff] }
 0x5eb   :  { %4253 = vmatpush1.msra.mxu0 %v11912_v57  ;;  %3759 = vmatprep.mubr.f32.mxu1 %v10092_v8  ;;  %v10240_v57 = vld [vmem:[%s22325_s1 + $0x458] sm:$0xff] }
 0x5ec   :  { %v17142_v22 = vpop.f32.mrf.mxu0  ;;  %4254 = vmatprep.subr.mxu0 %v22461_v12  ;;  %11948 = vmatpush3.msra.mxu1 %v10242_v60 }
 0x5ed   :  { %4255 = vmatpush1.msra.mxu0 %v4070_v25  ;;  %11949 = vmatprep.subr.mxu1 %v10241_v23  ;;  %v10096_v25 = vld [vmem:[%s22327_s5 + $0xc58] sm:$0xff] }
 0x5ee   :  { %3760 = vmatmul.mubr.f32.gmra.mxu1 %v10091_v5  ;;  %v17148_v45 = vpop.f32.mrf.mxu0  ;;  %4256 = vmatprep.subr.mxu0 %v22461_v12  ;;  %v10101_v5 = vld [vmem:[%s22327_s5 + $0xc80] sm:$0xff] }
 0x5ef   :  { %4257 = vmatpush1.msra.mxu0 %v11909_v41  ;;  %3764 = vmatprep.mubr.f32.mxu1 %v10094_v21  ;;  %v10239_v41 = vld [vmem:[%s22325_s1 + $0x450] sm:$0xff] }
 0x5f0   :  { %v17157_v17 = vpop.f32.mrf.mxu0  ;;  %4258 = vmatprep.subr.mxu0 %v22461_v12  ;;  %11950 = vmatpush3.msra.mxu1 %v10241_v23 }
 0x5f1   :  { %4259 = vmatpush1.msra.mxu0 %v17088_v14  ;;  %11951 = vmatprep.subr.mxu1 %v10240_v57  ;;  %v10098_v14 = vld [vmem:[%s22327_s5 + $0xc68] sm:$0xff] }
 0x5f2   :  { %3765 = vmatmul.mubr.f32.gmra.mxu1 %v10093_v7  ;;  %v17164_v63 = vpop.f32.mrf.mxu0  ;;  %4260 = vmatprep.subr.mxu0 %v22461_v12  ;;  %v10103_v7 = vld [vmem:[%s22327_s5 + $0xc90] sm:$0xff] }
 0x5f3   :  { %4261 = vmatpush1.msra.mxu0 %v17079_v52  ;;  %3769 = vmatprep.mubr.f32.mxu1 %v10096_v25  ;;  %v10238_v52 = vld [vmem:[%s22325_s1 + $0x448] sm:$0xff] }
 0x5f4   :  { %v17174_v27 = vpop.f32.mrf.mxu0  ;;  %4262 = vmatprep.subr.mxu0 %v22461_v12  ;;  %11952 = vmatpush3.msra.mxu1 %v10240_v57 }
 0x5f5   :  { %4263 = vmatpush1.msra.mxu0 %v17083_v55  ;;  %11953 = vmatprep.subr.mxu1 %v10239_v41  ;;  %v10100_v55 = vld [vmem:[%s22327_s5 + $0xc78] sm:$0xff] }
 0x5f6   :  { %3770 = vmatmul.mubr.f32.gmra.mxu1 %v10095_v61  ;;  %v17181_v42 = vpop.f32.mrf.mxu0  ;;  %4264 = vmatprep.subr.mxu0 %v22461_v12  ;;  %v10105_v61 = vld [vmem:[%s22327_s5 + $0xca0] sm:$0xff] }
 0x5f7   :  { %4265 = vmatpush1.msra.mxu0 %v17073_v35  ;;  %3774 = vmatprep.mubr.f32.mxu1 %v10098_v14  ;;  %v10237_v35 = vld [vmem:[%s22325_s1 + $0x440] sm:$0xff]  ;;  %v10108_v14 = vld [vmem:[%s22327_s5 + $0xcb8] sm:$0xff] }
 0x5f8   :  { %v17191_v38 = vpop.f32.mrf.mxu0  ;;  %4266 = vmatprep.subr.mxu0 %v22461_v12  ;;  %11954 = vmatpush3.msra.mxu1 %v10239_v41  ;;  %v10234_v41 = vld [vmem:[%s22325_s1 + $0x428] sm:$0xff] }
 0x5f9   :  { %4267 = vmatpush1.msra.mxu0 %v17076_v16  ;;  %11955 = vmatprep.subr.mxu1 %v10238_v52  ;;  %v10102_v16 = vld [vmem:[%s22327_s5 + $0xc88] sm:$0xff] }
 0x5fa   :  { %3775 = vmatmul.mubr.f32.gmra.mxu1 %v10097_v28  ;;  %v11936_v60 = vpop.f32.mrf.mxu0  ;;  %4268 = vmatprep.subr.mxu0 %v22461_v12  ;;  %v10107_v28 = vld [vmem:[%s22327_s5 + $0xcb0] sm:$0xff] }
 0x5fb   :  { %4269 = vmatpush1.msra.mxu0 %v17067_v1  ;;  %3779 = vmatprep.mubr.f32.mxu1 %v10100_v55  ;;  %v10236_v1 = vld [vmem:[%s22325_s1 + $0x438] sm:$0xff]  ;;  %v10110_v55 = vld [vmem:[%s22327_s5 + $0xcc8] sm:$0xff] }
 0x5fc   :  { %v4150_v8 = vpop.f32.mrf.mxu0  ;;  %4270 = vmatprep.subr.mxu0 %v22461_v12  ;;  %11956 = vmatpush3.msra.mxu1 %v10238_v52  ;;  %v10233_v52 = vld [vmem:[%s22325_s1 + $0x420] sm:$0xff] }
 0x5fd   :  { %4271 = vmatpush1.msra.mxu0 %v17070_v44  ;;  %11957 = vmatprep.subr.mxu1 %v10237_v35  ;;  %v10104_v44 = vld [vmem:[%s22327_s5 + $0xc98] sm:$0xff] }
 0x5fe   :  { %3780 = vmatmul.mubr.f32.gmra.mxu1 %v10099_v32  ;;  %v11939_v23 = vpop.f32.mrf.mxu0  ;;  %4272 = vmatprep.subr.mxu0 %v22461_v12  ;;  %v10112_v32 = vld [vmem:[%s22327_s5 + $0xcd8] sm:$0xff] }
 0x5ff   :  { %4273 = vmatpush1.msra.mxu0 %v17061_v51  ;;  %3784 = vmatprep.mubr.f32.mxu1 %v10102_v16  ;;  %v10235_v51 = vld [vmem:[%s22325_s1 + $0x430] sm:$0xff]  ;;  %v10113_v16 = vld [vmem:[%s22327_s5 + $0xce0] sm:$0xff] }
 0x600   :  { %v4160_v21 = vpop.f32.mrf.mxu0  ;;  %4274 = vmatprep.subr.mxu0 %v22461_v12  ;;  %11958 = vmatpush3.msra.mxu1 %v10237_v35  ;;  %v10109_v35 = vld [vmem:[%s22327_s5 + $0xcc0] sm:$0xff] }
 0x601   :  { %4275 = vmatpush1.msra.mxu0 %v17064_v20  ;;  %11959 = vmatprep.subr.mxu1 %v10236_v1  ;;  %v10106_v20 = vld [vmem:[%s22327_s5 + $0xca8] sm:$0xff] }
 0x602   :  { %3785 = vmatmul.mubr.f32.gmra.mxu1 %v10101_v5  ;;  %v11942_v57 = vpop.f32.mrf.mxu0  ;;  %4276 = vmatprep.subr.mxu0 %v22461_v12  ;;  %v10168_v5 = vld [vmem:[%s22327_s5 + $0xe18] sm:$0xff] }
 0x603   :  { %4277 = vmatpush2.msra.mxu0 %v11942_v57  ;;  %3789 = vmatprep.mubr.f32.mxu1 %v10104_v44  ;;  %v10122_v44 = vld [vmem:[%s22327_s5 + $0xd28] sm:$0xff]  ;;  %v10121_v57 = vld [vmem:[%s22327_s5 + $0xd20] sm:$0xff] }
 0x604   :  { %v4170_v25 = vpop.f32.mrf.mxu0  ;;  %4278 = vmatprep.subr.mxu0 %v22461_v12  ;;  %11960 = vmatpush3.msra.mxu1 %v10236_v1  ;;  %v10165_v1 = vld [vmem:[%s22327_s5 + $0xe00] sm:$0xff] }
 0x605   :  { %4279 = vmatpush2.msra.mxu0 %v4170_v25  ;;  %11961 = vmatprep.subr.mxu1 %v10235_v51  ;;  %v10172_v25 = vld [vmem:[%s22327_s5 + $0xe38] sm:$0xff] }
 0x606   :  { %3790 = vmatmul.mubr.f32.gmra.mxu1 %v10103_v7  ;;  %4280 = vmatprep.subr.mxu0 %v22461_v12  ;;  %v10124_v7 = vld [vmem:[%s22327_s5 + $0xd38] sm:$0xff] }
 0x607   :  { %4281 = vmatpush2.msra.mxu0 %v11939_v23  ;;  %3794 = vmatprep.mubr.f32.mxu1 %v10106_v20  ;;  %v10115_v23 = vld [vmem:[%s22327_s5 + $0xcf0] sm:$0xff] }
 0x608   :  { %4282 = vmatprep.subr.mxu0 %v22461_v12  ;;  %11962 = vmatpush3.msra.mxu1 %v10235_v51  ;;  %v10169_v51 = vld [vmem:[%s22327_s5 + $0xe20] sm:$0xff]  ;;  %v10123_v20 = vld [vmem:[%s22327_s5 + $0xd30] sm:$0xff] }
 0x609   :  { %4283 = vmatpush2.msra.mxu0 %v4160_v21  ;;  %11963 = vmatprep.subr.mxu1 %v10234_v41  ;;  %v10167_v21 = vld [vmem:[%s22327_s5 + $0xe10] sm:$0xff] }
 0x60a   :  { %3795 = vmatmul.mubr.f32.gmra.mxu1 %v10105_v61  ;;  %4284 = vmatprep.subr.mxu0 %v22461_v12  ;;  %v10126_v61 = vld [vmem:[%s22327_s5 + $0xd48] sm:$0xff] }
 0x60b   :  { %4285 = vmatpush2.msra.mxu0 %v11936_v60  ;;  %3799 = vmatprep.mubr.f32.mxu1 %v10108_v14  ;;  %v10232_v60 = vld [vmem:[%s22325_s1 + $0x418] sm:$0xff]  ;;  %v10174_v14 = vld [vmem:[%s22327_s5 + $0xe48] sm:$0xff] }
 0x60c   :  { %4286 = vmatprep.subr.mxu0 %v22461_v12  ;;  %11964 = vmatpush3.msra.mxu1 %v10234_v41  ;;  %v10171_v41 = vld [vmem:[%s22327_s5 + $0xe30] sm:$0xff] }
 0x60d   :  { %4287 = vmatpush2.msra.mxu0 %v4150_v8  ;;  %11965 = vmatprep.subr.mxu1 %v10233_v52  ;;  %v10111_v8 = vld [vmem:[%s22327_s5 + $0xcd0] sm:$0xff] }
 0x60e   :  { %3800 = vmatmul.mubr.f32.gmra.mxu1 %v10107_v28  ;;  %4288 = vmatprep.subr.mxu0 %v22461_v12  ;;  %v10173_v28 = vld [vmem:[%s22327_s5 + $0xe40] sm:$0xff] }
 0x60f   :  { %4289 = vmatpush2.msra.mxu0 %v17181_v42  ;;  %3804 = vmatprep.mubr.f32.mxu1 %v10110_v55  ;;  %v10231_v42 = vld [vmem:[%s22325_s1 + $0x410] sm:$0xff]  ;;  %v10128_v55 = vld [vmem:[%s22327_s5 + $0xd58] sm:$0xff] }
 0x610   :  { %4290 = vmatprep.subr.mxu0 %v22461_v12  ;;  %11966 = vmatpush3.msra.mxu1 %v10233_v52  ;;  %v10125_v52 = vld [vmem:[%s22327_s5 + $0xd40] sm:$0xff] }
 0x611   :  { %4291 = vmatpush2.msra.mxu0 %v17191_v38  ;;  %11967 = vmatprep.subr.mxu1 %v10232_v60  ;;  %v10114_v38 = vld [vmem:[%s22327_s5 + $0xce8] sm:$0xff] }
 0x612   :  { %3805 = vmatmul.mubr.f32.gmra.mxu1 %v10109_v35  ;;  %4292 = vmatprep.subr.mxu0 %v22461_v12  ;;  %v10127_v35 = vld [vmem:[%s22327_s5 + $0xd50] sm:$0xff] }
 0x613   :  { %4293 = vmatpush2.msra.mxu0 %v17164_v63  ;;  %3809 = vmatprep.mubr.f32.mxu1 %v10112_v32  ;;  %v10230_v63 = vld [vmem:[%s22325_s1 + $0x408] sm:$0xff]  ;;  %v10175_v32 = vld [vmem:[%s22327_s5 + $0xe50] sm:$0xff] }
 0x614   :  { %4294 = vmatprep.subr.mxu0 %v22461_v12  ;;  %11968 = vmatpush3.msra.mxu1 %v10232_v60  ;;  %v10176_v60 = vld [vmem:[%s22327_s5 + $0xe58] sm:$0xff] }
 0x615   :  { %4295 = vmatpush2.msra.mxu0 %v17174_v27  ;;  %11969 = vmatprep.subr.mxu1 %v10231_v42  ;;  %v10116_v27 = vld [vmem:[%s22327_s5 + $0xcf8] sm:$0xff] }
 0x616   :  { %3810 = vmatmul.mubr.f32.gmra.mxu1 %v10111_v8  ;;  %4296 = vmatprep.subr.mxu0 %v22461_v12  ;;  %v10178_v8 = vld [vmem:[%s22327_s5 + $0xe68] sm:$0xff] }
 0x617   :  { %4297 = vmatpush2.msra.mxu0 %v17148_v45  ;;  %3814 = vmatprep.mubr.f32.mxu1 %v10114_v38  ;;  %v10229_v45 = vld [vmem:[%s22325_s1 + $0x400] sm:$0xff] }
 0x618   :  { %4298 = vmatprep.subr.mxu0 %v22461_v12  ;;  %11970 = vmatpush3.msra.mxu1 %v10231_v42  ;;  %v10130_v42 = vld [vmem:[%s22327_s5 + $0xd68] sm:$0xff]  ;;  %v10129_v38 = vld [vmem:[%s22327_s5 + $0xd60] sm:$0xff] }
 0x619   :  { %4299 = vmatpush2.msra.mxu0 %v17157_v17  ;;  %11971 = vmatprep.subr.mxu1 %v10230_v63  ;;  %v10118_v17 = vld [vmem:[%s22327_s5 + $0xd08] sm:$0xff] }
 0x61a   :  { %3815 = vmatmul.mubr.f32.gmra.mxu1 %v10113_v16  ;;  %4300 = vmatprep.subr.mxu0 %v22461_v12  ;;  %v10132_v16 = vld [vmem:[%s22327_s5 + $0xd78] sm:$0xff] }
 0x61b   :  { %4301 = vmatpush2.msra.mxu0 %v17133_v48  ;;  %3819 = vmatprep.mubr.f32.mxu1 %v10116_v27  ;;  %v10117_v48 = vld [vmem:[%s22327_s5 + $0xd00] sm:$0xff]  ;;  %v10180_v27 = vld [vmem:[%s22327_s5 + $0xe78] sm:$0xff] }
 0x61c   :  { %4302 = vmatprep.subr.mxu0 %v22461_v12  ;;  %11972 = vmatpush3.msra.mxu1 %v10230_v63  ;;  %v10177_v63 = vld [vmem:[%s22327_s5 + $0xe60] sm:$0xff] }
 0x61d   :  { %4303 = vmatpush2.msra.mxu0 %v17142_v22  ;;  %11973 = vmatprep.subr.mxu1 %v10229_v45  ;;  %v10120_v22 = vld [vmem:[%s22327_s5 + $0xd18] sm:$0xff] }
 0x61e   :  { %3820 = vmatmul.mubr.f32.gmra.mxu1 %v10115_v23  ;;  %4304 = vmatprep.subr.mxu0 %v22461_v12  ;;  %v10179_v23 = vld [vmem:[%s22327_s5 + $0xe70] sm:$0xff] }
 0x61f   :  { %4305 = vmatpush2.msra.mxu0 %v17118_v58  ;;  %3824 = vmatprep.mubr.f32.mxu1 %v10118_v17  ;;  %v10119_v58 = vld [vmem:[%s22327_s5 + $0xd10] sm:$0xff]  ;;  %v10134_v17 = vld [vmem:[%s22327_s5 + $0xd88] sm:$0xff] }
 0x620   :  { %4306 = vmatprep.subr.mxu0 %v22461_v12  ;;  %11974 = vmatpush3.msra.mxu1 %v10229_v45  ;;  %v10131_v45 = vld [vmem:[%s22327_s5 + $0xd70] sm:$0xff] }
 0x621   :  { %4307 = vmatpush2.msra.mxu0 %v17127_v46  ;;  %4808 = vmatprep.subr.mxu1 %v22461_v12  ;;  %v10170_v46 = vld [vmem:[%s22327_s5 + $0xe28] sm:$0xff] }
 0x622   :  { %3825 = vmatmul.mubr.f32.gmra.mxu1 %v10117_v48  ;;  %4309 = vmatmul.mubr.f32.vlgmr.msra.gmra.mxu0 %v10165_v1  ;;  %v10182_v48 = vld [vmem:[%s22327_s5 + $0xe88] sm:$0xff]  ;;  %v10133_v1 = vld [vmem:[%s22327_s5 + $0xd80] sm:$0xff] }
 0x623   :  { %3829 = vmatprep.mubr.f32.mxu1 %v10120_v22  ;;  %4313 = vmatprep.mubr.f32.mxu0 %v10168_v5  ;;  %v10181_v22 = vld [vmem:[%s22327_s5 + $0xe80] sm:$0xff]  ;;  %v10136_v5 = vld [vmem:[%s22327_s5 + $0xd98] sm:$0xff] }
 0x626   :  { %3830 = vmatmul.mubr.f32.gmra.mxu1 %v10119_v58  ;;  %4314 = vmatmul.mubr.f32.gmra.mxu0 %v10167_v21  ;;  %v10184_v58 = vld [vmem:[%s22327_s5 + $0xe98] sm:$0xff]  ;;  %v10135_v21 = vld [vmem:[%s22327_s5 + $0xd90] sm:$0xff] }
 0x627   :  { %3834 = vmatprep.mubr.f32.mxu1 %v10122_v44  ;;  %4318 = vmatprep.mubr.f32.mxu0 %v10170_v46  ;;  %v10183_v44 = vld [vmem:[%s22327_s5 + $0xe90] sm:$0xff]  ;;  %v10138_v46 = vld [vmem:[%s22327_s5 + $0xda8] sm:$0xff] }
 0x62a   :  { %3835 = vmatmul.mubr.f32.gmra.mxu1 %v10121_v57  ;;  %4319 = vmatmul.mubr.f32.gmra.mxu0 %v10169_v51  ;;  %v10186_v57 = vld [vmem:[%s22327_s5 + $0xea8] sm:$0xff]  ;;  %v10137_v51 = vld [vmem:[%s22327_s5 + $0xda0] sm:$0xff] }
 0x62b   :  { %3839 = vmatprep.mubr.f32.mxu1 %v10124_v7  ;;  %4323 = vmatprep.mubr.f32.mxu0 %v10172_v25  ;;  %v10185_v7 = vld [vmem:[%s22327_s5 + $0xea0] sm:$0xff]  ;;  %v10140_v25 = vld [vmem:[%s22327_s5 + $0xdb8] sm:$0xff] }
 0x62e   :  { %3840 = vmatmul.mubr.f32.gmra.mxu1 %v10123_v20  ;;  %4324 = vmatmul.mubr.f32.gmra.mxu0 %v10171_v41  ;;  %v10188_v20 = vld [vmem:[%s22327_s5 + $0xeb8] sm:$0xff]  ;;  %v10139_v41 = vld [vmem:[%s22327_s5 + $0xdb0] sm:$0xff] }
 0x62f   :  { %3844 = vmatprep.mubr.f32.mxu1 %v10126_v61  ;;  %4328 = vmatprep.mubr.f32.mxu0 %v10174_v14  ;;  %v10187_v61 = vld [vmem:[%s22327_s5 + $0xeb0] sm:$0xff]  ;;  %v10142_v14 = vld [vmem:[%s22327_s5 + $0xdc8] sm:$0xff] }
 0x632   :  { %3845 = vmatmul.mubr.f32.gmra.mxu1 %v10125_v52  ;;  %4329 = vmatmul.mubr.f32.gmra.mxu0 %v10173_v28  ;;  %v10190_v52 = vld [vmem:[%s22327_s5 + $0xec8] sm:$0xff]  ;;  %v10141_v28 = vld [vmem:[%s22327_s5 + $0xdc0] sm:$0xff] }
 0x633   :  { %3849 = vmatprep.mubr.f32.mxu1 %v10128_v55  ;;  %4333 = vmatprep.mubr.f32.mxu0 %v10176_v60  ;;  %v10189_v55 = vld [vmem:[%s22327_s5 + $0xec0] sm:$0xff]  ;;  %v10144_v60 = vld [vmem:[%s22327_s5 + $0xdd8] sm:$0xff] }
 0x636   :  { %3850 = vmatmul.mubr.f32.gmra.mxu1 %v10127_v35  ;;  %4334 = vmatmul.mubr.f32.gmra.mxu0 %v10175_v32  ;;  %v10192_v35 = vld [vmem:[%s22327_s5 + $0xed8] sm:$0xff]  ;;  %v10143_v32 = vld [vmem:[%s22327_s5 + $0xdd0] sm:$0xff] }
 0x637   :  { %3854 = vmatprep.mubr.f32.mxu1 %v10130_v42  ;;  %4338 = vmatprep.mubr.f32.mxu0 %v10178_v8  ;;  %v10191_v42 = vld [vmem:[%s22327_s5 + $0xed0] sm:$0xff]  ;;  %v10146_v8 = vld [vmem:[%s22327_s5 + $0xde8] sm:$0xff] }
 0x63a   :  { %3855 = vmatmul.mubr.f32.gmra.mxu1 %v10129_v38  ;;  %4339 = vmatmul.mubr.f32.gmra.mxu0 %v10177_v63  ;;  %v10194_v38 = vld [vmem:[%s22327_s5 + $0xee8] sm:$0xff]  ;;  %v10145_v63 = vld [vmem:[%s22327_s5 + $0xde0] sm:$0xff] }
 0x63b   :  { %3859 = vmatprep.mubr.f32.mxu1 %v10132_v16  ;;  %4343 = vmatprep.mubr.f32.mxu0 %v10180_v27  ;;  %v10193_v16 = vld [vmem:[%s22327_s5 + $0xee0] sm:$0xff]  ;;  %v10148_v27 = vld [vmem:[%s22327_s5 + $0xdf8] sm:$0xff] }
 0x63e   :  { %3860 = vmatmul.mubr.f32.gmra.mxu1 %v10131_v45  ;;  %4344 = vmatmul.mubr.f32.gmra.mxu0 %v10179_v23  ;;  %v10196_v45 = vld [vmem:[%s22327_s5 + $0xef8] sm:$0xff]  ;;  %v10147_v23 = vld [vmem:[%s22327_s5 + $0xdf0] sm:$0xff] }
 0x63f   :  { %3864 = vmatprep.mubr.f32.mxu1 %v10134_v17  ;;  %4348 = vmatprep.mubr.f32.mxu0 %v10182_v48  ;;  %v10195_v17 = vld [vmem:[%s22327_s5 + $0xef0] sm:$0xff]  ;;  %v10198_v48 = vld [vmem:[%s22327_s5 + $0xf08] sm:$0xff] }
 0x642   :  { %3865 = vmatmul.mubr.f32.gmra.mxu1 %v10133_v1  ;;  %4349 = vmatmul.mubr.f32.gmra.mxu0 %v10181_v22  ;;  %v12904_v1 = vld [vmem:[%s22326_s0] sm:$0xff] }
 0x643   :  { %3869 = vmatprep.mubr.f32.mxu1 %v10136_v5  ;;  %4353 = vmatprep.mubr.f32.mxu0 %v10184_v58  ;;  %v10197_v22 = vld [vmem:[%s22327_s5 + $0xf00] sm:$0xff]  ;;  %v10200_v5 = vld [vmem:[%s22327_s5 + $0xf18] sm:$0xff]  ;;  %v12905_v58 = vld [vmem:[%s22326_s0 + $0x8] sm:$0xff] }
 0x646   :  { %3870 = vmatmul.mubr.f32.gmra.mxu1 %v10135_v21  ;;  %4354 = vmatmul.mubr.f32.gmra.mxu0 %v10183_v44  ;;  %v12906_v21 = vld [vmem:[%s22326_s0 + $0x10] sm:$0xff] }
 0x647   :  { %3874 = vmatprep.mubr.f32.mxu1 %v10138_v46  ;;  %4358 = vmatprep.mubr.f32.mxu0 %v10186_v57  ;;  %v10199_v44 = vld [vmem:[%s22327_s5 + $0xf10] sm:$0xff]  ;;  %v10202_v46 = vld [vmem:[%s22327_s5 + $0xf28] sm:$0xff]  ;;  %v12907_v57 = vld [vmem:[%s22326_s0 + $0x18] sm:$0xff] }
 0x64a   :  { %3875 = vmatmul.mubr.f32.gmra.mxu1 %v10137_v51  ;;  %4359 = vmatmul.mubr.f32.gmra.mxu0 %v10185_v7  ;;  %v12908_v51 = vld [vmem:[%s22326_s0 + $0x20] sm:$0xff] }
 0x64b   :  { %3879 = vmatprep.mubr.f32.mxu1 %v10140_v25  ;;  %4363 = vmatprep.mubr.f32.mxu0 %v10188_v20  ;;  %v10201_v7 = vld [vmem:[%s22327_s5 + $0xf20] sm:$0xff]  ;;  %v10204_v25 = vld [vmem:[%s22327_s5 + $0xf38] sm:$0xff]  ;;  %v12909_v20 = vld [vmem:[%s22326_s0 + $0x28] sm:$0xff] }
 0x64e   :  { %3880 = vmatmul.mubr.f32.gmra.mxu1 %v10139_v41  ;;  %4364 = vmatmul.mubr.f32.gmra.mxu0 %v10187_v61  ;;  %v12910_v41 = vld [vmem:[%s22326_s0 + $0x30] sm:$0xff] }
 0x64f   :  { %3884 = vmatprep.mubr.f32.mxu1 %v10142_v14  ;;  %4368 = vmatprep.mubr.f32.mxu0 %v10190_v52  ;;  %v10203_v61 = vld [vmem:[%s22327_s5 + $0xf30] sm:$0xff]  ;;  %v10206_v14 = vld [vmem:[%s22327_s5 + $0xf48] sm:$0xff]  ;;  %v12911_v52 = vld [vmem:[%s22326_s0 + $0x38] sm:$0xff] }
 0x652   :  { %3885 = vmatmul.mubr.f32.gmra.mxu1 %v10141_v28  ;;  %4369 = vmatmul.mubr.f32.gmra.mxu0 %v10189_v55  ;;  %v12912_v28 = vld [vmem:[%s22326_s0 + $0x40] sm:$0xff] }
 0x653   :  { %3889 = vmatprep.mubr.f32.mxu1 %v10144_v60  ;;  %4373 = vmatprep.mubr.f32.mxu0 %v10192_v35  ;;  %v10205_v55 = vld [vmem:[%s22327_s5 + $0xf40] sm:$0xff]  ;;  %v10208_v60 = vld [vmem:[%s22327_s5 + $0xf58] sm:$0xff]  ;;  %v12913_v35 = vld [vmem:[%s22326_s0 + $0x48] sm:$0xff] }
 0x656   :  { %3890 = vmatmul.mubr.f32.gmra.mxu1 %v10143_v32  ;;  %4374 = vmatmul.mubr.f32.gmra.mxu0 %v10191_v42  ;;  %v12914_v32 = vld [vmem:[%s22326_s0 + $0x50] sm:$0xff] }
 0x657   :  { %3894 = vmatprep.mubr.f32.mxu1 %v10146_v8  ;;  %4378 = vmatprep.mubr.f32.mxu0 %v10194_v38  ;;  %v10207_v42 = vld [vmem:[%s22327_s5 + $0xf50] sm:$0xff]  ;;  %v10210_v8 = vld [vmem:[%s22327_s5 + $0xf68] sm:$0xff]  ;;  %v12915_v38 = vld [vmem:[%s22326_s0 + $0x58] sm:$0xff] }
 0x65a   :  { %3895 = vmatmul.mubr.f32.gmra.mxu1 %v10145_v63  ;;  %4379 = vmatmul.mubr.f32.gmra.mxu0 %v10193_v16  ;;  %v12916_v63 = vld [vmem:[%s22326_s0 + $0x60] sm:$0xff] }
 0x65b   :  { %3899 = vmatprep.mubr.f32.mxu1 %v10148_v27  ;;  %4383 = vmatprep.mubr.f32.mxu0 %v10196_v45  ;;  %v10209_v16 = vld [vmem:[%s22327_s5 + $0xf60] sm:$0xff]  ;;  %v10212_v27 = vld [vmem:[%s22327_s5 + $0xf78] sm:$0xff]  ;;  %v12917_v45 = vld [vmem:[%s22326_s0 + $0x68] sm:$0xff] }
 0x65e   :  { %3900 = vmatmul.mubr.f32.gmra.mxu1 %v10147_v23  ;;  %4384 = vmatmul.mubr.f32.gmra.mxu0 %v10195_v17  ;;  %v12918_v23 = vld [vmem:[%s22326_s0 + $0x70] sm:$0xff] }
 0x65f   :  { %4388 = vmatprep.mubr.f32.mxu0 %v10198_v48  ;;  %11975 = vmatprep.mubr.f32.mxu1 %v12904_v1  ;;  %v10211_v17 = vld [vmem:[%s22327_s5 + $0xf70] sm:$0xff]  ;;  %v10214_v48 = vld [vmem:[%s22327_s5 + $0xf88] sm:$0xff]  ;;  %v12919_v1 = vld [vmem:[%s22326_s0 + $0x78] sm:$0xff] }
 0x662   :  { %4389 = vmatmul.mubr.f32.gmra.mxu0 %v10197_v22  ;;  %11976 = vmatmul.mubr.f32.vlgmr.msra.gmra.mxu1 %v12905_v58  ;;  %v12920_v22 = vld [vmem:[%s22326_s0 + $0x80] sm:$0xff]  ;;  %v10216_v58 = vld [vmem:[%s22327_s5 + $0xf98] sm:$0xff] }
 0x663   :  { %4393 = vmatprep.mubr.f32.mxu0 %v10200_v5  ;;  %11978 = vmatprep.mubr.f32.mxu1 %v12906_v21  ;;  %v10213_v5 = vld [vmem:[%s22327_s5 + $0xf80] sm:$0xff]  ;;  %v12921_v21 = vld [vmem:[%s22326_s0 + $0x88] sm:$0xff] }
 0x666   :  { %4394 = vmatmul.mubr.f32.gmra.mxu0 %v10199_v44  ;;  %11979 = vmatmul.mubr.f32.gmra.mxu1 %v12907_v57  ;;  %v12922_v44 = vld [vmem:[%s22326_s0 + $0x90] sm:$0xff]  ;;  %v10218_v57 = vld [vmem:[%s22327_s5 + $0xfa8] sm:$0xff] }
 0x667   :  { %4398 = vmatprep.mubr.f32.mxu0 %v10202_v46  ;;  %11981 = vmatprep.mubr.f32.mxu1 %v12908_v51  ;;  %v10215_v46 = vld [vmem:[%s22327_s5 + $0xf90] sm:$0xff]  ;;  %v12923_v51 = vld [vmem:[%s22326_s0 + $0x98] sm:$0xff] }
 0x66a   :  { %4399 = vmatmul.mubr.f32.gmra.mxu0 %v10201_v7  ;;  %11982 = vmatmul.mubr.f32.gmra.mxu1 %v12909_v20  ;;  %v12924_v7 = vld [vmem:[%s22326_s0 + $0xa0] sm:$0xff]  ;;  %v10220_v20 = vld [vmem:[%s22327_s5 + $0xfb8] sm:$0xff] }
 0x66b   :  { %4403 = vmatprep.mubr.f32.mxu0 %v10204_v25  ;;  %11984 = vmatprep.mubr.f32.mxu1 %v12910_v41  ;;  %v10217_v25 = vld [vmem:[%s22327_s5 + $0xfa0] sm:$0xff]  ;;  %v12925_v41 = vld [vmem:[%s22326_s0 + $0xa8] sm:$0xff] }
 0x66e   :  { %4404 = vmatmul.mubr.f32.gmra.mxu0 %v10203_v61  ;;  %11985 = vmatmul.mubr.f32.gmra.mxu1 %v12911_v52  ;;  %v12926_v61 = vld [vmem:[%s22326_s0 + $0xb0] sm:$0xff]  ;;  %v10222_v52 = vld [vmem:[%s22327_s5 + $0xfc8] sm:$0xff] }
 0x66f   :  { %4408 = vmatprep.mubr.f32.mxu0 %v10206_v14  ;;  %11987 = vmatprep.mubr.f32.mxu1 %v12912_v28  ;;  %v10219_v14 = vld [vmem:[%s22327_s5 + $0xfb0] sm:$0xff]  ;;  %v12927_v28 = vld [vmem:[%s22326_s0 + $0xb8] sm:$0xff] }
 0x672   :  { %4409 = vmatmul.mubr.f32.gmra.mxu0 %v10205_v55  ;;  %11988 = vmatmul.mubr.f32.gmra.mxu1 %v12913_v35  ;;  %v12928_v55 = vld [vmem:[%s22326_s0 + $0xc0] sm:$0xff]  ;;  %v10224_v35 = vld [vmem:[%s22327_s5 + $0xfd8] sm:$0xff] }
 0x673   :  { %4413 = vmatprep.mubr.f32.mxu0 %v10208_v60  ;;  %11990 = vmatprep.mubr.f32.mxu1 %v12914_v32  ;;  %v10221_v60 = vld [vmem:[%s22327_s5 + $0xfc0] sm:$0xff]  ;;  %v12929_v32 = vld [vmem:[%s22326_s0 + $0xc8] sm:$0xff] }
 0x676   :  { %4414 = vmatmul.mubr.f32.gmra.mxu0 %v10207_v42  ;;  %11991 = vmatmul.mubr.f32.gmra.mxu1 %v12915_v38  ;;  %v12930_v42 = vld [vmem:[%s22326_s0 + $0xd0] sm:$0xff]  ;;  %v10226_v38 = vld [vmem:[%s22327_s5 + $0xfe8] sm:$0xff] }
 0x677   :  { %4418 = vmatprep.mubr.f32.mxu0 %v10210_v8  ;;  %11993 = vmatprep.mubr.f32.mxu1 %v12916_v63  ;;  %v10223_v8 = vld [vmem:[%s22327_s5 + $0xfd0] sm:$0xff]  ;;  %v12931_v63 = vld [vmem:[%s22326_s0 + $0xd8] sm:$0xff] }
 0x67a   :  { %4419 = vmatmul.mubr.f32.gmra.mxu0 %v10209_v16  ;;  %11994 = vmatmul.mubr.f32.gmra.mxu1 %v12917_v45  ;;  %v12932_v16 = vld [vmem:[%s22326_s0 + $0xe0] sm:$0xff]  ;;  %v10228_v45 = vld [vmem:[%s22327_s5 + $0xff8] sm:$0xff] }
 0x67b   :  { %4423 = vmatprep.mubr.f32.mxu0 %v10212_v27  ;;  %11996 = vmatprep.mubr.f32.mxu1 %v12918_v23  ;;  %v10225_v27 = vld [vmem:[%s22327_s5 + $0xfe0] sm:$0xff]  ;;  %v12933_v23 = vld [vmem:[%s22326_s0 + $0xe8] sm:$0xff] }
 0x67e   :  { %4424 = vmatmul.mubr.f32.gmra.mxu0 %v10211_v17  ;;  %11997 = vmatmul.mubr.f32.gmra.mxu1 %v12919_v1  ;;  %v12934_v17 = vld [vmem:[%s22326_s0 + $0xf0] sm:$0xff]  ;;  %v12935_v1 = vld [vmem:[%s22326_s0 + $0xf8] sm:$0xff] }
 0x67f   :  { %4428 = vmatprep.mubr.f32.mxu0 %v10214_v48  ;;  %11999 = vmatprep.mubr.f32.mxu1 %v12920_v22  ;;  %v10227_v48 = vld [vmem:[%s22327_s5 + $0xff0] sm:$0xff] }
 0x682   :  { %4429 = vmatmul.mubr.f32.gmra.mxu0 %v10213_v5  ;;  %12000 = vmatmul.mubr.f32.gmra.mxu1 %v12921_v21 }
 0x683   :  { %4433 = vmatprep.mubr.f32.mxu0 %v10216_v58  ;;  %12002 = vmatprep.mubr.f32.mxu1 %v12922_v44 }
 0x686   :  { %4434 = vmatmul.mubr.f32.gmra.mxu0 %v10215_v46  ;;  %12003 = vmatmul.mubr.f32.gmra.mxu1 %v12923_v51 }
 0x687   :  { %4438 = vmatprep.mubr.f32.mxu0 %v10218_v57  ;;  %12005 = vmatprep.mubr.f32.mxu1 %v12924_v7 }
 0x68a   :  { %4439 = vmatmul.mubr.f32.gmra.mxu0 %v10217_v25  ;;  %12006 = vmatmul.mubr.f32.gmra.mxu1 %v12925_v41 }
 0x68b   :  { %4443 = vmatprep.mubr.f32.mxu0 %v10220_v20  ;;  %12008 = vmatprep.mubr.f32.mxu1 %v12926_v61 }
 0x68e   :  { %4444 = vmatmul.mubr.f32.gmra.mxu0 %v10219_v14  ;;  %12009 = vmatmul.mubr.f32.gmra.mxu1 %v12927_v28 }
 0x68f   :  { %4448 = vmatprep.mubr.f32.mxu0 %v10222_v52  ;;  %12011 = vmatprep.mubr.f32.mxu1 %v12928_v55 }
 0x692   :  { %4449 = vmatmul.mubr.f32.gmra.mxu0 %v10221_v60  ;;  %12012 = vmatmul.mubr.f32.gmra.mxu1 %v12929_v32 }
 0x693   :  { %4453 = vmatprep.mubr.f32.mxu0 %v10224_v35  ;;  %12014 = vmatprep.mubr.f32.mxu1 %v12930_v42 }
 0x696   :  { %4454 = vmatmul.mubr.f32.gmra.mxu0 %v10223_v8  ;;  %12015 = vmatmul.mubr.f32.gmra.mxu1 %v12931_v63 }
 0x697   :  { %4458 = vmatprep.mubr.f32.mxu0 %v10226_v38  ;;  %12017 = vmatprep.mubr.f32.mxu1 %v12932_v16 }
 0x69a   :  { %4459 = vmatmul.mubr.f32.gmra.mxu0 %v10225_v27  ;;  %12018 = vmatmul.mubr.f32.gmra.mxu1 %v12933_v23 }
 0x69b   :  { %4463 = vmatprep.mubr.f32.mxu0 %v10228_v45  ;;  %12020 = vmatprep.mubr.f32.mxu1 %v12934_v17 }
 0x69e   :  { %4464 = vmatmul.mubr.f32.gmra.mxu0 %v10227_v48  ;;  %12021 = vmatmul.mubr.f32.gmra.mxu1 %v12935_v1 }
 0x6a2   :  { %v3746_v22 = vpop.f32.mrf.mxu1 }
 0x6a3   :  { %v3905_v5 = vadd.f32 %v3746_v22, %v16865_v47 }
 0x6a4   :  { %v3748_v58 = vpop.f32.mrf.mxu1 }
 0x6a6   :  { %v3751_v21 = vpop.f32.mrf.mxu1 }
 0x6a7   :  { %v3906_v44 = vadd.f32 %v3751_v21, %v16871_v54 }
 0x6a8   :  { %v3753_v46 = vpop.f32.mrf.mxu1 }
 0x6aa   :  { %v3756_v57 = vpop.f32.mrf.mxu1 }
 0x6ab   :  { %v3907_v51 = vadd.f32 %v3756_v57, %v16877_v34 }
 0x6ac   :  { %v3758_v7 = vpop.f32.mrf.mxu1 }
 0x6ae   :  { %v3761_v25 = vpop.f32.mrf.mxu1 }
 0x6af   :  { %v3908_v20 = vadd.f32 %v3761_v25, %v16883_v6 }
 0x6b0   :  { %v3763_v41 = vpop.f32.mrf.mxu1 }
 0x6b2   :  { %v3766_v61 = vpop.f32.mrf.mxu1 }
 0x6b3   :  { %v3909_v14 = vadd.f32 %v3766_v61, %v16889_v39 }
 0x6b4   :  { %v3768_v52 = vpop.f32.mrf.mxu1 }
 0x6b6   :  { %v3771_v28 = vpop.f32.mrf.mxu1 }
 0x6b7   :  { %v17698_v47 = vadd.f32 %v3771_v28, %v16895_v59 }
 0x6b8   :  { %v3773_v55 = vpop.f32.mrf.mxu1 }
 0x6ba   :  { %v3776_v60 = vpop.f32.mrf.mxu1 }
 0x6bb   :  { %v17701_v54 = vadd.f32 %v3776_v60, %v16901_v30 }
 0x6bc   :  { %v3778_v35 = vpop.f32.mrf.mxu1 }
 0x6be   :  { %v3781_v34 = vpop.f32.mrf.mxu1 }
 0x6bf   :  { %v17704_v32 = vadd.f32 %v3781_v34, %v16910_v31 }
 0x6c0   :  { %v3783_v6 = vpop.f32.mrf.mxu1 }
 0x6c2   :  { %v3786_v42 = vpop.f32.mrf.mxu1 }
 0x6c3   :  { %v17707_v8 = vadd.f32 %v3786_v42, %v16916_v50 }
 0x6c4   :  { %v3788_v39 = vpop.f32.mrf.mxu1 }
 0x6c6   :  { %v3791_v38 = vpop.f32.mrf.mxu1 }
 0x6c7   :  { %v17710_v59 = vadd.f32 %v3791_v38, %v16922_v62 }
 0x6c8   :  { %v3793_v63 = vpop.f32.mrf.mxu1 }
 0x6ca   :  { %v3796_v16 = vpop.f32.mrf.mxu1 }
 0x6cb   :  { %v17713_v30 = vadd.f32 %v3796_v16, %v16928_v43 }
 0x6cc   :  { %v3798_v27 = vpop.f32.mrf.mxu1 }
 0x6ce   :  { %v3801_v45 = vpop.f32.mrf.mxu1 }
 0x6cf   :  { %v17716_v31 = vadd.f32 %v3801_v45, %v16934_v9 }
 0x6d0   :  { %v3803_v23 = vpop.f32.mrf.mxu1 }
 0x6d2   :  { %v3806_v17 = vpop.f32.mrf.mxu1 }
 0x6d3   :  { %v17719_v50 = vadd.f32 %v3806_v17, %v16940_v36 }
 0x6d4   :  { %v3808_v48 = vpop.f32.mrf.mxu1 }
 0x6d6   :  { %v3811_v1 = vpop.f32.mrf.mxu1 }
 0x6d7   :  { %v17722_v62 = vadd.f32 %v3811_v1, %v16946_v49 }
 0x6d8   :  { %v3813_v22 = vpop.f32.mrf.mxu1 }
 0x6da   :  { %v3816_v58 = vpop.f32.mrf.mxu1 }
 0x6db   :  { %v17725_v43 = vadd.f32 %v3816_v58, %v16952_v13 }
 0x6dc   :  { %v3818_v21 = vpop.f32.mrf.mxu1 }
 0x6de   :  { %v3821_v46 = vpop.f32.mrf.mxu1 }
 0x6df   :  { %v17728_v9 = vadd.f32 %v3821_v46, %v16958_v40 }
 0x6e0   :  { %v3823_v57 = vpop.f32.mrf.mxu1 }
 0x6e2   :  { %v3826_v7 = vpop.f32.mrf.mxu1  ;;  %v4310_v25 = vpop.f32.mrf.mxu0 }
 0x6e3   :  { %v17731_v36 = vadd.f32 %v3826_v7, %v16963_v33  ;;  %v17733_v41 = vadd.f32 %v4310_v25, %v3905_v5 }
 0x6e4   :  { %v3828_v49 = vpop.f32.mrf.mxu1  ;;  %v4312_v61 = vpop.f32.mrf.mxu0 }
 0x6e6   :  { %v3831_v52 = vpop.f32.mrf.mxu1  ;;  %v4315_v28 = vpop.f32.mrf.mxu0 }
 0x6e7   :  { %v17736_v13 = vadd.f32 %v3831_v52, %v16970_v19  ;;  %v17738_v55 = vadd.f32 %v4315_v28, %v3906_v44 }
 0x6e8   :  { %v3833_v60 = vpop.f32.mrf.mxu1  ;;  %v4317_v40 = vpop.f32.mrf.mxu0 }
 0x6ea   :  { %v3836_v35 = vpop.f32.mrf.mxu1  ;;  %v4320_v34 = vpop.f32.mrf.mxu0 }
 0x6eb   :  { %v17741_v6 = vadd.f32 %v3836_v35, %v16977_v11  ;;  %v17743_v33 = vadd.f32 %v4320_v34, %v3907_v51 }
 0x6ec   :  { %v3838_v5 = vpop.f32.mrf.mxu1  ;;  %v4322_v42 = vpop.f32.mrf.mxu0 }
 0x6ee   :  { %v3841_v39 = vpop.f32.mrf.mxu1  ;;  %v4325_v38 = vpop.f32.mrf.mxu0 }
 0x6ef   :  { %v17746_v63 = vadd.f32 %v3841_v39, %v16982_v3  ;;  %v17748_v19 = vadd.f32 %v4325_v38, %v3908_v20 }
 0x6f0   :  { %v3843_v44 = vpop.f32.mrf.mxu1  ;;  %v4327_v16 = vpop.f32.mrf.mxu0 }
 0x6f2   :  { %v3846_v27 = vpop.f32.mrf.mxu1  ;;  %v4330_v45 = vpop.f32.mrf.mxu0 }
 0x6f3   :  { %v17751_v23 = vadd.f32 %v3846_v27, %v16985_v53  ;;  %v17753_v11 = vadd.f32 %v4330_v45, %v3909_v14 }
 0x6f4   :  { %v3848_v51 = vpop.f32.mrf.mxu1  ;;  %v4332_v17 = vpop.f32.mrf.mxu0 }
 0x6f6   :  { %v3851_v48 = vpop.f32.mrf.mxu1  ;;  %v4335_v1 = vpop.f32.mrf.mxu0 }
 0x6f7   :  { %v17756_v22 = vadd.f32 %v3851_v48, %v16988_v18  ;;  %v17759_v3 = vadd.f32 %v4335_v1, %v17698_v47  ;;  %v10246_v18 = vld [vmem:[%s22327_s5 + $0x1008] sm:$0xff] }
 0x6f8   :  { %v3853_v20 = vpop.f32.mrf.mxu1  ;;  %v4337_v58 = vpop.f32.mrf.mxu0  ;;  %4872 = vmatprep.mubr.f32.mxu1 %v10246_v18 }
 0x6fa   :  { %v3856_v21 = vpop.f32.mrf.mxu1  ;;  %v4340_v46 = vpop.f32.mrf.mxu0 }
 0x6fb   :  { %v17762_v57 = vadd.f32 %v3856_v21, %v16991_v0  ;;  %v17765_v53 = vadd.f32 %v4340_v46, %v17701_v54 }
 0x6fc   :  { %v3858_v14 = vpop.f32.mrf.mxu1  ;;  %v4342_v7 = vpop.f32.mrf.mxu0 }
 0x6fe   :  { %v3861_v25 = vpop.f32.mrf.mxu1  ;;  %v4345_v47 = vpop.f32.mrf.mxu0 }
 0x6ff   :  { %v17771_v49 = vadd.f32 %v3861_v25, %v16997_v2  ;;  %v17774_v61 = vadd.f32 %v4345_v47, %v17704_v32 }
 0x700   :  { %v3863_v0 = vpop.f32.mrf.mxu1  ;;  %v4347_v52 = vpop.f32.mrf.mxu0 }
 0x702   :  { %v3866_v28 = vpop.f32.mrf.mxu1  ;;  %v4350_v54 = vpop.f32.mrf.mxu0 }
 0x703   :  { %v17777_v60 = vadd.f32 %v3866_v28, %v17004_v10  ;;  %v17780_v40 = vadd.f32 %v4350_v54, %v17707_v8 }
 0x704   :  { %v3868_v35 = vpop.f32.mrf.mxu1  ;;  %v4352_v34 = vpop.f32.mrf.mxu0 }
 0x706   :  { %v3871_v5 = vpop.f32.mrf.mxu1  ;;  %v4355_v42 = vpop.f32.mrf.mxu0 }
 0x707   :  { %v17783_v2 = vadd.f32 %v3871_v5, %v17013_v24  ;;  %v17786_v32 = vadd.f32 %v4355_v42, %v17710_v59 }
 0x708   :  { %v3873_v39 = vpop.f32.mrf.mxu1  ;;  %v4357_v38 = vpop.f32.mrf.mxu0 }
 0x70a   :  { %v3876_v44 = vpop.f32.mrf.mxu1  ;;  %v4360_v16 = vpop.f32.mrf.mxu0 }
 0x70b   :  { %v17789_v10 = vadd.f32 %v3876_v44, %v17022_v4  ;;  %v17792_v8 = vadd.f32 %v4360_v16, %v17713_v30 }
 0x70c   :  { %v3878_v27 = vpop.f32.mrf.mxu1  ;;  %v4362_v45 = vpop.f32.mrf.mxu0 }
 0x70e   :  { %v3881_v51 = vpop.f32.mrf.mxu1  ;;  %v4365_v17 = vpop.f32.mrf.mxu0 }
 0x70f   :  { %v17795_v24 = vadd.f32 %v3881_v51, %v17031_v56  ;;  %v17798_v59 = vadd.f32 %v4365_v17, %v17716_v31 }
 0x710   :  { %v3883_v48 = vpop.f32.mrf.mxu1  ;;  %v4367_v1 = vpop.f32.mrf.mxu0 }
 0x712   :  { %v3886_v20 = vpop.f32.mrf.mxu1  ;;  %v4370_v58 = vpop.f32.mrf.mxu0 }
 0x713   :  { %v17801_v4 = vadd.f32 %v3886_v20, %v17036_v29  ;;  %v17804_v30 = vadd.f32 %v4370_v58, %v17719_v50 }
 0x714   :  { %v3888_v21 = vpop.f32.mrf.mxu1  ;;  %v4372_v46 = vpop.f32.mrf.mxu0 }
 0x716   :  { %v3891_v14 = vpop.f32.mrf.mxu1  ;;  %v4375_v7 = vpop.f32.mrf.mxu0 }
 0x717   :  { %v17807_v56 = vadd.f32 %v3891_v14, %v17043_v26  ;;  %v17810_v31 = vadd.f32 %v4375_v7, %v17722_v62 }
 0x718   :  { %v3893_v18 = vpop.f32.mrf.mxu1  ;;  %v4377_v25 = vpop.f32.mrf.mxu0 }
 0x71a   :  { %v3896_v47 = vpop.f32.mrf.mxu1  ;;  %v4380_v0 = vpop.f32.mrf.mxu0 }
 0x71b   :  { %v17813_v29 = vadd.f32 %v3896_v47, %v17050_v37  ;;  %v17816_v50 = vadd.f32 %v4380_v0, %v17725_v43 }
 0x71c   :  { %v3898_v52 = vpop.f32.mrf.mxu1  ;;  %v4382_v28 = vpop.f32.mrf.mxu0 }
 0x71e   :  { %v3901_v54 = vpop.f32.mrf.mxu1  ;;  %v4385_v35 = vpop.f32.mrf.mxu0 }
 0x71f   :  { %v17819_v26 = vadd.f32 %v3901_v54, %v17057_v15  ;;  %v17822_v62 = vadd.f32 %v4385_v35, %v17728_v9 }
 0x720   :  { %v3903_v34 = vpop.f32.mrf.mxu1  ;;  %v4387_v5 = vpop.f32.mrf.mxu0 }
 0x722   :  { %v4390_v42 = vpop.f32.mrf.mxu0  ;;  %v17824_v39 = vpop.f32.mrf.mxu1 }
 0x723   :  { %v17827_v37 = vadd.f32 %v4390_v42, %v17731_v36 }
 0x724   :  { %v4392_v43 = vpop.f32.mrf.mxu0  ;;  %v17829_v38 = vpop.f32.mrf.mxu1 }
 0x726   :  { %v4395_v44 = vpop.f32.mrf.mxu0  ;;  %v17831_v16 = vpop.f32.mrf.mxu1 }
 0x727   :  { %v17834_v15 = vadd.f32 %v4395_v44, %v17736_v13 }
 0x728   :  { %v4397_v27 = vpop.f32.mrf.mxu0  ;;  %v17836_v9 = vpop.f32.mrf.mxu1 }
 0x72a   :  { %v4400_v45 = vpop.f32.mrf.mxu0  ;;  %v17838_v51 = vpop.f32.mrf.mxu1 }
 0x72b   :  { %v17841_v17 = vadd.f32 %v4400_v45, %v17741_v6 }
 0x72c   :  { %v4402_v36 = vpop.f32.mrf.mxu0  ;;  %v17843_v48 = vpop.f32.mrf.mxu1 }
 0x72e   :  { %v4405_v1 = vpop.f32.mrf.mxu0  ;;  %v11986_v20 = vpop.f32.mrf.mxu1 }
 0x72f   :  { %v17846_v58 = vadd.f32 %v4405_v1, %v17746_v63 }
 0x730   :  { %v4407_v21 = vpop.f32.mrf.mxu0  ;;  %v4614_v13 = vpop.f32.mrf.mxu1 }
 0x732   :  { %v4410_v46 = vpop.f32.mrf.mxu0  ;;  %v11989_v14 = vpop.f32.mrf.mxu1 }
 0x733   :  { %v17849_v7 = vadd.f32 %v4410_v46, %v17751_v23 }
 0x734   :  { %v4412_v18 = vpop.f32.mrf.mxu0  ;;  %v4624_v25 = vpop.f32.mrf.mxu1 }
 0x736   :  { %v4415_v47 = vpop.f32.mrf.mxu0  ;;  %v11992_v6 = vpop.f32.mrf.mxu1 }
 0x737   :  { %v17852_v0 = vadd.f32 %v4415_v47, %v17756_v22 }
 0x738   :  { %v4417_v52 = vpop.f32.mrf.mxu0  ;;  %v4634_v28 = vpop.f32.mrf.mxu1 }
 0x73a   :  { %v4420_v54 = vpop.f32.mrf.mxu0  ;;  %v11995_v35 = vpop.f32.mrf.mxu1 }
 0x73b   :  { %v17855_v63 = vadd.f32 %v4420_v54, %v17762_v57 }
 0x73c   :  { %v4422_v34 = vpop.f32.mrf.mxu0  ;;  %v4644_v5 = vpop.f32.mrf.mxu1 }
 0x73e   :  { %v4425_v42 = vpop.f32.mrf.mxu0  ;;  %v11998_v43 = vpop.f32.mrf.mxu1 }
 0x73f   :  { %v17858_v23 = vadd.f32 %v4425_v42, %v17771_v49  ;;  %4809 = vmatpush1.msra.mxu1 %v11998_v43 }
 0x740   :  { %v4427_v44 = vpop.f32.mrf.mxu0  ;;  %v4654_v27 = vpop.f32.mrf.mxu1  ;;  %4810 = vmatprep.subr.mxu1 %v22461_v12 }
 0x741   :  { %4811 = vmatpush1.msra.mxu1 %v4654_v27 }
 0x742   :  { %v4430_v22 = vpop.f32.mrf.mxu0  ;;  %v17861_v45 = vpop.f32.mrf.mxu1  ;;  %4812 = vmatprep.subr.mxu1 %v22461_v12 }
 0x743   :  { %v17865_v57 = vadd.f32 %v4430_v22, %v17777_v60  ;;  %4813 = vmatpush1.msra.mxu1 %v11995_v35 }
 0x744   :  { %v4432_v36 = vpop.f32.mrf.mxu0  ;;  %v17867_v1 = vpop.f32.mrf.mxu1  ;;  %4814 = vmatprep.subr.mxu1 %v22461_v12 }
 0x745   :  { %4815 = vmatpush1.msra.mxu1 %v4644_v5 }
 0x746   :  { %v4435_v49 = vpop.f32.mrf.mxu0  ;;  %v17870_v21 = vpop.f32.mrf.mxu1  ;;  %4816 = vmatprep.subr.mxu1 %v22461_v12 }
 0x747   :  { %v17874_v46 = vadd.f32 %v4435_v49, %v17783_v2  ;;  %4817 = vmatpush1.msra.mxu1 %v11992_v6 }
 0x748   :  { %v4437_v18 = vpop.f32.mrf.mxu0  ;;  %v17876_v47 = vpop.f32.mrf.mxu1  ;;  %4818 = vmatprep.subr.mxu1 %v22461_v12 }
 0x749   :  { %4819 = vmatpush1.msra.mxu1 %v4634_v28 }
 0x74a   :  { %v4440_v60 = vpop.f32.mrf.mxu0  ;;  %v17879_v52 = vpop.f32.mrf.mxu1  ;;  %4820 = vmatprep.subr.mxu1 %v22461_v12 }
 0x74b   :  { %v17883_v54 = vadd.f32 %v4440_v60, %v17789_v10  ;;  %4821 = vmatpush1.msra.mxu1 %v11989_v14  ;;  %v5148_v60 = vld [vmem:[%s22328_s3 + $0x60] sm:$0xff] }
 0x74c   :  { %v4442_v35 = vpop.f32.mrf.mxu0  ;;  %v17885_v34 = vpop.f32.mrf.mxu1  ;;  %4822 = vmatprep.subr.mxu1 %v22461_v12 }
 0x74d   :  { %4823 = vmatpush1.msra.mxu1 %v4624_v25  ;;  %v10249_v35 = vld [vmem:[%s22327_s5 + $0x1020] sm:$0xff] }
 0x74e   :  { %v4445_v2 = vpop.f32.mrf.mxu0  ;;  %v12010_v6 = vpop.f32.mrf.mxu1  ;;  %4824 = vmatprep.subr.mxu1 %v22461_v12 }
 0x74f   :  { %v17890_v28 = vadd.f32 %v4445_v2, %v17795_v24  ;;  %4825 = vmatpush1.msra.mxu1 %v11986_v20  ;;  %v10252_v2 = vld [vmem:[%s22327_s5 + $0x1038] sm:$0xff] }
 0x750   :  { %v4447_v5 = vpop.f32.mrf.mxu0  ;;  %v4694_v42 = vpop.f32.mrf.mxu1  ;;  %4826 = vmatprep.subr.mxu1 %v22461_v12 }
 0x751   :  { %4827 = vmatpush1.msra.mxu1 %v4614_v13  ;;  %v10251_v5 = vld [vmem:[%s22327_s5 + $0x1030] sm:$0xff] }
 0x752   :  { %v4450_v10 = vpop.f32.mrf.mxu0  ;;  %v12013_v14 = vpop.f32.mrf.mxu1  ;;  %4828 = vmatprep.subr.mxu1 %v22461_v12 }
 0x753   :  { %v17895_v43 = vadd.f32 %v4450_v10, %v17801_v4  ;;  %4829 = vmatpush1.msra.mxu1 %v17838_v51  ;;  %v10254_v10 = vld [vmem:[%s22327_s5 + $0x1048] sm:$0xff] }
 0x754   :  { %v4452_v25 = vpop.f32.mrf.mxu0  ;;  %v4704_v44 = vpop.f32.mrf.mxu1  ;;  %4830 = vmatprep.subr.mxu1 %v22461_v12 }
 0x755   :  { %4831 = vmatpush1.msra.mxu1 %v17843_v48  ;;  %v10253_v25 = vld [vmem:[%s22327_s5 + $0x1040] sm:$0xff] }
 0x756   :  { %v4455_v24 = vpop.f32.mrf.mxu0  ;;  %v12016_v20 = vpop.f32.mrf.mxu1  ;;  %4832 = vmatprep.subr.mxu1 %v22461_v12 }
 0x757   :  { %v17902_v13 = vadd.f32 %v4455_v24, %v17807_v56  ;;  %4833 = vmatpush1.msra.mxu1 %v17831_v16  ;;  %v10256_v24 = vld [vmem:[%s22327_s5 + $0x1058] sm:$0xff] }
 0x758   :  { %v4457_v27 = vpop.f32.mrf.mxu0  ;;  %v4714_v4 = vpop.f32.mrf.mxu1  ;;  %4834 = vmatprep.subr.mxu1 %v22461_v12 }
 0x759   :  { %4835 = vmatpush1.msra.mxu1 %v17836_v9  ;;  %v10255_v27 = vld [vmem:[%s22327_s5 + $0x1050] sm:$0xff] }
 0x75a   :  { %v4460_v51 = vpop.f32.mrf.mxu0  ;;  %v12019_v22 = vpop.f32.mrf.mxu1  ;;  %4836 = vmatprep.subr.mxu1 %v22461_v12 }
 0x75b   :  { %v17909_v48 = vadd.f32 %v4460_v51, %v17813_v29  ;;  %4837 = vmatpush1.msra.mxu1 %v17824_v39  ;;  %v5151_v39 = vld [vmem:[%s22328_s3 + $0x78] sm:$0xff]  ;;  %v10257_v51 = vld [vmem:[%s22327_s5 + $0x1060] sm:$0xff] }
 0x75c   :  { %v4462_v36 = vpop.f32.mrf.mxu0  ;;  %v4724_v56 = vpop.f32.mrf.mxu1  ;;  %4838 = vmatprep.subr.mxu1 %v22461_v12  ;;  %12023 = vmatprep.subr.mxu0 %v5151_v39 }
 0x75d   :  { %4839 = vmatpush1.msra.mxu1 %v17829_v38  ;;  %v5150_v38 = vld [vmem:[%s22328_s3 + $0x70] sm:$0xff]  ;;  %12024 = vmatpush3.msra.mxu0 %v5151_v39  ;;  %v10268_v39 = vld [vmem:[%s22327_s5 + $0x10b8] sm:$0xff] }
 0x75e   :  { %v4465_v16 = vpop.f32.mrf.mxu0  ;;  %v12022_v49 = vpop.f32.mrf.mxu1  ;;  %4840 = vmatprep.subr.mxu1 %v22461_v12  ;;  %12025 = vmatprep.subr.mxu0 %v5150_v38  ;;  %v10259_v36 = vld [vmem:[%s22327_s5 + $0x1070] sm:$0xff] }
 0x75f   :  { %v17916_v9 = vadd.f32 %v4465_v16, %v17819_v26  ;;  %4841 = vmatpush2.msra.mxu1 %v12022_v49  ;;  %v10245_v26 = vld [vmem:[%s22327_s5 + $0x1000] sm:$0xff]  ;;  %12026 = vmatpush3.msra.mxu0 %v5150_v38  ;;  %v10264_v49 = vld [vmem:[%s22327_s5 + $0x1098] sm:$0xff]  ;;  %v10267_v38 = vld [vmem:[%s22327_s5 + $0x10b0] sm:$0xff] }
 0x760   :  { %v4734_v18 = vpop.f32.mrf.mxu1  ;;  %4842 = vmatprep.subr.mxu1 %v22461_v12  ;;  %v4467_v29 = vpop.f32.mrf.mxu0  ;;  %v10261_v16 = vld [vmem:[%s22327_s5 + $0x1080] sm:$0xff] }
 0x761   :  { %4843 = vmatpush2.msra.mxu1 %v4734_v18  ;;  %v10263_v18 = vld [vmem:[%s22327_s5 + $0x1090] sm:$0xff]  ;;  %v10266_v29 = vld [vmem:[%s22327_s5 + $0x10a8] sm:$0xff] }
 0x762   :  { %4844 = vmatprep.subr.mxu1 %v22461_v12 }
 0x763   :  { %4845 = vmatpush2.msra.mxu1 %v12019_v22  ;;  %v10260_v22 = vld [vmem:[%s22327_s5 + $0x1078] sm:$0xff] }
 0x764   :  { %4846 = vmatprep.subr.mxu1 %v22461_v12 }
 0x765   :  { %4847 = vmatpush2.msra.mxu1 %v4724_v56  ;;  %v10262_v56 = vld [vmem:[%s22327_s5 + $0x1088] sm:$0xff] }
 0x766   :  { %4848 = vmatprep.subr.mxu1 %v22461_v12 }
 0x767   :  { %4849 = vmatpush2.msra.mxu1 %v12016_v20  ;;  %v5141_v20 = vld [vmem:[%s22328_s3 + $0x28] sm:$0xff] }
 0x768   :  { %4850 = vmatprep.subr.mxu1 %v22461_v12 }
 0x769   :  { %4851 = vmatpush2.msra.mxu1 %v4714_v4  ;;  %v10258_v4 = vld [vmem:[%s22327_s5 + $0x1068] sm:$0xff] }
 0x76a   :  { %4852 = vmatprep.subr.mxu1 %v22461_v12 }
 0x76b   :  { %4853 = vmatpush2.msra.mxu1 %v12013_v14  ;;  %v5143_v14 = vld [vmem:[%s22328_s3 + $0x38] sm:$0xff] }
 0x76c   :  { %4854 = vmatprep.subr.mxu1 %v22461_v12 }
 0x76d   :  { %4855 = vmatpush2.msra.mxu1 %v4704_v44  ;;  %v5142_v44 = vld [vmem:[%s22328_s3 + $0x30] sm:$0xff] }
 0x76e   :  { %4856 = vmatprep.subr.mxu1 %v22461_v12 }
 0x76f   :  { %4857 = vmatpush2.msra.mxu1 %v12010_v6  ;;  %v5145_v6 = vld [vmem:[%s22328_s3 + $0x48] sm:$0xff] }
 0x770   :  { %4858 = vmatprep.subr.mxu1 %v22461_v12 }
 0x771   :  { %4859 = vmatpush2.msra.mxu1 %v4694_v42  ;;  %v5144_v42 = vld [vmem:[%s22328_s3 + $0x40] sm:$0xff] }
 0x772   :  { %4860 = vmatprep.subr.mxu1 %v22461_v12 }
 0x773   :  { %4861 = vmatpush2.msra.mxu1 %v17879_v52  ;;  %v5147_v52 = vld [vmem:[%s22328_s3 + $0x58] sm:$0xff] }
 0x774   :  { %4862 = vmatprep.subr.mxu1 %v22461_v12 }
 0x775   :  { %4863 = vmatpush2.msra.mxu1 %v17885_v34  ;;  %v5146_v34 = vld [vmem:[%s22328_s3 + $0x50] sm:$0xff] }
 0x776   :  { %4864 = vmatprep.subr.mxu1 %v22461_v12 }
 0x777   :  { %4865 = vmatpush2.msra.mxu1 %v17870_v21  ;;  %v10248_v21 = vld [vmem:[%s22327_s5 + $0x1018] sm:$0xff] }
 0x778   :  { %4866 = vmatprep.subr.mxu1 %v22461_v12 }
 0x779   :  { %4867 = vmatpush2.msra.mxu1 %v17876_v47  ;;  %v10247_v47 = vld [vmem:[%s22327_s5 + $0x1010] sm:$0xff] }
 0x77a   :  { %4868 = vmatprep.subr.mxu1 %v22461_v12 }
 0x77b   :  { %4869 = vmatpush2.msra.mxu1 %v17861_v45  ;;  %v5149_v45 = vld [vmem:[%s22328_s3 + $0x68] sm:$0xff] }
 0x77c   :  { %4870 = vmatprep.subr.mxu1 %v22461_v12  ;;  %12027 = vmatprep.subr.mxu0 %v5149_v45 }
 0x77d   :  { %4871 = vmatpush2.msra.mxu1 %v17867_v1  ;;  %v10250_v1 = vld [vmem:[%s22327_s5 + $0x1028] sm:$0xff]  ;;  %12028 = vmatpush3.msra.mxu0 %v5149_v45  ;;  %v10269_v45 = vld [vmem:[%s22327_s5 + $0x10c0] sm:$0xff] }
 0x77e   :  { %4873 = vmatmul.mubr.f32.vlgmr.msra.gmra.mxu1 %v10245_v26  ;;  %5619 = vmatprep.subr.mxu1 %v22461_v12  ;;  %v10265_v26 = vld [vmem:[%s22327_s5 + $0x10a0] sm:$0xff] }
 0x77f   :  { %4877 = vmatprep.mubr.f32.mxu1 %v10248_v21  ;;  %12029 = vmatprep.subr.mxu0 %v5148_v60  ;;  %v10270_v21 = vld [vmem:[%s22327_s5 + $0x10c8] sm:$0xff] }
 0x780   :  { %12030 = vmatpush3.msra.mxu0 %v5148_v60  ;;  %v10271_v60 = vld [vmem:[%s22327_s5 + $0x10d0] sm:$0xff] }
 0x781   :  { %12031 = vmatprep.subr.mxu0 %v5147_v52 }
 0x782   :  { %4878 = vmatmul.mubr.f32.gmra.mxu1 %v10247_v47  ;;  %12032 = vmatpush3.msra.mxu0 %v5147_v52  ;;  %v10272_v47 = vld [vmem:[%s22327_s5 + $0x10d8] sm:$0xff]  ;;  %v10273_v52 = vld [vmem:[%s22327_s5 + $0x10e0] sm:$0xff] }
 0x783   :  { %4882 = vmatprep.mubr.f32.mxu1 %v10250_v1  ;;  %12033 = vmatprep.subr.mxu0 %v5146_v34  ;;  %v10274_v1 = vld [vmem:[%s22327_s5 + $0x10e8] sm:$0xff] }
 0x784   :  { %12034 = vmatpush3.msra.mxu0 %v5146_v34  ;;  %v10275_v34 = vld [vmem:[%s22327_s5 + $0x10f0] sm:$0xff] }
 0x785   :  { %12035 = vmatprep.subr.mxu0 %v5145_v6 }
 0x786   :  { %4883 = vmatmul.mubr.f32.gmra.mxu1 %v10249_v35  ;;  %12036 = vmatpush3.msra.mxu0 %v5145_v6  ;;  %v10276_v35 = vld [vmem:[%s22327_s5 + $0x10f8] sm:$0xff]  ;;  %v10277_v6 = vld [vmem:[%s22327_s5 + $0x1100] sm:$0xff] }
 0x787   :  { %4887 = vmatprep.mubr.f32.mxu1 %v10252_v2  ;;  %12037 = vmatprep.subr.mxu0 %v5144_v42  ;;  %v10278_v2 = vld [vmem:[%s22327_s5 + $0x1108] sm:$0xff] }
 0x788   :  { %12038 = vmatpush3.msra.mxu0 %v5144_v42  ;;  %v5140_v42 = vld [vmem:[%s22328_s3 + $0x20] sm:$0xff] }
 0x789   :  { %12039 = vmatprep.subr.mxu0 %v5143_v14 }
 0x78a   :  { %4888 = vmatmul.mubr.f32.gmra.mxu1 %v10251_v5  ;;  %12040 = vmatpush3.msra.mxu0 %v5143_v14  ;;  %v10280_v5 = vld [vmem:[%s22327_s5 + $0x1118] sm:$0xff]  ;;  %v10282_v14 = vld [vmem:[%s22327_s5 + $0x1128] sm:$0xff] }
 0x78b   :  { %4892 = vmatprep.mubr.f32.mxu1 %v10254_v10  ;;  %12041 = vmatprep.subr.mxu0 %v5142_v44  ;;  %v10279_v10 = vld [vmem:[%s22327_s5 + $0x1110] sm:$0xff] }
 0x78c   :  { %12042 = vmatpush3.msra.mxu0 %v5142_v44  ;;  %v5138_v44 = vld [vmem:[%s22328_s3 + $0x10] sm:$0xff] }
 0x78d   :  { %12043 = vmatprep.subr.mxu0 %v5141_v20 }
 0x78e   :  { %4893 = vmatmul.mubr.f32.gmra.mxu1 %v10253_v25  ;;  %12044 = vmatpush3.msra.mxu0 %v5141_v20  ;;  %v5139_v25 = vld [vmem:[%s22328_s3 + $0x18] sm:$0xff] }
 0x78f   :  { %4897 = vmatprep.mubr.f32.mxu1 %v10256_v24  ;;  %12045 = vmatprep.subr.mxu0 %v5140_v42  ;;  %v10281_v24 = vld [vmem:[%s22327_s5 + $0x1120] sm:$0xff]  ;;  %v10284_v20 = vld [vmem:[%s22327_s5 + $0x1138] sm:$0xff] }
 0x790   :  { %12046 = vmatpush3.msra.mxu0 %v5140_v42  ;;  %v10305_v42 = vld [vmem:[%s22327_s5 + $0x11e0] sm:$0xff] }
 0x791   :  { %12047 = vmatprep.subr.mxu0 %v5139_v25 }
 0x792   :  { %4898 = vmatmul.mubr.f32.gmra.mxu1 %v10255_v27  ;;  %12048 = vmatpush3.msra.mxu0 %v5139_v25  ;;  %v5137_v27 = vld [vmem:[%s22328_s3 + $0x8] sm:$0xff] }
 0x793   :  { %4902 = vmatprep.mubr.f32.mxu1 %v10258_v4  ;;  %12049 = vmatprep.subr.mxu0 %v5138_v44  ;;  %v5136_v4 = vld [vmem:[%s22328_s3] sm:$0xff]  ;;  %v12936_v25 = vld [vmem:[%s22327_s5 + $0x208] sm:$0xff] }
 0x794   :  { %12050 = vmatpush3.msra.mxu0 %v5138_v44  ;;  %v10325_v44 = vld [vmem:[%s22328_s3 + $0xf8] sm:$0xff] }
 0x795   :  { %12051 = vmatprep.subr.mxu0 %v5137_v27 }
 0x796   :  { %4903 = vmatmul.mubr.f32.gmra.mxu1 %v10257_v51  ;;  %12052 = vmatpush3.msra.mxu0 %v5137_v27  ;;  %v10283_v51 = vld [vmem:[%s22327_s5 + $0x1130] sm:$0xff] }
 0x797   :  { %4907 = vmatprep.mubr.f32.mxu1 %v10260_v22  ;;  %12053 = vmatprep.subr.mxu0 %v5136_v4  ;;  %v10286_v22 = vld [vmem:[%s22327_s5 + $0x1148] sm:$0xff] }
 0x798   :  { %12054 = vmatpush3.msra.mxu0 %v5136_v4 }
 0x799   :  { %12103 = vmatprep.subr.mxu0 %v10325_v44 }
 0x79a   :  { %4908 = vmatmul.mubr.f32.gmra.mxu1 %v10259_v36  ;;  %v10285_v36 = vld [vmem:[%s22327_s5 + $0x1140] sm:$0xff] }
 0x79b   :  { %4912 = vmatprep.mubr.f32.mxu1 %v10262_v56  ;;  %v10288_v56 = vld [vmem:[%s22327_s5 + $0x1158] sm:$0xff] }
 0x79e   :  { %4913 = vmatmul.mubr.f32.gmra.mxu1 %v10261_v16  ;;  %v10287_v16 = vld [vmem:[%s22327_s5 + $0x1150] sm:$0xff] }
 0x79f   :  { %4917 = vmatprep.mubr.f32.mxu1 %v10264_v49  ;;  %v10290_v49 = vld [vmem:[%s22327_s5 + $0x1168] sm:$0xff] }
 0x7a2   :  { %4918 = vmatmul.mubr.f32.gmra.mxu1 %v10263_v18  ;;  %v10289_v18 = vld [vmem:[%s22327_s5 + $0x1160] sm:$0xff] }
 0x7a3   :  { %4922 = vmatprep.mubr.f32.mxu1 %v10266_v29  ;;  %v10292_v29 = vld [vmem:[%s22327_s5 + $0x1178] sm:$0xff] }
 0x7a6   :  { %4923 = vmatmul.mubr.f32.gmra.mxu1 %v10265_v26  ;;  %v10291_v26 = vld [vmem:[%s22327_s5 + $0x1170] sm:$0xff] }
 0x7a7   :  { %4927 = vmatprep.mubr.f32.mxu1 %v10268_v39  ;;  %v10294_v39 = vld [vmem:[%s22327_s5 + $0x1188] sm:$0xff] }
 0x7aa   :  { %4928 = vmatmul.mubr.f32.gmra.mxu1 %v10267_v38  ;;  %v10293_v38 = vld [vmem:[%s22327_s5 + $0x1180] sm:$0xff] }
 0x7ab   :  { %4932 = vmatprep.mubr.f32.mxu1 %v10270_v21  ;;  %v10296_v21 = vld [vmem:[%s22327_s5 + $0x1198] sm:$0xff] }
 0x7ae   :  { %4933 = vmatmul.mubr.f32.gmra.mxu1 %v10269_v45  ;;  %v10295_v45 = vld [vmem:[%s22327_s5 + $0x1190] sm:$0xff] }
 0x7af   :  { %4937 = vmatprep.mubr.f32.mxu1 %v10272_v47  ;;  %v10298_v47 = vld [vmem:[%s22327_s5 + $0x11a8] sm:$0xff] }
 0x7b2   :  { %4938 = vmatmul.mubr.f32.gmra.mxu1 %v10271_v60  ;;  %v10297_v60 = vld [vmem:[%s22327_s5 + $0x11a0] sm:$0xff] }
 0x7b3   :  { %4942 = vmatprep.mubr.f32.mxu1 %v10274_v1  ;;  %v10300_v1 = vld [vmem:[%s22327_s5 + $0x11b8] sm:$0xff] }
 0x7b6   :  { %4943 = vmatmul.mubr.f32.gmra.mxu1 %v10273_v52  ;;  %v10299_v52 = vld [vmem:[%s22327_s5 + $0x11b0] sm:$0xff] }
 0x7b7   :  { %4947 = vmatprep.mubr.f32.mxu1 %v10276_v35  ;;  %v10302_v35 = vld [vmem:[%s22327_s5 + $0x11c8] sm:$0xff] }
 0x7ba   :  { %4948 = vmatmul.mubr.f32.gmra.mxu1 %v10275_v34  ;;  %v10301_v34 = vld [vmem:[%s22327_s5 + $0x11c0] sm:$0xff] }
 0x7bb   :  { %4952 = vmatprep.mubr.f32.mxu1 %v10278_v2  ;;  %v10304_v2 = vld [vmem:[%s22327_s5 + $0x11d8] sm:$0xff] }
 0x7be   :  { %4953 = vmatmul.mubr.f32.gmra.mxu1 %v10277_v6  ;;  %v10303_v6 = vld [vmem:[%s22327_s5 + $0x11d0] sm:$0xff] }
 0x7bf   :  { %4957 = vmatprep.mubr.f32.mxu1 %v10280_v5  ;;  %v10306_v5 = vld [vmem:[%s22327_s5 + $0x11e8] sm:$0xff] }
 0x7c2   :  { %4958 = vmatmul.mubr.f32.gmra.mxu1 %v10279_v10  ;;  %v10308_v10 = vld [vmem:[%s22327_s5 + $0x11f8] sm:$0xff] }
 0x7c3   :  { %4962 = vmatprep.mubr.f32.mxu1 %v10282_v14  ;;  %v10307_v14 = vld [vmem:[%s22327_s5 + $0x11f0] sm:$0xff] }
 0x7c6   :  { %4963 = vmatmul.mubr.f32.gmra.mxu1 %v10281_v24 }
 0x7c7   :  { %4967 = vmatprep.mubr.f32.mxu1 %v10284_v20  ;;  %v18186_v20 = vld [vmem:[%s22329_s2] ss:$0 sm:$0xff] }
 0x7ca   :  { %4968 = vmatmul.mubr.f32.gmra.mxu1 %v10283_v51 }
 0x7cb   :  { %4972 = vmatprep.mubr.f32.mxu1 %v10286_v22 }
 0x7ce   :  { %4973 = vmatmul.mubr.f32.gmra.mxu1 %v10285_v36 }
 0x7cf   :  { %4977 = vmatprep.mubr.f32.mxu1 %v10288_v56 }
 0x7d2   :  { %4978 = vmatmul.mubr.f32.gmra.mxu1 %v10287_v16 }
 0x7d3   :  { %4982 = vmatprep.mubr.f32.mxu1 %v10290_v49 }
 0x7d6   :  { %4983 = vmatmul.mubr.f32.gmra.mxu1 %v10289_v18 }
 0x7d7   :  { %4987 = vmatprep.mubr.f32.mxu1 %v10292_v29 }
 0x7da   :  { %4988 = vmatmul.mubr.f32.gmra.mxu1 %v10291_v26 }
 0x7db   :  { %4992 = vmatprep.mubr.f32.mxu1 %v10294_v39 }
 0x7de   :  { %4993 = vmatmul.mubr.f32.gmra.mxu1 %v10293_v38 }
 0x7df   :  { %4997 = vmatprep.mubr.f32.mxu1 %v10296_v21  ;;  %v10323_v21 = vld [vmem:[%s22328_s3 + $0xe8] sm:$0xff] }
 0x7e2   :  { %4998 = vmatmul.mubr.f32.gmra.mxu1 %v10295_v45 }
 0x7e3   :  { %5002 = vmatprep.mubr.f32.mxu1 %v10298_v47 }
 0x7e6   :  { %5003 = vmatmul.mubr.f32.gmra.mxu1 %v10297_v60  ;;  %v10322_v60 = vld [vmem:[%s22328_s3 + $0xe0] sm:$0xff] }
 0x7e7   :  { %5007 = vmatprep.mubr.f32.mxu1 %v10300_v1 }
 0x7ea   :  { %5008 = vmatmul.mubr.f32.gmra.mxu1 %v10299_v52 }
 0x7eb   :  { %5012 = vmatprep.mubr.f32.mxu1 %v10302_v35  ;;  %v10321_v35 = vld [vmem:[%s22328_s3 + $0xd8] sm:$0xff] }
 0x7ee   :  { %5013 = vmatmul.mubr.f32.gmra.mxu1 %v10301_v34 }
 0x7ef   :  { %5017 = vmatprep.mubr.f32.mxu1 %v10304_v2 }
 0x7f2   :  { %5018 = vmatmul.mubr.f32.gmra.mxu1 %v10303_v6  ;;  %v10320_v6 = vld [vmem:[%s22328_s3 + $0xd0] sm:$0xff] }
 0x7f3   :  { %5022 = vmatprep.mubr.f32.mxu1 %v10306_v5 }
 0x7f6   :  { %5023 = vmatmul.mubr.f32.gmra.mxu1 %v10305_v42 }
 0x7f7   :  { %5027 = vmatprep.mubr.f32.mxu1 %v10308_v10  ;;  %v10319_v10 = vld [vmem:[%s22328_s3 + $0xc8] sm:$0xff] }
 0x7fa   :  { %5028 = vmatmul.mubr.f32.gmra.mxu1 %v10307_v14 }
 0x7fb   :  { %5683 = vmatprep.mubr.f32.mxu1 %v12936_v25 }
 0x83e   :  { %v4874_v24 = vpop.f32.mrf.mxu1 }
 0x83f   :  { %v5033_v27 = vadd.f32 %v4874_v24, %v17733_v41  ;;  %v10324_v41 = vld [vmem:[%s22328_s3 + $0xf0] sm:$0xff] }
 0x840   :  { %v4876_v4 = vpop.f32.mrf.mxu1 }
 0x841   :  { %v5072_v51 = vadd.f32 %v18186_v20, %v5033_v27  ;;  %v10317_v4 = vld [vmem:[%s22328_s3 + $0xb8] sm:$0xff] }
 0x842   :  { %v4879_v22 = vpop.f32.mrf.mxu1 }
 0x843   :  { %v18190_v36 = vmax.f32 %v5072_v51, 0.0  ;;  %v5034_v56 = vadd.f32 %v4879_v22, %v17738_v55 }
 0x844   :  { %v4881_v16 = vpop.f32.mrf.mxu1 }
 0x845   :  { %v5073_v49 = vadd.f32 %v18186_v20, %v5034_v56  ;;  %12055 = vmatprep.mubr.f32.mxu0 %v18190_v36  ;;  %v10316_v56 = vld [vmem:[%s22328_s3 + $0xb0] sm:$0xff] }
 0x846   :  { %v4884_v18 = vpop.f32.mrf.mxu1 }
 0x847   :  { %v18195_v29 = vmax.f32 %v5073_v49, 0.0  ;;  %v5035_v26 = vadd.f32 %v4884_v18, %v17743_v33  ;;  %v10315_v18 = vld [vmem:[%s22328_s3 + $0xa8] sm:$0xff] }
 0x848   :  { %v4886_v39 = vpop.f32.mrf.mxu1 }
 0x849   :  { %v5074_v38 = vadd.f32 %v18186_v20, %v5035_v26  ;;  %12056 = vmatmul.mubr.f32.vlgmr.msra.gmra.mxu0 %v18195_v29 }
 0x84a   :  { %v4889_v55 = vpop.f32.mrf.mxu1  ;;  %12104 = vmatpush3.msra.mxu0 %v10325_v44  ;;  %v10318_v44 = vld [vmem:[%s22328_s3 + $0xc0] sm:$0xff] }
 0x84b   :  { %v18206_v45 = vmax.f32 %v5074_v38, 0.0  ;;  %v5036_v47 = vadd.f32 %v4889_v55, %v17748_v19  ;;  %12105 = vmatprep.subr.mxu0 %v10324_v41 }
 0x84c   :  { %v4891_v33 = vpop.f32.mrf.mxu1  ;;  %12106 = vmatpush3.msra.mxu0 %v10324_v41  ;;  %v10314_v41 = vld [vmem:[%s22328_s3 + $0xa0] sm:$0xff] }
 0x84d   :  { %v5075_v1 = vadd.f32 %v18186_v20, %v5036_v47  ;;  %12058 = vmatprep.mubr.f32.mxu0 %v18206_v45  ;;  %12107 = vmatprep.subr.mxu0 %v10323_v21 }
 0x84e   :  { %v4894_v52 = vpop.f32.mrf.mxu1  ;;  %12108 = vmatpush3.msra.mxu0 %v10323_v21  ;;  %v10313_v21 = vld [vmem:[%s22328_s3 + $0x98] sm:$0xff] }
 0x84f   :  { %v18217_v34 = vmax.f32 %v5075_v1, 0.0  ;;  %v5037_v19 = vadd.f32 %v4894_v52, %v17753_v11  ;;  %12109 = vmatprep.subr.mxu0 %v10322_v60 }
 0x850   :  { %v4896_v2 = vpop.f32.mrf.mxu1  ;;  %12110 = vmatpush3.msra.mxu0 %v10322_v60  ;;  %v10312_v60 = vld [vmem:[%s22328_s3 + $0x90] sm:$0xff] }
 0x851   :  { %v5076_v5 = vadd.f32 %v18186_v20, %v5037_v19  ;;  %12059 = vmatmul.mubr.f32.gmra.mxu0 %v18217_v34  ;;  %12111 = vmatprep.subr.mxu0 %v10321_v35 }
 0x852   :  { %v4899_v42 = vpop.f32.mrf.mxu1  ;;  %12112 = vmatpush3.msra.mxu0 %v10321_v35  ;;  %v10311_v35 = vld [vmem:[%s22328_s3 + $0x88] sm:$0xff] }
 0x853   :  { %v18228_v14 = vmax.f32 %v5076_v5, 0.0  ;;  %v5038_v11 = vadd.f32 %v4899_v42, %v17759_v3  ;;  %12113 = vmatprep.subr.mxu0 %v10320_v6 }
 0x854   :  { %v4901_v25 = vpop.f32.mrf.mxu1  ;;  %12114 = vmatpush3.msra.mxu0 %v10320_v6  ;;  %v10310_v6 = vld [vmem:[%s22328_s3 + $0x80] sm:$0xff] }
 0x855   :  { %v5077_v24 = vadd.f32 %v18186_v20, %v5038_v11  ;;  %12061 = vmatprep.mubr.f32.mxu0 %v18228_v14  ;;  %12115 = vmatprep.subr.mxu0 %v10319_v10 }
 0x856   :  { %v4904_v27 = vpop.f32.mrf.mxu1  ;;  %12116 = vmatpush3.msra.mxu0 %v10319_v10 }
 0x857   :  { %v18239_v51 = vmax.f32 %v5077_v24, 0.0  ;;  %v5039_v3 = vadd.f32 %v4904_v27, %v17765_v53  ;;  %12117 = vmatprep.subr.mxu0 %v10318_v44 }
 0x858   :  { %v4906_v22 = vpop.f32.mrf.mxu1  ;;  %12118 = vmatpush3.msra.mxu0 %v10318_v44 }
 0x859   :  { %v5078_v16 = vadd.f32 %v18186_v20, %v5039_v3  ;;  %12062 = vmatmul.mubr.f32.gmra.mxu0 %v18239_v51  ;;  %12119 = vmatprep.subr.mxu0 %v10317_v4 }
 0x85a   :  { %v4909_v49 = vpop.f32.mrf.mxu1  ;;  %12120 = vmatpush3.msra.mxu0 %v10317_v4 }
 0x85b   :  { %v18250_v26 = vmax.f32 %v5078_v16, 0.0  ;;  %v5040_v53 = vadd.f32 %v4909_v49, %v17774_v61  ;;  %12121 = vmatprep.subr.mxu0 %v10316_v56 }
 0x85c   :  { %v4911_v39 = vpop.f32.mrf.mxu1  ;;  %12122 = vmatpush3.msra.mxu0 %v10316_v56 }
 0x85d   :  { %v5079_v38 = vadd.f32 %v18186_v20, %v5040_v53  ;;  %12064 = vmatprep.mubr.f32.mxu0 %v18250_v26  ;;  %12123 = vmatprep.subr.mxu0 %v10315_v18 }
 0x85e   :  { %v4914_v55 = vpop.f32.mrf.mxu1  ;;  %12124 = vmatpush3.msra.mxu0 %v10315_v18 }
 0x85f   :  { %v18261_v47 = vmax.f32 %v5079_v38, 0.0  ;;  %v5041_v61 = vadd.f32 %v4914_v55, %v17780_v40  ;;  %12125 = vmatprep.subr.mxu0 %v10314_v41 }
 0x860   :  { %v4916_v33 = vpop.f32.mrf.mxu1  ;;  %12126 = vmatpush3.msra.mxu0 %v10314_v41 }
 0x861   :  { %v5080_v1 = vadd.f32 %v18186_v20, %v5041_v61  ;;  %12065 = vmatmul.mubr.f32.gmra.mxu0 %v18261_v47  ;;  %12127 = vmatprep.subr.mxu0 %v10313_v21 }
 0x862   :  { %v4919_v52 = vpop.f32.mrf.mxu1  ;;  %12128 = vmatpush3.msra.mxu0 %v10313_v21 }
 0x863   :  { %v18272_v19 = vmax.f32 %v5080_v1, 0.0  ;;  %v5042_v40 = vadd.f32 %v4919_v52, %v17786_v32  ;;  %12129 = vmatprep.subr.mxu0 %v10312_v60 }
 0x864   :  { %v4921_v2 = vpop.f32.mrf.mxu1  ;;  %12130 = vmatpush3.msra.mxu0 %v10312_v60 }
 0x865   :  { %v5081_v5 = vadd.f32 %v18186_v20, %v5042_v40  ;;  %12067 = vmatprep.mubr.f32.mxu0 %v18272_v19  ;;  %12131 = vmatprep.subr.mxu0 %v10311_v35 }
 0x866   :  { %v4924_v42 = vpop.f32.mrf.mxu1  ;;  %12132 = vmatpush3.msra.mxu0 %v10311_v35 }
 0x867   :  { %v18280_v10 = vmax.f32 %v5081_v5, 0.0  ;;  %v5043_v11 = vadd.f32 %v4924_v42, %v17792_v8  ;;  %12133 = vmatprep.subr.mxu0 %v10310_v6 }
 0x868   :  { %v4926_v32 = vpop.f32.mrf.mxu1  ;;  %12134 = vmatpush3.msra.mxu0 %v10310_v6 }
 0x869   :  { %v5082_v25 = vadd.f32 %v18186_v20, %v5043_v11  ;;  %12068 = vmatmul.mubr.f32.gmra.mxu0 %v18280_v10  ;;  %5844 = vmatprep.subr.mxu0 %v22461_v12 }
 0x86a   :  { %v4929_v44 = vpop.f32.mrf.mxu1 }
 0x86b   :  { %v18286_v24 = vmax.f32 %v5082_v25, 0.0  ;;  %v5044_v27 = vadd.f32 %v4929_v44, %v17798_v59 }
 0x86c   :  { %v4931_v4 = vpop.f32.mrf.mxu1 }
 0x86d   :  { %v5083_v3 = vadd.f32 %v18186_v20, %v5044_v27  ;;  %12070 = vmatprep.mubr.f32.mxu0 %v18286_v24 }
 0x86e   :  { %v4934_v8 = vpop.f32.mrf.mxu1 }
 0x86f   :  { %v18291_v22 = vmax.f32 %v5083_v3, 0.0  ;;  %v5045_v56 = vadd.f32 %v4934_v8, %v17804_v30 }
 0x870   :  { %v4936_v16 = vpop.f32.mrf.mxu1 }
 0x871   :  { %v5084_v49 = vadd.f32 %v18186_v20, %v5045_v56  ;;  %12071 = vmatmul.mubr.f32.gmra.mxu0 %v18291_v22 }
 0x872   :  { %v4939_v18 = vpop.f32.mrf.mxu1 }
 0x873   :  { %v18296_v53 = vmax.f32 %v5084_v49, 0.0  ;;  %v5046_v59 = vadd.f32 %v4939_v18, %v17810_v31 }
 0x874   :  { %v4941_v39 = vpop.f32.mrf.mxu1 }
 0x875   :  { %v5085_v41 = vadd.f32 %v18186_v20, %v5046_v59  ;;  %12073 = vmatprep.mubr.f32.mxu0 %v18296_v53 }
 0x876   :  { %v4944_v38 = vpop.f32.mrf.mxu1 }
 0x877   :  { %v18301_v55 = vmax.f32 %v5085_v41, 0.0  ;;  %v5047_v30 = vadd.f32 %v4944_v38, %v17816_v50 }
 0x878   :  { %v4946_v21 = vpop.f32.mrf.mxu1 }
 0x879   :  { %v5086_v61 = vadd.f32 %v18186_v20, %v5047_v30  ;;  %12074 = vmatmul.mubr.f32.gmra.mxu0 %v18301_v55 }
 0x87a   :  { %v4949_v33 = vpop.f32.mrf.mxu1 }
 0x87b   :  { %v18306_v60 = vmax.f32 %v5086_v61, 0.0  ;;  %v5048_v31 = vadd.f32 %v4949_v33, %v17822_v62 }
 0x87c   :  { %v4951_v1 = vpop.f32.mrf.mxu1 }
 0x87d   :  { %v5087_v52 = vadd.f32 %v18186_v20, %v5048_v31  ;;  %12076 = vmatprep.mubr.f32.mxu0 %v18306_v60 }
 0x87e   :  { %v4954_v35 = vpop.f32.mrf.mxu1 }
 0x87f   :  { %v18311_v40 = vmax.f32 %v5087_v52, 0.0  ;;  %v5049_v50 = vadd.f32 %v4954_v35, %v17827_v37 }
 0x880   :  { %v4956_v2 = vpop.f32.mrf.mxu1 }
 0x881   :  { %v5088_v6 = vadd.f32 %v18186_v20, %v5049_v50  ;;  %12077 = vmatmul.mubr.f32.gmra.mxu0 %v18311_v40 }
 0x882   :  { %v4959_v5 = vpop.f32.mrf.mxu1 }
 0x883   :  { %v18316_v42 = vmax.f32 %v5088_v6, 0.0  ;;  %v5050_v62 = vadd.f32 %v4959_v5, %v17834_v15 }
 0x884   :  { %v4961_v11 = vpop.f32.mrf.mxu1 }
 0x885   :  { %v5089_v32 = vadd.f32 %v18186_v20, %v5050_v62  ;;  %12079 = vmatprep.mubr.f32.mxu0 %v18316_v42 }
 0x886   :  { %v4964_v25 = vpop.f32.mrf.mxu1 }
 0x887   :  { %v18321_v44 = vmax.f32 %v5089_v32, 0.0  ;;  %v5051_v37 = vadd.f32 %v4964_v25, %v17841_v17 }
 0x888   :  { %v4966_v27 = vpop.f32.mrf.mxu1 }
 0x889   :  { %v5090_v4 = vadd.f32 %v18186_v20, %v5051_v37  ;;  %12080 = vmatmul.mubr.f32.gmra.mxu0 %v18321_v44 }
 0x88a   :  { %v4969_v3 = vpop.f32.mrf.mxu1 }
 0x88b   :  { %v18326_v8 = vmax.f32 %v5090_v4, 0.0  ;;  %v5052_v15 = vadd.f32 %v4969_v3, %v17846_v58 }
 0x88c   :  { %v4971_v56 = vpop.f32.mrf.mxu1 }
 0x88d   :  { %22462 = vst [vmem:[#allocation2_spill] sm:$0xff] %v18326_v8  ;;  %v5091_v16 = vadd.f32 %v18186_v20, %v5052_v15  ;;  %12082 = vmatprep.mubr.f32.mxu0 %v18326_v8 }
 0x88e   :  { %v4974_v49 = vpop.f32.mrf.mxu1 }
 0x88f   :  { %v18331_v18 = vmax.f32 %v5091_v16, 0.0  ;;  %v5053_v17 = vadd.f32 %v4974_v49, %v17849_v7 }
 0x890   :  { %v4976_v59 = vpop.f32.mrf.mxu1 }
 0x891   :  { %22463 = vst [vmem:[#allocation22_spill] sm:$0xff] %v18331_v18  ;;  %v5092_v39 = vadd.f32 %v18186_v20, %v5053_v17  ;;  %12083 = vmatmul.mubr.f32.gmra.mxu0 %v18331_v18 }
 0x892   :  { %v4979_v41 = vpop.f32.mrf.mxu1 }
 0x893   :  { %v18336_v38 = vmax.f32 %v5092_v39, 0.0  ;;  %v5054_v58 = vadd.f32 %v4979_v41, %v17852_v0 }
 0x894   :  { %v4981_v30 = vpop.f32.mrf.mxu1 }
 0x895   :  { %22464 = vst [vmem:[#allocation3_spill] sm:$0xff] %v18336_v38  ;;  %v5093_v21 = vadd.f32 %v18186_v20, %v5054_v58  ;;  %12085 = vmatprep.mubr.f32.mxu0 %v18336_v38 }
 0x896   :  { %v4984_v61 = vpop.f32.mrf.mxu1 }
 0x897   :  { %v18341_v33 = vmax.f32 %v5093_v21, 0.0  ;;  %v5055_v7 = vadd.f32 %v4984_v61, %v17855_v63 }
 0x898   :  { %v4986_v31 = vpop.f32.mrf.mxu1 }
 0x899   :  { %22465 = vst [vmem:[#allocation23_spill] sm:$0xff] %v18341_v33  ;;  %v5094_v1 = vadd.f32 %v18186_v20, %v5055_v7  ;;  %12086 = vmatmul.mubr.f32.gmra.mxu0 %v18341_v33 }
 0x89a   :  { %v4989_v52 = vpop.f32.mrf.mxu1 }
 0x89b   :  { %v18346_v35 = vmax.f32 %v5094_v1, 0.0  ;;  %v5056_v0 = vadd.f32 %v4989_v52, %v17858_v23 }
 0x89c   :  { %v4991_v50 = vpop.f32.mrf.mxu1 }
 0x89d   :  { %22466 = vst [vmem:[#allocation4_spill] sm:$0xff] %v18346_v35  ;;  %v5095_v2 = vadd.f32 %v18186_v20, %v5056_v0  ;;  %12088 = vmatprep.mubr.f32.mxu0 %v18346_v35 }
 0x89e   :  { %v4994_v6 = vpop.f32.mrf.mxu1 }
 0x89f   :  { %v18351_v5 = vmax.f32 %v5095_v2, 0.0  ;;  %v5057_v63 = vadd.f32 %v4994_v6, %v17865_v57 }
 0x8a0   :  { %v4996_v62 = vpop.f32.mrf.mxu1 }
 0x8a1   :  { %22467 = vst [vmem:[#allocation24_spill] sm:$0xff] %v18351_v5  ;;  %v5096_v11 = vadd.f32 %v18186_v20, %v5057_v63  ;;  %12089 = vmatmul.mubr.f32.gmra.mxu0 %v18351_v5 }
 0x8a2   :  { %v4999_v32 = vpop.f32.mrf.mxu1 }
 0x8a3   :  { %v18356_v25 = vmax.f32 %v5096_v11, 0.0  ;;  %v5058_v23 = vadd.f32 %v4999_v32, %v17874_v46 }
 0x8a4   :  { %v5001_v37 = vpop.f32.mrf.mxu1 }
 0x8a5   :  { %22468 = vst [vmem:[#allocation5_spill] sm:$0xff] %v18356_v25  ;;  %v5097_v27 = vadd.f32 %v18186_v20, %v5058_v23  ;;  %12091 = vmatprep.mubr.f32.mxu0 %v18356_v25 }
 0x8a6   :  { %v5004_v4 = vpop.f32.mrf.mxu1 }
 0x8a7   :  { %v18361_v3 = vmax.f32 %v5097_v27, 0.0  ;;  %v5059_v57 = vadd.f32 %v5004_v4, %v17883_v54 }
 0x8a8   :  { %v5006_v15 = vpop.f32.mrf.mxu1 }
 0x8a9   :  { %22469 = vst [vmem:[#allocation25_spill] sm:$0xff] %v18361_v3  ;;  %v5098_v56 = vadd.f32 %v18186_v20, %v5059_v57  ;;  %12092 = vmatmul.mubr.f32.gmra.mxu0 %v18361_v3 }
 0x8aa   :  { %v5009_v16 = vpop.f32.mrf.mxu1 }
 0x8ab   :  { %v18366_v49 = vmax.f32 %v5098_v56, 0.0  ;;  %v5060_v46 = vadd.f32 %v5009_v16, %v17890_v28 }
 0x8ac   :  { %v5011_v17 = vpop.f32.mrf.mxu1 }
 0x8ad   :  { %22470 = vst [vmem:[#allocation6_spill] sm:$0xff] %v18366_v49  ;;  %v5099_v59 = vadd.f32 %v18186_v20, %v5060_v46  ;;  %12094 = vmatprep.mubr.f32.mxu0 %v18366_v49 }
 0x8ae   :  { %v5014_v39 = vpop.f32.mrf.mxu1 }
 0x8af   :  { %v18371_v41 = vmax.f32 %v5099_v59, 0.0  ;;  %v5061_v54 = vadd.f32 %v5014_v39, %v17895_v43 }
 0x8b0   :  { %v5016_v58 = vpop.f32.mrf.mxu1 }
 0x8b1   :  { %22471 = vst [vmem:[#allocation26_spill] sm:$0xff] %v18371_v41  ;;  %v5100_v30 = vadd.f32 %v18186_v20, %v5061_v54  ;;  %12095 = vmatmul.mubr.f32.gmra.mxu0 %v18371_v41 }
 0x8b2   :  { %v5019_v21 = vpop.f32.mrf.mxu1 }
 0x8b3   :  { %v18376_v61 = vmax.f32 %v5100_v30, 0.0  ;;  %v5062_v28 = vadd.f32 %v5019_v21, %v17902_v13 }
 0x8b4   :  { %v5021_v7 = vpop.f32.mrf.mxu1 }
 0x8b5   :  { %22472 = vst [vmem:[#allocation7_spill] sm:$0xff] %v18376_v61  ;;  %v5101_v31 = vadd.f32 %v18186_v20, %v5062_v28  ;;  %12097 = vmatprep.mubr.f32.mxu0 %v18376_v61 }
 0x8b6   :  { %v5024_v1 = vpop.f32.mrf.mxu1 }
 0x8b7   :  { %v18381_v52 = vmax.f32 %v5101_v31, 0.0  ;;  %v5063_v43 = vadd.f32 %v5024_v1, %v17909_v48  ;;  %v12937_v48 = vld [vmem:[%s22327_s5 + $0x8] sm:$0xff] }
 0x8b8   :  { %v5026_v0 = vpop.f32.mrf.mxu1 }
 0x8b9   :  { %22473 = vst [vmem:[#allocation27_spill] sm:$0xff] %v18381_v52  ;;  %v5102_v50 = vadd.f32 %v18186_v20, %v5063_v43  ;;  %12098 = vmatmul.mubr.f32.gmra.mxu0 %v18381_v52 }
 0x8ba   :  { %v5029_v2 = vpop.f32.mrf.mxu1 }
 0x8bb   :  { %v18386_v6 = vmax.f32 %v5102_v50, 0.0  ;;  %v5064_v13 = vadd.f32 %v5029_v2, %v17916_v9 }
 0x8bc   :  { %v5031_v63 = vpop.f32.mrf.mxu1 }
 0x8bd   :  { %22474 = vst [vmem:[#allocation8_spill] sm:$0xff] %v18386_v6  ;;  %v5103_v62 = vadd.f32 %v18186_v20, %v5064_v13  ;;  %12100 = vmatprep.mubr.f32.mxu0 %v18386_v6 }
 0x8bf   :  { %v18391_v11 = vmax.f32 %v5103_v62, 0.0 }
 0x8c1   :  { %22475 = vst [vmem:[#allocation28_spill] sm:$0xff] %v18391_v11  ;;  %12101 = vmatmul.mubr.f32.gmra.mxu0 %v18391_v11 }
 0x8c2   :  { %12135 = vmatprep.mubr.f32.mxu0 %v18190_v36 }
 0x8c5   :  { %12136 = vmatmul.mubr.f32.vlgmr.msra.gmra.mxu0 %v18195_v29 }
 0x8c6   :  { %12138 = vmatprep.mubr.f32.mxu0 %v18206_v45 }
 0x8c9   :  { %12139 = vmatmul.mubr.f32.gmra.mxu0 %v18217_v34 }
 0x8ca   :  { %12141 = vmatprep.mubr.f32.mxu0 %v18228_v14 }
 0x8cd   :  { %12142 = vmatmul.mubr.f32.gmra.mxu0 %v18239_v51 }
 0x8ce   :  { %12144 = vmatprep.mubr.f32.mxu0 %v18250_v26 }
 0x8d1   :  { %12145 = vmatmul.mubr.f32.gmra.mxu0 %v18261_v47 }
 0x8d2   :  { %12147 = vmatprep.mubr.f32.mxu0 %v18272_v19 }
 0x8d5   :  { %12148 = vmatmul.mubr.f32.gmra.mxu0 %v18280_v10 }
 0x8d6   :  { %12150 = vmatprep.mubr.f32.mxu0 %v18286_v24 }
 0x8d9   :  { %12151 = vmatmul.mubr.f32.gmra.mxu0 %v18291_v22 }
 0x8da   :  { %12153 = vmatprep.mubr.f32.mxu0 %v18296_v53 }
 0x8dd   :  { %12154 = vmatmul.mubr.f32.gmra.mxu0 %v18301_v55 }
 0x8de   :  { %12156 = vmatprep.mubr.f32.mxu0 %v18306_v60 }
 0x8e1   :  { %12157 = vmatmul.mubr.f32.gmra.mxu0 %v18311_v40 }
 0x8e2   :  { %12159 = vmatprep.mubr.f32.mxu0 %v18316_v42 }
 0x8e5   :  { %12160 = vmatmul.mubr.f32.gmra.mxu0 %v18321_v44 }
 0x8e6   :  { %12162 = vmatprep.mubr.f32.mxu0 %v18326_v8 }
 0x8e9   :  { %12163 = vmatmul.mubr.f32.gmra.mxu0 %v18331_v18 }
 0x8ea   :  { %12165 = vmatprep.mubr.f32.mxu0 %v18336_v38 }
 0x8ed   :  { %12166 = vmatmul.mubr.f32.gmra.mxu0 %v18341_v33 }
 0x8ee   :  { %12168 = vmatprep.mubr.f32.mxu0 %v18346_v35 }
 0x8f1   :  { %12169 = vmatmul.mubr.f32.gmra.mxu0 %v18351_v5 }
 0x8f2   :  { %12171 = vmatprep.mubr.f32.mxu0 %v18356_v25 }
 0x8f5   :  { %12172 = vmatmul.mubr.f32.gmra.mxu0 %v18361_v3 }
 0x8f6   :  { %12174 = vmatprep.mubr.f32.mxu0 %v18366_v49 }
 0x8f9   :  { %12175 = vmatmul.mubr.f32.gmra.mxu0 %v18371_v41 }
 0x8fa   :  { %12177 = vmatprep.mubr.f32.mxu0 %v18376_v61 }
 0x8fd   :  { %12178 = vmatmul.mubr.f32.gmra.mxu0 %v18381_v52 }
 0x8fe   :  { %12180 = vmatprep.mubr.f32.mxu0 %v18386_v6 }
 0x901   :  { %12181 = vmatmul.mubr.f32.gmra.mxu0 %v18391_v11 }
 0x902   :  { %5908 = vmatprep.mubr.f32.mxu0 %v12937_v48 }
 0x909   :  { %v12057_v9 = vpop.f32.mrf.mxu0 }
 0x90b   :  { %v5218_v20 = vpop.f32.mrf.mxu0 }
 0x911   :  { %v12060_v32 = vpop.f32.mrf.mxu0 }
 0x913   :  { %v5228_v23 = vpop.f32.mrf.mxu0 }
 0x919   :  { %v12063_v37 = vpop.f32.mrf.mxu0 }
 0x91b   :  { %v5238_v27 = vpop.f32.mrf.mxu0 }
 0x921   :  { %v12066_v4 = vpop.f32.mrf.mxu0 }
 0x923   :  { %v5248_v57 = vpop.f32.mrf.mxu0 }
 0x929   :  { %v12069_v15 = vpop.f32.mrf.mxu0 }
 0x92b   :  { %v5258_v56 = vpop.f32.mrf.mxu0 }
 0x931   :  { %v12072_v16 = vpop.f32.mrf.mxu0 }
 0x933   :  { %v5268_v46 = vpop.f32.mrf.mxu0 }
 0x939   :  { %v12075_v17 = vpop.f32.mrf.mxu0 }
 0x93b   :  { %v5278_v59 = vpop.f32.mrf.mxu0 }
 0x941   :  { %v12078_v39 = vpop.f32.mrf.mxu0 }
 0x942   :  { %5845 = vmatpush1.msra.mxu0 %v12078_v39 }
 0x943   :  { %v5288_v54 = vpop.f32.mrf.mxu0  ;;  %5846 = vmatprep.subr.mxu0 %v22461_v12 }
 0x944   :  { %5847 = vmatpush1.msra.mxu0 %v5288_v54 }
 0x945   :  { %5848 = vmatprep.subr.mxu0 %v22461_v12 }
 0x946   :  { %5849 = vmatpush1.msra.mxu0 %v12075_v17 }
 0x947   :  { %5850 = vmatprep.subr.mxu0 %v22461_v12 }
 0x948   :  { %5851 = vmatpush1.msra.mxu0 %v5278_v59 }
 0x949   :  { %5852 = vmatprep.subr.mxu0 %v22461_v12  ;;  %v18439_v58 = vpop.f32.mrf.mxu0 }
 0x94a   :  { %5853 = vmatpush1.msra.mxu0 %v12072_v16 }
 0x94b   :  { %5854 = vmatprep.subr.mxu0 %v22461_v12  ;;  %v18443_v30 = vpop.f32.mrf.mxu0 }
 0x94c   :  { %5855 = vmatpush1.msra.mxu0 %v5268_v46 }
 0x94d   :  { %5856 = vmatprep.subr.mxu0 %v22461_v12 }
 0x94e   :  { %5857 = vmatpush1.msra.mxu0 %v12069_v15 }
 0x94f   :  { %5858 = vmatprep.subr.mxu0 %v22461_v12 }
 0x950   :  { %5859 = vmatpush1.msra.mxu0 %v5258_v56 }
 0x951   :  { %5860 = vmatprep.subr.mxu0 %v22461_v12  ;;  %v12084_v21 = vpop.f32.mrf.mxu0 }
 0x952   :  { %5861 = vmatpush1.msra.mxu0 %v12066_v4 }
 0x953   :  { %5862 = vmatprep.subr.mxu0 %v22461_v12  ;;  %v5308_v28 = vpop.f32.mrf.mxu0 }
 0x954   :  { %5863 = vmatpush1.msra.mxu0 %v5248_v57 }
 0x955   :  { %5864 = vmatprep.subr.mxu0 %v22461_v12 }
 0x956   :  { %5865 = vmatpush1.msra.mxu0 %v12063_v37 }
 0x957   :  { %5866 = vmatprep.subr.mxu0 %v22461_v12 }
 0x958   :  { %5867 = vmatpush1.msra.mxu0 %v5238_v27 }
 0x959   :  { %5868 = vmatprep.subr.mxu0 %v22461_v12  ;;  %v12087_v7 = vpop.f32.mrf.mxu0 }
 0x95a   :  { %5869 = vmatpush1.msra.mxu0 %v12060_v32 }
 0x95b   :  { %5870 = vmatprep.subr.mxu0 %v22461_v12  ;;  %v5318_v31 = vpop.f32.mrf.mxu0 }
 0x95c   :  { %5871 = vmatpush1.msra.mxu0 %v5228_v23 }
 0x95d   :  { %5872 = vmatprep.subr.mxu0 %v22461_v12 }
 0x95e   :  { %5873 = vmatpush1.msra.mxu0 %v12057_v9 }
 0x95f   :  { %5874 = vmatprep.subr.mxu0 %v22461_v12 }
 0x960   :  { %5875 = vmatpush1.msra.mxu0 %v5218_v20 }
 0x961   :  { %5876 = vmatprep.subr.mxu0 %v22461_v12  ;;  %v12090_v1 = vpop.f32.mrf.mxu0 }
 0x963   :  { %v5328_v43 = vpop.f32.mrf.mxu0 }
 0x969   :  { %v12093_v0 = vpop.f32.mrf.mxu0 }
 0x96b   :  { %v5338_v50 = vpop.f32.mrf.mxu0 }
 0x971   :  { %v12096_v2 = vpop.f32.mrf.mxu0 }
 0x973   :  { %v5348_v13 = vpop.f32.mrf.mxu0 }
 0x979   :  { %v12099_v63 = vpop.f32.mrf.mxu0 }
 0x97b   :  { %v5358_v62 = vpop.f32.mrf.mxu0 }
 0x981   :  { %v12102_v48 = vpop.f32.mrf.mxu0 }
 0x982   :  { %5877 = vmatpush2.msra.mxu0 %v12102_v48 }
 0x983   :  { %v5368_v32 = vpop.f32.mrf.mxu0  ;;  %5878 = vmatprep.subr.mxu0 %v22461_v12 }
 0x984   :  { %5879 = vmatpush2.msra.mxu0 %v5368_v32 }
 0x985   :  { %v18450_v9 = vpop.f32.mrf.mxu0  ;;  %5880 = vmatprep.subr.mxu0 %v22461_v12 }
 0x986   :  { %5881 = vmatpush2.msra.mxu0 %v12099_v63  ;;  %v12944_v63 = vld [vmem:[%s22327_s5 + $0x30] sm:$0xff] }
 0x987   :  { %v18453_v20 = vpop.f32.mrf.mxu0  ;;  %5882 = vmatprep.subr.mxu0 %v22461_v12 }
 0x988   :  { %5883 = vmatpush2.msra.mxu0 %v5358_v62  ;;  %v12945_v62 = vld [vmem:[%s22327_s5 + $0x48] sm:$0xff] }
 0x989   :  { %v18456_v23 = vpop.f32.mrf.mxu0  ;;  %5884 = vmatprep.subr.mxu0 %v22461_v12 }
 0x98a   :  { %5885 = vmatpush2.msra.mxu0 %v12096_v2 }
 0x98b   :  { %v18459_v37 = vpop.f32.mrf.mxu0  ;;  %5886 = vmatprep.subr.mxu0 %v22461_v12 }
 0x98c   :  { %5887 = vmatpush2.msra.mxu0 %v5348_v13 }
 0x98d   :  { %v18462_v27 = vpop.f32.mrf.mxu0  ;;  %5888 = vmatprep.subr.mxu0 %v22461_v12 }
 0x98e   :  { %5889 = vmatpush2.msra.mxu0 %v12093_v0  ;;  %v12942_v0 = vld [vmem:[%s22327_s5 + $0x20] sm:$0xff] }
 0x98f   :  { %v18465_v4 = vpop.f32.mrf.mxu0  ;;  %5890 = vmatprep.subr.mxu0 %v22461_v12 }
 0x990   :  { %5891 = vmatpush2.msra.mxu0 %v5338_v50  ;;  %v12943_v50 = vld [vmem:[%s22327_s5 + $0x38] sm:$0xff] }
 0x991   :  { %v18468_v57 = vpop.f32.mrf.mxu0  ;;  %5892 = vmatprep.subr.mxu0 %v22461_v12 }
 0x992   :  { %5893 = vmatpush2.msra.mxu0 %v12090_v1 }
 0x993   :  { %v18471_v15 = vpop.f32.mrf.mxu0  ;;  %5894 = vmatprep.subr.mxu0 %v22461_v12 }
 0x994   :  { %5895 = vmatpush2.msra.mxu0 %v5328_v43 }
 0x995   :  { %v12149_v56 = vpop.f32.mrf.mxu0  ;;  %5896 = vmatprep.subr.mxu0 %v22461_v12 }
 0x996   :  { %5897 = vmatpush2.msra.mxu0 %v12087_v7  ;;  %v12938_v7 = vld [vmem:[%s22327_s5] sm:$0xff] }
 0x997   :  { %v5500_v16 = vpop.f32.mrf.mxu0  ;;  %5898 = vmatprep.subr.mxu0 %v22461_v12 }
 0x998   :  { %5899 = vmatpush2.msra.mxu0 %v5318_v31  ;;  %v12941_v31 = vld [vmem:[%s22327_s5 + $0x28] sm:$0xff] }
 0x999   :  { %v12152_v46 = vpop.f32.mrf.mxu0  ;;  %5900 = vmatprep.subr.mxu0 %v22461_v12 }
 0x99a   :  { %5901 = vmatpush2.msra.mxu0 %v12084_v21  ;;  %v12939_v21 = vld [vmem:[%s22327_s5 + $0x18] sm:$0xff] }
 0x99b   :  { %v5510_v17 = vpop.f32.mrf.mxu0  ;;  %5902 = vmatprep.subr.mxu0 %v22461_v12 }
 0x99c   :  { %5903 = vmatpush2.msra.mxu0 %v5308_v28 }
 0x99d   :  { %v12155_v59 = vpop.f32.mrf.mxu0  ;;  %5904 = vmatprep.subr.mxu0 %v22461_v12 }
 0x99e   :  { %5905 = vmatpush2.msra.mxu0 %v18439_v58 }
 0x99f   :  { %v5520_v39 = vpop.f32.mrf.mxu0  ;;  %5906 = vmatprep.subr.mxu0 %v22461_v12 }
 0x9a0   :  { %5907 = vmatpush2.msra.mxu0 %v18443_v30  ;;  %v12940_v30 = vld [vmem:[%s22327_s5 + $0x10] sm:$0xff] }
 0x9a1   :  { %v12158_v54 = vpop.f32.mrf.mxu0  ;;  %5909 = vmatmul.mubr.f32.vlgmr.msra.gmra.mxu0 %v12938_v7  ;;  %6311 = vmatprep.subr.mxu0 %v22461_v12 }
 0x9a2   :  { %5620 = vmatpush1.msra.mxu1 %v12158_v54  ;;  %5913 = vmatprep.mubr.f32.mxu0 %v12939_v21  ;;  %v12950_v54 = vld [vmem:[%s22327_s5 + $0x60] sm:$0xff]  ;;  %v12952_v21 = vld [vmem:[%s22327_s5 + $0x70] sm:$0xff] }
 0x9a3   :  { %v5530_v58 = vpop.f32.mrf.mxu0  ;;  %5621 = vmatprep.subr.mxu1 %v22461_v12 }
 0x9a4   :  { %5622 = vmatpush1.msra.mxu1 %v5530_v58 }
 0x9a5   :  { %v18490_v28 = vpop.f32.mrf.mxu0  ;;  %5623 = vmatprep.subr.mxu1 %v22461_v12  ;;  %5914 = vmatmul.mubr.f32.gmra.mxu0 %v12940_v30  ;;  %v12954_v30 = vld [vmem:[%s22327_s5 + $0x80] sm:$0xff] }
 0x9a6   :  { %5624 = vmatpush1.msra.mxu1 %v12155_v59  ;;  %5918 = vmatprep.mubr.f32.mxu0 %v12941_v31  ;;  %v12948_v59 = vld [vmem:[%s22327_s5 + $0x50] sm:$0xff] }
 0x9a7   :  { %v18499_v1 = vpop.f32.mrf.mxu0  ;;  %5625 = vmatprep.subr.mxu1 %v22461_v12 }
 0x9a8   :  { %5626 = vmatpush1.msra.mxu1 %v5520_v39 }
 0x9a9   :  { %v18502_v43 = vpop.f32.mrf.mxu0  ;;  %5627 = vmatprep.subr.mxu1 %v22461_v12  ;;  %5919 = vmatmul.mubr.f32.gmra.mxu0 %v12942_v0  ;;  %v12957_v0 = vld [vmem:[%s22327_s5 + $0xa8] sm:$0xff] }
 0x9aa   :  { %5628 = vmatpush1.msra.mxu1 %v12152_v46  ;;  %5923 = vmatprep.mubr.f32.mxu0 %v12943_v50  ;;  %v12946_v46 = vld [vmem:[%s22327_s5 + $0x40] sm:$0xff] }
 0x9ab   :  { %v18511_v2 = vpop.f32.mrf.mxu0  ;;  %5629 = vmatprep.subr.mxu1 %v22461_v12  ;;  %v12958_v50 = vld [vmem:[%s22327_s5 + $0xa0] sm:$0xff] }
 0x9ac   :  { %5630 = vmatpush1.msra.mxu1 %v5510_v17 }
 0x9ad   :  { %v18514_v13 = vpop.f32.mrf.mxu0  ;;  %5631 = vmatprep.subr.mxu1 %v22461_v12  ;;  %5924 = vmatmul.mubr.f32.gmra.mxu0 %v12944_v63  ;;  %v12959_v63 = vld [vmem:[%s22327_s5 + $0xb8] sm:$0xff] }
 0x9ae   :  { %5632 = vmatpush1.msra.mxu1 %v12149_v56  ;;  %5928 = vmatprep.mubr.f32.mxu0 %v12945_v62  ;;  %v12947_v56 = vld [vmem:[%s22327_s5 + $0x58] sm:$0xff]  ;;  %v12960_v62 = vld [vmem:[%s22327_s5 + $0xb0] sm:$0xff] }
 0x9af   :  { %v18523_v48 = vpop.f32.mrf.mxu0  ;;  %5633 = vmatprep.subr.mxu1 %v22461_v12 }
 0x9b0   :  { %5634 = vmatpush1.msra.mxu1 %v5500_v16 }
 0x9b1   :  { %v18526_v32 = vpop.f32.mrf.mxu0  ;;  %5635 = vmatprep.subr.mxu1 %v22461_v12  ;;  %5929 = vmatmul.mubr.f32.gmra.mxu0 %v12946_v46  ;;  %v12961_v46 = vld [vmem:[%s22327_s5 + $0xc8] sm:$0xff] }
 0x9b2   :  { %5636 = vmatpush1.msra.mxu1 %v18468_v57  ;;  %5933 = vmatprep.mubr.f32.mxu0 %v12947_v56  ;;  %v12949_v57 = vld [vmem:[%s22327_s5 + $0x68] sm:$0xff]  ;;  %v12962_v56 = vld [vmem:[%s22327_s5 + $0xc0] sm:$0xff] }
 0x9b3   :  { %v18536_v17 = vpop.f32.mrf.mxu0  ;;  %5637 = vmatprep.subr.mxu1 %v22461_v12 }
 0x9b4   :  { %5638 = vmatpush1.msra.mxu1 %v18471_v15 }
 0x9b5   :  { %v12173_v16 = vpop.f32.mrf.mxu0  ;;  %5639 = vmatprep.subr.mxu1 %v22461_v12  ;;  %5934 = vmatmul.mubr.f32.gmra.mxu0 %v12948_v59  ;;  %v12964_v59 = vld [vmem:[%s22327_s5 + $0xd0] sm:$0xff] }
 0x9b6   :  { %5640 = vmatpush1.msra.mxu1 %v18462_v27  ;;  %5938 = vmatprep.mubr.f32.mxu0 %v12949_v57  ;;  %v12951_v27 = vld [vmem:[%s22327_s5 + $0x78] sm:$0xff]  ;;  %v12970_v57 = vld [vmem:[%s22327_s5 + $0x200] sm:$0xff] }
 0x9b7   :  { %v5580_v39 = vpop.f32.mrf.mxu0  ;;  %5641 = vmatprep.subr.mxu1 %v22461_v12 }
 0x9b8   :  { %5642 = vmatpush1.msra.mxu1 %v18465_v4 }
 0x9b9   :  { %v12176_v15 = vpop.f32.mrf.mxu0  ;;  %5643 = vmatprep.subr.mxu1 %v22461_v12  ;;  %5939 = vmatmul.mubr.f32.gmra.mxu0 %v12950_v54  ;;  %v12974_v54 = vld [vmem:[%s22327_s5 + $0x210] sm:$0xff] }
 0x9ba   :  { %5644 = vmatpush1.msra.mxu1 %v18456_v23  ;;  %5943 = vmatprep.mubr.f32.mxu0 %v12951_v27  ;;  %v12953_v23 = vld [vmem:[%s22327_s5 + $0x88] sm:$0xff]  ;;  %v12975_v27 = vld [vmem:[%s22327_s5 + $0x110] sm:$0xff] }
 0x9bb   :  { %v5590_v7 = vpop.f32.mrf.mxu0  ;;  %5645 = vmatprep.subr.mxu1 %v22461_v12 }
 0x9bc   :  { %5646 = vmatpush1.msra.mxu1 %v18459_v37 }
 0x9bd   :  { %v12179_v4 = vpop.f32.mrf.mxu0  ;;  %5647 = vmatprep.subr.mxu1 %v22461_v12  ;;  %5944 = vmatmul.mubr.f32.gmra.mxu0 %v12952_v21  ;;  %v12977_v21 = vld [vmem:[%s22327_s5 + $0x128] sm:$0xff] }
 0x9be   :  { %5648 = vmatpush1.msra.mxu1 %v18450_v9  ;;  %5948 = vmatprep.mubr.f32.mxu0 %v12953_v23  ;;  %v12955_v9 = vld [vmem:[%s22327_s5 + $0x98] sm:$0xff]  ;;  %v12978_v23 = vld [vmem:[%s22327_s5 + $0x220] sm:$0xff] }
 0x9bf   :  { %v5600_v58 = vpop.f32.mrf.mxu0  ;;  %5649 = vmatprep.subr.mxu1 %v22461_v12 }
 0x9c0   :  { %5650 = vmatpush1.msra.mxu1 %v18453_v20  ;;  %v12956_v20 = vld [vmem:[%s22327_s5 + $0x90] sm:$0xff] }
 0x9c1   :  { %v12182_v37 = vpop.f32.mrf.mxu0  ;;  %5651 = vmatprep.subr.mxu1 %v22461_v12  ;;  %5949 = vmatmul.mubr.f32.gmra.mxu0 %v12954_v30  ;;  %v12980_v30 = vld [vmem:[%s22327_s5 + $0x238] sm:$0xff] }
 0x9c2   :  { %5652 = vmatpush2.msra.mxu1 %v12182_v37  ;;  %5953 = vmatprep.mubr.f32.mxu0 %v12955_v9  ;;  %v10338_v37 = vld [vmem:[%s22328_s3 + $0x160] sm:$0xff]  ;;  %v12981_v9 = vld [vmem:[%s22327_s5 + $0x138] sm:$0xff] }
 0x9c3   :  { %v5610_v31 = vpop.f32.mrf.mxu0  ;;  %5653 = vmatprep.subr.mxu1 %v22461_v12 }
 0x9c4   :  { %5654 = vmatpush2.msra.mxu1 %v5610_v31  ;;  %v12982_v31 = vld [vmem:[%s22327_s5 + $0x230] sm:$0xff] }
 0x9c5   :  { %5655 = vmatprep.subr.mxu1 %v22461_v12  ;;  %5954 = vmatmul.mubr.f32.gmra.mxu0 %v12956_v20  ;;  %v12983_v20 = vld [vmem:[%s22327_s5 + $0x130] sm:$0xff] }
 0x9c6   :  { %5656 = vmatpush2.msra.mxu1 %v12179_v4  ;;  %5958 = vmatprep.mubr.f32.mxu0 %v12957_v0  ;;  %v12976_v4 = vld [vmem:[%s22327_s5 + $0x228] sm:$0xff]  ;;  %v10337_v0 = vld [vmem:[%s22328_s3 + $0x158] sm:$0xff] }
 0x9c7   :  { %5657 = vmatprep.subr.mxu1 %v22461_v12 }
 0x9c8   :  { %5658 = vmatpush2.msra.mxu1 %v5600_v58  ;;  %v12979_v58 = vld [vmem:[%s22327_s5 + $0x120] sm:$0xff] }
 0x9c9   :  { %5659 = vmatprep.subr.mxu1 %v22461_v12  ;;  %5959 = vmatmul.mubr.f32.gmra.mxu0 %v12958_v50  ;;  %v12984_v50 = vld [vmem:[%s22327_s5 + $0x248] sm:$0xff] }
 0x9ca   :  { %5660 = vmatpush2.msra.mxu1 %v12176_v15  ;;  %5963 = vmatprep.mubr.f32.mxu0 %v12959_v63  ;;  %v12972_v15 = vld [vmem:[%s22327_s5 + $0x218] sm:$0xff]  ;;  %v12985_v63 = vld [vmem:[%s22327_s5 + $0x148] sm:$0xff] }
 0x9cb   :  { %5661 = vmatprep.subr.mxu1 %v22461_v12 }
 0x9cc   :  { %5662 = vmatpush2.msra.mxu1 %v5590_v7  ;;  %v10339_v7 = vld [vmem:[%s22328_s3 + $0x168] sm:$0xff] }
 0x9cd   :  { %5663 = vmatprep.subr.mxu1 %v22461_v12  ;;  %5964 = vmatmul.mubr.f32.gmra.mxu0 %v12960_v62  ;;  %v12986_v62 = vld [vmem:[%s22327_s5 + $0x240] sm:$0xff] }
 0x9ce   :  { %5664 = vmatpush2.msra.mxu1 %v12173_v16  ;;  %5968 = vmatprep.mubr.f32.mxu0 %v12961_v46  ;;  %v12963_v16 = vld [vmem:[%s22327_s5 + $0xd8] sm:$0xff]  ;;  %v12987_v46 = vld [vmem:[%s22327_s5 + $0x140] sm:$0xff] }
 0x9cf   :  { %5665 = vmatprep.subr.mxu1 %v22461_v12 }
 0x9d0   :  { %5666 = vmatpush2.msra.mxu1 %v5580_v39  ;;  %v10340_v39 = vld [vmem:[%s22328_s3 + $0x170] sm:$0xff] }
 0x9d1   :  { %5667 = vmatprep.subr.mxu1 %v22461_v12  ;;  %5969 = vmatmul.mubr.f32.gmra.mxu0 %v12962_v56  ;;  %v10336_v56 = vld [vmem:[%s22328_s3 + $0x150] sm:$0xff] }
 0x9d2   :  { %5668 = vmatpush2.msra.mxu1 %v18526_v32  ;;  %5973 = vmatprep.mubr.f32.mxu0 %v12963_v16  ;;  %v12965_v32 = vld [vmem:[%s22327_s5 + $0xe8] sm:$0xff]  ;;  %v12988_v16 = vld [vmem:[%s22327_s5 + $0x258] sm:$0xff] }
 0x9d3   :  { %5669 = vmatprep.subr.mxu1 %v22461_v12 }
 0x9d4   :  { %5670 = vmatpush2.msra.mxu1 %v18536_v17  ;;  %v12966_v17 = vld [vmem:[%s22327_s5 + $0xe0] sm:$0xff] }
 0x9d5   :  { %5671 = vmatprep.subr.mxu1 %v22461_v12  ;;  %5974 = vmatmul.mubr.f32.gmra.mxu0 %v12964_v59  ;;  %v12989_v59 = vld [vmem:[%s22327_s5 + $0x158] sm:$0xff] }
 0x9d6   :  { %5672 = vmatpush2.msra.mxu1 %v18514_v13  ;;  %5978 = vmatprep.mubr.f32.mxu0 %v12965_v32  ;;  %v12967_v13 = vld [vmem:[%s22327_s5 + $0xf8] sm:$0xff]  ;;  %v12990_v32 = vld [vmem:[%s22327_s5 + $0x250] sm:$0xff] }
 0x9d7   :  { %5673 = vmatprep.subr.mxu1 %v22461_v12 }
 0x9d8   :  { %5674 = vmatpush2.msra.mxu1 %v18523_v48  ;;  %v12968_v48 = vld [vmem:[%s22327_s5 + $0xf0] sm:$0xff] }
 0x9d9   :  { %5675 = vmatprep.subr.mxu1 %v22461_v12  ;;  %5979 = vmatmul.mubr.f32.gmra.mxu0 %v12966_v17  ;;  %v12991_v17 = vld [vmem:[%s22327_s5 + $0x150] sm:$0xff] }
 0x9da   :  { %5676 = vmatpush2.msra.mxu1 %v18502_v43  ;;  %5983 = vmatprep.mubr.f32.mxu0 %v12967_v13  ;;  %v12969_v43 = vld [vmem:[%s22327_s5 + $0x108] sm:$0xff] }
 0x9db   :  { %5677 = vmatprep.subr.mxu1 %v22461_v12  ;;  %v10335_v13 = vld [vmem:[%s22328_s3 + $0x148] sm:$0xff] }
 0x9dc   :  { %5678 = vmatpush2.msra.mxu1 %v18511_v2  ;;  %v10341_v2 = vld [vmem:[%s22328_s3 + $0x178] sm:$0xff] }
 0x9dd   :  { %5679 = vmatprep.subr.mxu1 %v22461_v12  ;;  %5984 = vmatmul.mubr.f32.gmra.mxu0 %v12968_v48  ;;  %v12992_v48 = vld [vmem:[%s22327_s5 + $0x268] sm:$0xff] }
 0x9de   :  { %5680 = vmatpush2.msra.mxu1 %v18490_v28  ;;  %5988 = vmatprep.mubr.f32.mxu0 %v12969_v43  ;;  %v12971_v28 = vld [vmem:[%s22327_s5 + $0x100] sm:$0xff]  ;;  %v12993_v43 = vld [vmem:[%s22327_s5 + $0x168] sm:$0xff] }
 0x9df   :  { %5681 = vmatprep.subr.mxu1 %v22461_v12 }
 0x9e0   :  { %5682 = vmatpush2.msra.mxu1 %v18499_v1  ;;  %v12973_v1 = vld [vmem:[%s22327_s5 + $0x118] sm:$0xff] }
 0x9e1   :  { %5684 = vmatmul.mubr.f32.vlgmr.msra.gmra.mxu1 %v12970_v57  ;;  %5989 = vmatmul.mubr.f32.gmra.mxu0 %v12971_v28  ;;  %v12995_v57 = vld [vmem:[%s22327_s5 + $0x160] sm:$0xff] }
 0x9e2   :  { %5688 = vmatprep.mubr.f32.mxu1 %v12972_v15  ;;  %12183 = vmatprep.subr.mxu1 %v10341_v2  ;;  %v10334_v28 = vld [vmem:[%s22328_s3 + $0x140] sm:$0xff]  ;;  %v12997_v15 = vld [vmem:[%s22327_s5 + $0x178] sm:$0xff] }
 0x9e3   :  { %12184 = vmatpush3.msra.mxu1 %v10341_v2  ;;  %5993 = vmatprep.mubr.f32.mxu0 %v12973_v1  ;;  %v12994_v2 = vld [vmem:[%s22327_s5 + $0x260] sm:$0xff]  ;;  %v12998_v1 = vld [vmem:[%s22327_s5 + $0x270] sm:$0xff] }
 0x9e4   :  { %12185 = vmatprep.subr.mxu1 %v10340_v39 }
 0x9e5   :  { %5689 = vmatmul.mubr.f32.gmra.mxu1 %v12974_v54  ;;  %5994 = vmatmul.mubr.f32.gmra.mxu0 %v12975_v27  ;;  %v12999_v54 = vld [vmem:[%s22327_s5 + $0x170] sm:$0xff]  ;;  %v10333_v27 = vld [vmem:[%s22328_s3 + $0x138] sm:$0xff] }
 0x9e6   :  { %5693 = vmatprep.mubr.f32.mxu1 %v12976_v4  ;;  %5998 = vmatprep.mubr.f32.mxu0 %v12977_v21  ;;  %v13001_v4 = vld [vmem:[%s22327_s5 + $0x188] sm:$0xff]  ;;  %v13002_v21 = vld [vmem:[%s22327_s5 + $0x280] sm:$0xff] }
 0x9e7   :  { %12186 = vmatpush3.msra.mxu1 %v10340_v39  ;;  %v12996_v39 = vld [vmem:[%s22327_s5 + $0x278] sm:$0xff] }
 0x9e8   :  { %12187 = vmatprep.subr.mxu1 %v10339_v7 }
 0x9e9   :  { %5694 = vmatmul.mubr.f32.gmra.mxu1 %v12978_v23  ;;  %5999 = vmatmul.mubr.f32.gmra.mxu0 %v12979_v58  ;;  %v13003_v23 = vld [vmem:[%s22327_s5 + $0x180] sm:$0xff]  ;;  %v10332_v58 = vld [vmem:[%s22328_s3 + $0x130] sm:$0xff] }
 0x9ea   :  { %5698 = vmatprep.mubr.f32.mxu1 %v12980_v30  ;;  %6003 = vmatprep.mubr.f32.mxu0 %v12981_v9  ;;  %v13005_v30 = vld [vmem:[%s22327_s5 + $0x198] sm:$0xff]  ;;  %v13006_v9 = vld [vmem:[%s22327_s5 + $0x290] sm:$0xff] }
 0x9eb   :  { %12188 = vmatpush3.msra.mxu1 %v10339_v7  ;;  %v13000_v7 = vld [vmem:[%s22327_s5 + $0x288] sm:$0xff] }
 0x9ec   :  { %12189 = vmatprep.subr.mxu1 %v10338_v37 }
 0x9ed   :  { %5699 = vmatmul.mubr.f32.gmra.mxu1 %v12982_v31  ;;  %6004 = vmatmul.mubr.f32.gmra.mxu0 %v12983_v20  ;;  %v13007_v31 = vld [vmem:[%s22327_s5 + $0x190] sm:$0xff]  ;;  %v10331_v20 = vld [vmem:[%s22328_s3 + $0x128] sm:$0xff] }
 0x9ee   :  { %5703 = vmatprep.mubr.f32.mxu1 %v12984_v50  ;;  %6008 = vmatprep.mubr.f32.mxu0 %v12985_v63  ;;  %v13009_v50 = vld [vmem:[%s22327_s5 + $0x1a8] sm:$0xff]  ;;  %v13010_v63 = vld [vmem:[%s22327_s5 + $0x2a0] sm:$0xff] }
 0x9ef   :  { %12190 = vmatpush3.msra.mxu1 %v10338_v37  ;;  %v13004_v37 = vld [vmem:[%s22327_s5 + $0x298] sm:$0xff] }
 0x9f0   :  { %12191 = vmatprep.subr.mxu1 %v10337_v0 }
 0x9f1   :  { %5704 = vmatmul.mubr.f32.gmra.mxu1 %v12986_v62  ;;  %6009 = vmatmul.mubr.f32.gmra.mxu0 %v12987_v46  ;;  %v13011_v62 = vld [vmem:[%s22327_s5 + $0x1a0] sm:$0xff] }
 0x9f2   :  { %5708 = vmatprep.mubr.f32.mxu1 %v12988_v16  ;;  %6013 = vmatprep.mubr.f32.mxu0 %v12989_v59  ;;  %v10330_v46 = vld [vmem:[%s22328_s3 + $0x120] sm:$0xff]  ;;  %v13013_v16 = vld [vmem:[%s22327_s5 + $0x1b8] sm:$0xff]  ;;  %v13014_v59 = vld [vmem:[%s22327_s5 + $0x2b0] sm:$0xff] }
 0x9f3   :  { %12192 = vmatpush3.msra.mxu1 %v10337_v0  ;;  %v13008_v0 = vld [vmem:[%s22327_s5 + $0x2a8] sm:$0xff] }
 0x9f4   :  { %12193 = vmatprep.subr.mxu1 %v10336_v56 }
 0x9f5   :  { %5709 = vmatmul.mubr.f32.gmra.mxu1 %v12990_v32  ;;  %6014 = vmatmul.mubr.f32.gmra.mxu0 %v12991_v17  ;;  %v13015_v32 = vld [vmem:[%s22327_s5 + $0x1b0] sm:$0xff]  ;;  %v10329_v17 = vld [vmem:[%s22328_s3 + $0x118] sm:$0xff] }
 0x9f6   :  { %5713 = vmatprep.mubr.f32.mxu1 %v12992_v48  ;;  %6018 = vmatprep.mubr.f32.mxu0 %v12993_v43  ;;  %v13017_v48 = vld [vmem:[%s22327_s5 + $0x1c8] sm:$0xff]  ;;  %v13018_v43 = vld [vmem:[%s22327_s5 + $0x2c0] sm:$0xff] }
 0x9f7   :  { %12194 = vmatpush3.msra.mxu1 %v10336_v56  ;;  %v13012_v56 = vld [vmem:[%s22327_s5 + $0x2b8] sm:$0xff] }
 0x9f8   :  { %12195 = vmatprep.subr.mxu1 %v10335_v13 }
 0x9f9   :  { %5714 = vmatmul.mubr.f32.gmra.mxu1 %v12994_v2  ;;  %6019 = vmatmul.mubr.f32.gmra.mxu0 %v12995_v57  ;;  %v13019_v2 = vld [vmem:[%s22327_s5 + $0x1c0] sm:$0xff]  ;;  %v10328_v57 = vld [vmem:[%s22328_s3 + $0x110] sm:$0xff] }
 0x9fa   :  { %5718 = vmatprep.mubr.f32.mxu1 %v12996_v39  ;;  %6023 = vmatprep.mubr.f32.mxu0 %v12997_v15  ;;  %v13021_v39 = vld [vmem:[%s22327_s5 + $0x1d8] sm:$0xff]  ;;  %v13022_v15 = vld [vmem:[%s22327_s5 + $0x2d0] sm:$0xff] }
 0x9fb   :  { %12196 = vmatpush3.msra.mxu1 %v10335_v13  ;;  %v13016_v13 = vld [vmem:[%s22327_s5 + $0x2c8] sm:$0xff] }
 0x9fc   :  { %12197 = vmatprep.subr.mxu1 %v10334_v28 }
 0x9fd   :  { %5719 = vmatmul.mubr.f32.gmra.mxu1 %v12998_v1  ;;  %6024 = vmatmul.mubr.f32.gmra.mxu0 %v12999_v54  ;;  %v13023_v1 = vld [vmem:[%s22327_s5 + $0x1d0] sm:$0xff]  ;;  %v10327_v54 = vld [vmem:[%s22328_s3 + $0x108] sm:$0xff] }
 0x9fe   :  { %5723 = vmatprep.mubr.f32.mxu1 %v13000_v7  ;;  %6028 = vmatprep.mubr.f32.mxu0 %v13001_v4  ;;  %v13025_v7 = vld [vmem:[%s22327_s5 + $0x1e8] sm:$0xff]  ;;  %v13026_v4 = vld [vmem:[%s22327_s5 + $0x2e0] sm:$0xff] }
 0x9ff   :  { %12198 = vmatpush3.msra.mxu1 %v10334_v28  ;;  %v13020_v28 = vld [vmem:[%s22327_s5 + $0x2d8] sm:$0xff] }
 0xa00   :  { %12199 = vmatprep.subr.mxu1 %v10333_v27 }
 0xa01   :  { %5724 = vmatmul.mubr.f32.gmra.mxu1 %v13002_v21  ;;  %6029 = vmatmul.mubr.f32.gmra.mxu0 %v13003_v23  ;;  %v13027_v21 = vld [vmem:[%s22327_s5 + $0x1e0] sm:$0xff] }
 0xa02   :  { %5728 = vmatprep.mubr.f32.mxu1 %v13004_v37  ;;  %6033 = vmatprep.mubr.f32.mxu0 %v13005_v30  ;;  %v10326_v23 = vld [vmem:[%s22328_s3 + $0x100] sm:$0xff]  ;;  %v13029_v37 = vld [vmem:[%s22327_s5 + $0x1f8] sm:$0xff] }
 0xa03   :  { %12200 = vmatpush3.msra.mxu1 %v10333_v27  ;;  %v13024_v27 = vld [vmem:[%s22327_s5 + $0x2e8] sm:$0xff]  ;;  %v18873_v30 = vld [vmem:[%s22328_s3 + $0x1f8] sm:$0xff] }
 0xa04   :  { %12201 = vmatprep.subr.mxu1 %v10332_v58 }
 0xa05   :  { %5729 = vmatmul.mubr.f32.gmra.mxu1 %v13006_v9  ;;  %6034 = vmatmul.mubr.f32.gmra.mxu0 %v13007_v31  ;;  %v13030_v9 = vld [vmem:[%s22327_s5 + $0x2f0] sm:$0xff] }
 0xa06   :  { %5733 = vmatprep.mubr.f32.mxu1 %v13008_v0  ;;  %6038 = vmatprep.mubr.f32.mxu0 %v13009_v50  ;;  %v13031_v31 = vld [vmem:[%s22327_s5 + $0x1f0] sm:$0xff]  ;;  %v13033_v0 = vld [vmem:[%s22327_s5 + $0x408] sm:$0xff]  ;;  %v13034_v50 = vld [vmem:[%s22327_s5 + $0x300] sm:$0xff] }
 0xa07   :  { %12202 = vmatpush3.msra.mxu1 %v10332_v58  ;;  %v13028_v58 = vld [vmem:[%s22327_s5 + $0x2f8] sm:$0xff] }
 0xa08   :  { %12203 = vmatprep.subr.mxu1 %v10331_v20 }
 0xa09   :  { %5734 = vmatmul.mubr.f32.gmra.mxu1 %v13010_v63  ;;  %6039 = vmatmul.mubr.f32.gmra.mxu0 %v13011_v62  ;;  %v13035_v63 = vld [vmem:[%s22327_s5 + $0x318] sm:$0xff]  ;;  %v13036_v62 = vld [vmem:[%s22327_s5 + $0x310] sm:$0xff] }
 0xa0a   :  { %5738 = vmatprep.mubr.f32.mxu1 %v13012_v56  ;;  %6043 = vmatprep.mubr.f32.mxu0 %v13013_v16  ;;  %v13038_v56 = vld [vmem:[%s22327_s5 + $0x320] sm:$0xff]  ;;  %v13039_v16 = vld [vmem:[%s22327_s5 + $0x338] sm:$0xff] }
 0xa0b   :  { %12204 = vmatpush3.msra.mxu1 %v10331_v20  ;;  %v13032_v20 = vld [vmem:[%s22327_s5 + $0x308] sm:$0xff] }
 0xa0c   :  { %12205 = vmatprep.subr.mxu1 %v10330_v46 }
 0xa0d   :  { %5739 = vmatmul.mubr.f32.gmra.mxu1 %v13014_v59  ;;  %6044 = vmatmul.mubr.f32.gmra.mxu0 %v13015_v32  ;;  %v13040_v59 = vld [vmem:[%s22327_s5 + $0x330] sm:$0xff]  ;;  %v13041_v32 = vld [vmem:[%s22327_s5 + $0x348] sm:$0xff] }
 0xa0e   :  { %5743 = vmatprep.mubr.f32.mxu1 %v13016_v13  ;;  %6048 = vmatprep.mubr.f32.mxu0 %v13017_v48  ;;  %v13043_v13 = vld [vmem:[%s22327_s5 + $0x358] sm:$0xff]  ;;  %v13044_v48 = vld [vmem:[%s22327_s5 + $0x350] sm:$0xff] }
 0xa0f   :  { %12206 = vmatpush3.msra.mxu1 %v10330_v46  ;;  %v13037_v46 = vld [vmem:[%s22327_s5 + $0x328] sm:$0xff] }
 0xa10   :  { %12207 = vmatprep.subr.mxu1 %v10329_v17 }
 0xa11   :  { %5744 = vmatmul.mubr.f32.gmra.mxu1 %v13018_v43  ;;  %6049 = vmatmul.mubr.f32.gmra.mxu0 %v13019_v2  ;;  %v13045_v43 = vld [vmem:[%s22327_s5 + $0x368] sm:$0xff]  ;;  %v13046_v2 = vld [vmem:[%s22327_s5 + $0x360] sm:$0xff] }
 0xa12   :  { %5748 = vmatprep.mubr.f32.mxu1 %v13020_v28  ;;  %6053 = vmatprep.mubr.f32.mxu0 %v13021_v39  ;;  %v13048_v28 = vld [vmem:[%s22327_s5 + $0x370] sm:$0xff]  ;;  %v13049_v39 = vld [vmem:[%s22327_s5 + $0x388] sm:$0xff] }
 0xa13   :  { %12208 = vmatpush3.msra.mxu1 %v10329_v17  ;;  %v13042_v17 = vld [vmem:[%s22327_s5 + $0x340] sm:$0xff] }
 0xa14   :  { %12209 = vmatprep.subr.mxu1 %v10328_v57 }
 0xa15   :  { %5749 = vmatmul.mubr.f32.gmra.mxu1 %v13022_v15  ;;  %6054 = vmatmul.mubr.f32.gmra.mxu0 %v13023_v1  ;;  %v13050_v15 = vld [vmem:[%s22327_s5 + $0x380] sm:$0xff]  ;;  %v13051_v1 = vld [vmem:[%s22327_s5 + $0x398] sm:$0xff] }
 0xa16   :  { %5753 = vmatprep.mubr.f32.mxu1 %v13024_v27  ;;  %6058 = vmatprep.mubr.f32.mxu0 %v13025_v7  ;;  %v13053_v27 = vld [vmem:[%s22327_s5 + $0x3a8] sm:$0xff]  ;;  %v13054_v7 = vld [vmem:[%s22327_s5 + $0x3a0] sm:$0xff] }
 0xa17   :  { %12210 = vmatpush3.msra.mxu1 %v10328_v57  ;;  %v13047_v57 = vld [vmem:[%s22327_s5 + $0x378] sm:$0xff] }
 0xa18   :  { %12211 = vmatprep.subr.mxu1 %v10327_v54 }
 0xa19   :  { %5754 = vmatmul.mubr.f32.gmra.mxu1 %v13026_v4  ;;  %6059 = vmatmul.mubr.f32.gmra.mxu0 %v13027_v21  ;;  %v13055_v4 = vld [vmem:[%s22327_s5 + $0x3b8] sm:$0xff]  ;;  %v13056_v21 = vld [vmem:[%s22327_s5 + $0x3b0] sm:$0xff] }
 0xa1a   :  { %5758 = vmatprep.mubr.f32.mxu1 %v13028_v58  ;;  %6063 = vmatprep.mubr.f32.mxu0 %v13029_v37  ;;  %v13058_v58 = vld [vmem:[%s22327_s5 + $0x3c0] sm:$0xff]  ;;  %v13059_v37 = vld [vmem:[%s22327_s5 + $0x3d8] sm:$0xff] }
 0xa1b   :  { %12212 = vmatpush3.msra.mxu1 %v10327_v54  ;;  %v13052_v54 = vld [vmem:[%s22327_s5 + $0x390] sm:$0xff] }
 0xa1c   :  { %12213 = vmatprep.subr.mxu1 %v10326_v23 }
 0xa1d   :  { %5759 = vmatmul.mubr.f32.gmra.mxu1 %v13030_v9  ;;  %6064 = vmatmul.mubr.f32.gmra.mxu0 %v13031_v31  ;;  %v13060_v9 = vld [vmem:[%s22327_s5 + $0x3d0] sm:$0xff]  ;;  %v13061_v31 = vld [vmem:[%s22327_s5 + $0x3e8] sm:$0xff] }
 0xa1e   :  { %5763 = vmatprep.mubr.f32.mxu1 %v13032_v20  ;;  %12214 = vmatpush3.msra.mxu1 %v10326_v23  ;;  %v13057_v23 = vld [vmem:[%s22327_s5 + $0x3c8] sm:$0xff]  ;;  %v13062_v20 = vld [vmem:[%s22327_s5 + $0x3e0] sm:$0xff] }
 0xa1f   :  { %12263 = vmatprep.subr.mxu1 %v18873_v30  ;;  %6375 = vmatprep.mubr.f32.mxu0 %v13033_v0  ;;  %v13063_v0 = vld [vmem:[%s22327_s5 + $0x3f8] sm:$0xff] }
 0xa21   :  { %5764 = vmatmul.mubr.f32.gmra.mxu1 %v13034_v50  ;;  %v13064_v50 = vld [vmem:[%s22327_s5 + $0x3f0] sm:$0xff] }
 0xa22   :  { %5768 = vmatprep.mubr.f32.mxu1 %v13035_v63  ;;  %v10356_v63 = vld [vmem:[%s22328_s3 + $0x1f0] sm:$0xff] }
 0xa25   :  { %5769 = vmatmul.mubr.f32.gmra.mxu1 %v13036_v62 }
 0xa26   :  { %5773 = vmatprep.mubr.f32.mxu1 %v13037_v46  ;;  %v10355_v46 = vld [vmem:[%s22328_s3 + $0x1e8] sm:$0xff] }
 0xa29   :  { %5774 = vmatmul.mubr.f32.gmra.mxu1 %v13038_v56 }
 0xa2a   :  { %5778 = vmatprep.mubr.f32.mxu1 %v13039_v16  ;;  %v10354_v16 = vld [vmem:[%s22328_s3 + $0x1e0] sm:$0xff] }
 0xa2d   :  { %5779 = vmatmul.mubr.f32.gmra.mxu1 %v13040_v59 }
 0xa2e   :  { %5783 = vmatprep.mubr.f32.mxu1 %v13041_v32 }
 0xa31   :  { %5784 = vmatmul.mubr.f32.gmra.mxu1 %v13042_v17  ;;  %v10352_v17 = vld [vmem:[%s22328_s3 + $0x1d0] sm:$0xff] }
 0xa32   :  { %5788 = vmatprep.mubr.f32.mxu1 %v13043_v13 }
 0xa35   :  { %5789 = vmatmul.mubr.f32.gmra.mxu1 %v13044_v48  ;;  %v10351_v48 = vld [vmem:[%s22328_s3 + $0x1c8] sm:$0xff] }
 0xa36   :  { %5793 = vmatprep.mubr.f32.mxu1 %v13045_v43 }
 0xa39   :  { %5794 = vmatmul.mubr.f32.gmra.mxu1 %v13046_v2  ;;  %v10350_v2 = vld [vmem:[%s22328_s3 + $0x1c0] sm:$0xff] }
 0xa3a   :  { %5798 = vmatprep.mubr.f32.mxu1 %v13047_v57 }
 0xa3d   :  { %5799 = vmatmul.mubr.f32.gmra.mxu1 %v13048_v28  ;;  %v10349_v28 = vld [vmem:[%s22328_s3 + $0x1b8] sm:$0xff] }
 0xa3e   :  { %5803 = vmatprep.mubr.f32.mxu1 %v13049_v39 }
 0xa41   :  { %5804 = vmatmul.mubr.f32.gmra.mxu1 %v13050_v15  ;;  %v10348_v15 = vld [vmem:[%s22328_s3 + $0x1b0] sm:$0xff] }
 0xa42   :  { %5808 = vmatprep.mubr.f32.mxu1 %v13051_v1 }
 0xa45   :  { %5809 = vmatmul.mubr.f32.gmra.mxu1 %v13052_v54  ;;  %v10347_v54 = vld [vmem:[%s22328_s3 + $0x1a8] sm:$0xff] }
 0xa46   :  { %5813 = vmatprep.mubr.f32.mxu1 %v13053_v27 }
 0xa49   :  { %5814 = vmatmul.mubr.f32.gmra.mxu1 %v13054_v7  ;;  %v10346_v7 = vld [vmem:[%s22328_s3 + $0x1a0] sm:$0xff] }
 0xa4a   :  { %5818 = vmatprep.mubr.f32.mxu1 %v13055_v4 }
 0xa4d   :  { %5819 = vmatmul.mubr.f32.gmra.mxu1 %v13056_v21  ;;  %v10345_v21 = vld [vmem:[%s22328_s3 + $0x198] sm:$0xff] }
 0xa4e   :  { %5823 = vmatprep.mubr.f32.mxu1 %v13057_v23 }
 0xa51   :  { %5824 = vmatmul.mubr.f32.gmra.mxu1 %v13058_v58  ;;  %v10344_v58 = vld [vmem:[%s22328_s3 + $0x190] sm:$0xff] }
 0xa52   :  { %5828 = vmatprep.mubr.f32.mxu1 %v13059_v37 }
 0xa55   :  { %5829 = vmatmul.mubr.f32.gmra.mxu1 %v13060_v9  ;;  %v10343_v9 = vld [vmem:[%s22328_s3 + $0x188] sm:$0xff] }
 0xa56   :  { %5833 = vmatprep.mubr.f32.mxu1 %v13061_v31 }
 0xa59   :  { %5834 = vmatmul.mubr.f32.gmra.mxu1 %v13062_v20  ;;  %v10342_v20 = vld [vmem:[%s22328_s3 + $0x180] sm:$0xff] }
 0xa5a   :  { %5838 = vmatprep.mubr.f32.mxu1 %v13063_v0 }
 0xa5d   :  { %5839 = vmatmul.mubr.f32.gmra.mxu1 %v13064_v50 }
 0xa5e   :  { %12215 = vmatprep.mubr.f32.mxu1 %v18190_v36 }
 0xa61   :  { %12216 = vmatmul.mubr.f32.vlgmr.msra.gmra.mxu1 %v18195_v29  ;;  %v18986_v62 = vpop.f32.mrf.mxu0 }
 0xa62   :  { %12218 = vmatprep.mubr.f32.mxu1 %v18206_v45  ;;  %12264 = vmatpush3.msra.mxu1 %v18873_v30  ;;  %v10353_v30 = vld [vmem:[%s22328_s3 + $0x1d8] sm:$0xff] }
 0xa63   :  { %12265 = vmatprep.subr.mxu1 %v10356_v63  ;;  %v5912_v56 = vpop.f32.mrf.mxu0 }
 0xa64   :  { %12266 = vmatpush3.msra.mxu1 %v10356_v63 }
 0xa65   :  { %12219 = vmatmul.mubr.f32.gmra.mxu1 %v18217_v34  ;;  %12267 = vmatprep.subr.mxu1 %v10355_v46  ;;  %v18997_v59 = vpop.f32.mrf.mxu0 }
 0xa66   :  { %12221 = vmatprep.mubr.f32.mxu1 %v18228_v14  ;;  %12268 = vmatpush3.msra.mxu1 %v10355_v46 }
 0xa67   :  { %12269 = vmatprep.subr.mxu1 %v10354_v16  ;;  %v5917_v32 = vpop.f32.mrf.mxu0 }
 0xa68   :  { %12270 = vmatpush3.msra.mxu1 %v10354_v16 }
 0xa69   :  { %12222 = vmatmul.mubr.f32.gmra.mxu1 %v18239_v51  ;;  %12271 = vmatprep.subr.mxu1 %v10353_v30  ;;  %v19007_v13 = vpop.f32.mrf.mxu0 }
 0xa6a   :  { %12224 = vmatprep.mubr.f32.mxu1 %v18250_v26  ;;  %12272 = vmatpush3.msra.mxu1 %v10353_v30 }
 0xa6b   :  { %12273 = vmatprep.subr.mxu1 %v10352_v17  ;;  %v5922_v43 = vpop.f32.mrf.mxu0 }
 0xa6c   :  { %12274 = vmatpush3.msra.mxu1 %v10352_v17 }
 0xa6d   :  { %12225 = vmatmul.mubr.f32.gmra.mxu1 %v18261_v47  ;;  %12275 = vmatprep.subr.mxu1 %v10351_v48  ;;  %v19017_v57 = vpop.f32.mrf.mxu0 }
 0xa6e   :  { %12227 = vmatprep.mubr.f32.mxu1 %v18272_v19  ;;  %12276 = vmatpush3.msra.mxu1 %v10351_v48 }
 0xa6f   :  { %12277 = vmatprep.subr.mxu1 %v10350_v2  ;;  %v5927_v39 = vpop.f32.mrf.mxu0 }
 0xa70   :  { %12278 = vmatpush3.msra.mxu1 %v10350_v2 }
 0xa71   :  { %12228 = vmatmul.mubr.f32.gmra.mxu1 %v18280_v10  ;;  %12279 = vmatprep.subr.mxu1 %v10349_v28  ;;  %v19027_v1 = vpop.f32.mrf.mxu0 }
 0xa72   :  { %12230 = vmatprep.mubr.f32.mxu1 %v18286_v24  ;;  %12280 = vmatpush3.msra.mxu1 %v10349_v28 }
 0xa73   :  { %12281 = vmatprep.subr.mxu1 %v10348_v15  ;;  %v5932_v27 = vpop.f32.mrf.mxu0 }
 0xa74   :  { %12282 = vmatpush3.msra.mxu1 %v10348_v15 }
 0xa75   :  { %12231 = vmatmul.mubr.f32.gmra.mxu1 %v18291_v22  ;;  %12283 = vmatprep.subr.mxu1 %v10347_v54  ;;  %v19037_v4 = vpop.f32.mrf.mxu0 }
 0xa76   :  { %12233 = vmatprep.mubr.f32.mxu1 %v18296_v53  ;;  %12284 = vmatpush3.msra.mxu1 %v10347_v54 }
 0xa77   :  { %12285 = vmatprep.subr.mxu1 %v10346_v7  ;;  %v5937_v23 = vpop.f32.mrf.mxu0 }
 0xa78   :  { %12286 = vmatpush3.msra.mxu1 %v10346_v7 }
 0xa79   :  { %12234 = vmatmul.mubr.f32.gmra.mxu1 %v18301_v55  ;;  %12287 = vmatprep.subr.mxu1 %v10345_v21  ;;  %v19047_v37 = vpop.f32.mrf.mxu0 }
 0xa7a   :  { %12236 = vmatprep.mubr.f32.mxu1 %v18306_v60  ;;  %12288 = vmatpush3.msra.mxu1 %v10345_v21 }
 0xa7b   :  { %12289 = vmatprep.subr.mxu1 %v10344_v58  ;;  %v5942_v31 = vpop.f32.mrf.mxu0 }
 0xa7c   :  { %12290 = vmatpush3.msra.mxu1 %v10344_v58 }
 0xa7d   :  { %12237 = vmatmul.mubr.f32.gmra.mxu1 %v18311_v40  ;;  %12291 = vmatprep.subr.mxu1 %v10343_v9  ;;  %v19057_v0 = vpop.f32.mrf.mxu0 }
 0xa7e   :  { %12239 = vmatprep.mubr.f32.mxu1 %v18316_v42  ;;  %12292 = vmatpush3.msra.mxu1 %v10343_v9 }
 0xa7f   :  { %12293 = vmatprep.subr.mxu1 %v10342_v20  ;;  %v5947_v50 = vpop.f32.mrf.mxu0 }
 0xa80   :  { %12294 = vmatpush3.msra.mxu1 %v10342_v20 }
 0xa81   :  { %12240 = vmatmul.mubr.f32.gmra.mxu1 %v18321_v44  ;;  %v19061_v63 = vpop.f32.mrf.mxu0  ;;  %6810 = vmatprep.subr.mxu1 %v22461_v12 }
 0xa82   :  { %12242 = vmatprep.mubr.f32.mxu1 %v18326_v8 }
 0xa83   :  { %v5952_v46 = vpop.f32.mrf.mxu0 }
 0xa85   :  { %12243 = vmatmul.mubr.f32.gmra.mxu1 %v18331_v18  ;;  %v19066_v56 = vpop.f32.mrf.mxu0 }
 0xa86   :  { %12245 = vmatprep.mubr.f32.mxu1 %v18336_v38 }
 0xa87   :  { %v5957_v16 = vpop.f32.mrf.mxu0 }
 0xa89   :  { %12246 = vmatmul.mubr.f32.gmra.mxu1 %v18341_v33  ;;  %v19070_v30 = vpop.f32.mrf.mxu0 }
 0xa8a   :  { %12248 = vmatprep.mubr.f32.mxu1 %v18346_v35 }
 0xa8b   :  { %v5962_v32 = vpop.f32.mrf.mxu0 }
 0xa8d   :  { %12249 = vmatmul.mubr.f32.gmra.mxu1 %v18351_v5  ;;  %v19074_v17 = vpop.f32.mrf.mxu0 }
 0xa8e   :  { %12251 = vmatprep.mubr.f32.mxu1 %v18356_v25 }
 0xa8f   :  { %v5967_v48 = vpop.f32.mrf.mxu0 }
 0xa91   :  { %12252 = vmatmul.mubr.f32.gmra.mxu1 %v18361_v3  ;;  %v19078_v43 = vpop.f32.mrf.mxu0 }
 0xa92   :  { %12254 = vmatprep.mubr.f32.mxu1 %v18366_v49 }
 0xa93   :  { %v5972_v2 = vpop.f32.mrf.mxu0 }
 0xa95   :  { %12255 = vmatmul.mubr.f32.gmra.mxu1 %v18371_v41  ;;  %v19082_v28 = vpop.f32.mrf.mxu0 }
 0xa96   :  { %12257 = vmatprep.mubr.f32.mxu1 %v18376_v61 }
 0xa97   :  { %v5977_v39 = vpop.f32.mrf.mxu0 }
 0xa99   :  { %12258 = vmatmul.mubr.f32.gmra.mxu1 %v18381_v52  ;;  %v19086_v15 = vpop.f32.mrf.mxu0 }
 0xa9a   :  { %12260 = vmatprep.mubr.f32.mxu1 %v18386_v6 }
 0xa9b   :  { %v5982_v54 = vpop.f32.mrf.mxu0 }
 0xa9d   :  { %12261 = vmatmul.mubr.f32.gmra.mxu1 %v18391_v11  ;;  %v19090_v27 = vpop.f32.mrf.mxu0 }
 0xa9e   :  { %12295 = vmatprep.mubr.f32.mxu1 %v18190_v36 }
 0xa9f   :  { %v5987_v7 = vpop.f32.mrf.mxu0 }
 0xaa1   :  { %v5685_v21 = vpop.f32.mrf.mxu1  ;;  %12296 = vmatmul.mubr.f32.vlgmr.msra.gmra.mxu1 %v18195_v29  ;;  %v19094_v23 = vpop.f32.mrf.mxu0 }
 0xaa2   :  { %v19097_v58 = vadd.f32 %v18986_v62, %v5685_v21  ;;  %12298 = vmatprep.mubr.f32.mxu1 %v18206_v45 }
 0xaa3   :  { %v5687_v9 = vpop.f32.mrf.mxu1  ;;  %v5992_v31 = vpop.f32.mrf.mxu0 }
 0xaa5   :  { %v5690_v20 = vpop.f32.mrf.mxu1  ;;  %12299 = vmatmul.mubr.f32.gmra.mxu1 %v18217_v34  ;;  %v19101_v50 = vpop.f32.mrf.mxu0 }
 0xaa6   :  { %v19104_v46 = vadd.f32 %v18997_v59, %v5690_v20  ;;  %12301 = vmatprep.mubr.f32.mxu1 %v18228_v14 }
 0xaa7   :  { %v5692_v16 = vpop.f32.mrf.mxu1  ;;  %v5997_v32 = vpop.f32.mrf.mxu0 }
 0xaa9   :  { %v5695_v48 = vpop.f32.mrf.mxu1  ;;  %12302 = vmatmul.mubr.f32.gmra.mxu1 %v18239_v51  ;;  %v19108_v62 = vpop.f32.mrf.mxu0 }
 0xaaa   :  { %v19111_v2 = vadd.f32 %v19007_v13, %v5695_v48  ;;  %12304 = vmatprep.mubr.f32.mxu1 %v18250_v26 }
 0xaab   :  { %v5697_v39 = vpop.f32.mrf.mxu1  ;;  %v6002_v54 = vpop.f32.mrf.mxu0 }
 0xaac   :  { %22476 = vst [vmem:[#allocation9_spill] sm:$0xff] %v19111_v2 }
 0xaad   :  { %v5700_v7 = vpop.f32.mrf.mxu1  ;;  %12305 = vmatmul.mubr.f32.gmra.mxu1 %v18261_v47  ;;  %v19115_v59 = vpop.f32.mrf.mxu0 }
 0xaae   :  { %v19118_v21 = vadd.f32 %v19017_v57, %v5700_v7  ;;  %12307 = vmatprep.mubr.f32.mxu1 %v18272_v19 }
 0xaaf   :  { %v5702_v9 = vpop.f32.mrf.mxu1  ;;  %v6007_v31 = vpop.f32.mrf.mxu0 }
 0xab0   :  { %22477 = vst [vmem:[#allocation29_spill] sm:$0xff] %v19118_v21 }
 0xab1   :  { %v5705_v20 = vpop.f32.mrf.mxu1  ;;  %12308 = vmatmul.mubr.f32.gmra.mxu1 %v18280_v10  ;;  %v19122_v13 = vpop.f32.mrf.mxu0 }
 0xab2   :  { %v19125_v16 = vadd.f32 %v19027_v1, %v5705_v20  ;;  %12310 = vmatprep.mubr.f32.mxu1 %v18286_v24 }
 0xab3   :  { %v5707_v32 = vpop.f32.mrf.mxu1  ;;  %v6012_v48 = vpop.f32.mrf.mxu0 }
 0xab4   :  { %22478 = vst [vmem:[#allocation10_spill] sm:$0xff] %v19125_v16 }
 0xab5   :  { %v5710_v39 = vpop.f32.mrf.mxu1  ;;  %12311 = vmatmul.mubr.f32.gmra.mxu1 %v18291_v22  ;;  %v19129_v57 = vpop.f32.mrf.mxu0 }
 0xab6   :  { %v19132_v54 = vadd.f32 %v19037_v4, %v5710_v39  ;;  %12313 = vmatprep.mubr.f32.mxu1 %v18296_v53 }
 0xab7   :  { %v5712_v7 = vpop.f32.mrf.mxu1  ;;  %v6017_v9 = vpop.f32.mrf.mxu0 }
 0xab8   :  { %22479 = vst [vmem:[#allocation30_spill] sm:$0xff] %v19132_v54 }
 0xab9   :  { %v5715_v31 = vpop.f32.mrf.mxu1  ;;  %12314 = vmatmul.mubr.f32.gmra.mxu1 %v18301_v55  ;;  %v19136_v1 = vpop.f32.mrf.mxu0 }
 0xaba   :  { %v19139_v20 = vadd.f32 %v19047_v37, %v5715_v31  ;;  %12316 = vmatprep.mubr.f32.mxu1 %v18306_v60 }
 0xabb   :  { %v5717_v32 = vpop.f32.mrf.mxu1  ;;  %v6022_v48 = vpop.f32.mrf.mxu0 }
 0xabc   :  { %22480 = vst [vmem:[#allocation11_spill] sm:$0xff] %v19139_v20 }
 0xabd   :  { %v5720_v16 = vpop.f32.mrf.mxu1  ;;  %12317 = vmatmul.mubr.f32.gmra.mxu1 %v18311_v40  ;;  %v19143_v4 = vpop.f32.mrf.mxu0 }
 0xabe   :  { %v19146_v39 = vadd.f32 %v19057_v0, %v5720_v16  ;;  %12319 = vmatprep.mubr.f32.mxu1 %v18316_v42 }
 0xabf   :  { %v5722_v7 = vpop.f32.mrf.mxu1  ;;  %v6027_v9 = vpop.f32.mrf.mxu0 }
 0xac0   :  { %22481 = vst [vmem:[#allocation31_spill] sm:$0xff] %v19146_v39 }
 0xac1   :  { %v5725_v54 = vpop.f32.mrf.mxu1  ;;  %12320 = vmatmul.mubr.f32.gmra.mxu1 %v18321_v44  ;;  %v19150_v37 = vpop.f32.mrf.mxu0 }
 0xac2   :  { %v19153_v31 = vadd.f32 %v19061_v63, %v5725_v54  ;;  %12322 = vmatprep.mubr.f32.mxu1 %v18326_v8 }
 0xac3   :  { %v5727_v32 = vpop.f32.mrf.mxu1  ;;  %v6032_v48 = vpop.f32.mrf.mxu0 }
 0xac4   :  { %22482 = vst [vmem:[#allocation12_spill] sm:$0xff] %v19153_v31 }
 0xac5   :  { %v5730_v20 = vpop.f32.mrf.mxu1  ;;  %12323 = vmatmul.mubr.f32.gmra.mxu1 %v18331_v18  ;;  %v19157_v0 = vpop.f32.mrf.mxu0 }
 0xac6   :  { %v19160_v16 = vadd.f32 %v19066_v56, %v5730_v20  ;;  %12325 = vmatprep.mubr.f32.mxu1 %v18336_v38 }
 0xac7   :  { %v5732_v7 = vpop.f32.mrf.mxu1  ;;  %v6037_v9 = vpop.f32.mrf.mxu0 }
 0xac8   :  { %22483 = vst [vmem:[#allocation32_spill] sm:$0xff] %v19160_v16 }
 0xac9   :  { %v5735_v39 = vpop.f32.mrf.mxu1  ;;  %12326 = vmatmul.mubr.f32.gmra.mxu1 %v18341_v33  ;;  %v19164_v63 = vpop.f32.mrf.mxu0 }
 0xaca   :  { %v19167_v54 = vadd.f32 %v19070_v30, %v5735_v39  ;;  %12328 = vmatprep.mubr.f32.mxu1 %v18346_v35 }
 0xacb   :  { %v5737_v32 = vpop.f32.mrf.mxu1  ;;  %v6042_v48 = vpop.f32.mrf.mxu0 }
 0xacc   :  { %22484 = vst [vmem:[#allocation13_spill] sm:$0xff] %v19167_v54 }
 0xacd   :  { %v5740_v31 = vpop.f32.mrf.mxu1  ;;  %12329 = vmatmul.mubr.f32.gmra.mxu1 %v18351_v5  ;;  %v19171_v56 = vpop.f32.mrf.mxu0 }
 0xace   :  { %v19174_v20 = vadd.f32 %v19074_v17, %v5740_v31  ;;  %12331 = vmatprep.mubr.f32.mxu1 %v18356_v25 }
 0xacf   :  { %v5742_v7 = vpop.f32.mrf.mxu1  ;;  %v6047_v9 = vpop.f32.mrf.mxu0 }
 0xad0   :  { %22485 = vst [vmem:[#allocation33_spill] sm:$0xff] %v19174_v20 }
 0xad1   :  { %v5745_v16 = vpop.f32.mrf.mxu1  ;;  %12332 = vmatmul.mubr.f32.gmra.mxu1 %v18361_v3  ;;  %v19178_v30 = vpop.f32.mrf.mxu0 }
 0xad2   :  { %v19181_v39 = vadd.f32 %v19078_v43, %v5745_v16  ;;  %12334 = vmatprep.mubr.f32.mxu1 %v18366_v49 }
 0xad3   :  { %v5747_v32 = vpop.f32.mrf.mxu1  ;;  %v6052_v48 = vpop.f32.mrf.mxu0 }
 0xad4   :  { %22486 = vst [vmem:[#allocation14_spill] sm:$0xff] %v19181_v39 }
 0xad5   :  { %v5750_v54 = vpop.f32.mrf.mxu1  ;;  %12335 = vmatmul.mubr.f32.gmra.mxu1 %v18371_v41  ;;  %v6055_v17 = vpop.f32.mrf.mxu0 }
 0xad6   :  { %v19186_v31 = vadd.f32 %v19082_v28, %v5750_v54  ;;  %12337 = vmatprep.mubr.f32.mxu1 %v18376_v61 }
 0xad7   :  { %v5752_v7 = vpop.f32.mrf.mxu1  ;;  %v6057_v9 = vpop.f32.mrf.mxu0 }
 0xad8   :  { %22487 = vst [vmem:[#allocation34_spill] sm:$0xff] %v19186_v31  ;;  %v13065_v7 = vld [vmem:[%s22327_s5 + $0x608] sm:$0xff] }
 0xad9   :  { %v5755_v20 = vpop.f32.mrf.mxu1  ;;  %12338 = vmatmul.mubr.f32.gmra.mxu1 %v18381_v52  ;;  %v6060_v43 = vpop.f32.mrf.mxu0 }
 0xada   :  { %v19191_v16 = vadd.f32 %v19086_v15, %v5755_v20  ;;  %12340 = vmatprep.mubr.f32.mxu1 %v18386_v6 }
 0xadb   :  { %v5757_v32 = vpop.f32.mrf.mxu1  ;;  %v6062_v48 = vpop.f32.mrf.mxu0 }
 0xadc   :  { %22488 = vst [vmem:[#allocation15_spill] sm:$0xff] %v19191_v16 }
 0xadd   :  { %v5760_v39 = vpop.f32.mrf.mxu1  ;;  %12341 = vmatmul.mubr.f32.gmra.mxu1 %v18391_v11  ;;  %v6065_v28 = vpop.f32.mrf.mxu0 }
 0xade   :  { %v19196_v54 = vadd.f32 %v19090_v27, %v5760_v39  ;;  %6874 = vmatprep.mubr.f32.mxu1 %v13065_v7 }
 0xadf   :  { %v5762_v9 = vpop.f32.mrf.mxu1  ;;  %v6067_v31 = vpop.f32.mrf.mxu0 }
 0xae0   :  { %22489 = vst [vmem:[#allocation35_spill] sm:$0xff] %v19196_v54 }
 0xae1   :  { %v5765_v15 = vpop.f32.mrf.mxu1 }
 0xae2   :  { %v19202_v20 = vadd.f32 %v19094_v23, %v5765_v15 }
 0xae3   :  { %v5767_v32 = vpop.f32.mrf.mxu1 }
 0xae5   :  { %v5770_v48 = vpop.f32.mrf.mxu1 }
 0xae6   :  { %v19205_v16 = vadd.f32 %v19101_v50, %v5770_v48 }
 0xae7   :  { %v5772_v21 = vpop.f32.mrf.mxu1 }
 0xae9   :  { %v5775_v2 = vpop.f32.mrf.mxu1 }
 0xaea   :  { %v19208_v27 = vadd.f32 %v19108_v62, %v5775_v2 }
 0xaeb   :  { %v5777_v39 = vpop.f32.mrf.mxu1 }
 0xaed   :  { %v5780_v54 = vpop.f32.mrf.mxu1 }
 0xaee   :  { %v19211_v7 = vadd.f32 %v19115_v59, %v5780_v54 }
 0xaef   :  { %v5782_v31 = vpop.f32.mrf.mxu1 }
 0xaf1   :  { %v5785_v9 = vpop.f32.mrf.mxu1 }
 0xaf2   :  { %v19214_v23 = vadd.f32 %v19122_v13, %v5785_v9 }
 0xaf3   :  { %v5787_v15 = vpop.f32.mrf.mxu1 }
 0xaf5   :  { %v5790_v32 = vpop.f32.mrf.mxu1 }
 0xaf6   :  { %v19217_v50 = vadd.f32 %v19129_v57, %v5790_v32 }
 0xaf7   :  { %v5792_v21 = vpop.f32.mrf.mxu1 }
 0xaf9   :  { %v5795_v48 = vpop.f32.mrf.mxu1 }
 0xafa   :  { %v19220_v62 = vadd.f32 %v19136_v1, %v5795_v48 }
 0xafb   :  { %v5797_v2 = vpop.f32.mrf.mxu1 }
 0xafd   :  { %v5800_v39 = vpop.f32.mrf.mxu1 }
 0xafe   :  { %v19223_v59 = vadd.f32 %v19143_v4, %v5800_v39 }
 0xaff   :  { %v5802_v54 = vpop.f32.mrf.mxu1 }
 0xb01   :  { %v5805_v31 = vpop.f32.mrf.mxu1 }
 0xb02   :  { %v19226_v13 = vadd.f32 %v19150_v37, %v5805_v31 }
 0xb03   :  { %v5807_v9 = vpop.f32.mrf.mxu1 }
 0xb04   :  { %22490 = vst [vmem:[#allocation17_spill] sm:$0xff] %v19226_v13 }
 0xb05   :  { %v5810_v15 = vpop.f32.mrf.mxu1 }
 0xb06   :  { %v19229_v57 = vadd.f32 %v19157_v0, %v5810_v15 }
 0xb07   :  { %v5812_v32 = vpop.f32.mrf.mxu1 }
 0xb08   :  { %22491 = vst [vmem:[#allocation36_spill] sm:$0xff] %v19229_v57 }
 0xb09   :  { %v5815_v21 = vpop.f32.mrf.mxu1 }
 0xb0a   :  { %v19232_v1 = vadd.f32 %v19164_v63, %v5815_v21 }
 0xb0b   :  { %v5817_v48 = vpop.f32.mrf.mxu1 }
 0xb0c   :  { %22492 = vst [vmem:[#allocation19_spill] sm:$0xff] %v19232_v1 }
 0xb0d   :  { %v5820_v2 = vpop.f32.mrf.mxu1 }
 0xb0e   :  { %v19235_v4 = vadd.f32 %v19171_v56, %v5820_v2 }
 0xb0f   :  { %v5822_v39 = vpop.f32.mrf.mxu1 }
 0xb10   :  { %22493 = vst [vmem:[#allocation37_spill] sm:$0xff] %v19235_v4 }
 0xb11   :  { %v5825_v54 = vpop.f32.mrf.mxu1 }
 0xb12   :  { %v19238_v37 = vadd.f32 %v19178_v30, %v5825_v54 }
 0xb13   :  { %v5827_v31 = vpop.f32.mrf.mxu1 }
 0xb14   :  { %22494 = vst [vmem:[#allocation16_spill] sm:$0xff] %v19238_v37 }
 0xb15   :  { %v5830_v9 = vpop.f32.mrf.mxu1 }
 0xb16   :  { %v19240_v13 = vadd.f32 %v6055_v17, %v5830_v9 }
 0xb17   :  { %v5832_v0 = vpop.f32.mrf.mxu1 }
 0xb18   :  { %22495 = vst [vmem:[#allocation20_spill] sm:$0xff] %v19240_v13 }
 0xb19   :  { %v5835_v15 = vpop.f32.mrf.mxu1 }
 0xb1a   :  { %v19242_v32 = vadd.f32 %v6060_v43, %v5835_v15 }
 0xb1b   :  { %v5837_v63 = vpop.f32.mrf.mxu1 }
 0xb1c   :  { %22496 = vst [vmem:[#allocation38_spill] sm:$0xff] %v19242_v32 }
 0xb1d   :  { %v5840_v21 = vpop.f32.mrf.mxu1 }
 0xb1e   :  { %v19244_v48 = vadd.f32 %v6065_v28, %v5840_v21 }
 0xb1f   :  { %v5842_v1 = vpop.f32.mrf.mxu1 }
 0xb20   :  { %22497 = vst [vmem:[#allocation39_spill] sm:$0xff] %v19244_v48 }
 0xb21   :  { %v12217_v56 = vpop.f32.mrf.mxu1 }
 0xb23   :  { %v6152_v2 = vpop.f32.mrf.mxu1 }
 0xb25   :  { %v12220_v39 = vpop.f32.mrf.mxu1 }
 0xb27   :  { %v6162_v4 = vpop.f32.mrf.mxu1 }
 0xb29   :  { %v12223_v57 = vpop.f32.mrf.mxu1 }
 0xb2b   :  { %v6172_v30 = vpop.f32.mrf.mxu1 }
 0xb2d   :  { %v12226_v54 = vpop.f32.mrf.mxu1 }
 0xb2f   :  { %v6182_v31 = vpop.f32.mrf.mxu1 }
 0xb31   :  { %v12229_v37 = vpop.f32.mrf.mxu1 }
 0xb33   :  { %v6192_v17 = vpop.f32.mrf.mxu1 }
 0xb35   :  { %v12232_v9 = vpop.f32.mrf.mxu1 }
 0xb37   :  { %v6202_v0 = vpop.f32.mrf.mxu1 }
 0xb39   :  { %v12235_v13 = vpop.f32.mrf.mxu1 }
 0xb3b   :  { %v6212_v43 = vpop.f32.mrf.mxu1 }
 0xb3d   :  { %v12238_v15 = vpop.f32.mrf.mxu1 }
 0xb3e   :  { %6312 = vmatpush1.msra.mxu0 %v12238_v15 }
 0xb3f   :  { %v6222_v63 = vpop.f32.mrf.mxu1  ;;  %6313 = vmatprep.subr.mxu0 %v22461_v12 }
 0xb40   :  { %6314 = vmatpush1.msra.mxu0 %v6222_v63 }
 0xb41   :  { %v19247_v28 = vpop.f32.mrf.mxu1  ;;  %6315 = vmatprep.subr.mxu0 %v22461_v12 }
 0xb42   :  { %6316 = vmatpush1.msra.mxu0 %v12235_v13 }
 0xb43   :  { %v19250_v1 = vpop.f32.mrf.mxu1  ;;  %6317 = vmatprep.subr.mxu0 %v22461_v12 }
 0xb44   :  { %6318 = vmatpush1.msra.mxu0 %v6212_v43 }
 0xb45   :  { %v19253_v21 = vpop.f32.mrf.mxu1  ;;  %6319 = vmatprep.subr.mxu0 %v22461_v12 }
 0xb46   :  { %6320 = vmatpush1.msra.mxu0 %v12232_v9 }
 0xb47   :  { %v19256_v15 = vpop.f32.mrf.mxu1  ;;  %6321 = vmatprep.subr.mxu0 %v22461_v12 }
 0xb48   :  { %6322 = vmatpush1.msra.mxu0 %v6202_v0 }
 0xb49   :  { %v12247_v63 = vpop.f32.mrf.mxu1  ;;  %6323 = vmatprep.subr.mxu0 %v22461_v12 }
 0xb4a   :  { %6324 = vmatpush1.msra.mxu0 %v12229_v37 }
 0xb4b   :  { %v6252_v13 = vpop.f32.mrf.mxu1  ;;  %6325 = vmatprep.subr.mxu0 %v22461_v12 }
 0xb4c   :  { %6326 = vmatpush1.msra.mxu0 %v6192_v17 }
 0xb4d   :  { %v12250_v48 = vpop.f32.mrf.mxu1  ;;  %6327 = vmatprep.subr.mxu0 %v22461_v12 }
 0xb4e   :  { %6328 = vmatpush1.msra.mxu0 %v12226_v54 }
 0xb4f   :  { %v6262_v43 = vpop.f32.mrf.mxu1  ;;  %6329 = vmatprep.subr.mxu0 %v22461_v12 }
 0xb50   :  { %6330 = vmatpush1.msra.mxu0 %v6182_v31 }
 0xb51   :  { %v12253_v9 = vpop.f32.mrf.mxu1  ;;  %6331 = vmatprep.subr.mxu0 %v22461_v12 }
 0xb52   :  { %6332 = vmatpush1.msra.mxu0 %v12223_v57 }
 0xb53   :  { %v6272_v0 = vpop.f32.mrf.mxu1  ;;  %6333 = vmatprep.subr.mxu0 %v22461_v12 }
 0xb54   :  { %6334 = vmatpush1.msra.mxu0 %v6172_v30 }
 0xb55   :  { %v12256_v37 = vpop.f32.mrf.mxu1  ;;  %6335 = vmatprep.subr.mxu0 %v22461_v12 }
 0xb56   :  { %6336 = vmatpush1.msra.mxu0 %v12220_v39 }
 0xb57   :  { %v6282_v17 = vpop.f32.mrf.mxu1  ;;  %6337 = vmatprep.subr.mxu0 %v22461_v12 }
 0xb58   :  { %6338 = vmatpush1.msra.mxu0 %v6162_v4 }
 0xb59   :  { %v12259_v54 = vpop.f32.mrf.mxu1  ;;  %6339 = vmatprep.subr.mxu0 %v22461_v12 }
 0xb5a   :  { %6340 = vmatpush1.msra.mxu0 %v12217_v56 }
 0xb5b   :  { %v6292_v31 = vpop.f32.mrf.mxu1  ;;  %6341 = vmatprep.subr.mxu0 %v22461_v12 }
 0xb5c   :  { %6342 = vmatpush1.msra.mxu0 %v6152_v2 }
 0xb5d   :  { %v12262_v57 = vpop.f32.mrf.mxu1  ;;  %6343 = vmatprep.subr.mxu0 %v22461_v12 }
 0xb5e   :  { %6344 = vmatpush2.msra.mxu0 %v12262_v57 }
 0xb5f   :  { %v6302_v30 = vpop.f32.mrf.mxu1  ;;  %6345 = vmatprep.subr.mxu0 %v22461_v12 }
 0xb60   :  { %6346 = vmatpush2.msra.mxu0 %v6302_v30  ;;  %v13067_v30 = vld [vmem:[%s22327_s5 + $0x418] sm:$0xff] }
 0xb61   :  { %6347 = vmatprep.subr.mxu0 %v22461_v12  ;;  %v19272_v39 = vpop.f32.mrf.mxu1 }
 0xb62   :  { %6348 = vmatpush2.msra.mxu0 %v12259_v54 }
 0xb63   :  { %6349 = vmatprep.subr.mxu0 %v22461_v12  ;;  %v19275_v4 = vpop.f32.mrf.mxu1 }
 0xb64   :  { %6350 = vmatpush2.msra.mxu0 %v6292_v31 }
 0xb65   :  { %6351 = vmatprep.subr.mxu0 %v22461_v12  ;;  %v19278_v56 = vpop.f32.mrf.mxu1 }
 0xb66   :  { %6352 = vmatpush2.msra.mxu0 %v12256_v37 }
 0xb67   :  { %6353 = vmatprep.subr.mxu0 %v22461_v12  ;;  %v19281_v2 = vpop.f32.mrf.mxu1 }
 0xb68   :  { %6354 = vmatpush2.msra.mxu0 %v6282_v17 }
 0xb69   :  { %6355 = vmatprep.subr.mxu0 %v22461_v12  ;;  %v19284_v57 = vpop.f32.mrf.mxu1 }
 0xb6a   :  { %6356 = vmatpush2.msra.mxu0 %v12253_v9 }
 0xb6b   :  { %6357 = vmatprep.subr.mxu0 %v22461_v12  ;;  %v19287_v54 = vpop.f32.mrf.mxu1 }
 0xb6c   :  { %6358 = vmatpush2.msra.mxu0 %v6272_v0 }
 0xb6d   :  { %6359 = vmatprep.subr.mxu0 %v22461_v12  ;;  %v19290_v31 = vpop.f32.mrf.mxu1 }
 0xb6e   :  { %6360 = vmatpush2.msra.mxu0 %v12250_v48 }
 0xb6f   :  { %6361 = vmatprep.subr.mxu0 %v22461_v12  ;;  %v19293_v37 = vpop.f32.mrf.mxu1 }
 0xb70   :  { %6362 = vmatpush2.msra.mxu0 %v6262_v43 }
 0xb71   :  { %6363 = vmatprep.subr.mxu0 %v22461_v12  ;;  %v12309_v17 = vpop.f32.mrf.mxu1 }
 0xb72   :  { %6364 = vmatpush2.msra.mxu0 %v12247_v63  ;;  %v10373_v63 = vld [vmem:[%s22328_s3 + $0x278] sm:$0xff] }
 0xb73   :  { %6365 = vmatprep.subr.mxu0 %v22461_v12  ;;  %v19297_v9 = vpop.f32.mrf.mxu1 }
 0xb74   :  { %6366 = vmatpush2.msra.mxu0 %v6252_v13 }
 0xb75   :  { %6367 = vmatprep.subr.mxu0 %v22461_v12  ;;  %v12312_v0 = vpop.f32.mrf.mxu1 }
 0xb76   :  { %6368 = vmatpush2.msra.mxu0 %v19253_v21  ;;  %v13066_v21 = vld [vmem:[%s22327_s5 + $0x400] sm:$0xff] }
 0xb77   :  { %6369 = vmatprep.subr.mxu0 %v22461_v12  ;;  %v6701_v48 = vpop.f32.mrf.mxu1 }
 0xb78   :  { %6370 = vmatpush2.msra.mxu0 %v19256_v15 }
 0xb79   :  { %6371 = vmatprep.subr.mxu0 %v22461_v12  ;;  %v12315_v43 = vpop.f32.mrf.mxu1 }
 0xb7a   :  { %6372 = vmatpush2.msra.mxu0 %v19247_v28  ;;  %v10372_v28 = vld [vmem:[%s22328_s3 + $0x270] sm:$0xff] }
 0xb7b   :  { %6373 = vmatprep.subr.mxu0 %v22461_v12  ;;  %v6711_v13 = vpop.f32.mrf.mxu1 }
 0xb7c   :  { %6374 = vmatpush2.msra.mxu0 %v19250_v1  ;;  %v13068_v1 = vld [vmem:[%s22327_s5 + $0x410] sm:$0xff] }
 0xb7d   :  { %6376 = vmatmul.mubr.f32.vlgmr.msra.gmra.mxu0 %v13066_v21  ;;  %v12318_v15 = vpop.f32.mrf.mxu1  ;;  %12343 = vmatprep.subr.mxu0 %v10373_v63 }
 0xb7e   :  { %6811 = vmatpush1.msra.mxu1 %v12318_v15  ;;  %6380 = vmatprep.mubr.f32.mxu0 %v13067_v30  ;;  %v10371_v15 = vld [vmem:[%s22328_s3 + $0x268] sm:$0xff]  ;;  %v13070_v30 = vld [vmem:[%s22327_s5 + $0x420] sm:$0xff] }
 0xb7f   :  { %v6721_v32 = vpop.f32.mrf.mxu1  ;;  %6812 = vmatprep.subr.mxu1 %v22461_v12  ;;  %12344 = vmatpush3.msra.mxu0 %v10373_v63  ;;  %v13069_v63 = vld [vmem:[%s22327_s5 + $0x428] sm:$0xff] }
 0xb80   :  { %6813 = vmatpush1.msra.mxu1 %v6721_v32  ;;  %12345 = vmatprep.subr.mxu0 %v10372_v28 }
 0xb81   :  { %6381 = vmatmul.mubr.f32.gmra.mxu0 %v13068_v1  ;;  %v19323_v21 = vpop.f32.mrf.mxu1  ;;  %6814 = vmatprep.subr.mxu1 %v22461_v12 }
 0xb82   :  { %6815 = vmatpush1.msra.mxu1 %v12315_v43  ;;  %6385 = vmatprep.mubr.f32.mxu0 %v13069_v63  ;;  %v10370_v43 = vld [vmem:[%s22328_s3 + $0x260] sm:$0xff]  ;;  %v13072_v63 = vld [vmem:[%s22327_s5 + $0x430] sm:$0xff] }
 0xb83   :  { %v19332_v32 = vpop.f32.mrf.mxu1  ;;  %6816 = vmatprep.subr.mxu1 %v22461_v12  ;;  %12346 = vmatpush3.msra.mxu0 %v10372_v28  ;;  %v13071_v28 = vld [vmem:[%s22327_s5 + $0x438] sm:$0xff] }
 0xb84   :  { %6817 = vmatpush1.msra.mxu1 %v6711_v13  ;;  %12347 = vmatprep.subr.mxu0 %v10371_v15 }
 0xb85   :  { %6386 = vmatmul.mubr.f32.gmra.mxu0 %v13070_v30  ;;  %v19338_v1 = vpop.f32.mrf.mxu1  ;;  %6818 = vmatprep.subr.mxu1 %v22461_v12 }
 0xb86   :  { %6819 = vmatpush1.msra.mxu1 %v12312_v0  ;;  %6390 = vmatprep.mubr.f32.mxu0 %v13071_v28  ;;  %v10369_v0 = vld [vmem:[%s22328_s3 + $0x258] sm:$0xff]  ;;  %v13074_v28 = vld [vmem:[%s22327_s5 + $0x440] sm:$0xff] }
 0xb87   :  { %v19347_v13 = vpop.f32.mrf.mxu1  ;;  %6820 = vmatprep.subr.mxu1 %v22461_v12  ;;  %12348 = vmatpush3.msra.mxu0 %v10371_v15  ;;  %v13073_v15 = vld [vmem:[%s22327_s5 + $0x448] sm:$0xff] }
 0xb88   :  { %6821 = vmatpush1.msra.mxu1 %v6701_v48  ;;  %12349 = vmatprep.subr.mxu0 %v10370_v43 }
 0xb89   :  { %6391 = vmatmul.mubr.f32.gmra.mxu0 %v13072_v63  ;;  %v19353_v30 = vpop.f32.mrf.mxu1  ;;  %6822 = vmatprep.subr.mxu1 %v22461_v12 }
 0xb8a   :  { %6823 = vmatpush1.msra.mxu1 %v12309_v17  ;;  %6395 = vmatprep.mubr.f32.mxu0 %v13073_v15  ;;  %v10368_v17 = vld [vmem:[%s22328_s3 + $0x250] sm:$0xff] }
 0xb8b   :  { %v19362_v48 = vpop.f32.mrf.mxu1  ;;  %6824 = vmatprep.subr.mxu1 %v22461_v12  ;;  %12350 = vmatpush3.msra.mxu0 %v10370_v43  ;;  %v13076_v15 = vld [vmem:[%s22327_s5 + $0x450] sm:$0xff] }
 0xb8c   :  { %6825 = vmatpush1.msra.mxu1 %v19297_v9  ;;  %12351 = vmatprep.subr.mxu0 %v10369_v0  ;;  %v13075_v9 = vld [vmem:[%s22327_s5 + $0x458] sm:$0xff] }
 0xb8d   :  { %6396 = vmatmul.mubr.f32.gmra.mxu0 %v13074_v28  ;;  %v19369_v63 = vpop.f32.mrf.mxu1  ;;  %6826 = vmatprep.subr.mxu1 %v22461_v12 }
 0xb8e   :  { %6827 = vmatpush1.msra.mxu1 %v19290_v31  ;;  %6400 = vmatprep.mubr.f32.mxu0 %v13075_v9  ;;  %v10367_v31 = vld [vmem:[%s22328_s3 + $0x248] sm:$0xff]  ;;  %v13078_v9 = vld [vmem:[%s22327_s5 + $0x460] sm:$0xff] }
 0xb8f   :  { %v19379_v43 = vpop.f32.mrf.mxu1  ;;  %6828 = vmatprep.subr.mxu1 %v22461_v12  ;;  %12352 = vmatpush3.msra.mxu0 %v10369_v0 }
 0xb90   :  { %6829 = vmatpush1.msra.mxu1 %v19293_v37  ;;  %12353 = vmatprep.subr.mxu0 %v10368_v17  ;;  %v13077_v37 = vld [vmem:[%s22327_s5 + $0x468] sm:$0xff] }
 0xb91   :  { %6401 = vmatmul.mubr.f32.gmra.mxu0 %v13076_v15  ;;  %v19386_v28 = vpop.f32.mrf.mxu1  ;;  %6830 = vmatprep.subr.mxu1 %v22461_v12 }
 0xb92   :  { %6831 = vmatpush1.msra.mxu1 %v19284_v57  ;;  %6405 = vmatprep.mubr.f32.mxu0 %v13077_v37  ;;  %v10366_v57 = vld [vmem:[%s22328_s3 + $0x240] sm:$0xff]  ;;  %v13080_v37 = vld [vmem:[%s22327_s5 + $0x470] sm:$0xff] }
 0xb93   :  { %v19396_v0 = vpop.f32.mrf.mxu1  ;;  %6832 = vmatprep.subr.mxu1 %v22461_v12  ;;  %12354 = vmatpush3.msra.mxu0 %v10368_v17  ;;  %v13079_v17 = vld [vmem:[%s22327_s5 + $0x478] sm:$0xff] }
 0xb94   :  { %6833 = vmatpush1.msra.mxu1 %v19287_v54  ;;  %12355 = vmatprep.subr.mxu0 %v10367_v31 }
 0xb95   :  { %6406 = vmatmul.mubr.f32.gmra.mxu0 %v13078_v9  ;;  %v12336_v15 = vpop.f32.mrf.mxu1  ;;  %6834 = vmatprep.subr.mxu1 %v22461_v12 }
 0xb96   :  { %6835 = vmatpush1.msra.mxu1 %v19278_v56  ;;  %6410 = vmatprep.mubr.f32.mxu0 %v13079_v17  ;;  %v10365_v56 = vld [vmem:[%s22328_s3 + $0x238] sm:$0xff]  ;;  %v13082_v17 = vld [vmem:[%s22327_s5 + $0x480] sm:$0xff] }
 0xb97   :  { %v6781_v54 = vpop.f32.mrf.mxu1  ;;  %6836 = vmatprep.subr.mxu1 %v22461_v12  ;;  %12356 = vmatpush3.msra.mxu0 %v10367_v31  ;;  %v13081_v31 = vld [vmem:[%s22327_s5 + $0x488] sm:$0xff] }
 0xb98   :  { %6837 = vmatpush1.msra.mxu1 %v19281_v2  ;;  %12357 = vmatprep.subr.mxu0 %v10366_v57 }
 0xb99   :  { %6411 = vmatmul.mubr.f32.gmra.mxu0 %v13080_v37  ;;  %v12339_v9 = vpop.f32.mrf.mxu1  ;;  %6838 = vmatprep.subr.mxu1 %v22461_v12 }
 0xb9a   :  { %6839 = vmatpush1.msra.mxu1 %v19272_v39  ;;  %6415 = vmatprep.mubr.f32.mxu0 %v13081_v31  ;;  %v10364_v39 = vld [vmem:[%s22328_s3 + $0x230] sm:$0xff] }
 0xb9b   :  { %v6791_v2 = vpop.f32.mrf.mxu1  ;;  %6840 = vmatprep.subr.mxu1 %v22461_v12  ;;  %12358 = vmatpush3.msra.mxu0 %v10366_v57  ;;  %v13083_v57 = vld [vmem:[%s22327_s5 + $0x498] sm:$0xff]  ;;  %v13084_v31 = vld [vmem:[%s22327_s5 + $0x490] sm:$0xff] }
 0xb9c   :  { %6841 = vmatpush1.msra.mxu1 %v19275_v4  ;;  %12359 = vmatprep.subr.mxu0 %v10365_v56 }
 0xb9d   :  { %6416 = vmatmul.mubr.f32.gmra.mxu0 %v13082_v17  ;;  %v12342_v37 = vpop.f32.mrf.mxu1  ;;  %6842 = vmatprep.subr.mxu1 %v22461_v12  ;;  %v10363_v17 = vld [vmem:[%s22328_s3 + $0x228] sm:$0xff] }
 0xb9e   :  { %6843 = vmatpush2.msra.mxu1 %v12342_v37  ;;  %6420 = vmatprep.mubr.f32.mxu0 %v13083_v57  ;;  %v13085_v37 = vld [vmem:[%s22327_s5 + $0x4a8] sm:$0xff]  ;;  %v13087_v57 = vld [vmem:[%s22327_s5 + $0x4b8] sm:$0xff] }
 0xb9f   :  { %v6801_v4 = vpop.f32.mrf.mxu1  ;;  %6844 = vmatprep.subr.mxu1 %v22461_v12  ;;  %12360 = vmatpush3.msra.mxu0 %v10365_v56  ;;  %v13086_v56 = vld [vmem:[%s22327_s5 + $0x4a0] sm:$0xff] }
 0xba0   :  { %6845 = vmatpush2.msra.mxu1 %v6801_v4  ;;  %12361 = vmatprep.subr.mxu0 %v10364_v39  ;;  %v13091_v4 = vld [vmem:[%s22327_s5 + $0x4d8] sm:$0xff] }
 0xba1   :  { %6421 = vmatmul.mubr.f32.gmra.mxu0 %v13084_v31  ;;  %6846 = vmatprep.subr.mxu1 %v22461_v12  ;;  %v13093_v31 = vld [vmem:[%s22327_s5 + $0x4e8] sm:$0xff] }
 0xba2   :  { %6847 = vmatpush2.msra.mxu1 %v12339_v9  ;;  %6425 = vmatprep.mubr.f32.mxu0 %v13085_v37  ;;  %v10362_v9 = vld [vmem:[%s22328_s3 + $0x220] sm:$0xff] }
 0xba3   :  { %6848 = vmatprep.subr.mxu1 %v22461_v12  ;;  %12362 = vmatpush3.msra.mxu0 %v10364_v39  ;;  %v13089_v39 = vld [vmem:[%s22327_s5 + $0x4c8] sm:$0xff]  ;;  %v13099_v37 = vld [vmem:[%s22327_s5 + $0x600] sm:$0xff] }
 0xba4   :  { %6849 = vmatpush2.msra.mxu1 %v6791_v2  ;;  %12363 = vmatprep.subr.mxu0 %v10363_v17  ;;  %v13088_v2 = vld [vmem:[%s22327_s5 + $0x4b0] sm:$0xff] }
 0xba5   :  { %6426 = vmatmul.mubr.f32.gmra.mxu0 %v13086_v56  ;;  %6850 = vmatprep.subr.mxu1 %v22461_v12  ;;  %v13101_v56 = vld [vmem:[%s22327_s5 + $0x618] sm:$0xff] }
 0xba6   :  { %6851 = vmatpush2.msra.mxu1 %v12336_v15  ;;  %6430 = vmatprep.mubr.f32.mxu0 %v13087_v57  ;;  %v10361_v15 = vld [vmem:[%s22328_s3 + $0x218] sm:$0xff]  ;;  %v13102_v57 = vld [vmem:[%s22327_s5 + $0x510] sm:$0xff] }
 0xba7   :  { %6852 = vmatprep.subr.mxu1 %v22461_v12  ;;  %12364 = vmatpush3.msra.mxu0 %v10363_v17  ;;  %v13095_v17 = vld [vmem:[%s22327_s5 + $0x4f8] sm:$0xff] }
 0xba8   :  { %6853 = vmatpush2.msra.mxu1 %v6781_v54  ;;  %12365 = vmatprep.subr.mxu0 %v10362_v9  ;;  %v13090_v54 = vld [vmem:[%s22327_s5 + $0x4c0] sm:$0xff] }
 0xba9   :  { %6431 = vmatmul.mubr.f32.gmra.mxu0 %v13088_v2  ;;  %6854 = vmatprep.subr.mxu1 %v22461_v12  ;;  %v13103_v2 = vld [vmem:[%s22327_s5 + $0x610] sm:$0xff] }
 0xbaa   :  { %6855 = vmatpush2.msra.mxu1 %v19386_v28  ;;  %6435 = vmatprep.mubr.f32.mxu0 %v13089_v39  ;;  %v10360_v28 = vld [vmem:[%s22328_s3 + $0x210] sm:$0xff]  ;;  %v13105_v39 = vld [vmem:[%s22327_s5 + $0x628] sm:$0xff] }
 0xbab   :  { %6856 = vmatprep.subr.mxu1 %v22461_v12  ;;  %12366 = vmatpush3.msra.mxu0 %v10362_v9  ;;  %v10388_v9 = vld [vmem:[%s22328_s3 + $0x2f0] sm:$0xff] }
 0xbac   :  { %6857 = vmatpush2.msra.mxu1 %v19396_v0  ;;  %12367 = vmatprep.subr.mxu0 %v10361_v15  ;;  %v13092_v0 = vld [vmem:[%s22327_s5 + $0x4d0] sm:$0xff] }
 0xbad   :  { %6436 = vmatmul.mubr.f32.gmra.mxu0 %v13090_v54  ;;  %6858 = vmatprep.subr.mxu1 %v22461_v12  ;;  %v10387_v54 = vld [vmem:[%s22328_s3 + $0x2e8] sm:$0xff] }
 0xbae   :  { %6859 = vmatpush2.msra.mxu1 %v19369_v63  ;;  %6440 = vmatprep.mubr.f32.mxu0 %v13091_v4  ;;  %v10359_v63 = vld [vmem:[%s22328_s3 + $0x208] sm:$0xff]  ;;  %v13107_v4 = vld [vmem:[%s22327_s5 + $0x620] sm:$0xff] }
 0xbaf   :  { %6860 = vmatprep.subr.mxu1 %v22461_v12  ;;  %12368 = vmatpush3.msra.mxu0 %v10361_v15  ;;  %v13104_v15 = vld [vmem:[%s22327_s5 + $0x528] sm:$0xff] }
 0xbb0   :  { %6861 = vmatpush2.msra.mxu1 %v19379_v43  ;;  %12369 = vmatprep.subr.mxu0 %v10360_v28  ;;  %v13094_v43 = vld [vmem:[%s22327_s5 + $0x4e0] sm:$0xff] }
 0xbb1   :  { %6441 = vmatmul.mubr.f32.gmra.mxu0 %v13092_v0  ;;  %6862 = vmatprep.subr.mxu1 %v22461_v12  ;;  %v13108_v0 = vld [vmem:[%s22327_s5 + $0x538] sm:$0xff] }
 0xbb2   :  { %6863 = vmatpush2.msra.mxu1 %v19353_v30  ;;  %6445 = vmatprep.mubr.f32.mxu0 %v13093_v31  ;;  %v10358_v30 = vld [vmem:[%s22328_s3 + $0x200] sm:$0xff] }
 0xbb3   :  { %6864 = vmatprep.subr.mxu1 %v22461_v12  ;;  %12370 = vmatpush3.msra.mxu0 %v10360_v28  ;;  %v13106_v28 = vld [vmem:[%s22327_s5 + $0x520] sm:$0xff] }
 0xbb4   :  { %6865 = vmatpush2.msra.mxu1 %v19362_v48  ;;  %12371 = vmatprep.subr.mxu0 %v10359_v63  ;;  %v13096_v48 = vld [vmem:[%s22327_s5 + $0x4f0] sm:$0xff]  ;;  %v10386_v31 = vld [vmem:[%s22328_s3 + $0x2e0] sm:$0xff] }
 0xbb5   :  { %6446 = vmatmul.mubr.f32.gmra.mxu0 %v13094_v43  ;;  %6866 = vmatprep.subr.mxu1 %v22461_v12  ;;  %v13110_v43 = vld [vmem:[%s22327_s5 + $0x530] sm:$0xff] }
 0xbb6   :  { %6867 = vmatpush2.msra.mxu1 %v19338_v1  ;;  %6450 = vmatprep.mubr.f32.mxu0 %v13095_v17  ;;  %v13097_v1 = vld [vmem:[%s22327_s5 + $0x508] sm:$0xff] }
 0xbb7   :  { %6868 = vmatprep.subr.mxu1 %v22461_v12  ;;  %12372 = vmatpush3.msra.mxu0 %v10359_v63  ;;  %v13109_v63 = vld [vmem:[%s22327_s5 + $0x638] sm:$0xff]  ;;  %v13112_v17 = vld [vmem:[%s22327_s5 + $0x548] sm:$0xff] }
 0xbb8   :  { %6869 = vmatpush2.msra.mxu1 %v19347_v13  ;;  %12373 = vmatprep.subr.mxu0 %v10358_v30  ;;  %v10389_v13 = vld [vmem:[%s22328_s3 + $0x2f8] sm:$0xff] }
 0xbb9   :  { %6451 = vmatmul.mubr.f32.gmra.mxu0 %v13096_v48  ;;  %6870 = vmatprep.subr.mxu1 %v22461_v12  ;;  %v13113_v48 = vld [vmem:[%s22327_s5 + $0x648] sm:$0xff] }
 0xbba   :  { %6871 = vmatpush2.msra.mxu1 %v19323_v21  ;;  %6455 = vmatprep.mubr.f32.mxu0 %v13097_v1  ;;  %v13098_v21 = vld [vmem:[%s22327_s5 + $0x500] sm:$0xff]  ;;  %v10385_v1 = vld [vmem:[%s22328_s3 + $0x2d8] sm:$0xff] }
 0xbbb   :  { %6872 = vmatprep.subr.mxu1 %v22461_v12  ;;  %12374 = vmatpush3.msra.mxu0 %v10358_v30  ;;  %v13111_v30 = vld [vmem:[%s22327_s5 + $0x630] sm:$0xff] }
 0xbbc   :  { %6873 = vmatpush2.msra.mxu1 %v19332_v32  ;;  %7309 = vmatprep.subr.mxu0 %v22461_v12  ;;  %v13100_v32 = vld [vmem:[%s22327_s5 + $0x518] sm:$0xff] }
 0xbbd   :  { %6456 = vmatmul.mubr.f32.gmra.mxu0 %v13098_v21  ;;  %6875 = vmatmul.mubr.f32.vlgmr.msra.gmra.mxu1 %v13099_v37  ;;  %v13115_v21 = vld [vmem:[%s22327_s5 + $0x640] sm:$0xff]  ;;  %v13116_v37 = vld [vmem:[%s22327_s5 + $0x558] sm:$0xff] }
 0xbbe   :  { %6460 = vmatprep.mubr.f32.mxu0 %v13100_v32  ;;  %6879 = vmatprep.mubr.f32.mxu1 %v13101_v56  ;;  %v13117_v32 = vld [vmem:[%s22327_s5 + $0x658] sm:$0xff]  ;;  %v10384_v56 = vld [vmem:[%s22328_s3 + $0x2d0] sm:$0xff] }
 0xbbf   :  { %12423 = vmatprep.subr.mxu1 %v10389_v13 }
 0xbc0   :  { %12424 = vmatpush3.msra.mxu1 %v10389_v13  ;;  %v13114_v13 = vld [vmem:[%s22327_s5 + $0x540] sm:$0xff] }
 0xbc1   :  { %6461 = vmatmul.mubr.f32.gmra.mxu0 %v13102_v57  ;;  %6880 = vmatmul.mubr.f32.gmra.mxu1 %v13103_v2  ;;  %v13119_v57 = vld [vmem:[%s22327_s5 + $0x650] sm:$0xff]  ;;  %v13120_v2 = vld [vmem:[%s22327_s5 + $0x568] sm:$0xff] }
 0xbc2   :  { %6465 = vmatprep.mubr.f32.mxu0 %v13104_v15  ;;  %6884 = vmatprep.mubr.f32.mxu1 %v13105_v39  ;;  %v13121_v15 = vld [vmem:[%s22327_s5 + $0x668] sm:$0xff] }
 0xbc3   :  { %12425 = vmatprep.subr.mxu1 %v10388_v9  ;;  %v10383_v39 = vld [vmem:[%s22328_s3 + $0x2c8] sm:$0xff] }
 0xbc4   :  { %12426 = vmatpush3.msra.mxu1 %v10388_v9  ;;  %v13118_v9 = vld [vmem:[%s22327_s5 + $0x550] sm:$0xff] }
 0xbc5   :  { %6466 = vmatmul.mubr.f32.gmra.mxu0 %v13106_v28  ;;  %6885 = vmatmul.mubr.f32.gmra.mxu1 %v13107_v4  ;;  %v13123_v28 = vld [vmem:[%s22327_s5 + $0x660] sm:$0xff]  ;;  %v13124_v4 = vld [vmem:[%s22327_s5 + $0x578] sm:$0xff] }
 0xbc6   :  { %6470 = vmatprep.mubr.f32.mxu0 %v13108_v0  ;;  %6889 = vmatprep.mubr.f32.mxu1 %v13109_v63  ;;  %v13125_v0 = vld [vmem:[%s22327_s5 + $0x678] sm:$0xff]  ;;  %v10382_v63 = vld [vmem:[%s22328_s3 + $0x2c0] sm:$0xff] }
 0xbc7   :  { %12427 = vmatprep.subr.mxu1 %v10387_v54 }
 0xbc8   :  { %12428 = vmatpush3.msra.mxu1 %v10387_v54  ;;  %v13122_v54 = vld [vmem:[%s22327_s5 + $0x560] sm:$0xff] }
 0xbc9   :  { %6471 = vmatmul.mubr.f32.gmra.mxu0 %v13110_v43  ;;  %6890 = vmatmul.mubr.f32.gmra.mxu1 %v13111_v30  ;;  %v13127_v43 = vld [vmem:[%s22327_s5 + $0x670] sm:$0xff]  ;;  %v13128_v30 = vld [vmem:[%s22327_s5 + $0x588] sm:$0xff] }
 0xbca   :  { %6475 = vmatprep.mubr.f32.mxu0 %v13112_v17  ;;  %6894 = vmatprep.mubr.f32.mxu1 %v13113_v48  ;;  %v13129_v17 = vld [vmem:[%s22327_s5 + $0x688] sm:$0xff]  ;;  %v10381_v48 = vld [vmem:[%s22328_s3 + $0x2b8] sm:$0xff] }
 0xbcb   :  { %12429 = vmatprep.subr.mxu1 %v10386_v31 }
 0xbcc   :  { %12430 = vmatpush3.msra.mxu1 %v10386_v31  ;;  %v13126_v31 = vld [vmem:[%s22327_s5 + $0x570] sm:$0xff] }
 0xbcd   :  { %6476 = vmatmul.mubr.f32.gmra.mxu0 %v13114_v13  ;;  %6895 = vmatmul.mubr.f32.gmra.mxu1 %v13115_v21  ;;  %v13131_v13 = vld [vmem:[%s22327_s5 + $0x680] sm:$0xff]  ;;  %v13132_v21 = vld [vmem:[%s22327_s5 + $0x598] sm:$0xff] }
 0xbce   :  { %6480 = vmatprep.mubr.f32.mxu0 %v13116_v37  ;;  %6899 = vmatprep.mubr.f32.mxu1 %v13117_v32  ;;  %v13133_v37 = vld [vmem:[%s22327_s5 + $0x698] sm:$0xff]  ;;  %v10380_v32 = vld [vmem:[%s22328_s3 + $0x2b0] sm:$0xff] }
 0xbcf   :  { %12431 = vmatprep.subr.mxu1 %v10385_v1 }
 0xbd0   :  { %12432 = vmatpush3.msra.mxu1 %v10385_v1  ;;  %v13130_v1 = vld [vmem:[%s22327_s5 + $0x580] sm:$0xff] }
 0xbd1   :  { %6481 = vmatmul.mubr.f32.gmra.mxu0 %v13118_v9  ;;  %6900 = vmatmul.mubr.f32.gmra.mxu1 %v13119_v57  ;;  %v13135_v9 = vld [vmem:[%s22327_s5 + $0x690] sm:$0xff]  ;;  %v13136_v57 = vld [vmem:[%s22327_s5 + $0x5a8] sm:$0xff] }
 0xbd2   :  { %6485 = vmatprep.mubr.f32.mxu0 %v13120_v2  ;;  %6904 = vmatprep.mubr.f32.mxu1 %v13121_v15  ;;  %v13137_v2 = vld [vmem:[%s22327_s5 + $0x6a8] sm:$0xff] }
 0xbd3   :  { %12433 = vmatprep.subr.mxu1 %v10384_v56  ;;  %v10379_v15 = vld [vmem:[%s22328_s3 + $0x2a8] sm:$0xff] }
 0xbd4   :  { %12434 = vmatpush3.msra.mxu1 %v10384_v56  ;;  %v13134_v56 = vld [vmem:[%s22327_s5 + $0x590] sm:$0xff] }
 0xbd5   :  { %6486 = vmatmul.mubr.f32.gmra.mxu0 %v13122_v54  ;;  %6905 = vmatmul.mubr.f32.gmra.mxu1 %v13123_v28  ;;  %v13139_v54 = vld [vmem:[%s22327_s5 + $0x6a0] sm:$0xff]  ;;  %v13140_v28 = vld [vmem:[%s22327_s5 + $0x5b8] sm:$0xff] }
 0xbd6   :  { %6490 = vmatprep.mubr.f32.mxu0 %v13124_v4  ;;  %6909 = vmatprep.mubr.f32.mxu1 %v13125_v0  ;;  %v13141_v4 = vld [vmem:[%s22327_s5 + $0x6b8] sm:$0xff]  ;;  %v10378_v0 = vld [vmem:[%s22328_s3 + $0x2a0] sm:$0xff] }
 0xbd7   :  { %12435 = vmatprep.subr.mxu1 %v10383_v39 }
 0xbd8   :  { %12436 = vmatpush3.msra.mxu1 %v10383_v39  ;;  %v13138_v39 = vld [vmem:[%s22327_s5 + $0x5a0] sm:$0xff] }
 0xbd9   :  { %6491 = vmatmul.mubr.f32.gmra.mxu0 %v13126_v31  ;;  %6910 = vmatmul.mubr.f32.gmra.mxu1 %v13127_v43  ;;  %v13143_v31 = vld [vmem:[%s22327_s5 + $0x6b0] sm:$0xff]  ;;  %v13144_v43 = vld [vmem:[%s22327_s5 + $0x5c8] sm:$0xff] }
 0xbda   :  { %6495 = vmatprep.mubr.f32.mxu0 %v13128_v30  ;;  %6914 = vmatprep.mubr.f32.mxu1 %v13129_v17  ;;  %v13145_v30 = vld [vmem:[%s22327_s5 + $0x6c8] sm:$0xff]  ;;  %v10377_v17 = vld [vmem:[%s22328_s3 + $0x298] sm:$0xff] }
 0xbdb   :  { %12437 = vmatprep.subr.mxu1 %v10382_v63 }
 0xbdc   :  { %12438 = vmatpush3.msra.mxu1 %v10382_v63  ;;  %v13142_v63 = vld [vmem:[%s22327_s5 + $0x5b0] sm:$0xff] }
 0xbdd   :  { %6496 = vmatmul.mubr.f32.gmra.mxu0 %v13130_v1  ;;  %6915 = vmatmul.mubr.f32.gmra.mxu1 %v13131_v13  ;;  %v13147_v1 = vld [vmem:[%s22327_s5 + $0x6c0] sm:$0xff]  ;;  %v13148_v13 = vld [vmem:[%s22327_s5 + $0x5d8] sm:$0xff] }
 0xbde   :  { %6500 = vmatprep.mubr.f32.mxu0 %v13132_v21  ;;  %6919 = vmatprep.mubr.f32.mxu1 %v13133_v37  ;;  %v13149_v21 = vld [vmem:[%s22327_s5 + $0x6d8] sm:$0xff]  ;;  %v10376_v37 = vld [vmem:[%s22328_s3 + $0x290] sm:$0xff] }
 0xbdf   :  { %12439 = vmatprep.subr.mxu1 %v10381_v48 }
 0xbe0   :  { %12440 = vmatpush3.msra.mxu1 %v10381_v48  ;;  %v13146_v48 = vld [vmem:[%s22327_s5 + $0x5c0] sm:$0xff] }
 0xbe1   :  { %6501 = vmatmul.mubr.f32.gmra.mxu0 %v13134_v56  ;;  %6920 = vmatmul.mubr.f32.gmra.mxu1 %v13135_v9  ;;  %v13151_v56 = vld [vmem:[%s22327_s5 + $0x6d0] sm:$0xff]  ;;  %v13152_v9 = vld [vmem:[%s22327_s5 + $0x5e8] sm:$0xff] }
 0xbe2   :  { %6505 = vmatprep.mubr.f32.mxu0 %v13136_v57  ;;  %6924 = vmatprep.mubr.f32.mxu1 %v13137_v2  ;;  %v13153_v57 = vld [vmem:[%s22327_s5 + $0x6e8] sm:$0xff] }
 0xbe3   :  { %12441 = vmatprep.subr.mxu1 %v10380_v32  ;;  %v10375_v2 = vld [vmem:[%s22328_s3 + $0x288] sm:$0xff] }
 0xbe4   :  { %12442 = vmatpush3.msra.mxu1 %v10380_v32  ;;  %v13150_v32 = vld [vmem:[%s22327_s5 + $0x5d0] sm:$0xff] }
 0xbe5   :  { %6506 = vmatmul.mubr.f32.gmra.mxu0 %v13138_v39  ;;  %6925 = vmatmul.mubr.f32.gmra.mxu1 %v13139_v54  ;;  %v13155_v39 = vld [vmem:[%s22327_s5 + $0x6e0] sm:$0xff]  ;;  %v13156_v54 = vld [vmem:[%s22327_s5 + $0x5f8] sm:$0xff] }
 0xbe6   :  { %6510 = vmatprep.mubr.f32.mxu0 %v13140_v28  ;;  %6929 = vmatprep.mubr.f32.mxu1 %v13141_v4  ;;  %v13157_v28 = vld [vmem:[%s22327_s5 + $0x6f8] sm:$0xff]  ;;  %v10374_v4 = vld [vmem:[%s22328_s3 + $0x280] sm:$0xff] }
 0xbe7   :  { %12443 = vmatprep.subr.mxu1 %v10379_v15 }
 0xbe8   :  { %12444 = vmatpush3.msra.mxu1 %v10379_v15  ;;  %v13154_v15 = vld [vmem:[%s22327_s5 + $0x5e0] sm:$0xff] }
 0xbe9   :  { %6511 = vmatmul.mubr.f32.gmra.mxu0 %v13142_v63  ;;  %6930 = vmatmul.mubr.f32.gmra.mxu1 %v13143_v31  ;;  %v13159_v63 = vld [vmem:[%s22327_s5 + $0x6f0] sm:$0xff]  ;;  %v13160_v31 = vld [vmem:[%s22327_s5 + $0x708] sm:$0xff] }
 0xbea   :  { %6515 = vmatprep.mubr.f32.mxu0 %v13144_v43  ;;  %6934 = vmatprep.mubr.f32.mxu1 %v13145_v30  ;;  %v13161_v43 = vld [vmem:[%s22327_s5 + $0x700] sm:$0xff]  ;;  %v13162_v30 = vld [vmem:[%s22327_s5 + $0x718] sm:$0xff] }
 0xbeb   :  { %12445 = vmatprep.subr.mxu1 %v10378_v0 }
 0xbec   :  { %12446 = vmatpush3.msra.mxu1 %v10378_v0  ;;  %v13158_v0 = vld [vmem:[%s22327_s5 + $0x5f0] sm:$0xff] }
 0xbed   :  { %6516 = vmatmul.mubr.f32.gmra.mxu0 %v13146_v48  ;;  %6935 = vmatmul.mubr.f32.gmra.mxu1 %v13147_v1  ;;  %v13164_v48 = vld [vmem:[%s22327_s5 + $0x728] sm:$0xff]  ;;  %v13165_v1 = vld [vmem:[%s22327_s5 + $0x720] sm:$0xff] }
 0xbee   :  { %6520 = vmatprep.mubr.f32.mxu0 %v13148_v13  ;;  %6939 = vmatprep.mubr.f32.mxu1 %v13149_v21  ;;  %v13166_v13 = vld [vmem:[%s22327_s5 + $0x738] sm:$0xff]  ;;  %v13167_v21 = vld [vmem:[%s22327_s5 + $0x730] sm:$0xff] }
 0xbef   :  { %12447 = vmatprep.subr.mxu1 %v10377_v17 }
 0xbf0   :  { %12448 = vmatpush3.msra.mxu1 %v10377_v17  ;;  %v13163_v17 = vld [vmem:[%s22327_s5 + $0x710] sm:$0xff] }
 0xbf1   :  { %6521 = vmatmul.mubr.f32.gmra.mxu0 %v13150_v32  ;;  %6940 = vmatmul.mubr.f32.gmra.mxu1 %v13151_v56  ;;  %v13169_v32 = vld [vmem:[%s22327_s5 + $0x740] sm:$0xff]  ;;  %v13170_v56 = vld [vmem:[%s22327_s5 + $0x758] sm:$0xff] }
 0xbf2   :  { %6525 = vmatprep.mubr.f32.mxu0 %v13152_v9  ;;  %6944 = vmatprep.mubr.f32.mxu1 %v13153_v57  ;;  %v13171_v9 = vld [vmem:[%s22327_s5 + $0x750] sm:$0xff]  ;;  %v13172_v57 = vld [vmem:[%s22327_s5 + $0x768] sm:$0xff] }
 0xbf3   :  { %12449 = vmatprep.subr.mxu1 %v10376_v37 }
 0xbf4   :  { %12450 = vmatpush3.msra.mxu1 %v10376_v37  ;;  %v13168_v37 = vld [vmem:[%s22327_s5 + $0x748] sm:$0xff] }
 0xbf5   :  { %6526 = vmatmul.mubr.f32.gmra.mxu0 %v13154_v15  ;;  %6945 = vmatmul.mubr.f32.gmra.mxu1 %v13155_v39  ;;  %v13174_v15 = vld [vmem:[%s22327_s5 + $0x778] sm:$0xff]  ;;  %v13175_v39 = vld [vmem:[%s22327_s5 + $0x770] sm:$0xff] }
 0xbf6   :  { %6530 = vmatprep.mubr.f32.mxu0 %v13156_v54  ;;  %6949 = vmatprep.mubr.f32.mxu1 %v13157_v28  ;;  %v13176_v54 = vld [vmem:[%s22327_s5 + $0x788] sm:$0xff]  ;;  %v13177_v28 = vld [vmem:[%s22327_s5 + $0x780] sm:$0xff] }
 0xbf7   :  { %12451 = vmatprep.subr.mxu1 %v10375_v2 }
 0xbf8   :  { %12452 = vmatpush3.msra.mxu1 %v10375_v2  ;;  %v13173_v2 = vld [vmem:[%s22327_s5 + $0x760] sm:$0xff] }
 0xbf9   :  { %6531 = vmatmul.mubr.f32.gmra.mxu0 %v13158_v0  ;;  %6950 = vmatmul.mubr.f32.gmra.mxu1 %v13159_v63  ;;  %v13179_v0 = vld [vmem:[%s22327_s5 + $0x790] sm:$0xff]  ;;  %v13180_v63 = vld [vmem:[%s22327_s5 + $0x7a8] sm:$0xff] }
 0xbfa   :  { %12375 = vmatprep.mubr.f32.mxu0 %v18190_v36  ;;  %6954 = vmatprep.mubr.f32.mxu1 %v13160_v31  ;;  %v13181_v31 = vld [vmem:[%s22327_s5 + $0x7a0] sm:$0xff] }
 0xbfb   :  { %12453 = vmatprep.subr.mxu1 %v10374_v4 }
 0xbfc   :  { %12454 = vmatpush3.msra.mxu1 %v10374_v4  ;;  %v13178_v4 = vld [vmem:[%s22327_s5 + $0x798] sm:$0xff] }
 0xbfd   :  { %6955 = vmatmul.mubr.f32.gmra.mxu1 %v13161_v43  ;;  %12376 = vmatmul.mubr.f32.vlgmr.msra.gmra.mxu0 %v18195_v29  ;;  %v13182_v43 = vld [vmem:[%s22327_s5 + $0x7b8] sm:$0xff] }
 0xbfe   :  { %12378 = vmatprep.mubr.f32.mxu0 %v18206_v45  ;;  %6959 = vmatprep.mubr.f32.mxu1 %v13162_v30  ;;  %v13183_v30 = vld [vmem:[%s22327_s5 + $0x7b0] sm:$0xff] }
 0xbff   :  { %7808 = vmatprep.subr.mxu1 %v22461_v12 }
 0xc01   :  { %6960 = vmatmul.mubr.f32.gmra.mxu1 %v13163_v17  ;;  %12379 = vmatmul.mubr.f32.gmra.mxu0 %v18217_v34  ;;  %v13184_v17 = vld [vmem:[%s22327_s5 + $0x7c8] sm:$0xff] }
 0xc02   :  { %12381 = vmatprep.mubr.f32.mxu0 %v18228_v14  ;;  %6964 = vmatprep.mubr.f32.mxu1 %v13164_v48  ;;  %v13185_v48 = vld [vmem:[%s22327_s5 + $0x7c0] sm:$0xff] }
 0xc05   :  { %6965 = vmatmul.mubr.f32.gmra.mxu1 %v13165_v1  ;;  %12382 = vmatmul.mubr.f32.gmra.mxu0 %v18239_v51  ;;  %v13186_v1 = vld [vmem:[%s22327_s5 + $0x7d8] sm:$0xff] }
 0xc06   :  { %12384 = vmatprep.mubr.f32.mxu0 %v18250_v26  ;;  %6969 = vmatprep.mubr.f32.mxu1 %v13166_v13  ;;  %v13187_v13 = vld [vmem:[%s22327_s5 + $0x7d0] sm:$0xff] }
 0xc09   :  { %6970 = vmatmul.mubr.f32.gmra.mxu1 %v13167_v21  ;;  %12385 = vmatmul.mubr.f32.gmra.mxu0 %v18261_v47  ;;  %v13188_v21 = vld [vmem:[%s22327_s5 + $0x7e8] sm:$0xff] }
 0xc0a   :  { %12387 = vmatprep.mubr.f32.mxu0 %v18272_v19  ;;  %6974 = vmatprep.mubr.f32.mxu1 %v13168_v37  ;;  %v13189_v37 = vld [vmem:[%s22327_s5 + $0x7e0] sm:$0xff] }
 0xc0d   :  { %6975 = vmatmul.mubr.f32.gmra.mxu1 %v13169_v32  ;;  %12388 = vmatmul.mubr.f32.gmra.mxu0 %v18280_v10  ;;  %v13190_v32 = vld [vmem:[%s22327_s5 + $0x7f8] sm:$0xff] }
 0xc0e   :  { %12390 = vmatprep.mubr.f32.mxu0 %v18286_v24  ;;  %6979 = vmatprep.mubr.f32.mxu1 %v13170_v56  ;;  %v13191_v56 = vld [vmem:[%s22327_s5 + $0x7f0] sm:$0xff] }
 0xc11   :  { %6980 = vmatmul.mubr.f32.gmra.mxu1 %v13171_v9  ;;  %12391 = vmatmul.mubr.f32.gmra.mxu0 %v18291_v22  ;;  %v13192_v9 = vld [vmem:[%s22327_s5 + $0x808] sm:$0xff] }
 0xc12   :  { %12393 = vmatprep.mubr.f32.mxu0 %v18296_v53  ;;  %6984 = vmatprep.mubr.f32.mxu1 %v13172_v57 }
 0xc15   :  { %6985 = vmatmul.mubr.f32.gmra.mxu1 %v13173_v2  ;;  %12394 = vmatmul.mubr.f32.gmra.mxu0 %v18301_v55 }
 0xc16   :  { %12396 = vmatprep.mubr.f32.mxu0 %v18306_v60  ;;  %6989 = vmatprep.mubr.f32.mxu1 %v13174_v15 }
 0xc19   :  { %6990 = vmatmul.mubr.f32.gmra.mxu1 %v13175_v39  ;;  %12397 = vmatmul.mubr.f32.gmra.mxu0 %v18311_v40 }
 0xc1a   :  { %12399 = vmatprep.mubr.f32.mxu0 %v18316_v42  ;;  %6994 = vmatprep.mubr.f32.mxu1 %v13176_v54 }
 0xc1d   :  { %6995 = vmatmul.mubr.f32.gmra.mxu1 %v13177_v28  ;;  %12400 = vmatmul.mubr.f32.gmra.mxu0 %v18321_v44 }
 0xc1e   :  { %12402 = vmatprep.mubr.f32.mxu0 %v18326_v8  ;;  %6999 = vmatprep.mubr.f32.mxu1 %v13178_v4 }
 0xc21   :  { %7000 = vmatmul.mubr.f32.gmra.mxu1 %v13179_v0  ;;  %12403 = vmatmul.mubr.f32.gmra.mxu0 %v18331_v18  ;;  %v22498_v0 = vld [vmem:[#allocation9_spill] sm:$0xff] }
 0xc22   :  { %12405 = vmatprep.mubr.f32.mxu0 %v18336_v38  ;;  %7004 = vmatprep.mubr.f32.mxu1 %v13180_v63 }
 0xc25   :  { %7005 = vmatmul.mubr.f32.gmra.mxu1 %v13181_v31  ;;  %12406 = vmatmul.mubr.f32.gmra.mxu0 %v18341_v33 }
 0xc26   :  { %12408 = vmatprep.mubr.f32.mxu0 %v18346_v35  ;;  %7009 = vmatprep.mubr.f32.mxu1 %v13182_v43  ;;  %v22499_v43 = vld [vmem:[#allocation29_spill] sm:$0xff] }
 0xc29   :  { %7010 = vmatmul.mubr.f32.gmra.mxu1 %v13183_v30  ;;  %12409 = vmatmul.mubr.f32.gmra.mxu0 %v18351_v5 }
 0xc2a   :  { %12411 = vmatprep.mubr.f32.mxu0 %v18356_v25  ;;  %7014 = vmatprep.mubr.f32.mxu1 %v13184_v17 }
 0xc2d   :  { %7015 = vmatmul.mubr.f32.gmra.mxu1 %v13185_v48  ;;  %12412 = vmatmul.mubr.f32.gmra.mxu0 %v18361_v3  ;;  %v22500_v48 = vld [vmem:[#allocation10_spill] sm:$0xff] }
 0xc2e   :  { %12414 = vmatprep.mubr.f32.mxu0 %v18366_v49  ;;  %7019 = vmatprep.mubr.f32.mxu1 %v13186_v1 }
 0xc31   :  { %7020 = vmatmul.mubr.f32.gmra.mxu1 %v13187_v13  ;;  %12415 = vmatmul.mubr.f32.gmra.mxu0 %v18371_v41 }
 0xc32   :  { %12417 = vmatprep.mubr.f32.mxu0 %v18376_v61  ;;  %7024 = vmatprep.mubr.f32.mxu1 %v13188_v21 }
 0xc35   :  { %7025 = vmatmul.mubr.f32.gmra.mxu1 %v13189_v37  ;;  %12418 = vmatmul.mubr.f32.gmra.mxu0 %v18381_v52  ;;  %v22501_v37 = vld [vmem:[#allocation30_spill] sm:$0xff] }
 0xc36   :  { %12420 = vmatprep.mubr.f32.mxu0 %v18386_v6  ;;  %7029 = vmatprep.mubr.f32.mxu1 %v13190_v32 }
 0xc39   :  { %7030 = vmatmul.mubr.f32.gmra.mxu1 %v13191_v56  ;;  %12421 = vmatmul.mubr.f32.gmra.mxu0 %v18391_v11 }
 0xc3a   :  { %12455 = vmatprep.mubr.f32.mxu1 %v18190_v36  ;;  %7373 = vmatprep.mubr.f32.mxu0 %v13192_v9 }
 0xc3d   :  { %v6377_v57 = vpop.f32.mrf.mxu0  ;;  %12456 = vmatmul.mubr.f32.vlgmr.msra.gmra.mxu1 %v18195_v29 }
 0xc3e   :  { %v19891_v2 = vadd.f32 %v6377_v57, %v19097_v58  ;;  %12458 = vmatprep.mubr.f32.mxu1 %v18206_v45  ;;  %v22502_v57 = vld [vmem:[#allocation11_spill] sm:$0xff] }
 0xc3f   :  { %v6379_v15 = vpop.f32.mrf.mxu0 }
 0xc41   :  { %v6382_v39 = vpop.f32.mrf.mxu0  ;;  %12459 = vmatmul.mubr.f32.gmra.mxu1 %v18217_v34 }
 0xc42   :  { %v19896_v54 = vadd.f32 %v6382_v39, %v19104_v46  ;;  %12461 = vmatprep.mubr.f32.mxu1 %v18228_v14 }
 0xc43   :  { %v6384_v28 = vpop.f32.mrf.mxu0 }
 0xc45   :  { %v6387_v4 = vpop.f32.mrf.mxu0  ;;  %12462 = vmatmul.mubr.f32.gmra.mxu1 %v18239_v51 }
 0xc46   :  { %v19901_v63 = vadd.f32 %v6387_v4, %v22498_v0  ;;  %12464 = vmatprep.mubr.f32.mxu1 %v18250_v26  ;;  %v22503_v4 = vld [vmem:[#allocation31_spill] sm:$0xff] }
 0xc47   :  { %v6389_v58 = vpop.f32.mrf.mxu0 }
 0xc49   :  { %v6392_v31 = vpop.f32.mrf.mxu0  ;;  %12465 = vmatmul.mubr.f32.gmra.mxu1 %v18261_v47 }
 0xc4a   :  { %v19906_v30 = vadd.f32 %v6392_v31, %v22499_v43  ;;  %12467 = vmatprep.mubr.f32.mxu1 %v18272_v19  ;;  %v22504_v43 = vld [vmem:[#allocation12_spill] sm:$0xff] }
 0xc4b   :  { %v6394_v46 = vpop.f32.mrf.mxu0 }
 0xc4d   :  { %v6397_v17 = vpop.f32.mrf.mxu0  ;;  %12468 = vmatmul.mubr.f32.gmra.mxu1 %v18280_v10 }
 0xc4e   :  { %v19911_v1 = vadd.f32 %v6397_v17, %v22500_v48  ;;  %12470 = vmatprep.mubr.f32.mxu1 %v18286_v24 }
 0xc4f   :  { %v6399_v13 = vpop.f32.mrf.mxu0 }
 0xc50   :  { %v22505_v13 = vld [vmem:[#allocation32_spill] sm:$0xff] }
 0xc51   :  { %v6402_v21 = vpop.f32.mrf.mxu0  ;;  %12471 = vmatmul.mubr.f32.gmra.mxu1 %v18291_v22 }
 0xc52   :  { %v19916_v32 = vadd.f32 %v6402_v21, %v22501_v37  ;;  %12473 = vmatprep.mubr.f32.mxu1 %v18296_v53 }
 0xc53   :  { %v6404_v56 = vpop.f32.mrf.mxu0 }
 0xc55   :  { %v6407_v9 = vpop.f32.mrf.mxu0  ;;  %12474 = vmatmul.mubr.f32.gmra.mxu1 %v18301_v55 }
 0xc56   :  { %v19921_v15 = vadd.f32 %v6407_v9, %v22502_v57  ;;  %12476 = vmatprep.mubr.f32.mxu1 %v18306_v60  ;;  %v22506_v9 = vld [vmem:[#allocation13_spill] sm:$0xff] }
 0xc57   :  { %v6409_v39 = vpop.f32.mrf.mxu0 }
 0xc59   :  { %v6412_v28 = vpop.f32.mrf.mxu0  ;;  %12477 = vmatmul.mubr.f32.gmra.mxu1 %v18311_v40 }
 0xc5a   :  { %v19926_v0 = vadd.f32 %v6412_v28, %v22503_v4  ;;  %12479 = vmatprep.mubr.f32.mxu1 %v18316_v42  ;;  %v22507_v4 = vld [vmem:[#allocation33_spill] sm:$0xff] }
 0xc5b   :  { %v6414_v58 = vpop.f32.mrf.mxu0 }
 0xc5d   :  { %v6417_v31 = vpop.f32.mrf.mxu0  ;;  %12480 = vmatmul.mubr.f32.gmra.mxu1 %v18321_v44 }
 0xc5e   :  { %v19931_v46 = vadd.f32 %v6417_v31, %v22504_v43  ;;  %12482 = vmatprep.mubr.f32.mxu1 %v18326_v8 }
 0xc5f   :  { %v6419_v17 = vpop.f32.mrf.mxu0 }
 0xc60   :  { %v22508_v17 = vld [vmem:[#allocation14_spill] sm:$0xff] }
 0xc61   :  { %v6422_v48 = vpop.f32.mrf.mxu0  ;;  %12483 = vmatmul.mubr.f32.gmra.mxu1 %v18331_v18 }
 0xc62   :  { %v19936_v21 = vadd.f32 %v6422_v48, %v22505_v13  ;;  %12485 = vmatprep.mubr.f32.mxu1 %v18336_v38 }
 0xc63   :  { %v6424_v37 = vpop.f32.mrf.mxu0 }
 0xc65   :  { %v6427_v56 = vpop.f32.mrf.mxu0  ;;  %12486 = vmatmul.mubr.f32.gmra.mxu1 %v18341_v33 }
 0xc66   :  { %v19941_v57 = vadd.f32 %v6427_v56, %v22506_v9  ;;  %12488 = vmatprep.mubr.f32.mxu1 %v18346_v35  ;;  %v22509_v56 = vld [vmem:[#allocation34_spill] sm:$0xff] }
 0xc67   :  { %v6429_v39 = vpop.f32.mrf.mxu0 }
 0xc69   :  { %v6432_v28 = vpop.f32.mrf.mxu0  ;;  %12489 = vmatmul.mubr.f32.gmra.mxu1 %v18351_v5 }
 0xc6a   :  { %v19946_v58 = vadd.f32 %v6432_v28, %v22507_v4  ;;  %12491 = vmatprep.mubr.f32.mxu1 %v18356_v25  ;;  %v22510_v4 = vld [vmem:[#allocation15_spill] sm:$0xff] }
 0xc6b   :  { %v6434_v31 = vpop.f32.mrf.mxu0 }
 0xc6d   :  { %v6437_v43 = vpop.f32.mrf.mxu0  ;;  %12492 = vmatmul.mubr.f32.gmra.mxu1 %v18361_v3 }
 0xc6e   :  { %v19951_v48 = vadd.f32 %v6437_v43, %v22508_v17  ;;  %12494 = vmatprep.mubr.f32.mxu1 %v18366_v49 }
 0xc6f   :  { %v6439_v13 = vpop.f32.mrf.mxu0 }
 0xc70   :  { %v22511_v13 = vld [vmem:[#allocation35_spill] sm:$0xff] }
 0xc71   :  { %v6442_v37 = vpop.f32.mrf.mxu0  ;;  %12495 = vmatmul.mubr.f32.gmra.mxu1 %v18371_v41 }
 0xc72   :  { %v19956_v9 = vadd.f32 %v6442_v37, %v22509_v56  ;;  %12497 = vmatprep.mubr.f32.mxu1 %v18376_v61  ;;  %v13193_v37 = vld [vmem:[%s22327_s5 + $0xa08] sm:$0xff] }
 0xc73   :  { %v6444_v39 = vpop.f32.mrf.mxu0 }
 0xc75   :  { %v6447_v28 = vpop.f32.mrf.mxu0  ;;  %12498 = vmatmul.mubr.f32.gmra.mxu1 %v18381_v52 }
 0xc76   :  { %v19961_v31 = vadd.f32 %v6447_v28, %v22510_v4  ;;  %12500 = vmatprep.mubr.f32.mxu1 %v18386_v6 }
 0xc77   :  { %v6449_v43 = vpop.f32.mrf.mxu0 }
 0xc79   :  { %v6452_v17 = vpop.f32.mrf.mxu0  ;;  %12501 = vmatmul.mubr.f32.gmra.mxu1 %v18391_v11 }
 0xc7a   :  { %v19966_v41 = vadd.f32 %v6452_v17, %v22511_v13  ;;  %7872 = vmatprep.mubr.f32.mxu1 %v13193_v37 }
 0xc7b   :  { %v6454_v56 = vpop.f32.mrf.mxu0 }
 0xc7d   :  { %v6457_v39 = vpop.f32.mrf.mxu0  ;;  %v6876_v52 = vpop.f32.mrf.mxu1 }
 0xc7e   :  { %v19972_v28 = vadd.f32 %v6457_v39, %v19202_v20  ;;  %v19975_v4 = vadd.f32 %v6876_v52, %v19891_v2 }
 0xc7f   :  { %v6459_v43 = vpop.f32.mrf.mxu0  ;;  %v6878_v6 = vpop.f32.mrf.mxu1 }
 0xc81   :  { %v6462_v11 = vpop.f32.mrf.mxu0  ;;  %v6881_v61 = vpop.f32.mrf.mxu1 }
 0xc82   :  { %v19978_v17 = vadd.f32 %v6462_v11, %v19205_v16  ;;  %v19981_v13 = vadd.f32 %v6881_v61, %v19896_v54 }
 0xc83   :  { %v6464_v37 = vpop.f32.mrf.mxu0  ;;  %v6883_v56 = vpop.f32.mrf.mxu1 }
 0xc84   :  { %22512 = vst [vmem:[#allocation18_spill] sm:$0xff] %v19981_v13 }
 0xc85   :  { %v6467_v49 = vpop.f32.mrf.mxu0  ;;  %v6886_v3 = vpop.f32.mrf.mxu1 }
 0xc86   :  { %v19984_v20 = vadd.f32 %v6467_v49, %v19208_v27  ;;  %v19987_v52 = vadd.f32 %v6886_v3, %v19901_v63 }
 0xc87   :  { %v6469_v2 = vpop.f32.mrf.mxu0  ;;  %v6888_v6 = vpop.f32.mrf.mxu1 }
 0xc88   :  { %22513 = vst [vmem:[#allocation21_spill] sm:$0xff] %v19987_v52 }
 0xc89   :  { %v6472_v39 = vpop.f32.mrf.mxu0  ;;  %v6891_v43 = vpop.f32.mrf.mxu1 }
 0xc8a   :  { %v19990_v11 = vadd.f32 %v6472_v39, %v19211_v7  ;;  %v19993_v61 = vadd.f32 %v6891_v43, %v19906_v30 }
 0xc8b   :  { %v6474_v16 = vpop.f32.mrf.mxu0  ;;  %v6893_v54 = vpop.f32.mrf.mxu1 }
 0xc8c   :  { %22514 = vst [vmem:[#allocation40_spill] sm:$0xff] %v19993_v61 }
 0xc8d   :  { %v6477_v37 = vpop.f32.mrf.mxu0  ;;  %v6896_v56 = vpop.f32.mrf.mxu1 }
 0xc8e   :  { %v19996_v49 = vadd.f32 %v6477_v37, %v19214_v23  ;;  %v19999_v3 = vadd.f32 %v6896_v56, %v19911_v1 }
 0xc8f   :  { %v6479_v27 = vpop.f32.mrf.mxu0  ;;  %v6898_v63 = vpop.f32.mrf.mxu1 }
 0xc90   :  { %22515 = vst [vmem:[#allocation9_spill] sm:$0xff] %v19999_v3 }
 0xc91   :  { %v6482_v2 = vpop.f32.mrf.mxu0  ;;  %v6901_v6 = vpop.f32.mrf.mxu1 }
 0xc92   :  { %v20002_v7 = vadd.f32 %v6482_v2, %v19217_v50  ;;  %v20005_v30 = vadd.f32 %v6901_v6, %v19916_v32 }
 0xc93   :  { %v6484_v39 = vpop.f32.mrf.mxu0  ;;  %v6903_v43 = vpop.f32.mrf.mxu1 }
 0xc94   :  { %22516 = vst [vmem:[#allocation29_spill] sm:$0xff] %v20005_v30  ;;  %v22519_v30 = vld [vmem:[#allocation17_spill] sm:$0xff] }
 0xc95   :  { %v6487_v16 = vpop.f32.mrf.mxu0  ;;  %v6906_v54 = vpop.f32.mrf.mxu1 }
 0xc96   :  { %v20008_v23 = vadd.f32 %v6487_v16, %v19220_v62  ;;  %v20011_v1 = vadd.f32 %v6906_v54, %v19921_v15 }
 0xc97   :  { %v6489_v37 = vpop.f32.mrf.mxu0  ;;  %v6908_v56 = vpop.f32.mrf.mxu1 }
 0xc98   :  { %22517 = vst [vmem:[#allocation10_spill] sm:$0xff] %v20011_v1  ;;  %v22521_v1 = vld [vmem:[#allocation36_spill] sm:$0xff] }
 0xc99   :  { %v6492_v27 = vpop.f32.mrf.mxu0  ;;  %v6911_v63 = vpop.f32.mrf.mxu1 }
 0xc9a   :  { %v20014_v50 = vadd.f32 %v6492_v27, %v19223_v59  ;;  %v20017_v32 = vadd.f32 %v6911_v63, %v19926_v0 }
 0xc9b   :  { %v6494_v2 = vpop.f32.mrf.mxu0  ;;  %v6913_v6 = vpop.f32.mrf.mxu1 }
 0xc9c   :  { %22518 = vst [vmem:[#allocation30_spill] sm:$0xff] %v20017_v32  ;;  %v22523_v32 = vld [vmem:[#allocation19_spill] sm:$0xff] }
 0xc9d   :  { %v6497_v39 = vpop.f32.mrf.mxu0  ;;  %v6916_v43 = vpop.f32.mrf.mxu1 }
 0xc9e   :  { %v20020_v62 = vadd.f32 %v6497_v39, %v22519_v30  ;;  %v20023_v15 = vadd.f32 %v6916_v43, %v19931_v46 }
 0xc9f   :  { %v6499_v16 = vpop.f32.mrf.mxu0  ;;  %v6918_v54 = vpop.f32.mrf.mxu1 }
 0xca0   :  { %22520 = vst [vmem:[#allocation11_spill] sm:$0xff] %v20023_v15  ;;  %v22525_v15 = vld [vmem:[#allocation37_spill] sm:$0xff] }
 0xca1   :  { %v6502_v37 = vpop.f32.mrf.mxu0  ;;  %v6921_v56 = vpop.f32.mrf.mxu1 }
 0xca2   :  { %v20026_v59 = vadd.f32 %v6502_v37, %v22521_v1  ;;  %v20029_v0 = vadd.f32 %v6921_v56, %v19936_v21 }
 0xca3   :  { %v6504_v27 = vpop.f32.mrf.mxu0  ;;  %v6923_v63 = vpop.f32.mrf.mxu1 }
 0xca4   :  { %22522 = vst [vmem:[#allocation31_spill] sm:$0xff] %v20029_v0  ;;  %v22527_v0 = vld [vmem:[#allocation16_spill] sm:$0xff] }
 0xca5   :  { %v6507_v2 = vpop.f32.mrf.mxu0  ;;  %v6926_v6 = vpop.f32.mrf.mxu1 }
 0xca6   :  { %v20032_v30 = vadd.f32 %v6507_v2, %v22523_v32  ;;  %v20035_v46 = vadd.f32 %v6926_v6, %v19941_v57 }
 0xca7   :  { %v6509_v39 = vpop.f32.mrf.mxu0  ;;  %v6928_v43 = vpop.f32.mrf.mxu1 }
 0xca8   :  { %22524 = vst [vmem:[#allocation12_spill] sm:$0xff] %v20035_v46  ;;  %v22529_v46 = vld [vmem:[#allocation20_spill] sm:$0xff] }
 0xca9   :  { %v6512_v16 = vpop.f32.mrf.mxu0  ;;  %v6931_v54 = vpop.f32.mrf.mxu1 }
 0xcaa   :  { %v20038_v1 = vadd.f32 %v6512_v16, %v22525_v15  ;;  %v20041_v21 = vadd.f32 %v6931_v54, %v19946_v58 }
 0xcab   :  { %v6514_v37 = vpop.f32.mrf.mxu0  ;;  %v6933_v56 = vpop.f32.mrf.mxu1 }
 0xcac   :  { %22526 = vst [vmem:[#allocation32_spill] sm:$0xff] %v20041_v21  ;;  %v22531_v21 = vld [vmem:[#allocation38_spill] sm:$0xff] }
 0xcad   :  { %v6517_v27 = vpop.f32.mrf.mxu0  ;;  %v6936_v63 = vpop.f32.mrf.mxu1 }
 0xcae   :  { %v20044_v32 = vadd.f32 %v6517_v27, %v22527_v0  ;;  %v20047_v57 = vadd.f32 %v6936_v63, %v19951_v48 }
 0xcaf   :  { %v6519_v2 = vpop.f32.mrf.mxu0  ;;  %v6938_v6 = vpop.f32.mrf.mxu1 }
 0xcb0   :  { %22528 = vst [vmem:[#allocation13_spill] sm:$0xff] %v20047_v57  ;;  %v22533_v57 = vld [vmem:[#allocation39_spill] sm:$0xff] }
 0xcb1   :  { %v6522_v39 = vpop.f32.mrf.mxu0  ;;  %v6941_v43 = vpop.f32.mrf.mxu1 }
 0xcb2   :  { %v20050_v15 = vadd.f32 %v6522_v39, %v22529_v46  ;;  %v20053_v58 = vadd.f32 %v6941_v43, %v19956_v9 }
 0xcb3   :  { %v6524_v16 = vpop.f32.mrf.mxu0  ;;  %v6943_v54 = vpop.f32.mrf.mxu1 }
 0xcb4   :  { %22530 = vst [vmem:[#allocation33_spill] sm:$0xff] %v20053_v58 }
 0xcb5   :  { %v6527_v37 = vpop.f32.mrf.mxu0  ;;  %v6946_v56 = vpop.f32.mrf.mxu1 }
 0xcb6   :  { %v20056_v0 = vadd.f32 %v6527_v37, %v22531_v21  ;;  %v20059_v48 = vadd.f32 %v6946_v56, %v19961_v31 }
 0xcb7   :  { %v6529_v27 = vpop.f32.mrf.mxu0  ;;  %v6948_v63 = vpop.f32.mrf.mxu1 }
 0xcb8   :  { %22532 = vst [vmem:[#allocation14_spill] sm:$0xff] %v20059_v48 }
 0xcb9   :  { %v6532_v2 = vpop.f32.mrf.mxu0  ;;  %v6951_v6 = vpop.f32.mrf.mxu1 }
 0xcba   :  { %v20062_v46 = vadd.f32 %v6532_v2, %v22533_v57  ;;  %v20065_v9 = vadd.f32 %v6951_v6, %v19966_v41 }
 0xcbb   :  { %v6534_v39 = vpop.f32.mrf.mxu0  ;;  %v6953_v43 = vpop.f32.mrf.mxu1 }
 0xcbc   :  { %22534 = vst [vmem:[#allocation34_spill] sm:$0xff] %v20065_v9 }
 0xcbd   :  { %v6956_v16 = vpop.f32.mrf.mxu1  ;;  %v20067_v54 = vpop.f32.mrf.mxu0 }
 0xcbe   :  { %v20070_v21 = vadd.f32 %v6956_v16, %v19972_v28 }
 0xcbf   :  { %v6958_v31 = vpop.f32.mrf.mxu1  ;;  %v20072_v37 = vpop.f32.mrf.mxu0 }
 0xcc0   :  { %22535 = vst [vmem:[#allocation15_spill] sm:$0xff] %v20070_v21 }
 0xcc1   :  { %v6961_v56 = vpop.f32.mrf.mxu1  ;;  %v20074_v27 = vpop.f32.mrf.mxu0 }
 0xcc2   :  { %v20077_v57 = vadd.f32 %v6961_v56, %v19978_v17 }
 0xcc3   :  { %v6963_v63 = vpop.f32.mrf.mxu1  ;;  %v20079_v41 = vpop.f32.mrf.mxu0 }
 0xcc4   :  { %22536 = vst [vmem:[#allocation35_spill] sm:$0xff] %v20077_v57 }
 0xcc5   :  { %v6966_v2 = vpop.f32.mrf.mxu1  ;;  %v20081_v6 = vpop.f32.mrf.mxu0 }
 0xcc6   :  { %v20084_v39 = vadd.f32 %v6966_v2, %v19984_v20 }
 0xcc7   :  { %v6968_v28 = vpop.f32.mrf.mxu1  ;;  %v20086_v43 = vpop.f32.mrf.mxu0 }
 0xcc8   :  { %22537 = vst [vmem:[#allocation17_spill] sm:$0xff] %v20084_v39 }
 0xcc9   :  { %v6971_v16 = vpop.f32.mrf.mxu1  ;;  %v12386_v31 = vpop.f32.mrf.mxu0 }
 0xcca   :  { %v20089_v21 = vadd.f32 %v6971_v16, %v19990_v11 }
 0xccb   :  { %v6973_v9 = vpop.f32.mrf.mxu1  ;;  %v7180_v17 = vpop.f32.mrf.mxu0 }
 0xccc   :  { %22538 = vst [vmem:[#allocation36_spill] sm:$0xff] %v20089_v21 }
 0xccd   :  { %v6976_v56 = vpop.f32.mrf.mxu1  ;;  %v12389_v63 = vpop.f32.mrf.mxu0 }
 0xcce   :  { %v20092_v57 = vadd.f32 %v6976_v56, %v19996_v49 }
 0xccf   :  { %v6978_v48 = vpop.f32.mrf.mxu1  ;;  %v7190_v58 = vpop.f32.mrf.mxu0 }
 0xcd1   :  { %v6981_v3 = vpop.f32.mrf.mxu1  ;;  %v12392_v20 = vpop.f32.mrf.mxu0 }
 0xcd2   :  { %v20095_v2 = vadd.f32 %v6981_v3, %v20002_v7 }
 0xcd3   :  { %v6983_v28 = vpop.f32.mrf.mxu1  ;;  %v7200_v39 = vpop.f32.mrf.mxu0 }
 0xcd5   :  { %v6986_v61 = vpop.f32.mrf.mxu1  ;;  %v12395_v52 = vpop.f32.mrf.mxu0 }
 0xcd6   :  { %v20098_v11 = vadd.f32 %v6986_v61, %v20008_v23 }
 0xcd7   :  { %v6988_v9 = vpop.f32.mrf.mxu1  ;;  %v7210_v16 = vpop.f32.mrf.mxu0 }
 0xcd9   :  { %v6991_v21 = vpop.f32.mrf.mxu1  ;;  %v12398_v13 = vpop.f32.mrf.mxu0 }
 0xcda   :  { %v20101_v49 = vadd.f32 %v6991_v21, %v20014_v50  ;;  %7310 = vmatpush1.msra.mxu0 %v12398_v13 }
 0xcdb   :  { %v6993_v48 = vpop.f32.mrf.mxu1  ;;  %v7220_v56 = vpop.f32.mrf.mxu0  ;;  %7311 = vmatprep.subr.mxu0 %v22461_v12 }
 0xcdc   :  { %7312 = vmatpush1.msra.mxu0 %v7220_v56 }
 0xcdd   :  { %v6996_v3 = vpop.f32.mrf.mxu1  ;;  %v20104_v7 = vpop.f32.mrf.mxu0  ;;  %7313 = vmatprep.subr.mxu0 %v22461_v12 }
 0xcde   :  { %v20108_v61 = vadd.f32 %v6996_v3, %v20020_v62  ;;  %7314 = vmatpush1.msra.mxu0 %v12395_v52 }
 0xcdf   :  { %v6998_v23 = vpop.f32.mrf.mxu1  ;;  %v20110_v28 = vpop.f32.mrf.mxu0  ;;  %7315 = vmatprep.subr.mxu0 %v22461_v12 }
 0xce0   :  { %7316 = vmatpush1.msra.mxu0 %v7210_v16 }
 0xce1   :  { %v7001_v13 = vpop.f32.mrf.mxu1  ;;  %v20113_v50 = vpop.f32.mrf.mxu0  ;;  %7317 = vmatprep.subr.mxu0 %v22461_v12 }
 0xce2   :  { %v20117_v21 = vadd.f32 %v7001_v13, %v20026_v59  ;;  %7318 = vmatpush1.msra.mxu0 %v12392_v20 }
 0xce3   :  { %v7003_v9 = vpop.f32.mrf.mxu1  ;;  %v20119_v48 = vpop.f32.mrf.mxu0  ;;  %7319 = vmatprep.subr.mxu0 %v22461_v12 }
 0xce4   :  { %7320 = vmatpush1.msra.mxu0 %v7200_v39 }
 0xce5   :  { %v7006_v52 = vpop.f32.mrf.mxu1  ;;  %v20122_v62 = vpop.f32.mrf.mxu0  ;;  %7321 = vmatprep.subr.mxu0 %v22461_v12 }
 0xce6   :  { %v20126_v16 = vadd.f32 %v7006_v52, %v20032_v30  ;;  %7322 = vmatpush1.msra.mxu0 %v12389_v63 }
 0xce7   :  { %v7008_v56 = vpop.f32.mrf.mxu1  ;;  %v20128_v3 = vpop.f32.mrf.mxu0  ;;  %7323 = vmatprep.subr.mxu0 %v22461_v12 }
 0xce8   :  { %7324 = vmatpush1.msra.mxu0 %v7190_v58 }
 0xce9   :  { %v7011_v59 = vpop.f32.mrf.mxu1  ;;  %v20131_v20 = vpop.f32.mrf.mxu0  ;;  %7325 = vmatprep.subr.mxu0 %v22461_v12 }
 0xcea   :  { %v20135_v39 = vadd.f32 %v7011_v59, %v20038_v1  ;;  %7326 = vmatpush1.msra.mxu0 %v12386_v31 }
 0xceb   :  { %v7013_v23 = vpop.f32.mrf.mxu1  ;;  %v7260_v13 = vpop.f32.mrf.mxu0  ;;  %7327 = vmatprep.subr.mxu0 %v22461_v12 }
 0xcec   :  { %7328 = vmatpush1.msra.mxu0 %v7180_v17 }
 0xced   :  { %v7016_v30 = vpop.f32.mrf.mxu1  ;;  %v12413_v63 = vpop.f32.mrf.mxu0  ;;  %7329 = vmatprep.subr.mxu0 %v22461_v12 }
 0xcee   :  { %v20140_v58 = vadd.f32 %v7016_v30, %v20044_v32  ;;  %7330 = vmatpush1.msra.mxu0 %v20081_v6 }
 0xcef   :  { %v7018_v9 = vpop.f32.mrf.mxu1  ;;  %v7270_v52 = vpop.f32.mrf.mxu0  ;;  %7331 = vmatprep.subr.mxu0 %v22461_v12 }
 0xcf0   :  { %7332 = vmatpush1.msra.mxu0 %v20086_v43 }
 0xcf1   :  { %v7021_v1 = vpop.f32.mrf.mxu1  ;;  %v12416_v31 = vpop.f32.mrf.mxu0  ;;  %7333 = vmatprep.subr.mxu0 %v22461_v12 }
 0xcf2   :  { %v20147_v17 = vadd.f32 %v7021_v1, %v20050_v15  ;;  %7334 = vmatpush1.msra.mxu0 %v20074_v27 }
 0xcf3   :  { %v7023_v56 = vpop.f32.mrf.mxu1  ;;  %v7280_v32 = vpop.f32.mrf.mxu0  ;;  %7335 = vmatprep.subr.mxu0 %v22461_v12 }
 0xcf4   :  { %7336 = vmatpush1.msra.mxu0 %v20079_v41 }
 0xcf5   :  { %v7026_v6 = vpop.f32.mrf.mxu1  ;;  %v12419_v59 = vpop.f32.mrf.mxu0  ;;  %7337 = vmatprep.subr.mxu0 %v22461_v12 }
 0xcf6   :  { %v20154_v43 = vadd.f32 %v7026_v6, %v20056_v0  ;;  %7338 = vmatpush1.msra.mxu0 %v20067_v54 }
 0xcf7   :  { %v7028_v23 = vpop.f32.mrf.mxu1  ;;  %v7290_v15 = vpop.f32.mrf.mxu0  ;;  %7339 = vmatprep.subr.mxu0 %v22461_v12 }
 0xcf8   :  { %7340 = vmatpush1.msra.mxu0 %v20072_v37  ;;  %v13195_v23 = vld [vmem:[%s22327_s5 + $0x818] sm:$0xff] }
 0xcf9   :  { %v7031_v27 = vpop.f32.mrf.mxu1  ;;  %v12422_v30 = vpop.f32.mrf.mxu0  ;;  %7341 = vmatprep.subr.mxu0 %v22461_v12 }
 0xcfa   :  { %v20161_v41 = vadd.f32 %v7031_v27, %v20062_v46  ;;  %7342 = vmatpush2.msra.mxu0 %v12422_v30  ;;  %v10403_v30 = vld [vmem:[%s22328_s3 + $0x368] sm:$0xff] }
 0xcfb   :  { %v7033_v9 = vpop.f32.mrf.mxu1  ;;  %v7300_v1 = vpop.f32.mrf.mxu0  ;;  %7343 = vmatprep.subr.mxu0 %v22461_v12 }
 0xcfc   :  { %7344 = vmatpush2.msra.mxu0 %v7300_v1  ;;  %v13197_v9 = vld [vmem:[%s22327_s5 + $0x828] sm:$0xff] }
 0xcfd   :  { %7345 = vmatprep.subr.mxu0 %v22461_v12  ;;  %v20165_v0 = vpop.f32.mrf.mxu1 }
 0xcfe   :  { %7346 = vmatpush2.msra.mxu0 %v12419_v59 }
 0xcff   :  { %7347 = vmatprep.subr.mxu0 %v22461_v12  ;;  %v20168_v54 = vpop.f32.mrf.mxu1 }
 0xd00   :  { %7348 = vmatpush2.msra.mxu0 %v7290_v15 }
 0xd01   :  { %7349 = vmatprep.subr.mxu0 %v22461_v12  ;;  %v20171_v46 = vpop.f32.mrf.mxu1 }
 0xd02   :  { %7350 = vmatpush2.msra.mxu0 %v12416_v31 }
 0xd03   :  { %7351 = vmatprep.subr.mxu0 %v22461_v12  ;;  %v20174_v37 = vpop.f32.mrf.mxu1 }
 0xd04   :  { %7352 = vmatpush2.msra.mxu0 %v7280_v32 }
 0xd05   :  { %7353 = vmatprep.subr.mxu0 %v22461_v12  ;;  %v20177_v56 = vpop.f32.mrf.mxu1 }
 0xd06   :  { %7354 = vmatpush2.msra.mxu0 %v12413_v63 }
 0xd07   :  { %7355 = vmatprep.subr.mxu0 %v22461_v12  ;;  %v20180_v6 = vpop.f32.mrf.mxu1 }
 0xd08   :  { %7356 = vmatpush2.msra.mxu0 %v7270_v52 }
 0xd09   :  { %7357 = vmatprep.subr.mxu0 %v22461_v12  ;;  %v20183_v59 = vpop.f32.mrf.mxu1 }
 0xd0a   :  { %7358 = vmatpush2.msra.mxu0 %v20131_v20 }
 0xd0b   :  { %7359 = vmatprep.subr.mxu0 %v22461_v12  ;;  %v20187_v31 = vpop.f32.mrf.mxu1 }
 0xd0c   :  { %7360 = vmatpush2.msra.mxu0 %v7260_v13 }
 0xd0d   :  { %7361 = vmatprep.subr.mxu0 %v22461_v12  ;;  %v12469_v32 = vpop.f32.mrf.mxu1 }
 0xd0e   :  { %7362 = vmatpush2.msra.mxu0 %v20122_v62  ;;  %v10405_v62 = vld [vmem:[%s22328_s3 + $0x378] sm:$0xff] }
 0xd0f   :  { %7363 = vmatprep.subr.mxu0 %v22461_v12  ;;  %v20192_v63 = vpop.f32.mrf.mxu1 }
 0xd10   :  { %7364 = vmatpush2.msra.mxu0 %v20128_v3 }
 0xd11   :  { %7365 = vmatprep.subr.mxu0 %v22461_v12  ;;  %v12472_v52 = vpop.f32.mrf.mxu1 }
 0xd12   :  { %7366 = vmatpush2.msra.mxu0 %v20113_v50  ;;  %v13194_v50 = vld [vmem:[%s22327_s5 + $0x800] sm:$0xff] }
 0xd13   :  { %7367 = vmatprep.subr.mxu0 %v22461_v12  ;;  %v7699_v20 = vpop.f32.mrf.mxu1 }
 0xd14   :  { %7368 = vmatpush2.msra.mxu0 %v20119_v48 }
 0xd15   :  { %7369 = vmatprep.subr.mxu0 %v22461_v12  ;;  %v12475_v13 = vpop.f32.mrf.mxu1 }
 0xd16   :  { %7370 = vmatpush2.msra.mxu0 %v20104_v7  ;;  %v10404_v7 = vld [vmem:[%s22328_s3 + $0x370] sm:$0xff] }
 0xd17   :  { %7371 = vmatprep.subr.mxu0 %v22461_v12  ;;  %v7709_v3 = vpop.f32.mrf.mxu1 }
 0xd18   :  { %7372 = vmatpush2.msra.mxu0 %v20110_v28  ;;  %v13196_v28 = vld [vmem:[%s22327_s5 + $0x810] sm:$0xff] }
 0xd19   :  { %7374 = vmatmul.mubr.f32.vlgmr.msra.gmra.mxu0 %v13194_v50  ;;  %v12478_v48 = vpop.f32.mrf.mxu1  ;;  %12503 = vmatprep.subr.mxu0 %v10405_v62 }
 0xd1a   :  { %7809 = vmatpush1.msra.mxu1 %v12478_v48  ;;  %7378 = vmatprep.mubr.f32.mxu0 %v13195_v23  ;;  %v13199_v48 = vld [vmem:[%s22327_s5 + $0x838] sm:$0xff] }
 0xd1b   :  { %v7719_v15 = vpop.f32.mrf.mxu1  ;;  %7810 = vmatprep.subr.mxu1 %v22461_v12  ;;  %12504 = vmatpush3.msra.mxu0 %v10405_v62  ;;  %v13198_v62 = vld [vmem:[%s22327_s5 + $0x820] sm:$0xff] }
 0xd1c   :  { %7811 = vmatpush1.msra.mxu1 %v7719_v15  ;;  %12505 = vmatprep.subr.mxu0 %v10404_v7  ;;  %v13201_v15 = vld [vmem:[%s22327_s5 + $0x848] sm:$0xff] }
 0xd1d   :  { %7379 = vmatmul.mubr.f32.gmra.mxu0 %v13196_v28  ;;  %v20219_v27 = vpop.f32.mrf.mxu1  ;;  %7812 = vmatprep.subr.mxu1 %v22461_v12  ;;  %v13202_v28 = vld [vmem:[%s22327_s5 + $0x840] sm:$0xff] }
 0xd1e   :  { %7813 = vmatpush1.msra.mxu1 %v12475_v13  ;;  %7383 = vmatprep.mubr.f32.mxu0 %v13197_v9  ;;  %v10402_v13 = vld [vmem:[%s22328_s3 + $0x360] sm:$0xff] }
 0xd1f   :  { %v20228_v1 = vpop.f32.mrf.mxu1  ;;  %7814 = vmatprep.subr.mxu1 %v22461_v12  ;;  %12506 = vmatpush3.msra.mxu0 %v10404_v7  ;;  %v13200_v7 = vld [vmem:[%s22327_s5 + $0x830] sm:$0xff] }
 0xd20   :  { %7815 = vmatpush1.msra.mxu1 %v7709_v3  ;;  %12507 = vmatprep.subr.mxu0 %v10403_v30 }
 0xd21   :  { %7384 = vmatmul.mubr.f32.gmra.mxu0 %v13198_v62  ;;  %v20234_v50 = vpop.f32.mrf.mxu1  ;;  %7816 = vmatprep.subr.mxu1 %v22461_v12  ;;  %v13204_v62 = vld [vmem:[%s22327_s5 + $0x850] sm:$0xff] }
 0xd22   :  { %7817 = vmatpush1.msra.mxu1 %v12472_v52  ;;  %7388 = vmatprep.mubr.f32.mxu0 %v13199_v48  ;;  %v10401_v52 = vld [vmem:[%s22328_s3 + $0x358] sm:$0xff] }
 0xd23   :  { %v20243_v3 = vpop.f32.mrf.mxu1  ;;  %7818 = vmatprep.subr.mxu1 %v22461_v12  ;;  %12508 = vmatpush3.msra.mxu0 %v10403_v30 }
 0xd24   :  { %7819 = vmatpush1.msra.mxu1 %v7699_v20  ;;  %12509 = vmatprep.subr.mxu0 %v10402_v13 }
 0xd25   :  { %7389 = vmatmul.mubr.f32.gmra.mxu0 %v13200_v7  ;;  %v20249_v23 = vpop.f32.mrf.mxu1  ;;  %7820 = vmatprep.subr.mxu1 %v22461_v12  ;;  %v13206_v7 = vld [vmem:[%s22327_s5 + $0x860] sm:$0xff] }
 0xd26   :  { %7821 = vmatpush1.msra.mxu1 %v12469_v32  ;;  %7393 = vmatprep.mubr.f32.mxu0 %v13201_v15  ;;  %v10400_v32 = vld [vmem:[%s22328_s3 + $0x350] sm:$0xff]  ;;  %v13207_v15 = vld [vmem:[%s22327_s5 + $0x878] sm:$0xff] }
 0xd27   :  { %v20258_v20 = vpop.f32.mrf.mxu1  ;;  %7822 = vmatprep.subr.mxu1 %v22461_v12  ;;  %12510 = vmatpush3.msra.mxu0 %v10402_v13 }
 0xd28   :  { %7823 = vmatpush1.msra.mxu1 %v20192_v63  ;;  %12511 = vmatprep.subr.mxu0 %v10401_v52  ;;  %v13203_v63 = vld [vmem:[%s22327_s5 + $0x858] sm:$0xff] }
 0xd29   :  { %7394 = vmatmul.mubr.f32.gmra.mxu0 %v13202_v28  ;;  %v20265_v30 = vpop.f32.mrf.mxu1  ;;  %7824 = vmatprep.subr.mxu1 %v22461_v12  ;;  %v13208_v28 = vld [vmem:[%s22327_s5 + $0x870] sm:$0xff] }
 0xd2a   :  { %7825 = vmatpush1.msra.mxu1 %v20183_v59  ;;  %7398 = vmatprep.mubr.f32.mxu0 %v13203_v63  ;;  %v10399_v59 = vld [vmem:[%s22328_s3 + $0x348] sm:$0xff] }
 0xd2b   :  { %v20275_v9 = vpop.f32.mrf.mxu1  ;;  %7826 = vmatprep.subr.mxu1 %v22461_v12  ;;  %12512 = vmatpush3.msra.mxu0 %v10401_v52  ;;  %v13209_v63 = vld [vmem:[%s22327_s5 + $0x888] sm:$0xff] }
 0xd2c   :  { %7827 = vmatpush1.msra.mxu1 %v20187_v31  ;;  %12513 = vmatprep.subr.mxu0 %v10400_v32  ;;  %v13205_v31 = vld [vmem:[%s22327_s5 + $0x868] sm:$0xff] }
 0xd2d   :  { %7399 = vmatmul.mubr.f32.gmra.mxu0 %v13204_v62  ;;  %v20282_v13 = vpop.f32.mrf.mxu1  ;;  %7828 = vmatprep.subr.mxu1 %v22461_v12  ;;  %v13210_v62 = vld [vmem:[%s22327_s5 + $0x880] sm:$0xff] }
 0xd2e   :  { %7829 = vmatpush1.msra.mxu1 %v20177_v56  ;;  %7403 = vmatprep.mubr.f32.mxu0 %v13205_v31  ;;  %v10398_v56 = vld [vmem:[%s22328_s3 + $0x340] sm:$0xff]  ;;  %v13211_v31 = vld [vmem:[%s22327_s5 + $0x898] sm:$0xff] }
 0xd2f   :  { %v20292_v48 = vpop.f32.mrf.mxu1  ;;  %7830 = vmatprep.subr.mxu1 %v22461_v12  ;;  %12514 = vmatpush3.msra.mxu0 %v10400_v32 }
 0xd30   :  { %7831 = vmatpush1.msra.mxu1 %v20180_v6  ;;  %12515 = vmatprep.subr.mxu0 %v10399_v59 }
 0xd31   :  { %7404 = vmatmul.mubr.f32.gmra.mxu0 %v13206_v7  ;;  %v12496_v52 = vpop.f32.mrf.mxu1  ;;  %7832 = vmatprep.subr.mxu1 %v22461_v12  ;;  %v13212_v7 = vld [vmem:[%s22327_s5 + $0x890] sm:$0xff] }
 0xd32   :  { %7833 = vmatpush1.msra.mxu1 %v20171_v46  ;;  %7408 = vmatprep.mubr.f32.mxu0 %v13207_v15  ;;  %v10397_v46 = vld [vmem:[%s22328_s3 + $0x338] sm:$0xff]  ;;  %v13213_v15 = vld [vmem:[%s22327_s5 + $0x8a8] sm:$0xff] }
 0xd33   :  { %v7779_v6 = vpop.f32.mrf.mxu1  ;;  %7834 = vmatprep.subr.mxu1 %v22461_v12  ;;  %12516 = vmatpush3.msra.mxu0 %v10399_v59 }
 0xd34   :  { %7835 = vmatpush1.msra.mxu1 %v20174_v37  ;;  %12517 = vmatprep.subr.mxu0 %v10398_v56 }
 0xd35   :  { %7409 = vmatmul.mubr.f32.gmra.mxu0 %v13208_v28  ;;  %v12499_v32 = vpop.f32.mrf.mxu1  ;;  %7836 = vmatprep.subr.mxu1 %v22461_v12  ;;  %v13214_v28 = vld [vmem:[%s22327_s5 + $0x8a0] sm:$0xff] }
 0xd36   :  { %7837 = vmatpush1.msra.mxu1 %v20165_v0  ;;  %7413 = vmatprep.mubr.f32.mxu0 %v13209_v63  ;;  %v10396_v0 = vld [vmem:[%s22328_s3 + $0x330] sm:$0xff] }
 0xd37   :  { %v7789_v37 = vpop.f32.mrf.mxu1  ;;  %7838 = vmatprep.subr.mxu1 %v22461_v12  ;;  %12518 = vmatpush3.msra.mxu0 %v10398_v56  ;;  %v10395_v56 = vld [vmem:[%s22328_s3 + $0x328] sm:$0xff]  ;;  %v13216_v63 = vld [vmem:[%s22327_s5 + $0x8b0] sm:$0xff] }
 0xd38   :  { %7839 = vmatpush1.msra.mxu1 %v20168_v54  ;;  %12519 = vmatprep.subr.mxu0 %v10397_v46 }
 0xd39   :  { %7414 = vmatmul.mubr.f32.gmra.mxu0 %v13210_v62  ;;  %v12502_v59 = vpop.f32.mrf.mxu1  ;;  %7840 = vmatprep.subr.mxu1 %v22461_v12  ;;  %v13219_v62 = vld [vmem:[%s22327_s5 + $0x8d8] sm:$0xff] }
 0xd3a   :  { %7841 = vmatpush2.msra.mxu1 %v12502_v59  ;;  %7418 = vmatprep.mubr.f32.mxu0 %v13211_v31  ;;  %v13221_v59 = vld [vmem:[%s22327_s5 + $0x8e8] sm:$0xff]  ;;  %v13227_v31 = vld [vmem:[%s22327_s5 + $0xa00] sm:$0xff] }
 0xd3b   :  { %v7799_v54 = vpop.f32.mrf.mxu1  ;;  %7842 = vmatprep.subr.mxu1 %v22461_v12  ;;  %12520 = vmatpush3.msra.mxu0 %v10397_v46  ;;  %v13215_v46 = vld [vmem:[%s22327_s5 + $0x8b8] sm:$0xff] }
 0xd3c   :  { %7843 = vmatpush2.msra.mxu1 %v7799_v54  ;;  %12521 = vmatprep.subr.mxu0 %v10396_v0  ;;  %v13229_v54 = vld [vmem:[%s22327_s5 + $0xa18] sm:$0xff] }
 0xd3d   :  { %7419 = vmatmul.mubr.f32.gmra.mxu0 %v13212_v7  ;;  %7844 = vmatprep.subr.mxu1 %v22461_v12  ;;  %v10420_v7 = vld [vmem:[%s22328_s3 + $0x3f0] sm:$0xff] }
 0xd3e   :  { %7845 = vmatpush2.msra.mxu1 %v12499_v32  ;;  %7423 = vmatprep.mubr.f32.mxu0 %v13213_v15  ;;  %v10394_v32 = vld [vmem:[%s22328_s3 + $0x320] sm:$0xff]  ;;  %v13231_v15 = vld [vmem:[%s22327_s5 + $0xa10] sm:$0xff] }
 0xd3f   :  { %7846 = vmatprep.subr.mxu1 %v22461_v12  ;;  %12522 = vmatpush3.msra.mxu0 %v10396_v0  ;;  %v13223_v0 = vld [vmem:[%s22327_s5 + $0x8f8] sm:$0xff] }
 0xd40   :  { %7847 = vmatpush2.msra.mxu1 %v7789_v37  ;;  %12523 = vmatprep.subr.mxu0 %v10395_v56  ;;  %v13217_v37 = vld [vmem:[%s22327_s5 + $0x8c8] sm:$0xff] }
 0xd41   :  { %7424 = vmatmul.mubr.f32.gmra.mxu0 %v13214_v28  ;;  %7848 = vmatprep.subr.mxu1 %v22461_v12  ;;  %v13232_v28 = vld [vmem:[%s22327_s5 + $0x928] sm:$0xff] }
 0xd42   :  { %7849 = vmatpush2.msra.mxu1 %v12496_v52  ;;  %7428 = vmatprep.mubr.f32.mxu0 %v13215_v46  ;;  %v10393_v52 = vld [vmem:[%s22328_s3 + $0x318] sm:$0xff]  ;;  %v10419_v46 = vld [vmem:[%s22328_s3 + $0x3e8] sm:$0xff] }
 0xd43   :  { %7850 = vmatprep.subr.mxu1 %v22461_v12  ;;  %12524 = vmatpush3.msra.mxu0 %v10395_v56  ;;  %v13230_v56 = vld [vmem:[%s22327_s5 + $0x910] sm:$0xff] }
 0xd44   :  { %7851 = vmatpush2.msra.mxu1 %v7779_v6  ;;  %12525 = vmatprep.subr.mxu0 %v10394_v32  ;;  %v13218_v6 = vld [vmem:[%s22327_s5 + $0x8c0] sm:$0xff] }
 0xd45   :  { %7429 = vmatmul.mubr.f32.gmra.mxu0 %v13216_v63  ;;  %7852 = vmatprep.subr.mxu1 %v22461_v12  ;;  %v13234_v63 = vld [vmem:[%s22327_s5 + $0x920] sm:$0xff] }
 0xd46   :  { %7853 = vmatpush2.msra.mxu1 %v20282_v13  ;;  %7433 = vmatprep.mubr.f32.mxu0 %v13217_v37  ;;  %v10392_v13 = vld [vmem:[%s22328_s3 + $0x310] sm:$0xff]  ;;  %v13236_v37 = vld [vmem:[%s22327_s5 + $0x938] sm:$0xff] }
 0xd47   :  { %7854 = vmatprep.subr.mxu1 %v22461_v12  ;;  %12526 = vmatpush3.msra.mxu0 %v10394_v32  ;;  %v13233_v32 = vld [vmem:[%s22327_s5 + $0xa28] sm:$0xff] }
 0xd48   :  { %7855 = vmatpush2.msra.mxu1 %v20292_v48  ;;  %12527 = vmatprep.subr.mxu0 %v10393_v52  ;;  %v13220_v48 = vld [vmem:[%s22327_s5 + $0x8d0] sm:$0xff] }
 0xd49   :  { %7434 = vmatmul.mubr.f32.gmra.mxu0 %v13218_v6  ;;  %7856 = vmatprep.subr.mxu1 %v22461_v12  ;;  %v13237_v6 = vld [vmem:[%s22327_s5 + $0xa38] sm:$0xff] }
 0xd4a   :  { %7857 = vmatpush2.msra.mxu1 %v20265_v30  ;;  %7438 = vmatprep.mubr.f32.mxu0 %v13219_v62  ;;  %v10391_v30 = vld [vmem:[%s22328_s3 + $0x308] sm:$0xff]  ;;  %v13238_v62 = vld [vmem:[%s22327_s5 + $0x930] sm:$0xff] }
 0xd4b   :  { %7858 = vmatprep.subr.mxu1 %v22461_v12  ;;  %12528 = vmatpush3.msra.mxu0 %v10393_v52  ;;  %v13235_v52 = vld [vmem:[%s22327_s5 + $0xa20] sm:$0xff] }
 0xd4c   :  { %7859 = vmatpush2.msra.mxu1 %v20275_v9  ;;  %12529 = vmatprep.subr.mxu0 %v10392_v13  ;;  %v13222_v9 = vld [vmem:[%s22327_s5 + $0x8e0] sm:$0xff] }
 0xd4d   :  { %7439 = vmatmul.mubr.f32.gmra.mxu0 %v13220_v48  ;;  %7860 = vmatprep.subr.mxu1 %v22461_v12  ;;  %v13239_v48 = vld [vmem:[%s22327_s5 + $0xa30] sm:$0xff] }
 0xd4e   :  { %7861 = vmatpush2.msra.mxu1 %v20249_v23  ;;  %7443 = vmatprep.mubr.f32.mxu0 %v13221_v59  ;;  %v10390_v23 = vld [vmem:[%s22328_s3 + $0x300] sm:$0xff]  ;;  %v13241_v59 = vld [vmem:[%s22327_s5 + $0xa48] sm:$0xff] }
 0xd4f   :  { %7862 = vmatprep.subr.mxu1 %v22461_v12  ;;  %12530 = vmatpush3.msra.mxu0 %v10392_v13  ;;  %v10418_v13 = vld [vmem:[%s22328_s3 + $0x3e0] sm:$0xff] }
 0xd50   :  { %7863 = vmatpush2.msra.mxu1 %v20258_v20  ;;  %12531 = vmatprep.subr.mxu0 %v10391_v30  ;;  %v13224_v20 = vld [vmem:[%s22327_s5 + $0x8f0] sm:$0xff] }
 0xd51   :  { %7444 = vmatmul.mubr.f32.gmra.mxu0 %v13222_v9  ;;  %7864 = vmatprep.subr.mxu1 %v22461_v12  ;;  %v10417_v9 = vld [vmem:[%s22328_s3 + $0x3d8] sm:$0xff] }
 0xd52   :  { %7865 = vmatpush2.msra.mxu1 %v20234_v50  ;;  %7448 = vmatprep.mubr.f32.mxu0 %v13223_v0  ;;  %v13225_v50 = vld [vmem:[%s22327_s5 + $0x908] sm:$0xff]  ;;  %v13243_v0 = vld [vmem:[%s22327_s5 + $0xa40] sm:$0xff] }
 0xd53   :  { %7866 = vmatprep.subr.mxu1 %v22461_v12  ;;  %12532 = vmatpush3.msra.mxu0 %v10391_v30  ;;  %v13240_v30 = vld [vmem:[%s22327_s5 + $0x948] sm:$0xff] }
 0xd54   :  { %7867 = vmatpush2.msra.mxu1 %v20243_v3  ;;  %12533 = vmatprep.subr.mxu0 %v10390_v23  ;;  %v10421_v3 = vld [vmem:[%s22328_s3 + $0x3f8] sm:$0xff] }
 0xd55   :  { %7449 = vmatmul.mubr.f32.gmra.mxu0 %v13224_v20  ;;  %7868 = vmatprep.subr.mxu1 %v22461_v12  ;;  %v13244_v20 = vld [vmem:[%s22327_s5 + $0x958] sm:$0xff] }
 0xd56   :  { %7869 = vmatpush2.msra.mxu1 %v20219_v27  ;;  %7453 = vmatprep.mubr.f32.mxu0 %v13225_v50  ;;  %v13226_v27 = vld [vmem:[%s22327_s5 + $0x900] sm:$0xff]  ;;  %v13245_v50 = vld [vmem:[%s22327_s5 + $0xa58] sm:$0xff] }
 0xd57   :  { %7870 = vmatprep.subr.mxu1 %v22461_v12  ;;  %12534 = vmatpush3.msra.mxu0 %v10390_v23  ;;  %v13242_v23 = vld [vmem:[%s22327_s5 + $0x940] sm:$0xff] }
 0xd58   :  { %7871 = vmatpush2.msra.mxu1 %v20228_v1  ;;  %8307 = vmatprep.subr.mxu0 %v22461_v12  ;;  %v13228_v1 = vld [vmem:[%s22327_s5 + $0x918] sm:$0xff] }
 0xd59   :  { %7454 = vmatmul.mubr.f32.gmra.mxu0 %v13226_v27  ;;  %7873 = vmatmul.mubr.f32.vlgmr.msra.gmra.mxu1 %v13227_v31  ;;  %v13246_v27 = vld [vmem:[%s22327_s5 + $0x950] sm:$0xff] }
 0xd5a   :  { %7458 = vmatprep.mubr.f32.mxu0 %v13228_v1  ;;  %7877 = vmatprep.mubr.f32.mxu1 %v13229_v54  ;;  %v13247_v31 = vld [vmem:[%s22327_s5 + $0xa50] sm:$0xff]  ;;  %v13248_v1 = vld [vmem:[%s22327_s5 + $0x968] sm:$0xff] }
 0xd5b   :  { %12583 = vmatprep.subr.mxu1 %v10421_v3  ;;  %v13249_v54 = vld [vmem:[%s22327_s5 + $0xa68] sm:$0xff] }
 0xd5c   :  { %12584 = vmatpush3.msra.mxu1 %v10421_v3  ;;  %v10416_v3 = vld [vmem:[%s22328_s3 + $0x3d0] sm:$0xff] }
 0xd5d   :  { %7459 = vmatmul.mubr.f32.gmra.mxu0 %v13230_v56  ;;  %7878 = vmatmul.mubr.f32.gmra.mxu1 %v13231_v15  ;;  %v13250_v56 = vld [vmem:[%s22327_s5 + $0x960] sm:$0xff] }
 0xd5e   :  { %7463 = vmatprep.mubr.f32.mxu0 %v13232_v28  ;;  %7882 = vmatprep.mubr.f32.mxu1 %v13233_v32  ;;  %v13251_v15 = vld [vmem:[%s22327_s5 + $0xa60] sm:$0xff]  ;;  %v13252_v28 = vld [vmem:[%s22327_s5 + $0x978] sm:$0xff] }
 0xd5f   :  { %12585 = vmatprep.subr.mxu1 %v10420_v7  ;;  %v13253_v32 = vld [vmem:[%s22327_s5 + $0xa78] sm:$0xff] }
 0xd60   :  { %12586 = vmatpush3.msra.mxu1 %v10420_v7  ;;  %v10415_v7 = vld [vmem:[%s22328_s3 + $0x3c8] sm:$0xff] }
 0xd61   :  { %7464 = vmatmul.mubr.f32.gmra.mxu0 %v13234_v63  ;;  %7883 = vmatmul.mubr.f32.gmra.mxu1 %v13235_v52  ;;  %v13254_v63 = vld [vmem:[%s22327_s5 + $0x970] sm:$0xff] }
 0xd62   :  { %7468 = vmatprep.mubr.f32.mxu0 %v13236_v37  ;;  %7887 = vmatprep.mubr.f32.mxu1 %v13237_v6  ;;  %v13255_v52 = vld [vmem:[%s22327_s5 + $0xa70] sm:$0xff]  ;;  %v13256_v37 = vld [vmem:[%s22327_s5 + $0x988] sm:$0xff] }
 0xd63   :  { %12587 = vmatprep.subr.mxu1 %v10419_v46  ;;  %v13257_v6 = vld [vmem:[%s22327_s5 + $0xa88] sm:$0xff] }
 0xd64   :  { %12588 = vmatpush3.msra.mxu1 %v10419_v46  ;;  %v10414_v46 = vld [vmem:[%s22328_s3 + $0x3c0] sm:$0xff] }
 0xd65   :  { %7469 = vmatmul.mubr.f32.gmra.mxu0 %v13238_v62  ;;  %7888 = vmatmul.mubr.f32.gmra.mxu1 %v13239_v48  ;;  %v13258_v62 = vld [vmem:[%s22327_s5 + $0x980] sm:$0xff] }
 0xd66   :  { %7473 = vmatprep.mubr.f32.mxu0 %v13240_v30  ;;  %7892 = vmatprep.mubr.f32.mxu1 %v13241_v59  ;;  %v13259_v48 = vld [vmem:[%s22327_s5 + $0xa80] sm:$0xff]  ;;  %v13260_v30 = vld [vmem:[%s22327_s5 + $0x998] sm:$0xff] }
 0xd67   :  { %12589 = vmatprep.subr.mxu1 %v10418_v13  ;;  %v13261_v59 = vld [vmem:[%s22327_s5 + $0xa98] sm:$0xff] }
 0xd68   :  { %12590 = vmatpush3.msra.mxu1 %v10418_v13  ;;  %v10413_v13 = vld [vmem:[%s22328_s3 + $0x3b8] sm:$0xff] }
 0xd69   :  { %7474 = vmatmul.mubr.f32.gmra.mxu0 %v13242_v23  ;;  %7893 = vmatmul.mubr.f32.gmra.mxu1 %v13243_v0  ;;  %v13262_v23 = vld [vmem:[%s22327_s5 + $0x990] sm:$0xff] }
 0xd6a   :  { %7478 = vmatprep.mubr.f32.mxu0 %v13244_v20  ;;  %7897 = vmatprep.mubr.f32.mxu1 %v13245_v50  ;;  %v13263_v0 = vld [vmem:[%s22327_s5 + $0xa90] sm:$0xff]  ;;  %v13264_v20 = vld [vmem:[%s22327_s5 + $0x9a8] sm:$0xff] }
 0xd6b   :  { %12591 = vmatprep.subr.mxu1 %v10417_v9  ;;  %v13265_v50 = vld [vmem:[%s22327_s5 + $0xaa8] sm:$0xff] }
 0xd6c   :  { %12592 = vmatpush3.msra.mxu1 %v10417_v9  ;;  %v10412_v9 = vld [vmem:[%s22328_s3 + $0x3b0] sm:$0xff] }
 0xd6d   :  { %7479 = vmatmul.mubr.f32.gmra.mxu0 %v13246_v27  ;;  %7898 = vmatmul.mubr.f32.gmra.mxu1 %v13247_v31  ;;  %v13266_v27 = vld [vmem:[%s22327_s5 + $0x9a0] sm:$0xff] }
 0xd6e   :  { %7483 = vmatprep.mubr.f32.mxu0 %v13248_v1  ;;  %7902 = vmatprep.mubr.f32.mxu1 %v13249_v54  ;;  %v13267_v31 = vld [vmem:[%s22327_s5 + $0xaa0] sm:$0xff]  ;;  %v13268_v1 = vld [vmem:[%s22327_s5 + $0x9b8] sm:$0xff] }
 0xd6f   :  { %12593 = vmatprep.subr.mxu1 %v10416_v3  ;;  %v13269_v54 = vld [vmem:[%s22327_s5 + $0xab8] sm:$0xff] }
 0xd70   :  { %12594 = vmatpush3.msra.mxu1 %v10416_v3  ;;  %v10411_v3 = vld [vmem:[%s22328_s3 + $0x3a8] sm:$0xff] }
 0xd71   :  { %7484 = vmatmul.mubr.f32.gmra.mxu0 %v13250_v56  ;;  %7903 = vmatmul.mubr.f32.gmra.mxu1 %v13251_v15  ;;  %v13270_v56 = vld [vmem:[%s22327_s5 + $0x9b0] sm:$0xff] }
 0xd72   :  { %7488 = vmatprep.mubr.f32.mxu0 %v13252_v28  ;;  %7907 = vmatprep.mubr.f32.mxu1 %v13253_v32  ;;  %v13271_v15 = vld [vmem:[%s22327_s5 + $0xab0] sm:$0xff]  ;;  %v13272_v28 = vld [vmem:[%s22327_s5 + $0x9c8] sm:$0xff] }
 0xd73   :  { %12595 = vmatprep.subr.mxu1 %v10415_v7  ;;  %v13273_v32 = vld [vmem:[%s22327_s5 + $0xac8] sm:$0xff] }
 0xd74   :  { %12596 = vmatpush3.msra.mxu1 %v10415_v7  ;;  %v10410_v7 = vld [vmem:[%s22328_s3 + $0x3a0] sm:$0xff] }
 0xd75   :  { %7489 = vmatmul.mubr.f32.gmra.mxu0 %v13254_v63  ;;  %7908 = vmatmul.mubr.f32.gmra.mxu1 %v13255_v52  ;;  %v13274_v63 = vld [vmem:[%s22327_s5 + $0x9c0] sm:$0xff] }
 0xd76   :  { %7493 = vmatprep.mubr.f32.mxu0 %v13256_v37  ;;  %7912 = vmatprep.mubr.f32.mxu1 %v13257_v6  ;;  %v13275_v52 = vld [vmem:[%s22327_s5 + $0xac0] sm:$0xff]  ;;  %v13276_v37 = vld [vmem:[%s22327_s5 + $0x9d8] sm:$0xff] }
 0xd77   :  { %12597 = vmatprep.subr.mxu1 %v10414_v46  ;;  %v13277_v6 = vld [vmem:[%s22327_s5 + $0xad8] sm:$0xff] }
 0xd78   :  { %12598 = vmatpush3.msra.mxu1 %v10414_v46  ;;  %v10409_v46 = vld [vmem:[%s22328_s3 + $0x398] sm:$0xff] }
 0xd79   :  { %7494 = vmatmul.mubr.f32.gmra.mxu0 %v13258_v62  ;;  %7913 = vmatmul.mubr.f32.gmra.mxu1 %v13259_v48  ;;  %v13278_v62 = vld [vmem:[%s22327_s5 + $0x9d0] sm:$0xff] }
 0xd7a   :  { %7498 = vmatprep.mubr.f32.mxu0 %v13260_v30  ;;  %7917 = vmatprep.mubr.f32.mxu1 %v13261_v59  ;;  %v13279_v48 = vld [vmem:[%s22327_s5 + $0xad0] sm:$0xff]  ;;  %v13280_v30 = vld [vmem:[%s22327_s5 + $0x9e8] sm:$0xff] }
 0xd7b   :  { %12599 = vmatprep.subr.mxu1 %v10413_v13  ;;  %v13281_v59 = vld [vmem:[%s22327_s5 + $0xae8] sm:$0xff] }
 0xd7c   :  { %12600 = vmatpush3.msra.mxu1 %v10413_v13  ;;  %v10408_v13 = vld [vmem:[%s22328_s3 + $0x390] sm:$0xff] }
 0xd7d   :  { %7499 = vmatmul.mubr.f32.gmra.mxu0 %v13262_v23  ;;  %7918 = vmatmul.mubr.f32.gmra.mxu1 %v13263_v0  ;;  %v13282_v23 = vld [vmem:[%s22327_s5 + $0x9e0] sm:$0xff] }
 0xd7e   :  { %7503 = vmatprep.mubr.f32.mxu0 %v13264_v20  ;;  %7922 = vmatprep.mubr.f32.mxu1 %v13265_v50  ;;  %v13283_v0 = vld [vmem:[%s22327_s5 + $0xae0] sm:$0xff]  ;;  %v13284_v20 = vld [vmem:[%s22327_s5 + $0x9f8] sm:$0xff] }
 0xd7f   :  { %12601 = vmatprep.subr.mxu1 %v10412_v9  ;;  %v13285_v50 = vld [vmem:[%s22327_s5 + $0xaf8] sm:$0xff] }
 0xd80   :  { %12602 = vmatpush3.msra.mxu1 %v10412_v9  ;;  %v10407_v9 = vld [vmem:[%s22328_s3 + $0x388] sm:$0xff] }
 0xd81   :  { %7504 = vmatmul.mubr.f32.gmra.mxu0 %v13266_v27  ;;  %7923 = vmatmul.mubr.f32.gmra.mxu1 %v13267_v31  ;;  %v13286_v27 = vld [vmem:[%s22327_s5 + $0x9f0] sm:$0xff] }
 0xd82   :  { %7508 = vmatprep.mubr.f32.mxu0 %v13268_v1  ;;  %7927 = vmatprep.mubr.f32.mxu1 %v13269_v54  ;;  %v13287_v31 = vld [vmem:[%s22327_s5 + $0xaf0] sm:$0xff]  ;;  %v13288_v1 = vld [vmem:[%s22327_s5 + $0xb08] sm:$0xff]  ;;  %v13289_v54 = vld [vmem:[%s22327_s5 + $0xb00] sm:$0xff] }
 0xd83   :  { %12603 = vmatprep.subr.mxu1 %v10411_v3 }
 0xd84   :  { %12604 = vmatpush3.msra.mxu1 %v10411_v3  ;;  %v10406_v3 = vld [vmem:[%s22328_s3 + $0x380] sm:$0xff] }
 0xd85   :  { %7509 = vmatmul.mubr.f32.gmra.mxu0 %v13270_v56  ;;  %7928 = vmatmul.mubr.f32.gmra.mxu1 %v13271_v15  ;;  %v13291_v56 = vld [vmem:[%s22327_s5 + $0xb10] sm:$0xff]  ;;  %v13292_v15 = vld [vmem:[%s22327_s5 + $0xb28] sm:$0xff] }
 0xd86   :  { %7513 = vmatprep.mubr.f32.mxu0 %v13272_v28  ;;  %7932 = vmatprep.mubr.f32.mxu1 %v13273_v32  ;;  %v13293_v28 = vld [vmem:[%s22327_s5 + $0xb20] sm:$0xff]  ;;  %v13294_v32 = vld [vmem:[%s22327_s5 + $0xb38] sm:$0xff] }
 0xd87   :  { %12605 = vmatprep.subr.mxu1 %v10410_v7 }
 0xd88   :  { %12606 = vmatpush3.msra.mxu1 %v10410_v7  ;;  %v13290_v7 = vld [vmem:[%s22327_s5 + $0xb18] sm:$0xff] }
 0xd89   :  { %7514 = vmatmul.mubr.f32.gmra.mxu0 %v13274_v63  ;;  %7933 = vmatmul.mubr.f32.gmra.mxu1 %v13275_v52  ;;  %v13296_v63 = vld [vmem:[%s22327_s5 + $0xb48] sm:$0xff]  ;;  %v13297_v52 = vld [vmem:[%s22327_s5 + $0xb40] sm:$0xff] }
 0xd8a   :  { %7518 = vmatprep.mubr.f32.mxu0 %v13276_v37  ;;  %7937 = vmatprep.mubr.f32.mxu1 %v13277_v6  ;;  %v13298_v37 = vld [vmem:[%s22327_s5 + $0xb58] sm:$0xff]  ;;  %v13299_v6 = vld [vmem:[%s22327_s5 + $0xb50] sm:$0xff] }
 0xd8b   :  { %12607 = vmatprep.subr.mxu1 %v10409_v46 }
 0xd8c   :  { %12608 = vmatpush3.msra.mxu1 %v10409_v46  ;;  %v13295_v46 = vld [vmem:[%s22327_s5 + $0xb30] sm:$0xff] }
 0xd8d   :  { %7519 = vmatmul.mubr.f32.gmra.mxu0 %v13278_v62  ;;  %7938 = vmatmul.mubr.f32.gmra.mxu1 %v13279_v48  ;;  %v13301_v62 = vld [vmem:[%s22327_s5 + $0xb60] sm:$0xff]  ;;  %v13302_v48 = vld [vmem:[%s22327_s5 + $0xb78] sm:$0xff] }
 0xd8e   :  { %7523 = vmatprep.mubr.f32.mxu0 %v13280_v30  ;;  %7942 = vmatprep.mubr.f32.mxu1 %v13281_v59  ;;  %v13303_v30 = vld [vmem:[%s22327_s5 + $0xb70] sm:$0xff]  ;;  %v13304_v59 = vld [vmem:[%s22327_s5 + $0xb88] sm:$0xff] }
 0xd8f   :  { %12609 = vmatprep.subr.mxu1 %v10408_v13 }
 0xd90   :  { %12610 = vmatpush3.msra.mxu1 %v10408_v13  ;;  %v13300_v13 = vld [vmem:[%s22327_s5 + $0xb68] sm:$0xff] }
 0xd91   :  { %7524 = vmatmul.mubr.f32.gmra.mxu0 %v13282_v23  ;;  %7943 = vmatmul.mubr.f32.gmra.mxu1 %v13283_v0  ;;  %v13306_v23 = vld [vmem:[%s22327_s5 + $0xb98] sm:$0xff]  ;;  %v13307_v0 = vld [vmem:[%s22327_s5 + $0xb90] sm:$0xff] }
 0xd92   :  { %7528 = vmatprep.mubr.f32.mxu0 %v13284_v20  ;;  %7947 = vmatprep.mubr.f32.mxu1 %v13285_v50  ;;  %v13308_v20 = vld [vmem:[%s22327_s5 + $0xba8] sm:$0xff]  ;;  %v13309_v50 = vld [vmem:[%s22327_s5 + $0xba0] sm:$0xff] }
 0xd93   :  { %12611 = vmatprep.subr.mxu1 %v10407_v9 }
 0xd94   :  { %12612 = vmatpush3.msra.mxu1 %v10407_v9  ;;  %v13305_v9 = vld [vmem:[%s22327_s5 + $0xb80] sm:$0xff] }
 0xd95   :  { %7529 = vmatmul.mubr.f32.gmra.mxu0 %v13286_v27  ;;  %7948 = vmatmul.mubr.f32.gmra.mxu1 %v13287_v31  ;;  %v13311_v27 = vld [vmem:[%s22327_s5 + $0xbb0] sm:$0xff]  ;;  %v13312_v31 = vld [vmem:[%s22327_s5 + $0xbc8] sm:$0xff] }
 0xd96   :  { %12535 = vmatprep.mubr.f32.mxu0 %v18190_v36  ;;  %7952 = vmatprep.mubr.f32.mxu1 %v13288_v1  ;;  %v13313_v1 = vld [vmem:[%s22327_s5 + $0xbc0] sm:$0xff] }
 0xd97   :  { %12613 = vmatprep.subr.mxu1 %v10406_v3 }
 0xd98   :  { %12614 = vmatpush3.msra.mxu1 %v10406_v3  ;;  %v13310_v3 = vld [vmem:[%s22327_s5 + $0xbb8] sm:$0xff] }
 0xd99   :  { %7953 = vmatmul.mubr.f32.gmra.mxu1 %v13289_v54  ;;  %12536 = vmatmul.mubr.f32.vlgmr.msra.gmra.mxu0 %v18195_v29  ;;  %v22539_v54 = vld [vmem:[#allocation25_spill] sm:$0xff] }
 0xd9a   :  { %12538 = vmatprep.mubr.f32.mxu0 %v18206_v45  ;;  %7957 = vmatprep.mubr.f32.mxu1 %v13290_v7  ;;  %v22540_v7 = vld [vmem:[#allocation6_spill] sm:$0xff] }
 0xd9b   :  { %8806 = vmatprep.subr.mxu1 %v22461_v12 }
 0xd9d   :  { %7958 = vmatmul.mubr.f32.gmra.mxu1 %v13291_v56  ;;  %12539 = vmatmul.mubr.f32.gmra.mxu0 %v18217_v34  ;;  %v13314_v56 = vld [vmem:[%s22327_s5 + $0xbd8] sm:$0xff] }
 0xd9e   :  { %12541 = vmatprep.mubr.f32.mxu0 %v18228_v14  ;;  %7962 = vmatprep.mubr.f32.mxu1 %v13292_v15  ;;  %v13315_v15 = vld [vmem:[%s22327_s5 + $0xbd0] sm:$0xff] }
 0xda1   :  { %7963 = vmatmul.mubr.f32.gmra.mxu1 %v13293_v28  ;;  %12542 = vmatmul.mubr.f32.gmra.mxu0 %v18239_v51  ;;  %v22541_v28 = vld [vmem:[#allocation26_spill] sm:$0xff] }
 0xda2   :  { %12544 = vmatprep.mubr.f32.mxu0 %v18250_v26  ;;  %7967 = vmatprep.mubr.f32.mxu1 %v13294_v32  ;;  %v22542_v32 = vld [vmem:[#allocation7_spill] sm:$0xff] }
 0xda5   :  { %7968 = vmatmul.mubr.f32.gmra.mxu1 %v13295_v46  ;;  %12545 = vmatmul.mubr.f32.gmra.mxu0 %v18261_v47  ;;  %v13316_v46 = vld [vmem:[%s22327_s5 + $0xbe8] sm:$0xff] }
 0xda6   :  { %12547 = vmatprep.mubr.f32.mxu0 %v18272_v19  ;;  %7972 = vmatprep.mubr.f32.mxu1 %v13296_v63  ;;  %v13317_v63 = vld [vmem:[%s22327_s5 + $0xbe0] sm:$0xff] }
 0xda9   :  { %7973 = vmatmul.mubr.f32.gmra.mxu1 %v13297_v52  ;;  %12548 = vmatmul.mubr.f32.gmra.mxu0 %v18280_v10  ;;  %v22543_v52 = vld [vmem:[#allocation27_spill] sm:$0xff] }
 0xdaa   :  { %12550 = vmatprep.mubr.f32.mxu0 %v18286_v24  ;;  %7977 = vmatprep.mubr.f32.mxu1 %v13298_v37  ;;  %v22544_v37 = vld [vmem:[#allocation8_spill] sm:$0xff] }
 0xdad   :  { %7978 = vmatmul.mubr.f32.gmra.mxu1 %v13299_v6  ;;  %12551 = vmatmul.mubr.f32.gmra.mxu0 %v18291_v22  ;;  %v13318_v6 = vld [vmem:[%s22327_s5 + $0xbf8] sm:$0xff] }
 0xdae   :  { %12553 = vmatprep.mubr.f32.mxu0 %v18296_v53  ;;  %7982 = vmatprep.mubr.f32.mxu1 %v13300_v13  ;;  %v13319_v13 = vld [vmem:[%s22327_s5 + $0xbf0] sm:$0xff] }
 0xdb1   :  { %7983 = vmatmul.mubr.f32.gmra.mxu1 %v13301_v62  ;;  %12554 = vmatmul.mubr.f32.gmra.mxu0 %v18301_v55  ;;  %v22545_v62 = vld [vmem:[#allocation28_spill] sm:$0xff] }
 0xdb2   :  { %12556 = vmatprep.mubr.f32.mxu0 %v18306_v60  ;;  %7987 = vmatprep.mubr.f32.mxu1 %v13302_v48  ;;  %v13320_v48 = vld [vmem:[%s22327_s5 + $0xc08] sm:$0xff] }
 0xdb5   :  { %7988 = vmatmul.mubr.f32.gmra.mxu1 %v13303_v30  ;;  %12557 = vmatmul.mubr.f32.gmra.mxu0 %v18311_v40 }
 0xdb6   :  { %12559 = vmatprep.mubr.f32.mxu0 %v18316_v42  ;;  %7992 = vmatprep.mubr.f32.mxu1 %v13304_v59 }
 0xdb9   :  { %7993 = vmatmul.mubr.f32.gmra.mxu1 %v13305_v9  ;;  %12560 = vmatmul.mubr.f32.gmra.mxu0 %v18321_v44 }
 0xdba   :  { %12562 = vmatprep.mubr.f32.mxu0 %v18326_v8  ;;  %7997 = vmatprep.mubr.f32.mxu1 %v13306_v23 }
 0xdbd   :  { %7998 = vmatmul.mubr.f32.gmra.mxu1 %v13307_v0  ;;  %12563 = vmatmul.mubr.f32.gmra.mxu0 %v18331_v18  ;;  %v22546_v0 = vld [vmem:[#allocation18_spill] sm:$0xff] }
 0xdbe   :  { %12565 = vmatprep.mubr.f32.mxu0 %v18336_v38  ;;  %8002 = vmatprep.mubr.f32.mxu1 %v13308_v20 }
 0xdc1   :  { %8003 = vmatmul.mubr.f32.gmra.mxu1 %v13309_v50  ;;  %12566 = vmatmul.mubr.f32.gmra.mxu0 %v18341_v33 }
 0xdc2   :  { %12568 = vmatprep.mubr.f32.mxu0 %v18346_v35  ;;  %8007 = vmatprep.mubr.f32.mxu1 %v13310_v3 }
 0xdc5   :  { %8008 = vmatmul.mubr.f32.gmra.mxu1 %v13311_v27  ;;  %12569 = vmatmul.mubr.f32.gmra.mxu0 %v18351_v5  ;;  %v22547_v27 = vld [vmem:[#allocation21_spill] sm:$0xff] }
 0xdc6   :  { %12571 = vmatprep.mubr.f32.mxu0 %v18356_v25  ;;  %8012 = vmatprep.mubr.f32.mxu1 %v13312_v31 }
 0xdc9   :  { %8013 = vmatmul.mubr.f32.gmra.mxu1 %v13313_v1  ;;  %12572 = vmatmul.mubr.f32.gmra.mxu0 %v22539_v54 }
 0xdca   :  { %12574 = vmatprep.mubr.f32.mxu0 %v22540_v7  ;;  %8017 = vmatprep.mubr.f32.mxu1 %v13314_v56  ;;  %v22548_v56 = vld [vmem:[#allocation40_spill] sm:$0xff] }
 0xdcd   :  { %8018 = vmatmul.mubr.f32.gmra.mxu1 %v13315_v15  ;;  %12575 = vmatmul.mubr.f32.gmra.mxu0 %v22541_v28 }
 0xdce   :  { %12577 = vmatprep.mubr.f32.mxu0 %v22542_v32  ;;  %8022 = vmatprep.mubr.f32.mxu1 %v13316_v46 }
 0xdd1   :  { %8023 = vmatmul.mubr.f32.gmra.mxu1 %v13317_v63  ;;  %12578 = vmatmul.mubr.f32.gmra.mxu0 %v22543_v52 }
 0xdd2   :  { %12580 = vmatprep.mubr.f32.mxu0 %v22544_v37  ;;  %8027 = vmatprep.mubr.f32.mxu1 %v13318_v6  ;;  %v22549_v6 = vld [vmem:[#allocation9_spill] sm:$0xff] }
 0xdd5   :  { %8028 = vmatmul.mubr.f32.gmra.mxu1 %v13319_v13  ;;  %12581 = vmatmul.mubr.f32.gmra.mxu0 %v22545_v62 }
 0xdd6   :  { %12615 = vmatprep.mubr.f32.mxu1 %v18190_v36  ;;  %8371 = vmatprep.mubr.f32.mxu0 %v13320_v48 }
 0xdd9   :  { %v7375_v30 = vpop.f32.mrf.mxu0  ;;  %12616 = vmatmul.mubr.f32.vlgmr.msra.gmra.mxu1 %v18195_v29 }
 0xdda   :  { %v20787_v59 = vadd.f32 %v7375_v30, %v19975_v4  ;;  %12618 = vmatprep.mubr.f32.mxu1 %v18206_v45 }
 0xddb   :  { %v7377_v9 = vpop.f32.mrf.mxu0 }
 0xddc   :  { %v22550_v9 = vld [vmem:[#allocation29_spill] sm:$0xff] }
 0xddd   :  { %v7380_v23 = vpop.f32.mrf.mxu0  ;;  %12619 = vmatmul.mubr.f32.gmra.mxu1 %v18217_v34 }
 0xdde   :  { %v20792_v20 = vadd.f32 %v7380_v23, %v22546_v0  ;;  %12621 = vmatprep.mubr.f32.mxu1 %v18228_v14 }
 0xddf   :  { %v7382_v50 = vpop.f32.mrf.mxu0 }
 0xde1   :  { %v7385_v3 = vpop.f32.mrf.mxu0  ;;  %12622 = vmatmul.mubr.f32.gmra.mxu1 %v18239_v51 }
 0xde2   :  { %v20797_v31 = vadd.f32 %v7385_v3, %v22547_v27  ;;  %12624 = vmatprep.mubr.f32.mxu1 %v18250_v26  ;;  %v22551_v3 = vld [vmem:[#allocation10_spill] sm:$0xff] }
 0xde3   :  { %v7387_v4 = vpop.f32.mrf.mxu0 }
 0xde5   :  { %v7390_v1 = vpop.f32.mrf.mxu0  ;;  %12625 = vmatmul.mubr.f32.gmra.mxu1 %v18261_v47 }
 0xde6   :  { %v20802_v15 = vadd.f32 %v7390_v1, %v22548_v56  ;;  %12627 = vmatprep.mubr.f32.mxu1 %v18272_v19  ;;  %v22552_v56 = vld [vmem:[#allocation30_spill] sm:$0xff] }
 0xde7   :  { %v7392_v46 = vpop.f32.mrf.mxu0 }
 0xde9   :  { %v7395_v63 = vpop.f32.mrf.mxu0  ;;  %12628 = vmatmul.mubr.f32.gmra.mxu1 %v18280_v10 }
 0xdea   :  { %v20807_v13 = vadd.f32 %v7395_v63, %v22549_v6  ;;  %12630 = vmatprep.mubr.f32.mxu1 %v18286_v24 }
 0xdeb   :  { %v7397_v48 = vpop.f32.mrf.mxu0 }
 0xdec   :  { %v22553_v48 = vld [vmem:[#allocation11_spill] sm:$0xff] }
 0xded   :  { %v7400_v30 = vpop.f32.mrf.mxu0  ;;  %12631 = vmatmul.mubr.f32.gmra.mxu1 %v18291_v22 }
 0xdee   :  { %v20812_v23 = vadd.f32 %v7400_v30, %v22550_v9  ;;  %12633 = vmatprep.mubr.f32.mxu1 %v18296_v53 }
 0xdef   :  { %v7402_v0 = vpop.f32.mrf.mxu0 }
 0xdf1   :  { %v7405_v50 = vpop.f32.mrf.mxu0  ;;  %12634 = vmatmul.mubr.f32.gmra.mxu1 %v18301_v55 }
 0xdf2   :  { %v20817_v27 = vadd.f32 %v7405_v50, %v22551_v3  ;;  %12636 = vmatprep.mubr.f32.mxu1 %v18306_v60  ;;  %v22554_v50 = vld [vmem:[#allocation31_spill] sm:$0xff] }
 0xdf3   :  { %v7407_v4 = vpop.f32.mrf.mxu0 }
 0xdf5   :  { %v7410_v1 = vpop.f32.mrf.mxu0  ;;  %12637 = vmatmul.mubr.f32.gmra.mxu1 %v18311_v40 }
 0xdf6   :  { %v20822_v46 = vadd.f32 %v7410_v1, %v22552_v56  ;;  %12639 = vmatprep.mubr.f32.mxu1 %v18316_v42  ;;  %v22555_v56 = vld [vmem:[#allocation12_spill] sm:$0xff] }
 0xdf7   :  { %v7412_v63 = vpop.f32.mrf.mxu0 }
 0xdf9   :  { %v7415_v6 = vpop.f32.mrf.mxu0  ;;  %12640 = vmatmul.mubr.f32.gmra.mxu1 %v18321_v44 }
 0xdfa   :  { %v20827_v30 = vadd.f32 %v7415_v6, %v22553_v48  ;;  %12642 = vmatprep.mubr.f32.mxu1 %v18326_v8  ;;  %v22564_v8 = vld [vmem:[#allocation17_spill] sm:$0xff] }
 0xdfb   :  { %v7417_v9 = vpop.f32.mrf.mxu0 }
 0xdfc   :  { %v22556_v9 = vld [vmem:[#allocation32_spill] sm:$0xff] }
 0xdfd   :  { %v7420_v0 = vpop.f32.mrf.mxu0  ;;  %12643 = vmatmul.mubr.f32.gmra.mxu1 %v18331_v18 }
 0xdfe   :  { %v20832_v3 = vadd.f32 %v7420_v0, %v22554_v50  ;;  %12645 = vmatprep.mubr.f32.mxu1 %v18336_v38 }
 0xdff   :  { %v7422_v4 = vpop.f32.mrf.mxu0 }
 0xe00   :  { %v22557_v4 = vld [vmem:[#allocation13_spill] sm:$0xff] }
 0xe01   :  { %v7425_v1 = vpop.f32.mrf.mxu0  ;;  %12646 = vmatmul.mubr.f32.gmra.mxu1 %v18341_v33 }
 0xe02   :  { %v20837_v63 = vadd.f32 %v7425_v1, %v22555_v56  ;;  %12648 = vmatprep.mubr.f32.mxu1 %v18346_v35 }
 0xe03   :  { %v7427_v6 = vpop.f32.mrf.mxu0 }
 0xe04   :  { %v22558_v6 = vld [vmem:[#allocation33_spill] sm:$0xff] }
 0xe05   :  { %v7430_v48 = vpop.f32.mrf.mxu0  ;;  %12649 = vmatmul.mubr.f32.gmra.mxu1 %v18351_v5 }
 0xe06   :  { %v20842_v18 = vadd.f32 %v7430_v48, %v22556_v9  ;;  %12651 = vmatprep.mubr.f32.mxu1 %v18356_v25 }
 0xe07   :  { %v7432_v0 = vpop.f32.mrf.mxu0 }
 0xe08   :  { %v22559_v0 = vld [vmem:[#allocation14_spill] sm:$0xff] }
 0xe09   :  { %v7435_v50 = vpop.f32.mrf.mxu0  ;;  %12652 = vmatmul.mubr.f32.gmra.mxu1 %v22539_v54 }
 0xe0a   :  { %v20847_v33 = vadd.f32 %v7435_v50, %v22557_v4  ;;  %12654 = vmatprep.mubr.f32.mxu1 %v22540_v7 }
 0xe0b   :  { %v7437_v1 = vpop.f32.mrf.mxu0 }
 0xe0c   :  { %v22560_v1 = vld [vmem:[#allocation34_spill] sm:$0xff] }
 0xe0d   :  { %v7440_v56 = vpop.f32.mrf.mxu0  ;;  %12655 = vmatmul.mubr.f32.gmra.mxu1 %v22541_v28 }
 0xe0e   :  { %v20852_v5 = vadd.f32 %v7440_v56, %v22558_v6  ;;  %12657 = vmatprep.mubr.f32.mxu1 %v22542_v32  ;;  %v13321_v56 = vld [vmem:[%s22327_s5 + $0xe08] sm:$0xff] }
 0xe0f   :  { %v7442_v48 = vpop.f32.mrf.mxu0  ;;  %v22561_v32 = vld [vmem:[#allocation15_spill] sm:$0xff] }
 0xe11   :  { %v7445_v9 = vpop.f32.mrf.mxu0  ;;  %12658 = vmatmul.mubr.f32.gmra.mxu1 %v22543_v52 }
 0xe12   :  { %v20857_v54 = vadd.f32 %v7445_v9, %v22559_v0  ;;  %12660 = vmatprep.mubr.f32.mxu1 %v22544_v37 }
 0xe13   :  { %v7447_v50 = vpop.f32.mrf.mxu0 }
 0xe15   :  { %v7450_v4 = vpop.f32.mrf.mxu0  ;;  %12661 = vmatmul.mubr.f32.gmra.mxu1 %v22545_v62 }
 0xe16   :  { %v20862_v28 = vadd.f32 %v7450_v4, %v22560_v1  ;;  %8870 = vmatprep.mubr.f32.mxu1 %v13321_v56  ;;  %v22563_v4 = vld [vmem:[#allocation35_spill] sm:$0xff] }
 0xe17   :  { %v7452_v6 = vpop.f32.mrf.mxu0 }
 0xe19   :  { %v7455_v48 = vpop.f32.mrf.mxu0  ;;  %v7874_v52 = vpop.f32.mrf.mxu1 }
 0xe1a   :  { %v20868_v9 = vadd.f32 %v7455_v48, %v22561_v32  ;;  %v20871_v0 = vadd.f32 %v7874_v52, %v20787_v59 }
 0xe1b   :  { %v7457_v50 = vpop.f32.mrf.mxu0  ;;  %v7876_v37 = vpop.f32.mrf.mxu1 }
 0xe1c   :  { %22562 = vst [vmem:[#allocation19_spill] sm:$0xff] %v20871_v0  ;;  %v22565_v0 = vld [vmem:[#allocation36_spill] sm:$0xff] }
 0xe1d   :  { %v7460_v62 = vpop.f32.mrf.mxu0  ;;  %v7879_v7 = vpop.f32.mrf.mxu1 }
 0xe1e   :  { %v20874_v1 = vadd.f32 %v7460_v62, %v22563_v4  ;;  %v20877_v25 = vadd.f32 %v7879_v7, %v20792_v20 }
 0xe1f   :  { %v7462_v56 = vpop.f32.mrf.mxu0  ;;  %v7881_v6 = vpop.f32.mrf.mxu1 }
 0xe21   :  { %v7465_v35 = vpop.f32.mrf.mxu0  ;;  %v7884_v38 = vpop.f32.mrf.mxu1 }
 0xe22   :  { %v20880_v32 = vadd.f32 %v7465_v35, %v22564_v8  ;;  %v20883_v52 = vadd.f32 %v7884_v38, %v20797_v31 }
 0xe23   :  { %v7467_v59 = vpop.f32.mrf.mxu0  ;;  %v7886_v37 = vpop.f32.mrf.mxu1 }
 0xe25   :  { %v7470_v48 = vpop.f32.mrf.mxu0  ;;  %v7889_v50 = vpop.f32.mrf.mxu1 }
 0xe26   :  { %v20886_v62 = vadd.f32 %v7470_v48, %v22565_v0  ;;  %v20889_v7 = vadd.f32 %v7889_v50, %v20802_v15 }
 0xe27   :  { %v7472_v20 = vpop.f32.mrf.mxu0  ;;  %v7891_v4 = vpop.f32.mrf.mxu1 }
 0xe29   :  { %v7475_v56 = vpop.f32.mrf.mxu0  ;;  %v7894_v6 = vpop.f32.mrf.mxu1 }
 0xe2a   :  { %v20892_v8 = vadd.f32 %v7475_v56, %v20092_v57  ;;  %v20895_v38 = vadd.f32 %v7894_v6, %v20807_v13 }
 0xe2b   :  { %v7477_v35 = vpop.f32.mrf.mxu0  ;;  %v7896_v31 = vpop.f32.mrf.mxu1 }
 0xe2d   :  { %v7480_v59 = vpop.f32.mrf.mxu0  ;;  %v7899_v37 = vpop.f32.mrf.mxu1 }
 0xe2e   :  { %v20898_v0 = vadd.f32 %v7480_v59, %v20095_v2  ;;  %v20901_v15 = vadd.f32 %v7899_v37, %v20812_v23 }
 0xe2f   :  { %v7482_v48 = vpop.f32.mrf.mxu0  ;;  %v7901_v50 = vpop.f32.mrf.mxu1 }
 0xe31   :  { %v7485_v20 = vpop.f32.mrf.mxu0  ;;  %v7904_v4 = vpop.f32.mrf.mxu1 }
 0xe32   :  { %v20904_v57 = vadd.f32 %v7485_v20, %v20098_v11  ;;  %v20907_v13 = vadd.f32 %v7904_v4, %v20817_v27 }
 0xe33   :  { %v7487_v56 = vpop.f32.mrf.mxu0  ;;  %v7906_v6 = vpop.f32.mrf.mxu1 }
 0xe35   :  { %v7490_v35 = vpop.f32.mrf.mxu0  ;;  %v7909_v31 = vpop.f32.mrf.mxu1 }
 0xe36   :  { %v20910_v2 = vadd.f32 %v7490_v35, %v20101_v49  ;;  %v20913_v23 = vadd.f32 %v7909_v31, %v20822_v46 }
 0xe37   :  { %v7492_v59 = vpop.f32.mrf.mxu0  ;;  %v7911_v37 = vpop.f32.mrf.mxu1 }
 0xe39   :  { %v7495_v48 = vpop.f32.mrf.mxu0  ;;  %v7914_v50 = vpop.f32.mrf.mxu1 }
 0xe3a   :  { %v20916_v11 = vadd.f32 %v7495_v48, %v20108_v61  ;;  %v20919_v27 = vadd.f32 %v7914_v50, %v20827_v30 }
 0xe3b   :  { %v7497_v20 = vpop.f32.mrf.mxu0  ;;  %v7916_v4 = vpop.f32.mrf.mxu1 }
 0xe3d   :  { %v7500_v56 = vpop.f32.mrf.mxu0  ;;  %v7919_v6 = vpop.f32.mrf.mxu1 }
 0xe3e   :  { %v20922_v49 = vadd.f32 %v7500_v56, %v20117_v21  ;;  %v20925_v46 = vadd.f32 %v7919_v6, %v20832_v3 }
 0xe3f   :  { %v7502_v35 = vpop.f32.mrf.mxu0  ;;  %v7921_v31 = vpop.f32.mrf.mxu1 }
 0xe40   :  { %22566 = vst [vmem:[#allocation37_spill] sm:$0xff] %v20925_v46 }
 0xe41   :  { %v7505_v59 = vpop.f32.mrf.mxu0  ;;  %v7924_v37 = vpop.f32.mrf.mxu1 }
 0xe42   :  { %v20928_v61 = vadd.f32 %v7505_v59, %v20126_v16  ;;  %v20931_v30 = vadd.f32 %v7924_v37, %v20837_v63 }
 0xe43   :  { %v7507_v48 = vpop.f32.mrf.mxu0  ;;  %v7926_v50 = vpop.f32.mrf.mxu1 }
 0xe44   :  { %22567 = vst [vmem:[#allocation16_spill] sm:$0xff] %v20931_v30 }
 0xe45   :  { %v7510_v20 = vpop.f32.mrf.mxu0  ;;  %v7929_v4 = vpop.f32.mrf.mxu1 }
 0xe46   :  { %v20934_v21 = vadd.f32 %v7510_v20, %v20135_v39  ;;  %v20937_v3 = vadd.f32 %v7929_v4, %v20842_v18 }
 0xe47   :  { %v7512_v56 = vpop.f32.mrf.mxu0  ;;  %v7931_v6 = vpop.f32.mrf.mxu1 }
 0xe48   :  { %22568 = vst [vmem:[#allocation20_spill] sm:$0xff] %v20937_v3 }
 0xe49   :  { %v7515_v35 = vpop.f32.mrf.mxu0  ;;  %v7934_v31 = vpop.f32.mrf.mxu1 }
 0xe4a   :  { %v20940_v16 = vadd.f32 %v7515_v35, %v20140_v58  ;;  %v20943_v63 = vadd.f32 %v7934_v31, %v20847_v33 }
 0xe4b   :  { %v7517_v59 = vpop.f32.mrf.mxu0  ;;  %v7936_v37 = vpop.f32.mrf.mxu1 }
 0xe4c   :  { %22569 = vst [vmem:[#allocation38_spill] sm:$0xff] %v20943_v63 }
 0xe4d   :  { %v7520_v48 = vpop.f32.mrf.mxu0  ;;  %v7939_v50 = vpop.f32.mrf.mxu1 }
 0xe4e   :  { %v20946_v39 = vadd.f32 %v7520_v48, %v20147_v17  ;;  %v20949_v18 = vadd.f32 %v7939_v50, %v20852_v5 }
 0xe4f   :  { %v7522_v20 = vpop.f32.mrf.mxu0  ;;  %v7941_v4 = vpop.f32.mrf.mxu1 }
 0xe50   :  { %22570 = vst [vmem:[#allocation39_spill] sm:$0xff] %v20949_v18 }
 0xe51   :  { %v7525_v56 = vpop.f32.mrf.mxu0  ;;  %v7944_v6 = vpop.f32.mrf.mxu1 }
 0xe52   :  { %v20952_v58 = vadd.f32 %v7525_v56, %v20154_v43  ;;  %v20955_v33 = vadd.f32 %v7944_v6, %v20857_v54 }
 0xe53   :  { %v7527_v35 = vpop.f32.mrf.mxu0  ;;  %v7946_v31 = vpop.f32.mrf.mxu1 }
 0xe54   :  { %22571 = vst [vmem:[#allocation18_spill] sm:$0xff] %v20955_v33 }
 0xe55   :  { %v7530_v59 = vpop.f32.mrf.mxu0  ;;  %v7949_v37 = vpop.f32.mrf.mxu1 }
 0xe56   :  { %v20958_v17 = vadd.f32 %v7530_v59, %v20161_v41  ;;  %v20961_v5 = vadd.f32 %v7949_v37, %v20862_v28 }
 0xe57   :  { %v7532_v48 = vpop.f32.mrf.mxu0  ;;  %v7951_v50 = vpop.f32.mrf.mxu1 }
 0xe58   :  { %22572 = vst [vmem:[#allocation21_spill] sm:$0xff] %v20961_v5 }
 0xe59   :  { %v7954_v20 = vpop.f32.mrf.mxu1  ;;  %v20963_v4 = vpop.f32.mrf.mxu0 }
 0xe5a   :  { %v20966_v43 = vadd.f32 %v7954_v20, %v20868_v9 }
 0xe5b   :  { %v7956_v54 = vpop.f32.mrf.mxu1  ;;  %v20968_v56 = vpop.f32.mrf.mxu0 }
 0xe5c   :  { %22573 = vst [vmem:[#allocation40_spill] sm:$0xff] %v20966_v43 }
 0xe5d   :  { %v7959_v6 = vpop.f32.mrf.mxu1  ;;  %v20970_v35 = vpop.f32.mrf.mxu0 }
 0xe5e   :  { %v20973_v41 = vadd.f32 %v7959_v6, %v20874_v1 }
 0xe5f   :  { %v7961_v31 = vpop.f32.mrf.mxu1  ;;  %v20975_v28 = vpop.f32.mrf.mxu0 }
 0xe60   :  { %22574 = vst [vmem:[#allocation9_spill] sm:$0xff] %v20973_v41 }
 0xe61   :  { %v7964_v59 = vpop.f32.mrf.mxu1  ;;  %v20977_v37 = vpop.f32.mrf.mxu0 }
 0xe62   :  { %v20980_v48 = vadd.f32 %v7964_v59, %v20880_v32 }
 0xe63   :  { %v7966_v9 = vpop.f32.mrf.mxu1  ;;  %v20982_v50 = vpop.f32.mrf.mxu0 }
 0xe64   :  { %22575 = vst [vmem:[#allocation29_spill] sm:$0xff] %v20980_v48 }
 0xe65   :  { %v7969_v20 = vpop.f32.mrf.mxu1  ;;  %v12546_v54 = vpop.f32.mrf.mxu0 }
 0xe66   :  { %v20985_v43 = vadd.f32 %v7969_v20, %v20886_v62 }
 0xe67   :  { %v7971_v5 = vpop.f32.mrf.mxu1  ;;  %v8178_v1 = vpop.f32.mrf.mxu0 }
 0xe68   :  { %22576 = vst [vmem:[#allocation10_spill] sm:$0xff] %v20985_v43 }
 0xe69   :  { %v7974_v6 = vpop.f32.mrf.mxu1  ;;  %v12549_v31 = vpop.f32.mrf.mxu0 }
 0xe6a   :  { %v20988_v41 = vadd.f32 %v7974_v6, %v20892_v8 }
 0xe6b   :  { %v7976_v33 = vpop.f32.mrf.mxu1  ;;  %v8188_v18 = vpop.f32.mrf.mxu0 }
 0xe6d   :  { %v7979_v63 = vpop.f32.mrf.mxu1  ;;  %v12552_v32 = vpop.f32.mrf.mxu0 }
 0xe6e   :  { %v20991_v59 = vadd.f32 %v7979_v63, %v20898_v0 }
 0xe6f   :  { %v7981_v9 = vpop.f32.mrf.mxu1  ;;  %v8198_v48 = vpop.f32.mrf.mxu0 }
 0xe71   :  { %v7984_v3 = vpop.f32.mrf.mxu1  ;;  %v12555_v30 = vpop.f32.mrf.mxu0 }
 0xe72   :  { %v20994_v62 = vadd.f32 %v7984_v3, %v20904_v57 }
 0xe73   :  { %v7986_v5 = vpop.f32.mrf.mxu1  ;;  %v8208_v20 = vpop.f32.mrf.mxu0 }
 0xe75   :  { %v7989_v43 = vpop.f32.mrf.mxu1  ;;  %v12558_v46 = vpop.f32.mrf.mxu0 }
 0xe76   :  { %v20997_v8 = vadd.f32 %v7989_v43, %v20910_v2  ;;  %8308 = vmatpush1.msra.mxu0 %v12558_v46 }
 0xe77   :  { %v7991_v33 = vpop.f32.mrf.mxu1  ;;  %v8218_v6 = vpop.f32.mrf.mxu0  ;;  %8309 = vmatprep.subr.mxu0 %v22461_v12 }
 0xe78   :  { %8310 = vmatpush1.msra.mxu0 %v8218_v6 }
 0xe79   :  { %v7994_v0 = vpop.f32.mrf.mxu1  ;;  %v21000_v63 = vpop.f32.mrf.mxu0  ;;  %8311 = vmatprep.subr.mxu0 %v22461_v12 }
 0xe7a   :  { %v21004_v57 = vadd.f32 %v7994_v0, %v20916_v11  ;;  %8312 = vmatpush1.msra.mxu0 %v12555_v30 }
 0xe7b   :  { %v7996_v3 = vpop.f32.mrf.mxu1  ;;  %v21006_v9 = vpop.f32.mrf.mxu0  ;;  %8313 = vmatprep.subr.mxu0 %v22461_v12 }
 0xe7c   :  { %8314 = vmatpush1.msra.mxu0 %v8208_v20 }
 0xe7d   :  { %v7999_v2 = vpop.f32.mrf.mxu1  ;;  %v21009_v46 = vpop.f32.mrf.mxu0  ;;  %8315 = vmatprep.subr.mxu0 %v22461_v12 }
 0xe7e   :  { %v21013_v43 = vadd.f32 %v7999_v2, %v20922_v49  ;;  %8316 = vmatpush1.msra.mxu0 %v12552_v32 }
 0xe7f   :  { %v8001_v5 = vpop.f32.mrf.mxu1  ;;  %v21015_v33 = vpop.f32.mrf.mxu0  ;;  %8317 = vmatprep.subr.mxu0 %v22461_v12 }
 0xe80   :  { %8318 = vmatpush1.msra.mxu0 %v8198_v48 }
 0xe81   :  { %v8004_v11 = vpop.f32.mrf.mxu1  ;;  %v21018_v30 = vpop.f32.mrf.mxu0  ;;  %8319 = vmatprep.subr.mxu0 %v22461_v12 }
 0xe82   :  { %v21022_v20 = vadd.f32 %v8004_v11, %v20928_v61  ;;  %8320 = vmatpush1.msra.mxu0 %v12549_v31 }
 0xe83   :  { %v8006_v6 = vpop.f32.mrf.mxu1  ;;  %v21024_v0 = vpop.f32.mrf.mxu0  ;;  %8321 = vmatprep.subr.mxu0 %v22461_v12 }
 0xe84   :  { %8322 = vmatpush1.msra.mxu0 %v8188_v18 }
 0xe85   :  { %v8009_v49 = vpop.f32.mrf.mxu1  ;;  %v21027_v32 = vpop.f32.mrf.mxu0  ;;  %8323 = vmatprep.subr.mxu0 %v22461_v12 }
 0xe86   :  { %v21031_v48 = vadd.f32 %v8009_v49, %v20934_v21  ;;  %8324 = vmatpush1.msra.mxu0 %v12546_v54 }
 0xe87   :  { %v8011_v3 = vpop.f32.mrf.mxu1  ;;  %v8258_v2 = vpop.f32.mrf.mxu0  ;;  %8325 = vmatprep.subr.mxu0 %v22461_v12 }
 0xe88   :  { %8326 = vmatpush1.msra.mxu0 %v8178_v1 }
 0xe89   :  { %v8014_v61 = vpop.f32.mrf.mxu1  ;;  %v12573_v31 = vpop.f32.mrf.mxu0  ;;  %8327 = vmatprep.subr.mxu0 %v22461_v12 }
 0xe8a   :  { %v21036_v18 = vadd.f32 %v8014_v61, %v20940_v16  ;;  %8328 = vmatpush1.msra.mxu0 %v20977_v37 }
 0xe8b   :  { %v8016_v5 = vpop.f32.mrf.mxu1  ;;  %v8268_v11 = vpop.f32.mrf.mxu0  ;;  %8329 = vmatprep.subr.mxu0 %v22461_v12 }
 0xe8c   :  { %8330 = vmatpush1.msra.mxu0 %v20982_v50 }
 0xe8d   :  { %v8019_v21 = vpop.f32.mrf.mxu1  ;;  %v12576_v54 = vpop.f32.mrf.mxu0  ;;  %8331 = vmatprep.subr.mxu0 %v22461_v12 }
 0xe8e   :  { %v21043_v1 = vadd.f32 %v8019_v21, %v20946_v39  ;;  %8332 = vmatpush1.msra.mxu0 %v20970_v35 }
 0xe8f   :  { %v8021_v6 = vpop.f32.mrf.mxu1  ;;  %v8278_v16 = vpop.f32.mrf.mxu0  ;;  %8333 = vmatprep.subr.mxu0 %v22461_v12 }
 0xe90   :  { %8334 = vmatpush1.msra.mxu0 %v20975_v28 }
 0xe91   :  { %v8024_v37 = vpop.f32.mrf.mxu1  ;;  %v12579_v49 = vpop.f32.mrf.mxu0  ;;  %8335 = vmatprep.subr.mxu0 %v22461_v12 }
 0xe92   :  { %v21050_v50 = vadd.f32 %v8024_v37, %v20952_v58  ;;  %8336 = vmatpush1.msra.mxu0 %v20963_v4 }
 0xe93   :  { %v8026_v3 = vpop.f32.mrf.mxu1  ;;  %v8288_v39 = vpop.f32.mrf.mxu0  ;;  %8337 = vmatprep.subr.mxu0 %v22461_v12 }
 0xe94   :  { %8338 = vmatpush1.msra.mxu0 %v20968_v56  ;;  %v13323_v3 = vld [vmem:[%s22327_s5 + $0xc18] sm:$0xff] }
 0xe95   :  { %v8029_v35 = vpop.f32.mrf.mxu1  ;;  %v12582_v61 = vpop.f32.mrf.mxu0  ;;  %8339 = vmatprep.subr.mxu0 %v22461_v12 }
 0xe96   :  { %v21057_v28 = vadd.f32 %v8029_v35, %v20958_v17  ;;  %8340 = vmatpush2.msra.mxu0 %v12582_v61  ;;  %v10435_v61 = vld [vmem:[%s22328_s3 + $0x468] sm:$0xff] }
 0xe97   :  { %v8031_v5 = vpop.f32.mrf.mxu1  ;;  %v8298_v21 = vpop.f32.mrf.mxu0  ;;  %8341 = vmatprep.subr.mxu0 %v22461_v12 }
 0xe98   :  { %8342 = vmatpush2.msra.mxu0 %v8298_v21  ;;  %v13325_v5 = vld [vmem:[%s22327_s5 + $0xc28] sm:$0xff] }
 0xe99   :  { %8343 = vmatprep.subr.mxu0 %v22461_v12  ;;  %v21061_v58 = vpop.f32.mrf.mxu1 }
 0xe9a   :  { %8344 = vmatpush2.msra.mxu0 %v12579_v49 }
 0xe9b   :  { %8345 = vmatprep.subr.mxu0 %v22461_v12  ;;  %v21064_v4 = vpop.f32.mrf.mxu1 }
 0xe9c   :  { %8346 = vmatpush2.msra.mxu0 %v8288_v39 }
 0xe9d   :  { %8347 = vmatprep.subr.mxu0 %v22461_v12  ;;  %v21067_v17 = vpop.f32.mrf.mxu1 }
 0xe9e   :  { %8348 = vmatpush2.msra.mxu0 %v12576_v54 }
 0xe9f   :  { %8349 = vmatprep.subr.mxu0 %v22461_v12  ;;  %v21070_v56 = vpop.f32.mrf.mxu1 }
 0xea0   :  { %8350 = vmatpush2.msra.mxu0 %v8278_v16 }
 0xea1   :  { %8351 = vmatprep.subr.mxu0 %v22461_v12  ;;  %v21073_v6 = vpop.f32.mrf.mxu1 }
 0xea2   :  { %8352 = vmatpush2.msra.mxu0 %v12573_v31 }
 0xea3   :  { %8353 = vmatprep.subr.mxu0 %v22461_v12  ;;  %v21076_v37 = vpop.f32.mrf.mxu1 }
 0xea4   :  { %8354 = vmatpush2.msra.mxu0 %v8268_v11 }
 0xea5   :  { %8355 = vmatprep.subr.mxu0 %v22461_v12  ;;  %v21079_v49 = vpop.f32.mrf.mxu1 }
 0xea6   :  { %8356 = vmatpush2.msra.mxu0 %v21027_v32 }
 0xea7   :  { %8357 = vmatprep.subr.mxu0 %v22461_v12  ;;  %v21083_v54 = vpop.f32.mrf.mxu1 }
 0xea8   :  { %8358 = vmatpush2.msra.mxu0 %v8258_v2 }
 0xea9   :  { %8359 = vmatprep.subr.mxu0 %v22461_v12  ;;  %v12629_v16 = vpop.f32.mrf.mxu1 }
 0xeaa   :  { %8360 = vmatpush2.msra.mxu0 %v21018_v30  ;;  %v10437_v30 = vld [vmem:[%s22328_s3 + $0x478] sm:$0xff] }
 0xeab   :  { %8361 = vmatprep.subr.mxu0 %v22461_v12  ;;  %v21088_v31 = vpop.f32.mrf.mxu1 }
 0xeac   :  { %8362 = vmatpush2.msra.mxu0 %v21024_v0 }
 0xead   :  { %8363 = vmatprep.subr.mxu0 %v22461_v12  ;;  %v12632_v11 = vpop.f32.mrf.mxu1 }
 0xeae   :  { %8364 = vmatpush2.msra.mxu0 %v21009_v46  ;;  %v13322_v46 = vld [vmem:[%s22327_s5 + $0xc00] sm:$0xff] }
 0xeaf   :  { %8365 = vmatprep.subr.mxu0 %v22461_v12  ;;  %v8697_v32 = vpop.f32.mrf.mxu1 }
 0xeb0   :  { %8366 = vmatpush2.msra.mxu0 %v21015_v33 }
 0xeb1   :  { %8367 = vmatprep.subr.mxu0 %v22461_v12  ;;  %v12635_v2 = vpop.f32.mrf.mxu1 }
 0xeb2   :  { %8368 = vmatpush2.msra.mxu0 %v21000_v63  ;;  %v10436_v63 = vld [vmem:[%s22328_s3 + $0x470] sm:$0xff] }
 0xeb3   :  { %8369 = vmatprep.subr.mxu0 %v22461_v12  ;;  %v8707_v0 = vpop.f32.mrf.mxu1 }
 0xeb4   :  { %8370 = vmatpush2.msra.mxu0 %v21006_v9  ;;  %v13324_v9 = vld [vmem:[%s22327_s5 + $0xc10] sm:$0xff] }
 0xeb5   :  { %8372 = vmatmul.mubr.f32.vlgmr.msra.gmra.mxu0 %v13322_v46  ;;  %v12638_v33 = vpop.f32.mrf.mxu1  ;;  %12663 = vmatprep.subr.mxu0 %v10437_v30 }
 0xeb6   :  { %8807 = vmatpush1.msra.mxu1 %v12638_v33  ;;  %8376 = vmatprep.mubr.f32.mxu0 %v13323_v3  ;;  %v13327_v33 = vld [vmem:[%s22327_s5 + $0xc38] sm:$0xff] }
 0xeb7   :  { %v8717_v39 = vpop.f32.mrf.mxu1  ;;  %8808 = vmatprep.subr.mxu1 %v22461_v12  ;;  %12664 = vmatpush3.msra.mxu0 %v10437_v30  ;;  %v13326_v30 = vld [vmem:[%s22327_s5 + $0xc20] sm:$0xff] }
 0xeb8   :  { %8809 = vmatpush1.msra.mxu1 %v8717_v39  ;;  %12665 = vmatprep.subr.mxu0 %v10436_v63  ;;  %v13329_v39 = vld [vmem:[%s22327_s5 + $0xc48] sm:$0xff] }
 0xeb9   :  { %8377 = vmatmul.mubr.f32.gmra.mxu0 %v13324_v9  ;;  %v21115_v35 = vpop.f32.mrf.mxu1  ;;  %8810 = vmatprep.subr.mxu1 %v22461_v12  ;;  %v13330_v9 = vld [vmem:[%s22327_s5 + $0xc40] sm:$0xff] }
 0xeba   :  { %8811 = vmatpush1.msra.mxu1 %v12635_v2  ;;  %8381 = vmatprep.mubr.f32.mxu0 %v13325_v5  ;;  %v10434_v2 = vld [vmem:[%s22328_s3 + $0x460] sm:$0xff] }
 0xebb   :  { %v21124_v21 = vpop.f32.mrf.mxu1  ;;  %8812 = vmatprep.subr.mxu1 %v22461_v12  ;;  %12666 = vmatpush3.msra.mxu0 %v10436_v63  ;;  %v13328_v63 = vld [vmem:[%s22327_s5 + $0xc30] sm:$0xff] }
 0xebc   :  { %8813 = vmatpush1.msra.mxu1 %v8707_v0  ;;  %12667 = vmatprep.subr.mxu0 %v10435_v61 }
 0xebd   :  { %8382 = vmatmul.mubr.f32.gmra.mxu0 %v13326_v30  ;;  %v21130_v46 = vpop.f32.mrf.mxu1  ;;  %8814 = vmatprep.subr.mxu1 %v22461_v12  ;;  %v13332_v30 = vld [vmem:[%s22327_s5 + $0xc50] sm:$0xff] }
 0xebe   :  { %8815 = vmatpush1.msra.mxu1 %v12632_v11  ;;  %8386 = vmatprep.mubr.f32.mxu0 %v13327_v33  ;;  %v10433_v11 = vld [vmem:[%s22328_s3 + $0x458] sm:$0xff] }
 0xebf   :  { %v21139_v0 = vpop.f32.mrf.mxu1  ;;  %8816 = vmatprep.subr.mxu1 %v22461_v12  ;;  %12668 = vmatpush3.msra.mxu0 %v10435_v61 }
 0xec0   :  { %8817 = vmatpush1.msra.mxu1 %v8697_v32  ;;  %12669 = vmatprep.subr.mxu0 %v10434_v2 }
 0xec1   :  { %8387 = vmatmul.mubr.f32.gmra.mxu0 %v13328_v63  ;;  %v21145_v3 = vpop.f32.mrf.mxu1  ;;  %8818 = vmatprep.subr.mxu1 %v22461_v12  ;;  %v13334_v63 = vld [vmem:[%s22327_s5 + $0xc60] sm:$0xff] }
 0xec2   :  { %8819 = vmatpush1.msra.mxu1 %v12629_v16  ;;  %8391 = vmatprep.mubr.f32.mxu0 %v13329_v39  ;;  %v10432_v16 = vld [vmem:[%s22328_s3 + $0x450] sm:$0xff]  ;;  %v13335_v39 = vld [vmem:[%s22327_s5 + $0xc78] sm:$0xff] }
 0xec3   :  { %v21154_v32 = vpop.f32.mrf.mxu1  ;;  %8820 = vmatprep.subr.mxu1 %v22461_v12  ;;  %12670 = vmatpush3.msra.mxu0 %v10434_v2 }
 0xec4   :  { %8821 = vmatpush1.msra.mxu1 %v21088_v31  ;;  %12671 = vmatprep.subr.mxu0 %v10433_v11  ;;  %v13331_v31 = vld [vmem:[%s22327_s5 + $0xc58] sm:$0xff] }
 0xec5   :  { %8392 = vmatmul.mubr.f32.gmra.mxu0 %v13330_v9  ;;  %v21161_v61 = vpop.f32.mrf.mxu1  ;;  %8822 = vmatprep.subr.mxu1 %v22461_v12  ;;  %v13336_v9 = vld [vmem:[%s22327_s5 + $0xc70] sm:$0xff] }
 0xec6   :  { %8823 = vmatpush1.msra.mxu1 %v21079_v49  ;;  %8396 = vmatprep.mubr.f32.mxu0 %v13331_v31  ;;  %v10431_v49 = vld [vmem:[%s22328_s3 + $0x448] sm:$0xff] }
 0xec7   :  { %v21171_v5 = vpop.f32.mrf.mxu1  ;;  %8824 = vmatprep.subr.mxu1 %v22461_v12  ;;  %12672 = vmatpush3.msra.mxu0 %v10433_v11  ;;  %v13337_v31 = vld [vmem:[%s22327_s5 + $0xc88] sm:$0xff] }
 0xec8   :  { %8825 = vmatpush1.msra.mxu1 %v21083_v54  ;;  %12673 = vmatprep.subr.mxu0 %v10432_v16  ;;  %v13333_v54 = vld [vmem:[%s22327_s5 + $0xc68] sm:$0xff] }
 0xec9   :  { %8397 = vmatmul.mubr.f32.gmra.mxu0 %v13332_v30  ;;  %v21178_v2 = vpop.f32.mrf.mxu1  ;;  %8826 = vmatprep.subr.mxu1 %v22461_v12  ;;  %v13338_v30 = vld [vmem:[%s22327_s5 + $0xc80] sm:$0xff] }
 0xeca   :  { %8827 = vmatpush1.msra.mxu1 %v21073_v6  ;;  %8401 = vmatprep.mubr.f32.mxu0 %v13333_v54  ;;  %v10430_v6 = vld [vmem:[%s22328_s3 + $0x440] sm:$0xff]  ;;  %v13339_v54 = vld [vmem:[%s22327_s5 + $0xc98] sm:$0xff] }
 0xecb   :  { %v21188_v33 = vpop.f32.mrf.mxu1  ;;  %8828 = vmatprep.subr.mxu1 %v22461_v12  ;;  %12674 = vmatpush3.msra.mxu0 %v10432_v16 }
 0xecc   :  { %8829 = vmatpush1.msra.mxu1 %v21076_v37  ;;  %12675 = vmatprep.subr.mxu0 %v10431_v49 }
 0xecd   :  { %8402 = vmatmul.mubr.f32.gmra.mxu0 %v13334_v63  ;;  %v12656_v11 = vpop.f32.mrf.mxu1  ;;  %8830 = vmatprep.subr.mxu1 %v22461_v12  ;;  %v13340_v63 = vld [vmem:[%s22327_s5 + $0xc90] sm:$0xff] }
 0xece   :  { %8831 = vmatpush1.msra.mxu1 %v21067_v17  ;;  %8406 = vmatprep.mubr.f32.mxu0 %v13335_v39  ;;  %v10429_v17 = vld [vmem:[%s22328_s3 + $0x438] sm:$0xff]  ;;  %v13341_v39 = vld [vmem:[%s22327_s5 + $0xca8] sm:$0xff] }
 0xecf   :  { %v8777_v37 = vpop.f32.mrf.mxu1  ;;  %8832 = vmatprep.subr.mxu1 %v22461_v12  ;;  %12676 = vmatpush3.msra.mxu0 %v10431_v49 }
 0xed0   :  { %8833 = vmatpush1.msra.mxu1 %v21070_v56  ;;  %12677 = vmatprep.subr.mxu0 %v10430_v6 }
 0xed1   :  { %8407 = vmatmul.mubr.f32.gmra.mxu0 %v13336_v9  ;;  %v12659_v16 = vpop.f32.mrf.mxu1  ;;  %8834 = vmatprep.subr.mxu1 %v22461_v12  ;;  %v13342_v9 = vld [vmem:[%s22327_s5 + $0xca0] sm:$0xff] }
 0xed2   :  { %8835 = vmatpush1.msra.mxu1 %v21061_v58  ;;  %8411 = vmatprep.mubr.f32.mxu0 %v13337_v31  ;;  %v10428_v58 = vld [vmem:[%s22328_s3 + $0x430] sm:$0xff] }
 0xed3   :  { %v8787_v56 = vpop.f32.mrf.mxu1  ;;  %8836 = vmatprep.subr.mxu1 %v22461_v12  ;;  %12678 = vmatpush3.msra.mxu0 %v10430_v6  ;;  %v10427_v6 = vld [vmem:[%s22328_s3 + $0x428] sm:$0xff]  ;;  %v13344_v31 = vld [vmem:[%s22327_s5 + $0xcb0] sm:$0xff] }
 0xed4   :  { %8837 = vmatpush1.msra.mxu1 %v21064_v4  ;;  %12679 = vmatprep.subr.mxu0 %v10429_v17 }
 0xed5   :  { %8412 = vmatmul.mubr.f32.gmra.mxu0 %v13338_v30  ;;  %v12662_v49 = vpop.f32.mrf.mxu1  ;;  %8838 = vmatprep.subr.mxu1 %v22461_v12  ;;  %v13347_v30 = vld [vmem:[%s22327_s5 + $0xcd8] sm:$0xff] }
 0xed6   :  { %8839 = vmatpush2.msra.mxu1 %v12662_v49  ;;  %8416 = vmatprep.mubr.f32.mxu0 %v13339_v54  ;;  %v13349_v49 = vld [vmem:[%s22327_s5 + $0xce8] sm:$0xff]  ;;  %v13356_v54 = vld [vmem:[%s22327_s5 + $0xd18] sm:$0xff] }
 0xed7   :  { %v8797_v4 = vpop.f32.mrf.mxu1  ;;  %8840 = vmatprep.subr.mxu1 %v22461_v12  ;;  %12680 = vmatpush3.msra.mxu0 %v10429_v17  ;;  %v13343_v17 = vld [vmem:[%s22327_s5 + $0xcb8] sm:$0xff] }
 0xed8   :  { %8841 = vmatpush2.msra.mxu1 %v8797_v4  ;;  %12681 = vmatprep.subr.mxu0 %v10428_v58  ;;  %v13358_v4 = vld [vmem:[%s22327_s5 + $0xd10] sm:$0xff] }
 0xed9   :  { %8417 = vmatmul.mubr.f32.gmra.mxu0 %v13340_v63  ;;  %8842 = vmatprep.subr.mxu1 %v22461_v12  ;;  %v13359_v63 = vld [vmem:[%s22327_s5 + $0xe10] sm:$0xff] }
 0xeda   :  { %8843 = vmatpush2.msra.mxu1 %v12659_v16  ;;  %8421 = vmatprep.mubr.f32.mxu0 %v13341_v39  ;;  %v10426_v16 = vld [vmem:[%s22328_s3 + $0x420] sm:$0xff]  ;;  %v13361_v39 = vld [vmem:[%s22327_s5 + $0xe28] sm:$0xff] }
 0xedb   :  { %8844 = vmatprep.subr.mxu1 %v22461_v12  ;;  %12682 = vmatpush3.msra.mxu0 %v10428_v58  ;;  %v13351_v58 = vld [vmem:[%s22327_s5 + $0xcf8] sm:$0xff] }
 0xedc   :  { %8845 = vmatpush2.msra.mxu1 %v8787_v56  ;;  %12683 = vmatprep.subr.mxu0 %v10427_v6  ;;  %v13345_v56 = vld [vmem:[%s22327_s5 + $0xcc8] sm:$0xff] }
 0xedd   :  { %8422 = vmatmul.mubr.f32.gmra.mxu0 %v13342_v9  ;;  %8846 = vmatprep.subr.mxu1 %v22461_v12  ;;  %v13362_v9 = vld [vmem:[%s22327_s5 + $0xd20] sm:$0xff] }
 0xede   :  { %8847 = vmatpush2.msra.mxu1 %v12656_v11  ;;  %8426 = vmatprep.mubr.f32.mxu0 %v13343_v17  ;;  %v10425_v11 = vld [vmem:[%s22328_s3 + $0x418] sm:$0xff] }
 0xedf   :  { %8848 = vmatprep.subr.mxu1 %v22461_v12  ;;  %12684 = vmatpush3.msra.mxu0 %v10427_v6  ;;  %v13360_v6 = vld [vmem:[%s22327_s5 + $0xd28] sm:$0xff]  ;;  %v13364_v17 = vld [vmem:[%s22327_s5 + $0xd38] sm:$0xff] }
 0xee0   :  { %8849 = vmatpush2.msra.mxu1 %v8777_v37  ;;  %12685 = vmatprep.subr.mxu0 %v10426_v16  ;;  %v13346_v37 = vld [vmem:[%s22327_s5 + $0xcc0] sm:$0xff] }
 0xee1   :  { %8427 = vmatmul.mubr.f32.gmra.mxu0 %v13344_v31  ;;  %8850 = vmatprep.subr.mxu1 %v22461_v12  ;;  %v13365_v31 = vld [vmem:[%s22327_s5 + $0xe38] sm:$0xff] }
 0xee2   :  { %8851 = vmatpush2.msra.mxu1 %v21178_v2  ;;  %8431 = vmatprep.mubr.f32.mxu0 %v13345_v56  ;;  %v10424_v2 = vld [vmem:[%s22328_s3 + $0x410] sm:$0xff] }
 0xee3   :  { %8852 = vmatprep.subr.mxu1 %v22461_v12  ;;  %12686 = vmatpush3.msra.mxu0 %v10426_v16  ;;  %v13363_v16 = vld [vmem:[%s22327_s5 + $0xe20] sm:$0xff]  ;;  %v13367_v56 = vld [vmem:[%s22327_s5 + $0xe30] sm:$0xff] }
 0xee4   :  { %8853 = vmatpush2.msra.mxu1 %v21188_v33  ;;  %12687 = vmatprep.subr.mxu0 %v10425_v11  ;;  %v13348_v33 = vld [vmem:[%s22327_s5 + $0xcd0] sm:$0xff] }
 0xee5   :  { %8432 = vmatmul.mubr.f32.gmra.mxu0 %v13346_v37  ;;  %8854 = vmatprep.subr.mxu1 %v22461_v12  ;;  %v13368_v37 = vld [vmem:[%s22327_s5 + $0xd48] sm:$0xff] }
 0xee6   :  { %8855 = vmatpush2.msra.mxu1 %v21161_v61  ;;  %8436 = vmatprep.mubr.f32.mxu0 %v13347_v30  ;;  %v10423_v61 = vld [vmem:[%s22328_s3 + $0x408] sm:$0xff]  ;;  %v13370_v30 = vld [vmem:[%s22327_s5 + $0xd40] sm:$0xff] }
 0xee7   :  { %8856 = vmatprep.subr.mxu1 %v22461_v12  ;;  %12688 = vmatpush3.msra.mxu0 %v10425_v11  ;;  %v13366_v11 = vld [vmem:[%s22327_s5 + $0xd30] sm:$0xff] }
 0xee8   :  { %8857 = vmatpush2.msra.mxu1 %v21171_v5  ;;  %12689 = vmatprep.subr.mxu0 %v10424_v2  ;;  %v13350_v5 = vld [vmem:[%s22327_s5 + $0xce0] sm:$0xff] }
 0xee9   :  { %8437 = vmatmul.mubr.f32.gmra.mxu0 %v13348_v33  ;;  %8858 = vmatprep.subr.mxu1 %v22461_v12  ;;  %v13371_v33 = vld [vmem:[%s22327_s5 + $0xe40] sm:$0xff] }
 0xeea   :  { %8859 = vmatpush2.msra.mxu1 %v21145_v3  ;;  %8441 = vmatprep.mubr.f32.mxu0 %v13349_v49  ;;  %v10422_v3 = vld [vmem:[%s22328_s3 + $0x400] sm:$0xff]  ;;  %v13373_v49 = vld [vmem:[%s22327_s5 + $0xe58] sm:$0xff] }
 0xeeb   :  { %8860 = vmatprep.subr.mxu1 %v22461_v12  ;;  %12690 = vmatpush3.msra.mxu0 %v10424_v2  ;;  %v13369_v2 = vld [vmem:[%s22327_s5 + $0xe48] sm:$0xff] }
 0xeec   :  { %8861 = vmatpush2.msra.mxu1 %v21154_v32  ;;  %12691 = vmatprep.subr.mxu0 %v10423_v61  ;;  %v13352_v32 = vld [vmem:[%s22327_s5 + $0xcf0] sm:$0xff] }
 0xeed   :  { %8442 = vmatmul.mubr.f32.gmra.mxu0 %v13350_v5  ;;  %8862 = vmatprep.subr.mxu1 %v22461_v12  ;;  %v13374_v5 = vld [vmem:[%s22327_s5 + $0xd50] sm:$0xff] }
 0xeee   :  { %8863 = vmatpush2.msra.mxu1 %v21130_v46  ;;  %8446 = vmatprep.mubr.f32.mxu0 %v13351_v58  ;;  %v13353_v46 = vld [vmem:[%s22327_s5 + $0xd08] sm:$0xff] }
 0xeef   :  { %8864 = vmatprep.subr.mxu1 %v22461_v12  ;;  %12692 = vmatpush3.msra.mxu0 %v10423_v61  ;;  %v13372_v61 = vld [vmem:[%s22327_s5 + $0xd58] sm:$0xff]  ;;  %v13376_v58 = vld [vmem:[%s22327_s5 + $0xd68] sm:$0xff] }
 0xef0   :  { %8865 = vmatpush2.msra.mxu1 %v21139_v0  ;;  %12693 = vmatprep.subr.mxu0 %v10422_v3  ;;  %v13354_v0 = vld [vmem:[%s22327_s5 + $0xd00] sm:$0xff] }
 0xef1   :  { %8447 = vmatmul.mubr.f32.gmra.mxu0 %v13352_v32  ;;  %8866 = vmatprep.subr.mxu1 %v22461_v12  ;;  %v13377_v32 = vld [vmem:[%s22327_s5 + $0xe68] sm:$0xff] }
 0xef2   :  { %8867 = vmatpush2.msra.mxu1 %v21115_v35  ;;  %8451 = vmatprep.mubr.f32.mxu0 %v13353_v46  ;;  %v13355_v35 = vld [vmem:[%s22327_s5 + $0xe00] sm:$0xff] }
 0xef3   :  { %8868 = vmatprep.subr.mxu1 %v22461_v12  ;;  %12694 = vmatpush3.msra.mxu0 %v10422_v3  ;;  %v13375_v3 = vld [vmem:[%s22327_s5 + $0xe50] sm:$0xff]  ;;  %v13378_v46 = vld [vmem:[%s22327_s5 + $0xd60] sm:$0xff] }
 0xef4   :  { %8869 = vmatpush2.msra.mxu1 %v21124_v21  ;;  %9305 = vmatprep.subr.mxu0 %v22461_v12  ;;  %v13357_v21 = vld [vmem:[%s22327_s5 + $0xe18] sm:$0xff] }
 0xef5   :  { %8452 = vmatmul.mubr.f32.gmra.mxu0 %v13354_v0  ;;  %8871 = vmatmul.mubr.f32.vlgmr.msra.gmra.mxu1 %v13355_v35  ;;  %v13379_v0 = vld [vmem:[%s22327_s5 + $0xe60] sm:$0xff]  ;;  %v13380_v35 = vld [vmem:[%s22327_s5 + $0xd78] sm:$0xff] }
 0xef6   :  { %8456 = vmatprep.mubr.f32.mxu0 %v13356_v54  ;;  %8875 = vmatprep.mubr.f32.mxu1 %v13357_v21  ;;  %v13381_v54 = vld [vmem:[%s22327_s5 + $0xe78] sm:$0xff]  ;;  %v13382_v21 = vld [vmem:[%s22327_s5 + $0xd70] sm:$0xff] }
 0xef9   :  { %8457 = vmatmul.mubr.f32.gmra.mxu0 %v13358_v4  ;;  %8876 = vmatmul.mubr.f32.gmra.mxu1 %v13359_v63  ;;  %v13383_v4 = vld [vmem:[%s22327_s5 + $0xe70] sm:$0xff]  ;;  %v13384_v63 = vld [vmem:[%s22327_s5 + $0xd88] sm:$0xff] }
 0xefa   :  { %8461 = vmatprep.mubr.f32.mxu0 %v13360_v6  ;;  %8880 = vmatprep.mubr.f32.mxu1 %v13361_v39  ;;  %v13385_v6 = vld [vmem:[%s22327_s5 + $0xe88] sm:$0xff]  ;;  %v13386_v39 = vld [vmem:[%s22327_s5 + $0xd80] sm:$0xff] }
 0xefd   :  { %8462 = vmatmul.mubr.f32.gmra.mxu0 %v13362_v9  ;;  %8881 = vmatmul.mubr.f32.gmra.mxu1 %v13363_v16  ;;  %v13387_v9 = vld [vmem:[%s22327_s5 + $0xe80] sm:$0xff]  ;;  %v13388_v16 = vld [vmem:[%s22327_s5 + $0xd98] sm:$0xff] }
 0xefe   :  { %8466 = vmatprep.mubr.f32.mxu0 %v13364_v17  ;;  %8885 = vmatprep.mubr.f32.mxu1 %v13365_v31  ;;  %v13389_v17 = vld [vmem:[%s22327_s5 + $0xe98] sm:$0xff]  ;;  %v13390_v31 = vld [vmem:[%s22327_s5 + $0xd90] sm:$0xff] }
 0xf01   :  { %8467 = vmatmul.mubr.f32.gmra.mxu0 %v13366_v11  ;;  %8886 = vmatmul.mubr.f32.gmra.mxu1 %v13367_v56  ;;  %v13391_v11 = vld [vmem:[%s22327_s5 + $0xe90] sm:$0xff]  ;;  %v13392_v56 = vld [vmem:[%s22327_s5 + $0xda8] sm:$0xff] }
 0xf02   :  { %8471 = vmatprep.mubr.f32.mxu0 %v13368_v37  ;;  %8890 = vmatprep.mubr.f32.mxu1 %v13369_v2  ;;  %v13393_v37 = vld [vmem:[%s22327_s5 + $0xea8] sm:$0xff]  ;;  %v13394_v2 = vld [vmem:[%s22327_s5 + $0xda0] sm:$0xff] }
 0xf05   :  { %8472 = vmatmul.mubr.f32.gmra.mxu0 %v13370_v30  ;;  %8891 = vmatmul.mubr.f32.gmra.mxu1 %v13371_v33  ;;  %v13395_v30 = vld [vmem:[%s22327_s5 + $0xea0] sm:$0xff]  ;;  %v13396_v33 = vld [vmem:[%s22327_s5 + $0xdb8] sm:$0xff] }
 0xf06   :  { %8476 = vmatprep.mubr.f32.mxu0 %v13372_v61  ;;  %8895 = vmatprep.mubr.f32.mxu1 %v13373_v49  ;;  %v13397_v61 = vld [vmem:[%s22327_s5 + $0xeb8] sm:$0xff]  ;;  %v13398_v49 = vld [vmem:[%s22327_s5 + $0xdb0] sm:$0xff] }
 0xf09   :  { %8477 = vmatmul.mubr.f32.gmra.mxu0 %v13374_v5  ;;  %8896 = vmatmul.mubr.f32.gmra.mxu1 %v13375_v3  ;;  %v13399_v5 = vld [vmem:[%s22327_s5 + $0xeb0] sm:$0xff]  ;;  %v13400_v3 = vld [vmem:[%s22327_s5 + $0xdc8] sm:$0xff] }
 0xf0a   :  { %8481 = vmatprep.mubr.f32.mxu0 %v13376_v58  ;;  %8900 = vmatprep.mubr.f32.mxu1 %v13377_v32  ;;  %v13401_v58 = vld [vmem:[%s22327_s5 + $0xec8] sm:$0xff]  ;;  %v13402_v32 = vld [vmem:[%s22327_s5 + $0xdc0] sm:$0xff] }
 0xf0d   :  { %8482 = vmatmul.mubr.f32.gmra.mxu0 %v13378_v46  ;;  %8901 = vmatmul.mubr.f32.gmra.mxu1 %v13379_v0  ;;  %v13403_v46 = vld [vmem:[%s22327_s5 + $0xec0] sm:$0xff]  ;;  %v13404_v0 = vld [vmem:[%s22327_s5 + $0xdd8] sm:$0xff] }
 0xf0e   :  { %8486 = vmatprep.mubr.f32.mxu0 %v13380_v35  ;;  %8905 = vmatprep.mubr.f32.mxu1 %v13381_v54  ;;  %v13405_v35 = vld [vmem:[%s22327_s5 + $0xed8] sm:$0xff]  ;;  %v13406_v54 = vld [vmem:[%s22327_s5 + $0xdd0] sm:$0xff] }
 0xf11   :  { %8487 = vmatmul.mubr.f32.gmra.mxu0 %v13382_v21  ;;  %8906 = vmatmul.mubr.f32.gmra.mxu1 %v13383_v4  ;;  %v13407_v21 = vld [vmem:[%s22327_s5 + $0xed0] sm:$0xff]  ;;  %v13408_v4 = vld [vmem:[%s22327_s5 + $0xde8] sm:$0xff] }
 0xf12   :  { %8491 = vmatprep.mubr.f32.mxu0 %v13384_v63  ;;  %8910 = vmatprep.mubr.f32.mxu1 %v13385_v6  ;;  %v13409_v63 = vld [vmem:[%s22327_s5 + $0xee8] sm:$0xff]  ;;  %v13410_v6 = vld [vmem:[%s22327_s5 + $0xde0] sm:$0xff] }
 0xf15   :  { %8492 = vmatmul.mubr.f32.gmra.mxu0 %v13386_v39  ;;  %8911 = vmatmul.mubr.f32.gmra.mxu1 %v13387_v9  ;;  %v13411_v39 = vld [vmem:[%s22327_s5 + $0xee0] sm:$0xff]  ;;  %v13412_v9 = vld [vmem:[%s22327_s5 + $0xdf8] sm:$0xff] }
 0xf16   :  { %8496 = vmatprep.mubr.f32.mxu0 %v13388_v16  ;;  %8915 = vmatprep.mubr.f32.mxu1 %v13389_v17  ;;  %v13413_v16 = vld [vmem:[%s22327_s5 + $0xef8] sm:$0xff]  ;;  %v13414_v17 = vld [vmem:[%s22327_s5 + $0xdf0] sm:$0xff] }
 0xf19   :  { %8497 = vmatmul.mubr.f32.gmra.mxu0 %v13390_v31  ;;  %8916 = vmatmul.mubr.f32.gmra.mxu1 %v13391_v11  ;;  %v13415_v31 = vld [vmem:[%s22327_s5 + $0xef0] sm:$0xff]  ;;  %v13416_v11 = vld [vmem:[%s22327_s5 + $0xf08] sm:$0xff] }
 0xf1a   :  { %8501 = vmatprep.mubr.f32.mxu0 %v13392_v56  ;;  %8920 = vmatprep.mubr.f32.mxu1 %v13393_v37  ;;  %v13417_v56 = vld [vmem:[%s22327_s5 + $0xf00] sm:$0xff]  ;;  %v13418_v37 = vld [vmem:[%s22327_s5 + $0xf18] sm:$0xff] }
 0xf1d   :  { %8502 = vmatmul.mubr.f32.gmra.mxu0 %v13394_v2  ;;  %8921 = vmatmul.mubr.f32.gmra.mxu1 %v13395_v30  ;;  %v22577_v2 = vld [vmem:[#allocation2_spill] sm:$0xff] }
 0xf1e   :  { %8506 = vmatprep.mubr.f32.mxu0 %v13396_v33  ;;  %8925 = vmatprep.mubr.f32.mxu1 %v13397_v61  ;;  %v22578_v30 = vld [vmem:[#allocation22_spill] sm:$0xff]  ;;  %v22579_v33 = vld [vmem:[#allocation3_spill] sm:$0xff] }
 0xf1f   :  { %v13437_v61 = vld [vmem:[%s22327_s5 + $0xfa0] sm:$0xff] }
 0xf21   :  { %8507 = vmatmul.mubr.f32.gmra.mxu0 %v13398_v49  ;;  %8926 = vmatmul.mubr.f32.gmra.mxu1 %v13399_v5  ;;  %v22580_v49 = vld [vmem:[#allocation23_spill] sm:$0xff]  ;;  %v22581_v5 = vld [vmem:[#allocation4_spill] sm:$0xff] }
 0xf22   :  { %8511 = vmatprep.mubr.f32.mxu0 %v13400_v3  ;;  %8930 = vmatprep.mubr.f32.mxu1 %v13401_v58  ;;  %v13438_v3 = vld [vmem:[%s22327_s5 + $0xfb8] sm:$0xff]  ;;  %v13439_v58 = vld [vmem:[%s22327_s5 + $0xfb0] sm:$0xff] }
 0xf25   :  { %8512 = vmatmul.mubr.f32.gmra.mxu0 %v13402_v32  ;;  %8931 = vmatmul.mubr.f32.gmra.mxu1 %v13403_v46  ;;  %v22582_v32 = vld [vmem:[#allocation24_spill] sm:$0xff]  ;;  %v22583_v46 = vld [vmem:[#allocation5_spill] sm:$0xff] }
 0xf26   :  { %8516 = vmatprep.mubr.f32.mxu0 %v13404_v0  ;;  %8935 = vmatprep.mubr.f32.mxu1 %v13405_v35  ;;  %v13440_v0 = vld [vmem:[%s22327_s5 + $0xfc8] sm:$0xff]  ;;  %v13441_v35 = vld [vmem:[%s22327_s5 + $0xfc0] sm:$0xff] }
 0xf29   :  { %8517 = vmatmul.mubr.f32.gmra.mxu0 %v13406_v54  ;;  %8936 = vmatmul.mubr.f32.gmra.mxu1 %v13407_v21  ;;  %v22584_v54 = vld [vmem:[#allocation25_spill] sm:$0xff]  ;;  %v22585_v21 = vld [vmem:[#allocation6_spill] sm:$0xff] }
 0xf2a   :  { %8521 = vmatprep.mubr.f32.mxu0 %v13408_v4  ;;  %8940 = vmatprep.mubr.f32.mxu1 %v13409_v63  ;;  %v13442_v4 = vld [vmem:[%s22327_s5 + $0xfd8] sm:$0xff]  ;;  %v13443_v63 = vld [vmem:[%s22327_s5 + $0xfd0] sm:$0xff] }
 0xf2d   :  { %8522 = vmatmul.mubr.f32.gmra.mxu0 %v13410_v6  ;;  %8941 = vmatmul.mubr.f32.gmra.mxu1 %v13411_v39  ;;  %v22586_v6 = vld [vmem:[#allocation26_spill] sm:$0xff]  ;;  %v22587_v39 = vld [vmem:[#allocation7_spill] sm:$0xff] }
 0xf2e   :  { %8526 = vmatprep.mubr.f32.mxu0 %v13412_v9  ;;  %8945 = vmatprep.mubr.f32.mxu1 %v13413_v16  ;;  %v13444_v9 = vld [vmem:[%s22327_s5 + $0xfe8] sm:$0xff]  ;;  %v13445_v16 = vld [vmem:[%s22327_s5 + $0xfe0] sm:$0xff] }
 0xf31   :  { %8527 = vmatmul.mubr.f32.gmra.mxu0 %v13414_v17  ;;  %8946 = vmatmul.mubr.f32.gmra.mxu1 %v13415_v31  ;;  %v22588_v17 = vld [vmem:[#allocation27_spill] sm:$0xff]  ;;  %v22589_v31 = vld [vmem:[#allocation8_spill] sm:$0xff] }
 0xf32   :  { %12695 = vmatprep.mubr.f32.mxu0 %v18190_v36  ;;  %8950 = vmatprep.mubr.f32.mxu1 %v13416_v11  ;;  %v13419_v36 = vld [vmem:[%s22327_s5 + $0xf10] sm:$0xff]  ;;  %v13446_v11 = vld [vmem:[%s22327_s5 + $0xff8] sm:$0xff] }
 0xf35   :  { %8951 = vmatmul.mubr.f32.gmra.mxu1 %v13417_v56  ;;  %12696 = vmatmul.mubr.f32.vlgmr.msra.gmra.mxu0 %v18195_v29  ;;  %v13420_v29 = vld [vmem:[%s22327_s5 + $0xf28] sm:$0xff]  ;;  %v13447_v56 = vld [vmem:[%s22327_s5 + $0xff0] sm:$0xff] }
 0xf36   :  { %12698 = vmatprep.mubr.f32.mxu0 %v18206_v45  ;;  %8955 = vmatprep.mubr.f32.mxu1 %v13418_v37  ;;  %v13421_v45 = vld [vmem:[%s22327_s5 + $0xf20] sm:$0xff]  ;;  %v22590_v37 = vld [vmem:[#allocation28_spill] sm:$0xff] }
 0xf39   :  { %8956 = vmatmul.mubr.f32.gmra.mxu1 %v13419_v36  ;;  %12699 = vmatmul.mubr.f32.gmra.mxu0 %v18217_v34  ;;  %v13422_v34 = vld [vmem:[%s22327_s5 + $0xf38] sm:$0xff]  ;;  %v13448_v36 = vld [vmem:[%s22327_s5 + $0x1008] sm:$0xff] }
 0xf3a   :  { %12701 = vmatprep.mubr.f32.mxu0 %v18228_v14  ;;  %8960 = vmatprep.mubr.f32.mxu1 %v13420_v29  ;;  %v13423_v14 = vld [vmem:[%s22327_s5 + $0xf30] sm:$0xff] }
 0xf3d   :  { %8961 = vmatmul.mubr.f32.gmra.mxu1 %v13421_v45  ;;  %12702 = vmatmul.mubr.f32.gmra.mxu0 %v18239_v51  ;;  %v13424_v51 = vld [vmem:[%s22327_s5 + $0xf48] sm:$0xff] }
 0xf3e   :  { %12704 = vmatprep.mubr.f32.mxu0 %v18250_v26  ;;  %8965 = vmatprep.mubr.f32.mxu1 %v13422_v34  ;;  %v13425_v26 = vld [vmem:[%s22327_s5 + $0xf40] sm:$0xff]  ;;  %v22591_v45 = vld [vmem:[#allocation19_spill] sm:$0xff] }
 0xf41   :  { %8966 = vmatmul.mubr.f32.gmra.mxu1 %v13423_v14  ;;  %12705 = vmatmul.mubr.f32.gmra.mxu0 %v18261_v47  ;;  %v13426_v47 = vld [vmem:[%s22327_s5 + $0xf58] sm:$0xff] }
 0xf42   :  { %12707 = vmatprep.mubr.f32.mxu0 %v18272_v19  ;;  %8970 = vmatprep.mubr.f32.mxu1 %v13424_v51  ;;  %v13427_v19 = vld [vmem:[%s22327_s5 + $0xf50] sm:$0xff] }
 0xf45   :  { %8971 = vmatmul.mubr.f32.gmra.mxu1 %v13425_v26  ;;  %12708 = vmatmul.mubr.f32.gmra.mxu0 %v18280_v10  ;;  %v13428_v10 = vld [vmem:[%s22327_s5 + $0xf68] sm:$0xff] }
 0xf46   :  { %12710 = vmatprep.mubr.f32.mxu0 %v18286_v24  ;;  %8975 = vmatprep.mubr.f32.mxu1 %v13426_v47  ;;  %v13429_v24 = vld [vmem:[%s22327_s5 + $0xf60] sm:$0xff] }
 0xf49   :  { %8976 = vmatmul.mubr.f32.gmra.mxu1 %v13427_v19  ;;  %12711 = vmatmul.mubr.f32.gmra.mxu0 %v18291_v22  ;;  %v13430_v22 = vld [vmem:[%s22327_s5 + $0xf78] sm:$0xff] }
 0xf4a   :  { %12713 = vmatprep.mubr.f32.mxu0 %v18296_v53  ;;  %8980 = vmatprep.mubr.f32.mxu1 %v13428_v10  ;;  %v13431_v53 = vld [vmem:[%s22327_s5 + $0xf70] sm:$0xff] }
 0xf4d   :  { %8981 = vmatmul.mubr.f32.gmra.mxu1 %v13429_v24  ;;  %12714 = vmatmul.mubr.f32.gmra.mxu0 %v18301_v55  ;;  %v13432_v55 = vld [vmem:[%s22327_s5 + $0xf88] sm:$0xff] }
 0xf4e   :  { %12716 = vmatprep.mubr.f32.mxu0 %v18306_v60  ;;  %8985 = vmatprep.mubr.f32.mxu1 %v13430_v22  ;;  %v13433_v60 = vld [vmem:[%s22327_s5 + $0xf80] sm:$0xff] }
 0xf51   :  { %8986 = vmatmul.mubr.f32.gmra.mxu1 %v13431_v53  ;;  %12717 = vmatmul.mubr.f32.gmra.mxu0 %v18311_v40  ;;  %v13434_v40 = vld [vmem:[%s22327_s5 + $0xf98] sm:$0xff] }
 0xf52   :  { %12719 = vmatprep.mubr.f32.mxu0 %v18316_v42  ;;  %8990 = vmatprep.mubr.f32.mxu1 %v13432_v55  ;;  %v13435_v42 = vld [vmem:[%s22327_s5 + $0xf90] sm:$0xff] }
 0xf55   :  { %8991 = vmatmul.mubr.f32.gmra.mxu1 %v13433_v60  ;;  %12720 = vmatmul.mubr.f32.gmra.mxu0 %v18321_v44  ;;  %v13436_v44 = vld [vmem:[%s22327_s5 + $0xfa8] sm:$0xff] }
 0xf56   :  { %12722 = vmatprep.mubr.f32.mxu0 %v22577_v2  ;;  %8995 = vmatprep.mubr.f32.mxu1 %v13434_v40 }
 0xf59   :  { %8996 = vmatmul.mubr.f32.gmra.mxu1 %v13435_v42  ;;  %12723 = vmatmul.mubr.f32.gmra.mxu0 %v22578_v30 }
 0xf5a   :  { %12725 = vmatprep.mubr.f32.mxu0 %v22579_v33  ;;  %9000 = vmatprep.mubr.f32.mxu1 %v13436_v44 }
 0xf5d   :  { %9001 = vmatmul.mubr.f32.gmra.mxu1 %v13437_v61  ;;  %12726 = vmatmul.mubr.f32.gmra.mxu0 %v22580_v49 }
 0xf5e   :  { %12728 = vmatprep.mubr.f32.mxu0 %v22581_v5  ;;  %9005 = vmatprep.mubr.f32.mxu1 %v13438_v3 }
 0xf61   :  { %9006 = vmatmul.mubr.f32.gmra.mxu1 %v13439_v58  ;;  %12729 = vmatmul.mubr.f32.gmra.mxu0 %v22582_v32  ;;  %v22592_v32 = vld [vmem:[#allocation37_spill] sm:$0xff] }
 0xf62   :  { %12731 = vmatprep.mubr.f32.mxu0 %v22583_v46  ;;  %9010 = vmatprep.mubr.f32.mxu1 %v13440_v0 }
 0xf65   :  { %9011 = vmatmul.mubr.f32.gmra.mxu1 %v13441_v35  ;;  %12732 = vmatmul.mubr.f32.gmra.mxu0 %v22584_v54  ;;  %v22593_v35 = vld [vmem:[#allocation16_spill] sm:$0xff] }
 0xf66   :  { %12734 = vmatprep.mubr.f32.mxu0 %v22585_v21  ;;  %9015 = vmatprep.mubr.f32.mxu1 %v13442_v4  ;;  %v22594_v4 = vld [vmem:[#allocation20_spill] sm:$0xff] }
 0xf69   :  { %9016 = vmatmul.mubr.f32.gmra.mxu1 %v13443_v63  ;;  %12735 = vmatmul.mubr.f32.gmra.mxu0 %v22586_v6 }
 0xf6a   :  { %12737 = vmatprep.mubr.f32.mxu0 %v22587_v39  ;;  %9020 = vmatprep.mubr.f32.mxu1 %v13444_v9  ;;  %v22595_v39 = vld [vmem:[#allocation38_spill] sm:$0xff] }
 0xf6d   :  { %9021 = vmatmul.mubr.f32.gmra.mxu1 %v13445_v16  ;;  %12738 = vmatmul.mubr.f32.gmra.mxu0 %v22588_v17  ;;  %v22596_v17 = vld [vmem:[#allocation39_spill] sm:$0xff] }
 0xf6e   :  { %12740 = vmatprep.mubr.f32.mxu0 %v22589_v31  ;;  %9025 = vmatprep.mubr.f32.mxu1 %v13446_v11 }
 0xf71   :  { %9026 = vmatmul.mubr.f32.gmra.mxu1 %v13447_v56  ;;  %12741 = vmatmul.mubr.f32.gmra.mxu0 %v22590_v37  ;;  %v22597_v37 = vld [vmem:[#allocation18_spill] sm:$0xff] }
 0xf72   :  { %9369 = vmatprep.mubr.f32.mxu0 %v13448_v36 }
 0xf75   :  { %v8373_v29 = vpop.f32.mrf.mxu0 }
 0xf76   :  { %v8532_v34 = vadd.f32 %v8373_v29, %v22591_v45 }
 0xf77   :  { %v8375_v14 = vpop.f32.mrf.mxu0 }
 0xf78   :  { %v22598_v14 = vld [vmem:[#allocation21_spill] sm:$0xff] }
 0xf79   :  { %v8378_v51 = vpop.f32.mrf.mxu0 }
 0xf7a   :  { %v8533_v26 = vadd.f32 %v8378_v51, %v20877_v25 }
 0xf7b   :  { %v8380_v47 = vpop.f32.mrf.mxu0 }
 0xf7d   :  { %v8383_v19 = vpop.f32.mrf.mxu0 }
 0xf7e   :  { %v8534_v10 = vadd.f32 %v8383_v19, %v20883_v52 }
 0xf7f   :  { %v8385_v24 = vpop.f32.mrf.mxu0 }
 0xf81   :  { %v8388_v22 = vpop.f32.mrf.mxu0 }
 0xf82   :  { %v8535_v53 = vadd.f32 %v8388_v22, %v20889_v7  ;;  %v22599_v22 = vld [vmem:[#allocation40_spill] sm:$0xff] }
 0xf83   :  { %v8390_v55 = vpop.f32.mrf.mxu0 }
 0xf85   :  { %v8393_v60 = vpop.f32.mrf.mxu0 }
 0xf86   :  { %v8536_v2 = vadd.f32 %v8393_v60, %v20895_v38 }
 0xf87   :  { %v8395_v40 = vpop.f32.mrf.mxu0 }
 0xf89   :  { %v8398_v42 = vpop.f32.mrf.mxu0 }
 0xf8a   :  { %v21637_v30 = vadd.f32 %v8398_v42, %v20901_v15 }
 0xf8b   :  { %v8400_v33 = vpop.f32.mrf.mxu0 }
 0xf8d   :  { %v8403_v44 = vpop.f32.mrf.mxu0 }
 0xf8e   :  { %v21640_v25 = vadd.f32 %v8403_v44, %v20907_v13 }
 0xf8f   :  { %v8405_v61 = vpop.f32.mrf.mxu0 }
 0xf90   :  { %v22600_v61 = vld [vmem:[#allocation9_spill] sm:$0xff] }
 0xf91   :  { %v8408_v52 = vpop.f32.mrf.mxu0 }
 0xf92   :  { %v21643_v49 = vadd.f32 %v8408_v52, %v20913_v23 }
 0xf93   :  { %v8410_v7 = vpop.f32.mrf.mxu0 }
 0xf95   :  { %v8413_v5 = vpop.f32.mrf.mxu0 }
 0xf96   :  { %v21646_v3 = vadd.f32 %v8413_v5, %v20919_v27 }
 0xf97   :  { %v8415_v38 = vpop.f32.mrf.mxu0 }
 0xf99   :  { %v8418_v58 = vpop.f32.mrf.mxu0 }
 0xf9a   :  { %v21649_v15 = vadd.f32 %v8418_v58, %v22592_v32 }
 0xf9b   :  { %v8420_v46 = vpop.f32.mrf.mxu0 }
 0xf9c   :  { %v22601_v46 = vld [vmem:[#allocation29_spill] sm:$0xff] }
 0xf9d   :  { %v8423_v0 = vpop.f32.mrf.mxu0 }
 0xf9e   :  { %v21652_v13 = vadd.f32 %v8423_v0, %v22593_v35 }
 0xf9f   :  { %v8425_v54 = vpop.f32.mrf.mxu0 }
 0xfa1   :  { %v8428_v21 = vpop.f32.mrf.mxu0 }
 0xfa2   :  { %v21655_v23 = vadd.f32 %v8428_v21, %v22594_v4 }
 0xfa3   :  { %v8430_v63 = vpop.f32.mrf.mxu0 }
 0xfa4   :  { %v22602_v63 = vld [vmem:[#allocation10_spill] sm:$0xff] }
 0xfa5   :  { %v8433_v6 = vpop.f32.mrf.mxu0 }
 0xfa6   :  { %v21658_v27 = vadd.f32 %v8433_v6, %v22595_v39 }
 0xfa7   :  { %v8435_v9 = vpop.f32.mrf.mxu0 }
 0xfa9   :  { %v8438_v16 = vpop.f32.mrf.mxu0 }
 0xfaa   :  { %v21661_v31 = vadd.f32 %v8438_v16, %v22596_v17 }
 0xfab   :  { %v8440_v11 = vpop.f32.mrf.mxu0 }
 0xfad   :  { %v8443_v56 = vpop.f32.mrf.mxu0 }
 0xfae   :  { %v21664_v36 = vadd.f32 %v8443_v56, %v22597_v37 }
 0xfaf   :  { %v8445_v29 = vpop.f32.mrf.mxu0 }
 0xfb1   :  { %v8448_v45 = vpop.f32.mrf.mxu0 }
 0xfb2   :  { %v21667_v51 = vadd.f32 %v8448_v45, %v22598_v14 }
 0xfb3   :  { %v8450_v47 = vpop.f32.mrf.mxu0 }
 0xfb5   :  { %v8453_v19 = vpop.f32.mrf.mxu0  ;;  %v8872_v24 = vpop.f32.mrf.mxu1 }
 0xfb6   :  { %v21670_v55 = vadd.f32 %v8453_v19, %v22599_v22  ;;  %v21672_v60 = vadd.f32 %v8872_v24, %v8532_v34 }
 0xfb7   :  { %v8455_v40 = vpop.f32.mrf.mxu0  ;;  %v8874_v42 = vpop.f32.mrf.mxu1 }
 0xfb9   :  { %v8458_v33 = vpop.f32.mrf.mxu0  ;;  %v8877_v44 = vpop.f32.mrf.mxu1 }
 0xfba   :  { %v21675_v52 = vadd.f32 %v8458_v33, %v22600_v61  ;;  %v21677_v7 = vadd.f32 %v8877_v44, %v8533_v26 }
 0xfbb   :  { %v8460_v5 = vpop.f32.mrf.mxu0  ;;  %v8879_v38 = vpop.f32.mrf.mxu1 }
 0xfbd   :  { %v8463_v58 = vpop.f32.mrf.mxu0  ;;  %v8882_v32 = vpop.f32.mrf.mxu1 }
 0xfbe   :  { %v21680_v0 = vadd.f32 %v8463_v58, %v22601_v46  ;;  %v21682_v35 = vadd.f32 %v8882_v32, %v8534_v10 }
 0xfbf   :  { %v8465_v34 = vpop.f32.mrf.mxu0  ;;  %v8884_v54 = vpop.f32.mrf.mxu1 }
 0xfc1   :  { %v8468_v21 = vpop.f32.mrf.mxu0  ;;  %v8887_v4 = vpop.f32.mrf.mxu1 }
 0xfc2   :  { %v21685_v6 = vadd.f32 %v8468_v21, %v22602_v63  ;;  %v21687_v39 = vadd.f32 %v8887_v4, %v8535_v53 }
 0xfc3   :  { %v8470_v26 = vpop.f32.mrf.mxu0  ;;  %v8889_v9 = vpop.f32.mrf.mxu1 }
 0xfc5   :  { %v8473_v16 = vpop.f32.mrf.mxu0  ;;  %v8892_v17 = vpop.f32.mrf.mxu1 }
 0xfc6   :  { %v21690_v11 = vadd.f32 %v8473_v16, %v20988_v41  ;;  %v21692_v56 = vadd.f32 %v8892_v17, %v8536_v2 }
 0xfc7   :  { %v8475_v10 = vpop.f32.mrf.mxu0  ;;  %v8894_v37 = vpop.f32.mrf.mxu1 }
 0xfc9   :  { %v8478_v29 = vpop.f32.mrf.mxu0  ;;  %v8897_v45 = vpop.f32.mrf.mxu1 }
 0xfca   :  { %v21695_v14 = vadd.f32 %v8478_v29, %v20991_v59  ;;  %v21698_v47 = vadd.f32 %v8897_v45, %v21637_v30 }
 0xfcb   :  { %v8480_v53 = vpop.f32.mrf.mxu0  ;;  %v8899_v19 = vpop.f32.mrf.mxu1 }
 0xfcd   :  { %v8483_v24 = vpop.f32.mrf.mxu0  ;;  %v8902_v22 = vpop.f32.mrf.mxu1 }
 0xfce   :  { %v21701_v40 = vadd.f32 %v8483_v24, %v20994_v62  ;;  %v21704_v41 = vadd.f32 %v8902_v22, %v21640_v25 }
 0xfcf   :  { %v8485_v2 = vpop.f32.mrf.mxu0  ;;  %v8904_v42 = vpop.f32.mrf.mxu1 }
 0xfd1   :  { %v8488_v33 = vpop.f32.mrf.mxu0  ;;  %v8907_v44 = vpop.f32.mrf.mxu1 }
 0xfd2   :  { %v21707_v59 = vadd.f32 %v8488_v33, %v20997_v8  ;;  %v21710_v30 = vadd.f32 %v8907_v44, %v21643_v49 }
 0xfd3   :  { %v8490_v61 = vpop.f32.mrf.mxu0  ;;  %v8909_v5 = vpop.f32.mrf.mxu1 }
 0xfd5   :  { %v8493_v38 = vpop.f32.mrf.mxu0  ;;  %v8912_v58 = vpop.f32.mrf.mxu1 }
 0xfd6   :  { %v21713_v62 = vadd.f32 %v8493_v38, %v21004_v57  ;;  %v21716_v25 = vadd.f32 %v8912_v58, %v21646_v3 }
 0xfd7   :  { %v8495_v32 = vpop.f32.mrf.mxu0  ;;  %v8914_v46 = vpop.f32.mrf.mxu1 }
 0xfd9   :  { %v8498_v34 = vpop.f32.mrf.mxu0  ;;  %v8917_v54 = vpop.f32.mrf.mxu1 }
 0xfda   :  { %v21719_v8 = vadd.f32 %v8498_v34, %v21013_v43  ;;  %v21722_v49 = vadd.f32 %v8917_v54, %v21649_v15 }
 0xfdb   :  { %v8500_v21 = vpop.f32.mrf.mxu0  ;;  %v8919_v4 = vpop.f32.mrf.mxu1 }
 0xfdd   :  { %v8503_v63 = vpop.f32.mrf.mxu0  ;;  %v8922_v26 = vpop.f32.mrf.mxu1 }
 0xfde   :  { %v21725_v57 = vadd.f32 %v8503_v63, %v21022_v20  ;;  %v21728_v3 = vadd.f32 %v8922_v26, %v21652_v13 }
 0xfdf   :  { %v8505_v9 = vpop.f32.mrf.mxu0  ;;  %v8924_v16 = vpop.f32.mrf.mxu1 }
 0xfe1   :  { %v8508_v17 = vpop.f32.mrf.mxu0  ;;  %v8927_v10 = vpop.f32.mrf.mxu1 }
 0xfe2   :  { %v21731_v43 = vadd.f32 %v8508_v17, %v21031_v48  ;;  %v21734_v15 = vadd.f32 %v8927_v10, %v21655_v23 }
 0xfe3   :  { %v8510_v37 = vpop.f32.mrf.mxu0  ;;  %v8929_v29 = vpop.f32.mrf.mxu1 }
 0xfe5   :  { %v8513_v45 = vpop.f32.mrf.mxu0  ;;  %v8932_v53 = vpop.f32.mrf.mxu1 }
 0xfe6   :  { %v21737_v20 = vadd.f32 %v8513_v45, %v21036_v18  ;;  %v21740_v13 = vadd.f32 %v8932_v53, %v21658_v27 }
 0xfe7   :  { %v8515_v19 = vpop.f32.mrf.mxu0  ;;  %v8934_v24 = vpop.f32.mrf.mxu1 }
 0xfe9   :  { %v8518_v22 = vpop.f32.mrf.mxu0  ;;  %v8937_v2 = vpop.f32.mrf.mxu1 }
 0xfea   :  { %v21743_v48 = vadd.f32 %v8518_v22, %v21043_v1  ;;  %v21746_v23 = vadd.f32 %v8937_v2, %v21661_v31 }
 0xfeb   :  { %v8520_v42 = vpop.f32.mrf.mxu0  ;;  %v8939_v33 = vpop.f32.mrf.mxu1 }
 0xfed   :  { %v8523_v44 = vpop.f32.mrf.mxu0  ;;  %v8942_v61 = vpop.f32.mrf.mxu1 }
 0xfee   :  { %v21749_v18 = vadd.f32 %v8523_v44, %v21050_v50  ;;  %v21752_v27 = vadd.f32 %v8942_v61, %v21664_v36 }
 0xfef   :  { %v8525_v5 = vpop.f32.mrf.mxu0  ;;  %v8944_v38 = vpop.f32.mrf.mxu1 }
 0xff1   :  { %v8528_v58 = vpop.f32.mrf.mxu0  ;;  %v8947_v32 = vpop.f32.mrf.mxu1 }
 0xff2   :  { %v21755_v1 = vadd.f32 %v8528_v58, %v21057_v28  ;;  %v21758_v31 = vadd.f32 %v8947_v32, %v21667_v51 }
 0xff3   :  { %v8530_v46 = vpop.f32.mrf.mxu0  ;;  %v8949_v34 = vpop.f32.mrf.mxu1 }
 0xff5   :  { %v8952_v54 = vpop.f32.mrf.mxu1  ;;  %v21760_v21 = vpop.f32.mrf.mxu0 }
 0xff6   :  { %v21763_v50 = vadd.f32 %v8952_v54, %v21670_v55 }
 0xff7   :  { %v8954_v36 = vpop.f32.mrf.mxu1  ;;  %v21765_v4 = vpop.f32.mrf.mxu0 }
 0xff9   :  { %v8957_v63 = vpop.f32.mrf.mxu1  ;;  %v21767_v26 = vpop.f32.mrf.mxu0 }
 0xffa   :  { %v21770_v28 = vadd.f32 %v8957_v63, %v21675_v52 }
 0xffb   :  { %v8959_v9 = vpop.f32.mrf.mxu1  ;;  %v21772_v51 = vpop.f32.mrf.mxu0 }
 0xffd   :  { %v8962_v16 = vpop.f32.mrf.mxu1  ;;  %v21774_v17 = vpop.f32.mrf.mxu0 }
 0xffe   :  { %v21777_v10 = vadd.f32 %v8962_v16, %v21680_v0 }
 0xfff   :  { %v8964_v55 = vpop.f32.mrf.mxu1  ;;  %v21779_v37 = vpop.f32.mrf.mxu0 }
0x1001   :  { %v8967_v29 = vpop.f32.mrf.mxu1  ;;  %v12706_v45 = vpop.f32.mrf.mxu0 }
0x1002   :  { %v21782_v53 = vadd.f32 %v8967_v29, %v21685_v6 }
0x1003   :  { %v8969_v19 = vpop.f32.mrf.mxu1  ;;  %v9176_v52 = vpop.f32.mrf.mxu0 }
0x1005   :  { %v8972_v24 = vpop.f32.mrf.mxu1  ;;  %v12709_v22 = vpop.f32.mrf.mxu0 }
0x1006   :  { %v21785_v2 = vadd.f32 %v8972_v24, %v21690_v11 }
0x1007   :  { %v8974_v42 = vpop.f32.mrf.mxu1  ;;  %v9186_v33 = vpop.f32.mrf.mxu0 }
0x1009   :  { %v8977_v44 = vpop.f32.mrf.mxu1  ;;  %v12712_v0 = vpop.f32.mrf.mxu0 }
0x100a   :  { %v21788_v61 = vadd.f32 %v8977_v44, %v21695_v14 }
0x100b   :  { %v8979_v5 = vpop.f32.mrf.mxu1  ;;  %v9196_v38 = vpop.f32.mrf.mxu0 }
0x100d   :  { %v8982_v58 = vpop.f32.mrf.mxu1  ;;  %v12715_v32 = vpop.f32.mrf.mxu0 }
0x100e   :  { %v21791_v6 = vadd.f32 %v8982_v58, %v21701_v40 }
0x100f   :  { %v8984_v46 = vpop.f32.mrf.mxu1  ;;  %v9206_v34 = vpop.f32.mrf.mxu0 }
0x1011   :  { %v8987_v54 = vpop.f32.mrf.mxu1  ;;  %v12718_v36 = vpop.f32.mrf.mxu0 }
0x1012   :  { %v21794_v11 = vadd.f32 %v8987_v54, %v21707_v59  ;;  %9306 = vmatpush1.msra.mxu0 %v12718_v36 }
0x1013   :  { %v8989_v63 = vpop.f32.mrf.mxu1  ;;  %v9216_v9 = vpop.f32.mrf.mxu0  ;;  %9307 = vmatprep.subr.mxu0 %v22461_v12 }
0x1014   :  { %9308 = vmatpush1.msra.mxu0 %v9216_v9 }
0x1015   :  { %v8992_v14 = vpop.f32.mrf.mxu1  ;;  %v21797_v16 = vpop.f32.mrf.mxu0  ;;  %9309 = vmatprep.subr.mxu0 %v22461_v12 }
0x1016   :  { %v21801_v40 = vadd.f32 %v8992_v14, %v21713_v62  ;;  %9310 = vmatpush1.msra.mxu0 %v12715_v32 }
0x1017   :  { %v8994_v55 = vpop.f32.mrf.mxu1  ;;  %v21803_v29 = vpop.f32.mrf.mxu0  ;;  %9311 = vmatprep.subr.mxu0 %v22461_v12 }
0x1018   :  { %9312 = vmatpush1.msra.mxu0 %v9206_v34 }
0x1019   :  { %v8997_v59 = vpop.f32.mrf.mxu1  ;;  %v21806_v19 = vpop.f32.mrf.mxu0  ;;  %9313 = vmatprep.subr.mxu0 %v22461_v12 }
0x101a   :  { %v21810_v24 = vadd.f32 %v8997_v59, %v21719_v8  ;;  %9314 = vmatpush1.msra.mxu0 %v12712_v0 }
0x101b   :  { %v8999_v42 = vpop.f32.mrf.mxu1  ;;  %v21812_v44 = vpop.f32.mrf.mxu0  ;;  %9315 = vmatprep.subr.mxu0 %v22461_v12 }
0x101c   :  { %9316 = vmatpush1.msra.mxu0 %v9196_v38 }
0x101d   :  { %v9002_v62 = vpop.f32.mrf.mxu1  ;;  %v21815_v5 = vpop.f32.mrf.mxu0  ;;  %9317 = vmatprep.subr.mxu0 %v22461_v12 }
0x101e   :  { %v21819_v58 = vadd.f32 %v9002_v62, %v21725_v57  ;;  %9318 = vmatpush1.msra.mxu0 %v12709_v22  ;;  %v13457_v62 = vld [vmem:[%s22327_s5 + $0x1040] sm:$0xff] }
0x101f   :  { %v9004_v32 = vpop.f32.mrf.mxu1  ;;  %v21821_v46 = vpop.f32.mrf.mxu0  ;;  %9319 = vmatprep.subr.mxu0 %v22461_v12 }
0x1020   :  { %9320 = vmatpush1.msra.mxu0 %v9186_v33  ;;  %v13459_v32 = vld [vmem:[%s22327_s5 + $0x1050] sm:$0xff] }
0x1021   :  { %v9007_v8 = vpop.f32.mrf.mxu1  ;;  %v12730_v0 = vpop.f32.mrf.mxu0  ;;  %9321 = vmatprep.subr.mxu0 %v22461_v12 }
0x1022   :  { %v21826_v38 = vadd.f32 %v9007_v8, %v21731_v43  ;;  %9322 = vmatpush1.msra.mxu0 %v12706_v45  ;;  %v13461_v8 = vld [vmem:[%s22327_s5 + $0x1060] sm:$0xff] }
0x1023   :  { %v9009_v34 = vpop.f32.mrf.mxu1  ;;  %v9256_v54 = vpop.f32.mrf.mxu0  ;;  %9323 = vmatprep.subr.mxu0 %v22461_v12 }
0x1024   :  { %9324 = vmatpush1.msra.mxu0 %v9176_v52  ;;  %v13463_v34 = vld [vmem:[%s22327_s5 + $0x1070] sm:$0xff] }
0x1025   :  { %v9012_v57 = vpop.f32.mrf.mxu1  ;;  %v12733_v22 = vpop.f32.mrf.mxu0  ;;  %9325 = vmatprep.subr.mxu0 %v22461_v12 }
0x1026   :  { %v21831_v36 = vadd.f32 %v9012_v57, %v21737_v20  ;;  %9326 = vmatpush1.msra.mxu0 %v21774_v17  ;;  %v13465_v57 = vld [vmem:[%s22327_s5 + $0x1080] sm:$0xff] }
0x1027   :  { %v9014_v33 = vpop.f32.mrf.mxu1  ;;  %v9266_v63 = vpop.f32.mrf.mxu0  ;;  %9327 = vmatprep.subr.mxu0 %v22461_v12 }
0x1028   :  { %9328 = vmatpush1.msra.mxu0 %v21779_v37  ;;  %v13467_v33 = vld [vmem:[%s22327_s5 + $0x1090] sm:$0xff] }
0x1029   :  { %v9017_v43 = vpop.f32.mrf.mxu1  ;;  %v12736_v45 = vpop.f32.mrf.mxu0  ;;  %9329 = vmatprep.subr.mxu0 %v22461_v12 }
0x102a   :  { %v21838_v52 = vadd.f32 %v9017_v43, %v21743_v48  ;;  %9330 = vmatpush1.msra.mxu0 %v21767_v26  ;;  %v13469_v43 = vld [vmem:[%s22327_s5 + $0x10a0] sm:$0xff] }
0x102b   :  { %v9019_v9 = vpop.f32.mrf.mxu1  ;;  %v9276_v20 = vpop.f32.mrf.mxu0  ;;  %9331 = vmatprep.subr.mxu0 %v22461_v12 }
0x102c   :  { %9332 = vmatpush1.msra.mxu0 %v21772_v51  ;;  %v13471_v9 = vld [vmem:[%s22327_s5 + $0x10b0] sm:$0xff] }
0x102d   :  { %v9022_v17 = vpop.f32.mrf.mxu1  ;;  %v12739_v14 = vpop.f32.mrf.mxu0  ;;  %9333 = vmatprep.subr.mxu0 %v22461_v12 }
0x102e   :  { %v21845_v37 = vadd.f32 %v9022_v17, %v21749_v18  ;;  %9334 = vmatpush1.msra.mxu0 %v21760_v21  ;;  %v13450_v21 = vld [vmem:[%s22327_s5 + $0x1018] sm:$0xff]  ;;  %v13473_v17 = vld [vmem:[%s22327_s5 + $0x10c0] sm:$0xff] }
0x102f   :  { %v9024_v55 = vpop.f32.mrf.mxu1  ;;  %v9286_v48 = vpop.f32.mrf.mxu0  ;;  %9335 = vmatprep.subr.mxu0 %v22461_v12 }
0x1030   :  { %9336 = vmatpush1.msra.mxu0 %v21765_v4  ;;  %v13451_v4 = vld [vmem:[%s22327_s5 + $0x1010] sm:$0xff] }
0x1031   :  { %v9027_v26 = vpop.f32.mrf.mxu1  ;;  %v12742_v59 = vpop.f32.mrf.mxu0  ;;  %9337 = vmatprep.subr.mxu0 %v22461_v12  ;;  %v13475_v55 = vld [vmem:[%s22327_s5 + $0x10d0] sm:$0xff] }
0x1032   :  { %v21852_v51 = vadd.f32 %v9027_v26, %v21755_v1  ;;  %9338 = vmatpush2.msra.mxu0 %v12742_v59  ;;  %v13449_v1 = vld [vmem:[%s22327_s5 + $0x1000] sm:$0xff]  ;;  %v13478_v59 = vld [vmem:[%s22327_s5 + $0x10f8] sm:$0xff] }
0x1033   :  { %v9296_v42 = vpop.f32.mrf.mxu0  ;;  %9339 = vmatprep.subr.mxu0 %v22461_v12  ;;  %v9029_v18 = vpop.f32.mrf.mxu1  ;;  %v13477_v26 = vld [vmem:[%s22327_s5 + $0x10e0] sm:$0xff] }
0x1034   :  { %9340 = vmatpush2.msra.mxu0 %v9296_v42  ;;  %v13479_v42 = vld [vmem:[%s22327_s5 + $0x10f0] sm:$0xff]  ;;  %v13480_v18 = vld [vmem:[%s22327_s5 + $0x1108] sm:$0xff] }
0x1035   :  { %9341 = vmatprep.subr.mxu0 %v22461_v12 }
0x1036   :  { %9342 = vmatpush2.msra.mxu0 %v12739_v14  ;;  %v13474_v14 = vld [vmem:[%s22327_s5 + $0x10d8] sm:$0xff] }
0x1037   :  { %9343 = vmatprep.subr.mxu0 %v22461_v12 }
0x1038   :  { %9344 = vmatpush2.msra.mxu0 %v9286_v48  ;;  %v13476_v48 = vld [vmem:[%s22327_s5 + $0x10e8] sm:$0xff] }
0x1039   :  { %9345 = vmatprep.subr.mxu0 %v22461_v12 }
0x103a   :  { %9346 = vmatpush2.msra.mxu0 %v12736_v45  ;;  %v13470_v45 = vld [vmem:[%s22327_s5 + $0x10b8] sm:$0xff] }
0x103b   :  { %9347 = vmatprep.subr.mxu0 %v22461_v12 }
0x103c   :  { %9348 = vmatpush2.msra.mxu0 %v9276_v20  ;;  %v13472_v20 = vld [vmem:[%s22327_s5 + $0x10c8] sm:$0xff] }
0x103d   :  { %9349 = vmatprep.subr.mxu0 %v22461_v12 }
0x103e   :  { %9350 = vmatpush2.msra.mxu0 %v12733_v22  ;;  %v13466_v22 = vld [vmem:[%s22327_s5 + $0x1098] sm:$0xff] }
0x103f   :  { %9351 = vmatprep.subr.mxu0 %v22461_v12 }
0x1040   :  { %9352 = vmatpush2.msra.mxu0 %v9266_v63  ;;  %v13468_v63 = vld [vmem:[%s22327_s5 + $0x10a8] sm:$0xff] }
0x1041   :  { %9353 = vmatprep.subr.mxu0 %v22461_v12 }
0x1042   :  { %9354 = vmatpush2.msra.mxu0 %v12730_v0  ;;  %v13462_v0 = vld [vmem:[%s22327_s5 + $0x1078] sm:$0xff] }
0x1043   :  { %9355 = vmatprep.subr.mxu0 %v22461_v12 }
0x1044   :  { %9356 = vmatpush2.msra.mxu0 %v9256_v54  ;;  %v13464_v54 = vld [vmem:[%s22327_s5 + $0x1088] sm:$0xff] }
0x1045   :  { %9357 = vmatprep.subr.mxu0 %v22461_v12 }
0x1046   :  { %9358 = vmatpush2.msra.mxu0 %v21815_v5  ;;  %v13458_v5 = vld [vmem:[%s22327_s5 + $0x1058] sm:$0xff] }
0x1047   :  { %9359 = vmatprep.subr.mxu0 %v22461_v12 }
0x1048   :  { %9360 = vmatpush2.msra.mxu0 %v21821_v46  ;;  %v13460_v46 = vld [vmem:[%s22327_s5 + $0x1068] sm:$0xff] }
0x1049   :  { %9361 = vmatprep.subr.mxu0 %v22461_v12 }
0x104a   :  { %9362 = vmatpush2.msra.mxu0 %v21806_v19  ;;  %v13455_v19 = vld [vmem:[%s22327_s5 + $0x1030] sm:$0xff] }
0x104b   :  { %9363 = vmatprep.subr.mxu0 %v22461_v12 }
0x104c   :  { %9364 = vmatpush2.msra.mxu0 %v21812_v44  ;;  %v13456_v44 = vld [vmem:[%s22327_s5 + $0x1048] sm:$0xff] }
0x104d   :  { %9365 = vmatprep.subr.mxu0 %v22461_v12 }
0x104e   :  { %9366 = vmatpush2.msra.mxu0 %v21797_v16  ;;  %v13453_v16 = vld [vmem:[%s22327_s5 + $0x1020] sm:$0xff] }
0x104f   :  { %9367 = vmatprep.subr.mxu0 %v22461_v12  ;;  %v13452_v12 = vld [vmem:[%s22327_s5 + $0x1028] sm:$0xff] }
0x1050   :  { %9368 = vmatpush2.msra.mxu0 %v21803_v29  ;;  %v13454_v29 = vld [vmem:[%s22327_s5 + $0x1038] sm:$0xff] }
0x1051   :  { %9370 = vmatmul.mubr.f32.vlgmr.msra.gmra.mxu0 %v13449_v1  ;;  %v13481_v1 = vld [vmem:[%s22327_s5 + $0x1100] sm:$0xff] }
0x1052   :  { %9374 = vmatprep.mubr.f32.mxu0 %v13450_v21  ;;  %v13482_v21 = vld [vmem:[%s22327_s5 + $0x1118] sm:$0xff] }
0x1055   :  { %9375 = vmatmul.mubr.f32.gmra.mxu0 %v13451_v4  ;;  %v13483_v4 = vld [vmem:[%s22327_s5 + $0x1110] sm:$0xff] }
0x1056   :  { %9379 = vmatprep.mubr.f32.mxu0 %v13452_v12  ;;  %v13484_v12 = vld [vmem:[%s22327_s5 + $0x1128] sm:$0xff] }
0x1059   :  { %9380 = vmatmul.mubr.f32.gmra.mxu0 %v13453_v16  ;;  %v13485_v16 = vld [vmem:[%s22327_s5 + $0x1120] sm:$0xff] }
0x105a   :  { %9384 = vmatprep.mubr.f32.mxu0 %v13454_v29  ;;  %v13486_v29 = vld [vmem:[%s22327_s5 + $0x1138] sm:$0xff] }
0x105d   :  { %9385 = vmatmul.mubr.f32.gmra.mxu0 %v13455_v19  ;;  %v13487_v19 = vld [vmem:[%s22327_s5 + $0x1130] sm:$0xff] }
0x105e   :  { %9389 = vmatprep.mubr.f32.mxu0 %v13456_v44  ;;  %v13488_v44 = vld [vmem:[%s22327_s5 + $0x1148] sm:$0xff] }
0x1061   :  { %9390 = vmatmul.mubr.f32.gmra.mxu0 %v13457_v62  ;;  %v13489_v62 = vld [vmem:[%s22327_s5 + $0x1140] sm:$0xff] }
0x1062   :  { %9394 = vmatprep.mubr.f32.mxu0 %v13458_v5  ;;  %v13490_v5 = vld [vmem:[%s22327_s5 + $0x1158] sm:$0xff] }
0x1065   :  { %9395 = vmatmul.mubr.f32.gmra.mxu0 %v13459_v32  ;;  %v13491_v32 = vld [vmem:[%s22327_s5 + $0x1150] sm:$0xff] }
0x1066   :  { %9399 = vmatprep.mubr.f32.mxu0 %v13460_v46  ;;  %v13492_v46 = vld [vmem:[%s22327_s5 + $0x1168] sm:$0xff] }
0x1069   :  { %9400 = vmatmul.mubr.f32.gmra.mxu0 %v13461_v8  ;;  %v13493_v8 = vld [vmem:[%s22327_s5 + $0x1160] sm:$0xff] }
0x106a   :  { %9404 = vmatprep.mubr.f32.mxu0 %v13462_v0  ;;  %v13494_v0 = vld [vmem:[%s22327_s5 + $0x1178] sm:$0xff] }
0x106d   :  { %9405 = vmatmul.mubr.f32.gmra.mxu0 %v13463_v34  ;;  %v13495_v34 = vld [vmem:[%s22327_s5 + $0x1170] sm:$0xff] }
0x106e   :  { %9409 = vmatprep.mubr.f32.mxu0 %v13464_v54  ;;  %v13496_v54 = vld [vmem:[%s22327_s5 + $0x1188] sm:$0xff] }
0x1071   :  { %9410 = vmatmul.mubr.f32.gmra.mxu0 %v13465_v57  ;;  %v13497_v57 = vld [vmem:[%s22327_s5 + $0x1180] sm:$0xff] }
0x1072   :  { %9414 = vmatprep.mubr.f32.mxu0 %v13466_v22  ;;  %v13498_v22 = vld [vmem:[%s22327_s5 + $0x1198] sm:$0xff] }
0x1075   :  { %9415 = vmatmul.mubr.f32.gmra.mxu0 %v13467_v33  ;;  %v13499_v33 = vld [vmem:[%s22327_s5 + $0x1190] sm:$0xff] }
0x1076   :  { %9419 = vmatprep.mubr.f32.mxu0 %v13468_v63  ;;  %v13500_v63 = vld [vmem:[%s22327_s5 + $0x11a8] sm:$0xff] }
0x1079   :  { %9420 = vmatmul.mubr.f32.gmra.mxu0 %v13469_v43  ;;  %v13501_v43 = vld [vmem:[%s22327_s5 + $0x11a0] sm:$0xff] }
0x107a   :  { %9424 = vmatprep.mubr.f32.mxu0 %v13470_v45  ;;  %v13502_v45 = vld [vmem:[%s22327_s5 + $0x11b8] sm:$0xff] }
0x107d   :  { %9425 = vmatmul.mubr.f32.gmra.mxu0 %v13471_v9  ;;  %v13503_v9 = vld [vmem:[%s22327_s5 + $0x11b0] sm:$0xff] }
0x107e   :  { %9429 = vmatprep.mubr.f32.mxu0 %v13472_v20  ;;  %v13504_v20 = vld [vmem:[%s22327_s5 + $0x11c8] sm:$0xff] }
0x1081   :  { %9430 = vmatmul.mubr.f32.gmra.mxu0 %v13473_v17  ;;  %v13505_v17 = vld [vmem:[%s22327_s5 + $0x11c0] sm:$0xff] }
0x1082   :  { %9434 = vmatprep.mubr.f32.mxu0 %v13474_v14  ;;  %v13506_v14 = vld [vmem:[%s22327_s5 + $0x11d8] sm:$0xff] }
0x1085   :  { %9435 = vmatmul.mubr.f32.gmra.mxu0 %v13475_v55  ;;  %v13507_v55 = vld [vmem:[%s22327_s5 + $0x11d0] sm:$0xff] }
0x1086   :  { %9439 = vmatprep.mubr.f32.mxu0 %v13476_v48  ;;  %v13508_v48 = vld [vmem:[%s22327_s5 + $0x11e8] sm:$0xff] }
0x1089   :  { %9440 = vmatmul.mubr.f32.gmra.mxu0 %v13477_v26  ;;  %v13509_v26 = vld [vmem:[%s22327_s5 + $0x11e0] sm:$0xff] }
0x108a   :  { %9444 = vmatprep.mubr.f32.mxu0 %v13478_v59  ;;  %v13510_v59 = vld [vmem:[%s22327_s5 + $0x11f8] sm:$0xff] }
0x108d   :  { %9445 = vmatmul.mubr.f32.gmra.mxu0 %v13479_v42  ;;  %v13511_v42 = vld [vmem:[%s22327_s5 + $0x11f0] sm:$0xff] }
0x108e   :  { %9449 = vmatprep.mubr.f32.mxu0 %v13480_v18 }
0x1091   :  { %9450 = vmatmul.mubr.f32.gmra.mxu0 %v13481_v1 }
0x1092   :  { %9454 = vmatprep.mubr.f32.mxu0 %v13482_v21  ;;  %v22068_v21 = vld [vmem:[%s22330_s4] ss:$0 sm:$0xff] }
0x1095   :  { %9455 = vmatmul.mubr.f32.gmra.mxu0 %v13483_v4 }
0x1096   :  { %9459 = vmatprep.mubr.f32.mxu0 %v13484_v12  ;;  %v13512_v12 = vld [vmem:[%s22326_s0] sm:$0xff] }
0x1099   :  { %9460 = vmatmul.mubr.f32.gmra.mxu0 %v13485_v16 }
0x109a   :  { %9464 = vmatprep.mubr.f32.mxu0 %v13486_v29 }
0x109d   :  { %9465 = vmatmul.mubr.f32.gmra.mxu0 %v13487_v19 }
0x109e   :  { %9469 = vmatprep.mubr.f32.mxu0 %v13488_v44 }
0x10a1   :  { %9470 = vmatmul.mubr.f32.gmra.mxu0 %v13489_v62 }
0x10a2   :  { %9474 = vmatprep.mubr.f32.mxu0 %v13490_v5 }
0x10a5   :  { %9475 = vmatmul.mubr.f32.gmra.mxu0 %v13491_v32 }
0x10a6   :  { %9479 = vmatprep.mubr.f32.mxu0 %v13492_v46 }
0x10a9   :  { %9480 = vmatmul.mubr.f32.gmra.mxu0 %v13493_v8 }
0x10aa   :  { %9484 = vmatprep.mubr.f32.mxu0 %v13494_v0 }
0x10ad   :  { %9485 = vmatmul.mubr.f32.gmra.mxu0 %v13495_v34 }
0x10ae   :  { %9489 = vmatprep.mubr.f32.mxu0 %v13496_v54 }
0x10b1   :  { %9490 = vmatmul.mubr.f32.gmra.mxu0 %v13497_v57 }
0x10b2   :  { %9494 = vmatprep.mubr.f32.mxu0 %v13498_v22 }
0x10b5   :  { %9495 = vmatmul.mubr.f32.gmra.mxu0 %v13499_v33 }
0x10b6   :  { %9499 = vmatprep.mubr.f32.mxu0 %v13500_v63 }
0x10b9   :  { %9500 = vmatmul.mubr.f32.gmra.mxu0 %v13501_v43 }
0x10ba   :  { %9504 = vmatprep.mubr.f32.mxu0 %v13502_v45 }
0x10bd   :  { %9505 = vmatmul.mubr.f32.gmra.mxu0 %v13503_v9 }
0x10be   :  { %9509 = vmatprep.mubr.f32.mxu0 %v13504_v20 }
0x10c1   :  { %9510 = vmatmul.mubr.f32.gmra.mxu0 %v13505_v17 }
0x10c2   :  { %9514 = vmatprep.mubr.f32.mxu0 %v13506_v14 }
0x10c5   :  { %9515 = vmatmul.mubr.f32.gmra.mxu0 %v13507_v55 }
0x10c6   :  { %9519 = vmatprep.mubr.f32.mxu0 %v13508_v48 }
0x10c9   :  { %9520 = vmatmul.mubr.f32.gmra.mxu0 %v13509_v26 }
0x10ca   :  { %9524 = vmatprep.mubr.f32.mxu0 %v13510_v59 }
0x10cd   :  { %9525 = vmatmul.mubr.f32.gmra.mxu0 %v13511_v42 }
0x1111   :  { %v9371_v18 = vpop.f32.mrf.mxu0 }
0x1112   :  { %v9530_v1 = vadd.f32 %v9371_v18, %v21672_v60  ;;  %v13513_v60 = vld [vmem:[%s22326_s0 + $0x8] sm:$0xff] }
0x1113   :  { %v9373_v4 = vpop.f32.mrf.mxu0 }
0x1114   :  { %v9562_v16 = vadd.f32 %v13512_v12, %v9530_v1 }
0x1115   :  { %v9376_v29 = vpop.f32.mrf.mxu0 }
0x1116   :  { %v9601_v19 = vadd.f32 %v22068_v21, %v9562_v16  ;;  %v9531_v44 = vadd.f32 %v9376_v29, %v21677_v7  ;;  %v13514_v7 = vld [vmem:[%s22326_s0 + $0x10] sm:$0xff] }
0x1117   :  { %v9378_v62 = vpop.f32.mrf.mxu0 }
0x1118   :  { %9633 = vst [vmem:[%s22331_s6] sm:$0xff] %v9601_v19  ;;  %v9563_v5 = vadd.f32 %v13513_v60, %v9531_v44 }
0x1119   :  { %v9381_v32 = vpop.f32.mrf.mxu0 }
0x111a   :  { %v9602_v46 = vadd.f32 %v22068_v21, %v9563_v5  ;;  %v9532_v8 = vadd.f32 %v9381_v32, %v21682_v35  ;;  %v13515_v35 = vld [vmem:[%s22326_s0 + $0x18] sm:$0xff] }
0x111b   :  { %v9383_v0 = vpop.f32.mrf.mxu0 }
0x111c   :  { %9634 = vst [vmem:[%s22331_s6 + $0x8] sm:$0xff] %v9602_v46  ;;  %v9564_v34 = vadd.f32 %v13514_v7, %v9532_v8 }
0x111d   :  { %v9386_v54 = vpop.f32.mrf.mxu0 }
0x111e   :  { %v9603_v57 = vadd.f32 %v22068_v21, %v9564_v34  ;;  %v9533_v22 = vadd.f32 %v9386_v54, %v21687_v39  ;;  %v13516_v39 = vld [vmem:[%s22326_s0 + $0x20] sm:$0xff] }
0x111f   :  { %v9388_v33 = vpop.f32.mrf.mxu0 }
0x1120   :  { %9635 = vst [vmem:[%s22331_s6 + $0x10] sm:$0xff] %v9603_v57  ;;  %v9565_v63 = vadd.f32 %v13515_v35, %v9533_v22 }
0x1121   :  { %v9391_v43 = vpop.f32.mrf.mxu0 }
0x1122   :  { %v9604_v45 = vadd.f32 %v22068_v21, %v9565_v63  ;;  %v9534_v9 = vadd.f32 %v9391_v43, %v21692_v56  ;;  %v13517_v56 = vld [vmem:[%s22326_s0 + $0x28] sm:$0xff] }
0x1123   :  { %v9393_v20 = vpop.f32.mrf.mxu0 }
0x1124   :  { %9636 = vst [vmem:[%s22331_s6 + $0x18] sm:$0xff] %v9604_v45  ;;  %v9566_v17 = vadd.f32 %v13516_v39, %v9534_v9 }
0x1125   :  { %v9396_v14 = vpop.f32.mrf.mxu0 }
0x1126   :  { %v9605_v55 = vadd.f32 %v22068_v21, %v9566_v17  ;;  %v9535_v48 = vadd.f32 %v9396_v14, %v21698_v47  ;;  %v13518_v47 = vld [vmem:[%s22326_s0 + $0x30] sm:$0xff] }
0x1127   :  { %v9398_v26 = vpop.f32.mrf.mxu0 }
0x1128   :  { %9637 = vst [vmem:[%s22331_s6 + $0x20] sm:$0xff] %v9605_v55  ;;  %v9567_v59 = vadd.f32 %v13517_v56, %v9535_v48 }
0x1129   :  { %v9401_v42 = vpop.f32.mrf.mxu0 }
0x112a   :  { %v9606_v18 = vadd.f32 %v22068_v21, %v9567_v59  ;;  %v9536_v1 = vadd.f32 %v9401_v42, %v21704_v41  ;;  %v13519_v41 = vld [vmem:[%s22326_s0 + $0x38] sm:$0xff] }
0x112b   :  { %v9403_v4 = vpop.f32.mrf.mxu0 }
0x112c   :  { %9638 = vst [vmem:[%s22331_s6 + $0x28] sm:$0xff] %v9606_v18  ;;  %v9568_v12 = vadd.f32 %v13518_v47, %v9536_v1 }
0x112d   :  { %v9406_v16 = vpop.f32.mrf.mxu0 }
0x112e   :  { %v9607_v29 = vadd.f32 %v22068_v21, %v9568_v12  ;;  %v9537_v19 = vadd.f32 %v9406_v16, %v21710_v30  ;;  %v13520_v30 = vld [vmem:[%s22326_s0 + $0x40] sm:$0xff] }
0x112f   :  { %v9408_v44 = vpop.f32.mrf.mxu0 }
0x1130   :  { %9639 = vst [vmem:[%s22331_s6 + $0x30] sm:$0xff] %v9607_v29  ;;  %v9569_v62 = vadd.f32 %v13519_v41, %v9537_v19 }
0x1131   :  { %v9411_v60 = vpop.f32.mrf.mxu0 }
0x1132   :  { %v9608_v5 = vadd.f32 %v22068_v21, %v9569_v62  ;;  %v9538_v32 = vadd.f32 %v9411_v60, %v21716_v25  ;;  %v13521_v25 = vld [vmem:[%s22326_s0 + $0x48] sm:$0xff] }
0x1133   :  { %v9413_v46 = vpop.f32.mrf.mxu0 }
0x1134   :  { %9640 = vst [vmem:[%s22331_s6 + $0x38] sm:$0xff] %v9608_v5  ;;  %v9570_v8 = vadd.f32 %v13520_v30, %v9538_v32 }
0x1135   :  { %v9416_v0 = vpop.f32.mrf.mxu0 }
0x1136   :  { %v9609_v7 = vadd.f32 %v22068_v21, %v9570_v8  ;;  %v9539_v34 = vadd.f32 %v9416_v0, %v21722_v49  ;;  %v13522_v49 = vld [vmem:[%s22326_s0 + $0x50] sm:$0xff] }
0x1137   :  { %v9418_v54 = vpop.f32.mrf.mxu0 }
0x1138   :  { %9641 = vst [vmem:[%s22331_s6 + $0x40] sm:$0xff] %v9609_v7  ;;  %v9571_v57 = vadd.f32 %v13521_v25, %v9539_v34 }
0x1139   :  { %v9421_v22 = vpop.f32.mrf.mxu0 }
0x113a   :  { %v9610_v33 = vadd.f32 %v22068_v21, %v9571_v57  ;;  %v9540_v35 = vadd.f32 %v9421_v22, %v21728_v3  ;;  %v13523_v3 = vld [vmem:[%s22326_s0 + $0x58] sm:$0xff] }
0x113b   :  { %v9423_v63 = vpop.f32.mrf.mxu0 }
0x113c   :  { %9642 = vst [vmem:[%s22331_s6 + $0x48] sm:$0xff] %v9610_v33  ;;  %v9572_v43 = vadd.f32 %v13522_v49, %v9540_v35 }
0x113d   :  { %v9426_v45 = vpop.f32.mrf.mxu0 }
0x113e   :  { %v9611_v9 = vadd.f32 %v22068_v21, %v9572_v43  ;;  %v9541_v20 = vadd.f32 %v9426_v45, %v21734_v15  ;;  %v13524_v15 = vld [vmem:[%s22326_s0 + $0x60] sm:$0xff] }
0x113f   :  { %v9428_v39 = vpop.f32.mrf.mxu0 }
0x1140   :  { %9643 = vst [vmem:[%s22331_s6 + $0x50] sm:$0xff] %v9611_v9  ;;  %v9573_v17 = vadd.f32 %v13523_v3, %v9541_v20 }
0x1141   :  { %v9431_v14 = vpop.f32.mrf.mxu0 }
0x1142   :  { %v9612_v55 = vadd.f32 %v22068_v21, %v9573_v17  ;;  %v9542_v48 = vadd.f32 %v9431_v14, %v21740_v13  ;;  %v13525_v13 = vld [vmem:[%s22326_s0 + $0x68] sm:$0xff] }
0x1143   :  { %v9433_v26 = vpop.f32.mrf.mxu0 }
0x1144   :  { %9644 = vst [vmem:[%s22331_s6 + $0x58] sm:$0xff] %v9612_v55  ;;  %v9574_v56 = vadd.f32 %v13524_v15, %v9542_v48 }
0x1145   :  { %v9436_v59 = vpop.f32.mrf.mxu0 }
0x1146   :  { %v9613_v42 = vadd.f32 %v22068_v21, %v9574_v56  ;;  %v9543_v18 = vadd.f32 %v9436_v59, %v21746_v23  ;;  %v13526_v23 = vld [vmem:[%s22326_s0 + $0x70] sm:$0xff] }
0x1147   :  { %v9438_v1 = vpop.f32.mrf.mxu0 }
0x1148   :  { %9645 = vst [vmem:[%s22331_s6 + $0x60] sm:$0xff] %v9613_v42  ;;  %v9575_v4 = vadd.f32 %v13525_v13, %v9543_v18 }
0x1149   :  { %v9441_v47 = vpop.f32.mrf.mxu0 }
0x114a   :  { %v9614_v12 = vadd.f32 %v22068_v21, %v9575_v4  ;;  %v9544_v16 = vadd.f32 %v9441_v47, %v21752_v27  ;;  %v13527_v27 = vld [vmem:[%s22326_s0 + $0x78] sm:$0xff] }
0x114b   :  { %v9443_v29 = vpop.f32.mrf.mxu0 }
0x114c   :  { %9646 = vst [vmem:[%s22331_s6 + $0x68] sm:$0xff] %v9614_v12  ;;  %v9576_v19 = vadd.f32 %v13526_v23, %v9544_v16 }
0x114d   :  { %v9446_v44 = vpop.f32.mrf.mxu0 }
0x114e   :  { %v9615_v41 = vadd.f32 %v22068_v21, %v9576_v19  ;;  %v9545_v62 = vadd.f32 %v9446_v44, %v21758_v31  ;;  %v13528_v31 = vld [vmem:[%s22326_s0 + $0x80] sm:$0xff] }
0x114f   :  { %v9448_v60 = vpop.f32.mrf.mxu0 }
0x1150   :  { %9647 = vst [vmem:[%s22331_s6 + $0x70] sm:$0xff] %v9615_v41  ;;  %v9577_v5 = vadd.f32 %v13527_v27, %v9545_v62 }
0x1151   :  { %v9451_v32 = vpop.f32.mrf.mxu0 }
0x1152   :  { %v9616_v46 = vadd.f32 %v22068_v21, %v9577_v5  ;;  %v9546_v30 = vadd.f32 %v9451_v32, %v21763_v50  ;;  %v13529_v50 = vld [vmem:[%s22326_s0 + $0x88] sm:$0xff] }
0x1153   :  { %v9453_v8 = vpop.f32.mrf.mxu0 }
0x1154   :  { %9648 = vst [vmem:[%s22331_s6 + $0x78] sm:$0xff] %v9616_v46  ;;  %v9578_v0 = vadd.f32 %v13528_v31, %v9546_v30 }
0x1155   :  { %v9456_v7 = vpop.f32.mrf.mxu0 }
0x1156   :  { %v9617_v34 = vadd.f32 %v22068_v21, %v9578_v0  ;;  %v9547_v54 = vadd.f32 %v9456_v7, %v21770_v28  ;;  %v13530_v28 = vld [vmem:[%s22326_s0 + $0x90] sm:$0xff] }
0x1157   :  { %v9458_v25 = vpop.f32.mrf.mxu0 }
0x1158   :  { %9649 = vst [vmem:[%s22331_s6 + $0x80] sm:$0xff] %v9617_v34  ;;  %v9579_v57 = vadd.f32 %v13529_v50, %v9547_v54 }
0x1159   :  { %v9461_v22 = vpop.f32.mrf.mxu0 }
0x115a   :  { %v9618_v33 = vadd.f32 %v22068_v21, %v9579_v57  ;;  %v9548_v35 = vadd.f32 %v9461_v22, %v21777_v10  ;;  %v13531_v10 = vld [vmem:[%s22326_s0 + $0x98] sm:$0xff] }
0x115b   :  { %v9463_v63 = vpop.f32.mrf.mxu0 }
0x115c   :  { %9650 = vst [vmem:[%s22331_s6 + $0x88] sm:$0xff] %v9618_v33  ;;  %v9580_v49 = vadd.f32 %v13530_v28, %v9548_v35 }
0x115d   :  { %v9466_v43 = vpop.f32.mrf.mxu0 }
0x115e   :  { %v9619_v45 = vadd.f32 %v22068_v21, %v9580_v49  ;;  %v9549_v9 = vadd.f32 %v9466_v43, %v21782_v53  ;;  %v13532_v53 = vld [vmem:[%s22326_s0 + $0xa0] sm:$0xff] }
0x115f   :  { %v9468_v20 = vpop.f32.mrf.mxu0 }
0x1160   :  { %9651 = vst [vmem:[%s22331_s6 + $0x90] sm:$0xff] %v9619_v45  ;;  %v9581_v39 = vadd.f32 %v13531_v10, %v9549_v9 }
0x1161   :  { %v9471_v3 = vpop.f32.mrf.mxu0 }
0x1162   :  { %v9620_v17 = vadd.f32 %v22068_v21, %v9581_v39  ;;  %v9550_v14 = vadd.f32 %v9471_v3, %v21785_v2  ;;  %v13533_v2 = vld [vmem:[%s22326_s0 + $0xa8] sm:$0xff] }
0x1163   :  { %v9473_v55 = vpop.f32.mrf.mxu0 }
0x1164   :  { %9652 = vst [vmem:[%s22331_s6 + $0x98] sm:$0xff] %v9620_v17  ;;  %v9582_v48 = vadd.f32 %v13532_v53, %v9550_v14 }
0x1165   :  { %v9476_v26 = vpop.f32.mrf.mxu0 }
0x1166   :  { %v9621_v15 = vadd.f32 %v22068_v21, %v9582_v48  ;;  %v9551_v56 = vadd.f32 %v9476_v26, %v21788_v61  ;;  %v13534_v61 = vld [vmem:[%s22326_s0 + $0xb0] sm:$0xff] }
0x1167   :  { %v9478_v59 = vpop.f32.mrf.mxu0 }
0x1168   :  { %9653 = vst [vmem:[%s22331_s6 + $0xa0] sm:$0xff] %v9621_v15  ;;  %v9583_v42 = vadd.f32 %v13533_v2, %v9551_v56 }
0x1169   :  { %v9481_v18 = vpop.f32.mrf.mxu0 }
0x116a   :  { %v9622_v1 = vadd.f32 %v22068_v21, %v9583_v42  ;;  %v9552_v13 = vadd.f32 %v9481_v18, %v21791_v6  ;;  %v13535_v6 = vld [vmem:[%s22326_s0 + $0xb8] sm:$0xff] }
0x116b   :  { %v9483_v4 = vpop.f32.mrf.mxu0 }
0x116c   :  { %9654 = vst [vmem:[%s22331_s6 + $0xa8] sm:$0xff] %v9622_v1  ;;  %v9584_v47 = vadd.f32 %v13534_v61, %v9552_v13 }
0x116d   :  { %v9486_v12 = vpop.f32.mrf.mxu0 }
0x116e   :  { %v9623_v16 = vadd.f32 %v22068_v21, %v9584_v47  ;;  %v9553_v29 = vadd.f32 %v9486_v12, %v21794_v11  ;;  %v13536_v11 = vld [vmem:[%s22326_s0 + $0xc0] sm:$0xff] }
0x116f   :  { %v9488_v23 = vpop.f32.mrf.mxu0 }
0x1170   :  { %9655 = vst [vmem:[%s22331_s6 + $0xb0] sm:$0xff] %v9623_v16  ;;  %v9585_v19 = vadd.f32 %v13535_v6, %v9553_v29 }
0x1171   :  { %v9491_v44 = vpop.f32.mrf.mxu0 }
0x1172   :  { %v9624_v41 = vadd.f32 %v22068_v21, %v9585_v19  ;;  %v9554_v62 = vadd.f32 %v9491_v44, %v21801_v40  ;;  %v13537_v40 = vld [vmem:[%s22326_s0 + $0xc8] sm:$0xff] }
0x1173   :  { %v9493_v60 = vpop.f32.mrf.mxu0 }
0x1174   :  { %9656 = vst [vmem:[%s22331_s6 + $0xb8] sm:$0xff] %v9624_v41  ;;  %v9586_v27 = vadd.f32 %v13536_v11, %v9554_v62 }
0x1175   :  { %v9496_v5 = vpop.f32.mrf.mxu0 }
0x1176   :  { %v9625_v32 = vadd.f32 %v22068_v21, %v9586_v27  ;;  %v9555_v46 = vadd.f32 %v9496_v5, %v21810_v24  ;;  %v13538_v24 = vld [vmem:[%s22326_s0 + $0xd0] sm:$0xff] }
0x1177   :  { %v9498_v30 = vpop.f32.mrf.mxu0 }
0x1178   :  { %9657 = vst [vmem:[%s22331_s6 + $0xc0] sm:$0xff] %v9625_v32  ;;  %v9587_v8 = vadd.f32 %v13537_v40, %v9555_v46 }
0x1179   :  { %v9501_v31 = vpop.f32.mrf.mxu0 }
0x117a   :  { %v9626_v0 = vadd.f32 %v22068_v21, %v9587_v8  ;;  %v9556_v7 = vadd.f32 %v9501_v31, %v21819_v58  ;;  %v13539_v58 = vld [vmem:[%s22326_s0 + $0xd8] sm:$0xff] }
0x117b   :  { %v9503_v34 = vpop.f32.mrf.mxu0 }
0x117c   :  { %9658 = vst [vmem:[%s22331_s6 + $0xc8] sm:$0xff] %v9626_v0  ;;  %v9588_v54 = vadd.f32 %v13538_v24, %v9556_v7 }
0x117d   :  { %v9506_v25 = vpop.f32.mrf.mxu0 }
0x117e   :  { %v9627_v50 = vadd.f32 %v22068_v21, %v9588_v54  ;;  %v9557_v57 = vadd.f32 %v9506_v25, %v21826_v38  ;;  %v13540_v38 = vld [vmem:[%s22326_s0 + $0xe0] sm:$0xff] }
0x117f   :  { %v9508_v22 = vpop.f32.mrf.mxu0 }
0x1180   :  { %9659 = vst [vmem:[%s22331_s6 + $0xd0] sm:$0xff] %v9627_v50  ;;  %v9589_v33 = vadd.f32 %v13539_v58, %v9557_v57 }
0x1181   :  { %v9511_v35 = vpop.f32.mrf.mxu0 }
0x1182   :  { %v9628_v63 = vadd.f32 %v22068_v21, %v9589_v33  ;;  %v9558_v28 = vadd.f32 %v9511_v35, %v21831_v36  ;;  %v13541_v36 = vld [vmem:[%s22326_s0 + $0xe8] sm:$0xff] }
0x1183   :  { %v9513_v49 = vpop.f32.mrf.mxu0 }
0x1184   :  { %9660 = vst [vmem:[%s22331_s6 + $0xd8] sm:$0xff] %v9628_v63  ;;  %v9590_v43 = vadd.f32 %v13540_v38, %v9558_v28 }
0x1185   :  { %v9516_v45 = vpop.f32.mrf.mxu0 }
0x1186   :  { %v9629_v9 = vadd.f32 %v22068_v21, %v9590_v43  ;;  %v9559_v20 = vadd.f32 %v9516_v45, %v21838_v52  ;;  %v13542_v52 = vld [vmem:[%s22326_s0 + $0xf0] sm:$0xff] }
0x1187   :  { %v9518_v10 = vpop.f32.mrf.mxu0 }
0x1188   :  { %9661 = vst [vmem:[%s22331_s6 + $0xe0] sm:$0xff] %v9629_v9  ;;  %v9591_v39 = vadd.f32 %v13541_v36, %v9559_v20 }
0x1189   :  { %v9521_v3 = vpop.f32.mrf.mxu0 }
0x118a   :  { %v9630_v17 = vadd.f32 %v22068_v21, %v9591_v39  ;;  %v9560_v14 = vadd.f32 %v9521_v3, %v21845_v37  ;;  %v13543_v37 = vld [vmem:[%s22326_s0 + $0xf8] sm:$0xff] }
0x118b   :  { %v9523_v55 = vpop.f32.mrf.mxu0 }
0x118c   :  { %9662 = vst [vmem:[%s22331_s6 + $0xe8] sm:$0xff] %v9630_v17  ;;  %v9592_v53 = vadd.f32 %v13542_v52, %v9560_v14 }
0x118d   :  { %v9526_v48 = vpop.f32.mrf.mxu0 }
0x118e   :  { %v9631_v26 = vadd.f32 %v22068_v21, %v9592_v53  ;;  %v9561_v15 = vadd.f32 %v9526_v48, %v21852_v51 }
0x118f   :  { %v9528_v56 = vpop.f32.mrf.mxu0 }
0x1190   :  { %9663 = vst [vmem:[%s22331_s6 + $0xf0] sm:$0xff] %v9631_v26  ;;  %v9593_v59 = vadd.f32 %v13543_v37, %v9561_v15 }
0x1192   :  { %v9632_v2 = vadd.f32 %v22068_v21, %v9593_v59 }
0x1194   :  { %9664 = vst [vmem:[%s22331_s6 + $0xf8] sm:$0xff] %v9632_v2 }

</bundles_post_ra>
